<compile_context>
chip_gen: v5e
topology: v5e:2x2
jax: 0.10.0
libtpu: 0.0.40
codegen_flags: <defaults>
</compile_context>

<pallas_src>
import math

import jax
import jax.numpy as jnp
import numpy as np
from jax.experimental import pallas as pl
from jax.experimental.pallas import tpu as pltpu


# ------------------------------ static helpers ------------------------------
def _layer_plan(num_in_channels, num_conv_volumes):
    """(Ci, Co, activation) per layer -- identical to the PyTorch module."""
    plan = []
    in_c = num_in_channels
    out_c = num_in_channels // 2
    for _ in range(num_conv_volumes - 1):
        plan.append((in_c, out_c, "relu"))
        in_c = out_c
        out_c //= 2
    plan.append((in_c, 3, "tanh"))
    return plan


def _wrap(v, r):
    """Decompose v in [-1, r] as r*carry + v' with v' in [0, r)."""
    if v < 0:
        return v + r, -1
    if v >= r:
        return v - r, 1
    return v, 0


def _pack_layer(w, b, cin_p, cop):
    """Pack ConvTranspose2d weight (Ci, Co, 4, 4) + bias (Co,) into
    wpk (9, 4*cop, cin_p) / bpk (4*cop, 1).

    wpk[3*sh+sw, (2a+b)*cop + co, ci] is the tap multiplying the input sample
    at coarse shift (sh-1, sw-1) for output parity (a, b); zero when that
    parity does not use that shift.  (Same verified math as before, now
    shift-major so each shift is one contiguous LHS block.)"""
    ci, co = w.shape[0], w.shape[1]
    wpk = np.zeros((9, 4 * cop, cin_p), np.float32)
    bpk = np.zeros((4 * cop, 1), np.float32)
    for a in range(2):
        for bb in range(2):
            row0 = (2 * a + bb) * cop
            bpk[row0:row0 + co, 0] = b
            for sh in (a, a + 1):
                for sw in (bb, bb + 1):
                    kh = 3 + a - 2 * sh
                    kw = 3 + bb - 2 * sw
                    s = 3 * sh + sw
                    wpk[s, row0:row0 + co, :ci] = w[:, :, kh, kw].T
    return wpk, bpk


# ------------------------------ fused kernel ---------------------------------
def _fused_decoder_call(x_prep, mask, wpks, bpks, *, layer_cfg, Wp, NW, GPAD):
    """One pallas_call running the whole decoder.

    x_prep : (Cin, NW + 2*GPAD) f32  flat-padded input planes
    mask   : (1, NW)            f32  1.0 on real image columns, else 0.0
    wpks/bpks: per-layer packed weights (bf16) / biases (f32)
    returns (4**(L-1), 4*cop_last, NW) f32 parity-major output planes.
    """
    L = len(layer_cfg)
    TOT = NW + 2 * GPAD
    r_last = 2 ** (L - 1)
    cop_last = layer_cfg[-1][1]

    def kernel(*refs):
        x_ref, mask_ref = refs[0], refs[1]
        wb = refs[2:2 + 2 * L]
        out_ref = refs[2 + 2 * L]
        acts = refs[3 + 2 * L:]

        valid = mask_ref[...] > 0.0              # (1, NW) bool

        def load_rhs(l, r2, c2, off):
            lo = GPAD + off
            if l == 0:
                v = x_ref[:, lo:lo + NW]
            else:
                cin_p = layer_cfg[l][0]
                r_prev = 2 ** (l - 1)
                g = (r2 // 2) * r_prev + (c2 // 2)
                pa = (r2 % 2) * 2 + (c2 % 2)
                v = acts[l - 1][g, pa * cin_p:(pa + 1) * cin_p, lo:lo + NW]
            return v.astype(jnp.bfloat16)        # MXU-native operand

        for l in range(L):
            cin_p, cop, act = layer_cfg[l]
            n_cls = 2 ** l                       # input row/col classes
            w_ref, b_ref = wb[2 * l], wb[2 * l + 1]
            w_s = [w_ref[s] for s in range(9)]   # 9 x (4*cop, cin_p) bf16
            bias = b_ref[...]                    # (4*cop, 1) f32
            for r in range(n_cls):
                for c in range(n_cls):
                    acc = None
                    for sh in range(3):
                        for sw in range(3):
                            r2, di = _wrap(r + sh - 1, n_cls)
                            c2, dj = _wrap(c + sw - 1, n_cls)
                            rhs = load_rhs(l, r2, c2, di * Wp + dj)
                            part = jnp.dot(w_s[3 * sh + sw], rhs,
                                           preferred_element_type=jnp.float32)
                            acc = part if acc is None else acc + part
                    acc = acc + bias
                    acc = jnp.maximum(acc, 0.0) if act == "relu" else jnp.tanh(acc)
                    acc = jnp.where(valid, acc, 0.0)   # zero halo/margins
                    g = r * n_cls + c
                    if l < L - 1:
                        acts[l][g, :, GPAD:GPAD + NW] = acc
                    else:
                        out_ref[g, :, :] = acc

    in_specs = [
        pl.BlockSpec(x_prep.shape, lambda i: (0, 0)),
        pl.BlockSpec(mask.shape, lambda i: (0, 0)),
    ]
    args = [x_prep, mask]
    for wpk, bpk in zip(wpks, bpks):
        in_specs.append(pl.BlockSpec(wpk.shape, lambda i: (0, 0, 0)))
        in_specs.append(pl.BlockSpec(bpk.shape, lambda i: (0, 0)))
        args += [wpk, bpk]

    out_shape = jax.ShapeDtypeStruct((r_last * r_last, 4 * cop_last, NW),
                                     jnp.float32)
    scratch_shapes = [
        pltpu.VMEM((4 ** l, 4 * layer_cfg[l][1], TOT), jnp.float32)
        for l in range(L - 1)
    ]

    return pl.pallas_call(
        kernel,
        out_shape=out_shape,
        grid_spec=pltpu.PrefetchScalarGridSpec(
            num_scalar_prefetch=0,
            grid=(1,),
            in_specs=in_specs,
            out_specs=pl.BlockSpec(out_shape.shape, lambda i: (0, 0, 0)),
            scratch_shapes=scratch_shapes,
        ),
        compiler_params=pltpu.CompilerParams(
            dimension_semantics=("arbitrary",)),
    )(*args)


# --------------------------- XLA pre / post glue -----------------------------
def _prep_input(x, SEG, PAD, GPAD):
    """(N, C, H, W) f32 -> (C, N*SEG + 2*GPAD) flat-padded planes.  The zero
    1-pixel halo, per-image margins and global guards are all built here
    (once, in XLA); the kernel never pads anything."""
    N, C, H, W = x.shape
    Hp, Wp = H + 2, W + 2
    xp = jnp.pad(x, ((0, 0), (0, 0), (1, 1), (1, 1)))          # (N,C,Hp,Wp)
    xf = xp.reshape(N, C, Hp * Wp)
    xf = jnp.pad(xf, ((0, 0), (0, 0), (PAD, SEG - PAD - Hp * Wp)))
    xf = jnp.transpose(xf, (1, 0, 2)).reshape(C, N * SEG)      # batch on lanes
    return jnp.pad(xf, ((0, 0), (GPAD, GPAD))).astype(jnp.float32)


def _make_mask(N, H, W, SEG, PAD):
    """(1, N*SEG) f32 -- 1.0 for columns holding real image pixels."""
    Hp, Wp = H + 2, W + 2
    m = np.zeros((Hp, Wp), np.float32)
    m[1:1 + H, 1:1 + W] = 1.0
    seg = np.zeros((SEG,), np.float32)
    seg[PAD:PAD + Hp * Wp] = m.reshape(-1)
    return np.tile(seg, N)[None, :]


def _post_output(out, N, H, W, SEG, PAD, r_last, cop_last):
    """Single XLA de-interleave of the parity-major kernel output to NCHW --
    the only layout shuffle in the whole forward pass."""
    Hp, Wp = H + 2, W + 2
    o = out.reshape(r_last, r_last, 2, 2, cop_last, N, SEG)
    o = o[..., PAD:PAD + Hp * Wp]
    o = o.reshape(r_last, r_last, 2, 2, cop_last, N, Hp, Wp)
    o = o[..., 1:1 + H, 1:1 + W]                     # strip halo
    o = jnp.transpose(o, (5, 4, 6, 0, 2, 7, 1, 3))   # (N, C, H, R, 2, W, R, 2)
    o = o.reshape(N, cop_last, H * 2 * r_last, W * 2 * r_last)
    return o[:, :3]                                   # strip padded channels


# --------------------------------- wrapper -----------------------------------
class PallasDecoder:
    """Pallas port of the PyTorch Decoder (kernel=4, stride=2, padding=1)."""

    def __init__(self, num_in_channels, num_conv_volumes=3, kernel_size=4,
                 conv_stride=2, conv_padding=1, key=None):
        assert (kernel_size, conv_stride, conv_padding) == (4, 2, 1), \
            "the parity/shift decomposition assumes k=4, s=2, p=1"
        self._num_in_channels = num_in_channels
        if key is None:
            key = jax.random.PRNGKey(0)

        self.params = []      # raw (w, b, act) -- used by the numpy reference
        self._layer_cfg = []  # (padded Cin, padded Cout, act) per layer
        self._wpk, self._bpk = [], []
        cin_p = num_in_channels
        for ci, co, act in _layer_plan(num_in_channels, num_conv_volumes):
            key, kw_key, kb_key = jax.random.split(key, 3)
            bound = 1.0 / math.sqrt(ci * 4 * 4)
            w = jax.random.uniform(kw_key, (ci, co, 4, 4), jnp.float32,
                                   -bound, bound)
            b = jax.random.uniform(kb_key, (co,), jnp.float32, -bound, bound)
            self.params.append((w, b, act))

            cop = max(2, 2 * ((co + 1) // 2))   # pad Co so 4*cop % 8 == 0
            wpk, bpk = _pack_layer(np.asarray(w), np.asarray(b), cin_p, cop)
            self._wpk.append(jnp.asarray(wpk, jnp.bfloat16))
            self._bpk.append(jnp.asarray(bpk, jnp.float32))
            self._layer_cfg.append((cin_p, cop, act))
            cin_p = cop
        self._layer_cfg = tuple(self._layer_cfg)
        self._fwd = jax.jit(self._forward)

    def _forward(self, x):
        N, _, H, W = x.shape
        Hp, Wp = H + 2, W + 2
        GPAD = 128                                        # aligned global guard
        assert Wp + 1 <= GPAD, "spatial size too large for this guard"
        SEG = ((Hp * Wp + 2 * (Wp + 1) + 127) // 128) * 128   # cols per image
        PAD = (SEG - Hp * Wp) // 2                        # >= Wp + 1 by constr.
        L = len(self._layer_cfg)
        r_last = 2 ** (L - 1)
        cop_last = self._layer_cfg[-1][1]

        x_prep = _prep_input(x, SEG, PAD, GPAD)
        mask = jnp.asarray(_make_mask(N, H, W, SEG, PAD))
        out = _fused_decoder_call(
            x_prep, mask, self._wpk, self._bpk,
            layer_cfg=self._layer_cfg, Wp=Wp, NW=N * SEG, GPAD=GPAD)
        return _post_output(out, N, H, W, SEG, PAD, r_last, cop_last)

    def __call__(self, x_nchw):
        assert x_nchw.shape[1] == self._num_in_channels
        return self._fwd(x_nchw)


# ----------------------------- reference (numpy) -----------------------------
def _ref_conv_transpose(x, w, b):
    """Direct-definition ConvTranspose2d(k=4, s=2, p=1). x:(N,Ci,H,W), w:(Ci,Co,4,4)."""
    N, Ci, H, W = x.shape
    Co = w.shape[1]
    full = np.zeros((N, Co, 2 * H + 2, 2 * W + 2), np.float32)
    for ih in range(H):
        for iw in range(W):
            contrib = np.einsum("nc,cokl->nokl", x[:, :, ih, iw], w)
            full[:, :, 2 * ih:2 * ih + 4, 2 * iw:2 * iw + 4] += contrib
    return full[:, :, 1:1 + 2 * H, 1:1 + 2 * W] + b[None, :, None, None]


def _ref_decoder(x_nchw, params):
    x = np.asarray(x_nchw, np.float32)
    for w, b, act in params:
        x = _ref_conv_transpose(x, np.asarray(w), np.asarray(b))
        x = np.maximum(x, 0.0) if act == "relu" else np.tanh(x)
    return x


if __name__ == "__main__":
    key = jax.random.PRNGKey(0)
    k_in, k_model = jax.random.split(key)

    # batch=2, num_in_channels=16, spatial 8x8 -> output (2, 3, 64, 64)
    N, C, H, W = 2, 16, 8, 8
    x = jax.random.normal(k_in, (N, C, H, W), jnp.float32)

    decoder = PallasDecoder(num_in_channels=C, num_conv_volumes=3, key=k_model)
    y = decoder(x)
    y = jax.block_until_ready(y)

    assert y.shape == (N, 3, 2 ** 3 * H, 2 ** 3 * W), y.shape
    assert bool(jnp.all(jnp.isfinite(y)))

    # Check against a direct-definition numpy reference.  Tolerance reflects
    # bf16 matmul operands (accumulation, bias and activations are f32).
    y_ref = _ref_decoder(np.asarray(x), decoder.params)
    np.testing.assert_allclose(np.asarray(y, np.float32), y_ref,
                               rtol=5e-2, atol=8e-3)

    print("KERNEL_OK")
</pallas_src>

<mosaic_0001>
module attributes {stable_mosaic.version = 11 : i64} {
  func.func @kernel(%arg0: i32, %arg1: memref<16x512xf32, #tpu.memory_space<vmem>>, %arg2: memref<1x256xf32, #tpu.memory_space<vmem>>, %arg3: memref<9x32x16xbf16, #tpu.memory_space<vmem>>, %arg4: memref<32x1xf32, #tpu.memory_space<vmem>>, %arg5: memref<9x16x8xbf16, #tpu.memory_space<vmem>>, %arg6: memref<16x1xf32, #tpu.memory_space<vmem>>, %arg7: memref<9x16x4xbf16, #tpu.memory_space<vmem>>, %arg8: memref<16x1xf32, #tpu.memory_space<vmem>>, %arg9: memref<16x16x256xf32, #tpu.memory_space<vmem>>, %arg10: memref<1x32x512xf32, #tpu.memory_space<vmem>>, %arg11: memref<4x16x512xf32, #tpu.memory_space<vmem>>) attributes {dimension_semantics = [#tpu.dimension_semantics<arbitrary>], iteration_bounds = array<i64: 1>, scalar_prefetch = 0 : i64, scratch_operands = 2 : i64, tpu.core_type = #tpu.core_type<tc>, window_params = [{pipeline_mode = #tpu.pipeline_mode<synchronous>, transform_indices = @transform_0, window_bounds = array<i64: 16, 512>}, {pipeline_mode = #tpu.pipeline_mode<synchronous>, transform_indices = @transform_1, window_bounds = array<i64: 1, 256>}, {pipeline_mode = #tpu.pipeline_mode<synchronous>, transform_indices = @transform_2, window_bounds = array<i64: 9, 32, 16>}, {pipeline_mode = #tpu.pipeline_mode<synchronous>, transform_indices = @transform_3, window_bounds = array<i64: 32, 1>}, {pipeline_mode = #tpu.pipeline_mode<synchronous>, transform_indices = @transform_4, window_bounds = array<i64: 9, 16, 8>}, {pipeline_mode = #tpu.pipeline_mode<synchronous>, transform_indices = @transform_5, window_bounds = array<i64: 16, 1>}, {pipeline_mode = #tpu.pipeline_mode<synchronous>, transform_indices = @transform_6, window_bounds = array<i64: 9, 16, 4>}, {pipeline_mode = #tpu.pipeline_mode<synchronous>, transform_indices = @transform_7, window_bounds = array<i64: 16, 1>}, {pipeline_mode = #tpu.pipeline_mode<synchronous>, transform_indices = @transform_8, window_bounds = array<i64: 16, 16, 256>}]} {
    %c0 = arith.constant 0 : index
    %c0_0 = arith.constant 0 : index
    %0 = vector.load %arg2[%c0, %c0_0] : memref<1x256xf32, #tpu.memory_space<vmem>>, vector<1x256xf32>
    %cst = arith.constant 0.000000e+00 : f32
    %1 = vector.broadcast %cst : f32 to vector<1x256xf32>
    %2 = arith.cmpf ogt, %0, %1 : vector<1x256xf32>
    %c0_1 = arith.constant 0 : index
    %c0_2 = arith.constant 0 : index
    %c0_3 = arith.constant 0 : index
    %3 = vector.load %arg3[%c0_1, %c0_2, %c0_3] : memref<9x32x16xbf16, #tpu.memory_space<vmem>>, vector<1x32x16xbf16>
    %4 = vector.shape_cast %3 : vector<1x32x16xbf16> to vector<32x16xbf16>
    %c1 = arith.constant 1 : index
    %c0_4 = arith.constant 0 : index
    %c0_5 = arith.constant 0 : index
    %5 = vector.load %arg3[%c1, %c0_4, %c0_5] : memref<9x32x16xbf16, #tpu.memory_space<vmem>>, vector<1x32x16xbf16>
    %6 = vector.shape_cast %5 : vector<1x32x16xbf16> to vector<32x16xbf16>
    %c2 = arith.constant 2 : index
    %c0_6 = arith.constant 0 : index
    %c0_7 = arith.constant 0 : index
    %7 = vector.load %arg3[%c2, %c0_6, %c0_7] : memref<9x32x16xbf16, #tpu.memory_space<vmem>>, vector<1x32x16xbf16>
    %8 = vector.shape_cast %7 : vector<1x32x16xbf16> to vector<32x16xbf16>
    %c3 = arith.constant 3 : index
    %c0_8 = arith.constant 0 : index
    %c0_9 = arith.constant 0 : index
    %9 = vector.load %arg3[%c3, %c0_8, %c0_9] : memref<9x32x16xbf16, #tpu.memory_space<vmem>>, vector<1x32x16xbf16>
    %10 = vector.shape_cast %9 : vector<1x32x16xbf16> to vector<32x16xbf16>
    %c4 = arith.constant 4 : index
    %c0_10 = arith.constant 0 : index
    %c0_11 = arith.constant 0 : index
    %11 = vector.load %arg3[%c4, %c0_10, %c0_11] : memref<9x32x16xbf16, #tpu.memory_space<vmem>>, vector<1x32x16xbf16>
    %12 = vector.shape_cast %11 : vector<1x32x16xbf16> to vector<32x16xbf16>
    %c5 = arith.constant 5 : index
    %c0_12 = arith.constant 0 : index
    %c0_13 = arith.constant 0 : index
    %13 = vector.load %arg3[%c5, %c0_12, %c0_13] : memref<9x32x16xbf16, #tpu.memory_space<vmem>>, vector<1x32x16xbf16>
    %14 = vector.shape_cast %13 : vector<1x32x16xbf16> to vector<32x16xbf16>
    %c6 = arith.constant 6 : index
    %c0_14 = arith.constant 0 : index
    %c0_15 = arith.constant 0 : index
    %15 = vector.load %arg3[%c6, %c0_14, %c0_15] : memref<9x32x16xbf16, #tpu.memory_space<vmem>>, vector<1x32x16xbf16>
    %16 = vector.shape_cast %15 : vector<1x32x16xbf16> to vector<32x16xbf16>
    %c7 = arith.constant 7 : index
    %c0_16 = arith.constant 0 : index
    %c0_17 = arith.constant 0 : index
    %17 = vector.load %arg3[%c7, %c0_16, %c0_17] : memref<9x32x16xbf16, #tpu.memory_space<vmem>>, vector<1x32x16xbf16>
    %18 = vector.shape_cast %17 : vector<1x32x16xbf16> to vector<32x16xbf16>
    %c8 = arith.constant 8 : index
    %c0_18 = arith.constant 0 : index
    %c0_19 = arith.constant 0 : index
    %19 = vector.load %arg3[%c8, %c0_18, %c0_19] : memref<9x32x16xbf16, #tpu.memory_space<vmem>>, vector<1x32x16xbf16>
    %20 = vector.shape_cast %19 : vector<1x32x16xbf16> to vector<32x16xbf16>
    %c0_20 = arith.constant 0 : index
    %c0_21 = arith.constant 0 : index
    %21 = vector.load %arg4[%c0_20, %c0_21] : memref<32x1xf32, #tpu.memory_space<vmem>>, vector<32x1xf32>
    %c0_22 = arith.constant 0 : index
    %c117 = arith.constant 117 : index
    %22 = vector.load %arg1[%c0_22, %c117] : memref<16x512xf32, #tpu.memory_space<vmem>>, vector<16x256xf32>
    %23 = arith.truncf %22 : vector<16x256xf32> to vector<16x256xbf16>
    %cst_23 = arith.constant dense<0.000000e+00> : vector<32x256xf32>
    %24 = tpu.matmul %4, %23, %cst_23 {dimension_numbers = #tpu.dot_dimension_numbers<[1], [0], [0], [1], [0, 0, 1, 1], [], []>} : vector<32x16xbf16>, vector<16x256xbf16>, vector<32x256xf32> -> vector<32x256xf32>
    %c0_24 = arith.constant 0 : index
    %c118 = arith.constant 118 : index
    %25 = vector.load %arg1[%c0_24, %c118] : memref<16x512xf32, #tpu.memory_space<vmem>>, vector<16x256xf32>
    %26 = arith.truncf %25 : vector<16x256xf32> to vector<16x256xbf16>
    %cst_25 = arith.constant dense<0.000000e+00> : vector<32x256xf32>
    %27 = tpu.matmul %6, %26, %cst_25 {dimension_numbers = #tpu.dot_dimension_numbers<[1], [0], [0], [1], [0, 0, 1, 1], [], []>} : vector<32x16xbf16>, vector<16x256xbf16>, vector<32x256xf32> -> vector<32x256xf32>
    %28 = arith.addf %24, %27 : vector<32x256xf32>
    %c0_26 = arith.constant 0 : index
    %c119 = arith.constant 119 : index
    %29 = vector.load %arg1[%c0_26, %c119] : memref<16x512xf32, #tpu.memory_space<vmem>>, vector<16x256xf32>
    %30 = arith.truncf %29 : vector<16x256xf32> to vector<16x256xbf16>
    %cst_27 = arith.constant dense<0.000000e+00> : vector<32x256xf32>
    %31 = tpu.matmul %8, %30, %cst_27 {dimension_numbers = #tpu.dot_dimension_numbers<[1], [0], [0], [1], [0, 0, 1, 1], [], []>} : vector<32x16xbf16>, vector<16x256xbf16>, vector<32x256xf32> -> vector<32x256xf32>
    %32 = arith.addf %28, %31 : vector<32x256xf32>
    %c0_28 = arith.constant 0 : index
    %c127 = arith.constant 127 : index
    %33 = vector.load %arg1[%c0_28, %c127] : memref<16x512xf32, #tpu.memory_space<vmem>>, vector<16x256xf32>
    %34 = arith.truncf %33 : vector<16x256xf32> to vector<16x256xbf16>
    %cst_29 = arith.constant dense<0.000000e+00> : vector<32x256xf32>
    %35 = tpu.matmul %10, %34, %cst_29 {dimension_numbers = #tpu.dot_dimension_numbers<[1], [0], [0], [1], [0, 0, 1, 1], [], []>} : vector<32x16xbf16>, vector<16x256xbf16>, vector<32x256xf32> -> vector<32x256xf32>
    %36 = arith.addf %32, %35 : vector<32x256xf32>
    %c0_30 = arith.constant 0 : index
    %c128 = arith.constant 128 : index
    %37 = vector.load %arg1[%c0_30, %c128] : memref<16x512xf32, #tpu.memory_space<vmem>>, vector<16x256xf32>
    %38 = arith.truncf %37 : vector<16x256xf32> to vector<16x256xbf16>
    %cst_31 = arith.constant dense<0.000000e+00> : vector<32x256xf32>
    %39 = tpu.matmul %12, %38, %cst_31 {dimension_numbers = #tpu.dot_dimension_numbers<[1], [0], [0], [1], [0, 0, 1, 1], [], []>} : vector<32x16xbf16>, vector<16x256xbf16>, vector<32x256xf32> -> vector<32x256xf32>
    %40 = arith.addf %36, %39 : vector<32x256xf32>
    %c0_32 = arith.constant 0 : index
    %c129 = arith.constant 129 : index
    %41 = vector.load %arg1[%c0_32, %c129] : memref<16x512xf32, #tpu.memory_space<vmem>>, vector<16x256xf32>
    %42 = arith.truncf %41 : vector<16x256xf32> to vector<16x256xbf16>
    %cst_33 = arith.constant dense<0.000000e+00> : vector<32x256xf32>
    %43 = tpu.matmul %14, %42, %cst_33 {dimension_numbers = #tpu.dot_dimension_numbers<[1], [0], [0], [1], [0, 0, 1, 1], [], []>} : vector<32x16xbf16>, vector<16x256xbf16>, vector<32x256xf32> -> vector<32x256xf32>
    %44 = arith.addf %40, %43 : vector<32x256xf32>
    %c0_34 = arith.constant 0 : index
    %c137 = arith.constant 137 : index
    %45 = vector.load %arg1[%c0_34, %c137] : memref<16x512xf32, #tpu.memory_space<vmem>>, vector<16x256xf32>
    %46 = arith.truncf %45 : vector<16x256xf32> to vector<16x256xbf16>
    %cst_35 = arith.constant dense<0.000000e+00> : vector<32x256xf32>
    %47 = tpu.matmul %16, %46, %cst_35 {dimension_numbers = #tpu.dot_dimension_numbers<[1], [0], [0], [1], [0, 0, 1, 1], [], []>} : vector<32x16xbf16>, vector<16x256xbf16>, vector<32x256xf32> -> vector<32x256xf32>
    %48 = arith.addf %44, %47 : vector<32x256xf32>
    %c0_36 = arith.constant 0 : index
    %c138 = arith.constant 138 : index
    %49 = vector.load %arg1[%c0_36, %c138] : memref<16x512xf32, #tpu.memory_space<vmem>>, vector<16x256xf32>
    %50 = arith.truncf %49 : vector<16x256xf32> to vector<16x256xbf16>
    %cst_37 = arith.constant dense<0.000000e+00> : vector<32x256xf32>
    %51 = tpu.matmul %18, %50, %cst_37 {dimension_numbers = #tpu.dot_dimension_numbers<[1], [0], [0], [1], [0, 0, 1, 1], [], []>} : vector<32x16xbf16>, vector<16x256xbf16>, vector<32x256xf32> -> vector<32x256xf32>
    %52 = arith.addf %48, %51 : vector<32x256xf32>
    %c0_38 = arith.constant 0 : index
    %c139 = arith.constant 139 : index
    %53 = vector.load %arg1[%c0_38, %c139] : memref<16x512xf32, #tpu.memory_space<vmem>>, vector<16x256xf32>
    %54 = arith.truncf %53 : vector<16x256xf32> to vector<16x256xbf16>
    %cst_39 = arith.constant dense<0.000000e+00> : vector<32x256xf32>
    %55 = tpu.matmul %20, %54, %cst_39 {dimension_numbers = #tpu.dot_dimension_numbers<[1], [0], [0], [1], [0, 0, 1, 1], [], []>} : vector<32x16xbf16>, vector<16x256xbf16>, vector<32x256xf32> -> vector<32x256xf32>
    %56 = arith.addf %52, %55 : vector<32x256xf32>
    %57 = vector.broadcast %21 : vector<32x1xf32> to vector<32x256xf32>
    %58 = arith.addf %56, %57 : vector<32x256xf32>
    %cst_40 = arith.constant 0.000000e+00 : f32
    %59 = vector.broadcast %cst_40 : f32 to vector<32x256xf32>
    %60 = arith.maximumf %58, %59 : vector<32x256xf32>
    %cst_41 = arith.constant 0.000000e+00 : f32
    %61 = vector.shape_cast %2 : vector<1x256xi1> to vector<1x256xi1>
    %62 = vector.broadcast %61 : vector<1x256xi1> to vector<32x256xi1>
    %63 = vector.broadcast %cst_41 : f32 to vector<32x256xf32>
    %64 = arith.select %62, %60, %63 : vector<32x256xi1>, vector<32x256xf32>
    %c0_42 = arith.constant 0 : index
    %c0_43 = arith.constant 0 : index
    %c128_44 = arith.constant 128 : index
    %65 = vector.load %arg10[%c0_42, %c0_43, %c128_44] : memref<1x32x512xf32, #tpu.memory_space<vmem>>, vector<1x32x256xf32>
    %66 = vector.shape_cast %65 : vector<1x32x256xf32> to vector<32x256xf32>
    %67 = vector.shape_cast %64 : vector<32x256xf32> to vector<1x32x256xf32>
    tpu.vector_store %arg10[%c0_42, %c0_43, %c128_44], %67 {strides = array<i32>} : memref<1x32x512xf32, #tpu.memory_space<vmem>>, vector<1x32x256xf32>,
    %c0_45 = arith.constant 0 : index
    %c0_46 = arith.constant 0 : index
    %c0_47 = arith.constant 0 : index
    %68 = vector.load %arg5[%c0_45, %c0_46, %c0_47] : memref<9x16x8xbf16, #tpu.memory_space<vmem>>, vector<1x16x8xbf16>
    %69 = vector.shape_cast %68 : vector<1x16x8xbf16> to vector<16x8xbf16>
    %c1_48 = arith.constant 1 : index
    %c0_49 = arith.constant 0 : index
    %c0_50 = arith.constant 0 : index
    %70 = vector.load %arg5[%c1_48, %c0_49, %c0_50] : memref<9x16x8xbf16, #tpu.memory_space<vmem>>, vector<1x16x8xbf16>
    %71 = vector.shape_cast %70 : vector<1x16x8xbf16> to vector<16x8xbf16>
    %c2_51 = arith.constant 2 : index
    %c0_52 = arith.constant 0 : index
    %c0_53 = arith.constant 0 : index
    %72 = vector.load %arg5[%c2_51, %c0_52, %c0_53] : memref<9x16x8xbf16, #tpu.memory_space<vmem>>, vector<1x16x8xbf16>
    %73 = vector.shape_cast %72 : vector<1x16x8xbf16> to vector<16x8xbf16>
    %c3_54 = arith.constant 3 : index
    %c0_55 = arith.constant 0 : index
    %c0_56 = arith.constant 0 : index
    %74 = vector.load %arg5[%c3_54, %c0_55, %c0_56] : memref<9x16x8xbf16, #tpu.memory_space<vmem>>, vector<1x16x8xbf16>
    %75 = vector.shape_cast %74 : vector<1x16x8xbf16> to vector<16x8xbf16>
    %c4_57 = arith.constant 4 : index
    %c0_58 = arith.constant 0 : index
    %c0_59 = arith.constant 0 : index
    %76 = vector.load %arg5[%c4_57, %c0_58, %c0_59] : memref<9x16x8xbf16, #tpu.memory_space<vmem>>, vector<1x16x8xbf16>
    %77 = vector.shape_cast %76 : vector<1x16x8xbf16> to vector<16x8xbf16>
    %c5_60 = arith.constant 5 : index
    %c0_61 = arith.constant 0 : index
    %c0_62 = arith.constant 0 : index
    %78 = vector.load %arg5[%c5_60, %c0_61, %c0_62] : memref<9x16x8xbf16, #tpu.memory_space<vmem>>, vector<1x16x8xbf16>
    %79 = vector.shape_cast %78 : vector<1x16x8xbf16> to vector<16x8xbf16>
    %c6_63 = arith.constant 6 : index
    %c0_64 = arith.constant 0 : index
    %c0_65 = arith.constant 0 : index
    %80 = vector.load %arg5[%c6_63, %c0_64, %c0_65] : memref<9x16x8xbf16, #tpu.memory_space<vmem>>, vector<1x16x8xbf16>
    %81 = vector.shape_cast %80 : vector<1x16x8xbf16> to vector<16x8xbf16>
    %c7_66 = arith.constant 7 : index
    %c0_67 = arith.constant 0 : index
    %c0_68 = arith.constant 0 : index
    %82 = vector.load %arg5[%c7_66, %c0_67, %c0_68] : memref<9x16x8xbf16, #tpu.memory_space<vmem>>, vector<1x16x8xbf16>
    %83 = vector.shape_cast %82 : vector<1x16x8xbf16> to vector<16x8xbf16>
    %c8_69 = arith.constant 8 : index
    %c0_70 = arith.constant 0 : index
    %c0_71 = arith.constant 0 : index
    %84 = vector.load %arg5[%c8_69, %c0_70, %c0_71] : memref<9x16x8xbf16, #tpu.memory_space<vmem>>, vector<1x16x8xbf16>
    %85 = vector.shape_cast %84 : vector<1x16x8xbf16> to vector<16x8xbf16>
    %c0_72 = arith.constant 0 : index
    %c0_73 = arith.constant 0 : index
    %86 = vector.load %arg6[%c0_72, %c0_73] : memref<16x1xf32, #tpu.memory_space<vmem>>, vector<16x1xf32>
    %c0_74 = arith.constant 0 : index
    %c24 = arith.constant 24 : index
    %c117_75 = arith.constant 117 : index
    %87 = vector.load %arg10[%c0_74, %c24, %c117_75] : memref<1x32x512xf32, #tpu.memory_space<vmem>>, vector<1x8x256xf32>
    %88 = vector.shape_cast %87 : vector<1x8x256xf32> to vector<8x256xf32>
    %89 = arith.truncf %88 : vector<8x256xf32> to vector<8x256xbf16>
    %cst_76 = arith.constant dense<0.000000e+00> : vector<16x256xf32>
    %90 = tpu.matmul %69, %89, %cst_76 {dimension_numbers = #tpu.dot_dimension_numbers<[1], [0], [0], [1], [0, 0, 1, 1], [], []>} : vector<16x8xbf16>, vector<8x256xbf16>, vector<16x256xf32> -> vector<16x256xf32>
    %c0_77 = arith.constant 0 : index
    %c16 = arith.constant 16 : index
    %c118_78 = arith.constant 118 : index
    %91 = vector.load %arg10[%c0_77, %c16, %c118_78] : memref<1x32x512xf32, #tpu.memory_space<vmem>>, vector<1x8x256xf32>
    %92 = vector.shape_cast %91 : vector<1x8x256xf32> to vector<8x256xf32>
    %93 = arith.truncf %92 : vector<8x256xf32> to vector<8x256xbf16>
    %cst_79 = arith.constant dense<0.000000e+00> : vector<16x256xf32>
    %94 = tpu.matmul %71, %93, %cst_79 {dimension_numbers = #tpu.dot_dimension_numbers<[1], [0], [0], [1], [0, 0, 1, 1], [], []>} : vector<16x8xbf16>, vector<8x256xbf16>, vector<16x256xf32> -> vector<16x256xf32>
    %95 = arith.addf %90, %94 : vector<16x256xf32>
    %c0_80 = arith.constant 0 : index
    %c24_81 = arith.constant 24 : index
    %c118_82 = arith.constant 118 : index
    %96 = vector.load %arg10[%c0_80, %c24_81, %c118_82] : memref<1x32x512xf32, #tpu.memory_space<vmem>>, vector<1x8x256xf32>
    %97 = vector.shape_cast %96 : vector<1x8x256xf32> to vector<8x256xf32>
    %98 = arith.truncf %97 : vector<8x256xf32> to vector<8x256xbf16>
    %cst_83 = arith.constant dense<0.000000e+00> : vector<16x256xf32>
    %99 = tpu.matmul %73, %98, %cst_83 {dimension_numbers = #tpu.dot_dimension_numbers<[1], [0], [0], [1], [0, 0, 1, 1], [], []>} : vector<16x8xbf16>, vector<8x256xbf16>, vector<16x256xf32> -> vector<16x256xf32>
    %100 = arith.addf %95, %99 : vector<16x256xf32>
    %c0_84 = arith.constant 0 : index
    %c8_85 = arith.constant 8 : index
    %c127_86 = arith.constant 127 : index
    %101 = vector.load %arg10[%c0_84, %c8_85, %c127_86] : memref<1x32x512xf32, #tpu.memory_space<vmem>>, vector<1x8x256xf32>
    %102 = vector.shape_cast %101 : vector<1x8x256xf32> to vector<8x256xf32>
    %103 = arith.truncf %102 : vector<8x256xf32> to vector<8x256xbf16>
    %cst_87 = arith.constant dense<0.000000e+00> : vector<16x256xf32>
    %104 = tpu.matmul %75, %103, %cst_87 {dimension_numbers = #tpu.dot_dimension_numbers<[1], [0], [0], [1], [0, 0, 1, 1], [], []>} : vector<16x8xbf16>, vector<8x256xbf16>, vector<16x256xf32> -> vector<16x256xf32>
    %105 = arith.addf %100, %104 : vector<16x256xf32>
    %c0_88 = arith.constant 0 : index
    %c0_89 = arith.constant 0 : index
    %c128_90 = arith.constant 128 : index
    %106 = vector.load %arg10[%c0_88, %c0_89, %c128_90] : memref<1x32x512xf32, #tpu.memory_space<vmem>>, vector<1x8x256xf32>
    %107 = vector.shape_cast %106 : vector<1x8x256xf32> to vector<8x256xf32>
    %108 = arith.truncf %107 : vector<8x256xf32> to vector<8x256xbf16>
    %cst_91 = arith.constant dense<0.000000e+00> : vector<16x256xf32>
    %109 = tpu.matmul %77, %108, %cst_91 {dimension_numbers = #tpu.dot_dimension_numbers<[1], [0], [0], [1], [0, 0, 1, 1], [], []>} : vector<16x8xbf16>, vector<8x256xbf16>, vector<16x256xf32> -> vector<16x256xf32>
    %110 = arith.addf %105, %109 : vector<16x256xf32>
    %c0_92 = arith.constant 0 : index
    %c8_93 = arith.constant 8 : index
    %c128_94 = arith.constant 128 : index
    %111 = vector.load %arg10[%c0_92, %c8_93, %c128_94] : memref<1x32x512xf32, #tpu.memory_space<vmem>>, vector<1x8x256xf32>
    %112 = vector.shape_cast %111 : vector<1x8x256xf32> to vector<8x256xf32>
    %113 = arith.truncf %112 : vector<8x256xf32> to vector<8x256xbf16>
    %cst_95 = arith.constant dense<0.000000e+00> : vector<16x256xf32>
    %114 = tpu.matmul %79, %113, %cst_95 {dimension_numbers = #tpu.dot_dimension_numbers<[1], [0], [0], [1], [0, 0, 1, 1], [], []>} : vector<16x8xbf16>, vector<8x256xbf16>, vector<16x256xf32> -> vector<16x256xf32>
    %115 = arith.addf %110, %114 : vector<16x256xf32>
    %c0_96 = arith.constant 0 : index
    %c24_97 = arith.constant 24 : index
    %c127_98 = arith.constant 127 : index
    %116 = vector.load %arg10[%c0_96, %c24_97, %c127_98] : memref<1x32x512xf32, #tpu.memory_space<vmem>>, vector<1x8x256xf32>
    %117 = vector.shape_cast %116 : vector<1x8x256xf32> to vector<8x256xf32>
    %118 = arith.truncf %117 : vector<8x256xf32> to vector<8x256xbf16>
    %cst_99 = arith.constant dense<0.000000e+00> : vector<16x256xf32>
    %119 = tpu.matmul %81, %118, %cst_99 {dimension_numbers = #tpu.dot_dimension_numbers<[1], [0], [0], [1], [0, 0, 1, 1], [], []>} : vector<16x8xbf16>, vector<8x256xbf16>, vector<16x256xf32> -> vector<16x256xf32>
    %120 = arith.addf %115, %119 : vector<16x256xf32>
    %c0_100 = arith.constant 0 : index
    %c16_101 = arith.constant 16 : index
    %c128_102 = arith.constant 128 : index
    %121 = vector.load %arg10[%c0_100, %c16_101, %c128_102] : memref<1x32x512xf32, #tpu.memory_space<vmem>>, vector<1x8x256xf32>
    %122 = vector.shape_cast %121 : vector<1x8x256xf32> to vector<8x256xf32>
    %123 = arith.truncf %122 : vector<8x256xf32> to vector<8x256xbf16>
    %cst_103 = arith.constant dense<0.000000e+00> : vector<16x256xf32>
    %124 = tpu.matmul %83, %123, %cst_103 {dimension_numbers = #tpu.dot_dimension_numbers<[1], [0], [0], [1], [0, 0, 1, 1], [], []>} : vector<16x8xbf16>, vector<8x256xbf16>, vector<16x256xf32> -> vector<16x256xf32>
    %125 = arith.addf %120, %124 : vector<16x256xf32>
    %c0_104 = arith.constant 0 : index
    %c24_105 = arith.constant 24 : index
    %c128_106 = arith.constant 128 : index
    %126 = vector.load %arg10[%c0_104, %c24_105, %c128_106] : memref<1x32x512xf32, #tpu.memory_space<vmem>>, vector<1x8x256xf32>
    %127 = vector.shape_cast %126 : vector<1x8x256xf32> to vector<8x256xf32>
    %128 = arith.truncf %127 : vector<8x256xf32> to vector<8x256xbf16>
    %cst_107 = arith.constant dense<0.000000e+00> : vector<16x256xf32>
    %129 = tpu.matmul %85, %128, %cst_107 {dimension_numbers = #tpu.dot_dimension_numbers<[1], [0], [0], [1], [0, 0, 1, 1], [], []>} : vector<16x8xbf16>, vector<8x256xbf16>, vector<16x256xf32> -> vector<16x256xf32>
    %130 = arith.addf %125, %129 : vector<16x256xf32>
    %131 = vector.broadcast %86 : vector<16x1xf32> to vector<16x256xf32>
    %132 = arith.addf %130, %131 : vector<16x256xf32>
    %cst_108 = arith.constant 0.000000e+00 : f32
    %133 = vector.broadcast %cst_108 : f32 to vector<16x256xf32>
    %134 = arith.maximumf %132, %133 : vector<16x256xf32>
    %cst_109 = arith.constant 0.000000e+00 : f32
    %135 = vector.shape_cast %2 : vector<1x256xi1> to vector<1x256xi1>
    %136 = vector.broadcast %135 : vector<1x256xi1> to vector<16x256xi1>
    %137 = vector.broadcast %cst_109 : f32 to vector<16x256xf32>
    %138 = arith.select %136, %134, %137 : vector<16x256xi1>, vector<16x256xf32>
    %c0_110 = arith.constant 0 : index
    %c0_111 = arith.constant 0 : index
    %c128_112 = arith.constant 128 : index
    %139 = vector.load %arg11[%c0_110, %c0_111, %c128_112] : memref<4x16x512xf32, #tpu.memory_space<vmem>>, vector<1x16x256xf32>
    %140 = vector.shape_cast %139 : vector<1x16x256xf32> to vector<16x256xf32>
    %141 = vector.shape_cast %138 : vector<16x256xf32> to vector<1x16x256xf32>
    tpu.vector_store %arg11[%c0_110, %c0_111, %c128_112], %141 {strides = array<i32>} : memref<4x16x512xf32, #tpu.memory_space<vmem>>, vector<1x16x256xf32>,
    %c0_113 = arith.constant 0 : index
    %c16_114 = arith.constant 16 : index
    %c118_115 = arith.constant 118 : index
    %142 = vector.load %arg10[%c0_113, %c16_114, %c118_115] : memref<1x32x512xf32, #tpu.memory_space<vmem>>, vector<1x8x256xf32>
    %143 = vector.shape_cast %142 : vector<1x8x256xf32> to vector<8x256xf32>
    %144 = arith.truncf %143 : vector<8x256xf32> to vector<8x256xbf16>
    %cst_116 = arith.constant dense<0.000000e+00> : vector<16x256xf32>
    %145 = tpu.matmul %69, %144, %cst_116 {dimension_numbers = #tpu.dot_dimension_numbers<[1], [0], [0], [1], [0, 0, 1, 1], [], []>} : vector<16x8xbf16>, vector<8x256xbf16>, vector<16x256xf32> -> vector<16x256xf32>
    %c0_117 = arith.constant 0 : index
    %c24_118 = arith.constant 24 : index
    %c118_119 = arith.constant 118 : index
    %146 = vector.load %arg10[%c0_117, %c24_118, %c118_119] : memref<1x32x512xf32, #tpu.memory_space<vmem>>, vector<1x8x256xf32>
    %147 = vector.shape_cast %146 : vector<1x8x256xf32> to vector<8x256xf32>
    %148 = arith.truncf %147 : vector<8x256xf32> to vector<8x256xbf16>
    %cst_120 = arith.constant dense<0.000000e+00> : vector<16x256xf32>
    %149 = tpu.matmul %71, %148, %cst_120 {dimension_numbers = #tpu.dot_dimension_numbers<[1], [0], [0], [1], [0, 0, 1, 1], [], []>} : vector<16x8xbf16>, vector<8x256xbf16>, vector<16x256xf32> -> vector<16x256xf32>
    %150 = arith.addf %145, %149 : vector<16x256xf32>
    %c0_121 = arith.constant 0 : index
    %c16_122 = arith.constant 16 : index
    %c119_123 = arith.constant 119 : index
    %151 = vector.load %arg10[%c0_121, %c16_122, %c119_123] : memref<1x32x512xf32, #tpu.memory_space<vmem>>, vector<1x8x256xf32>
    %152 = vector.shape_cast %151 : vector<1x8x256xf32> to vector<8x256xf32>
    %153 = arith.truncf %152 : vector<8x256xf32> to vector<8x256xbf16>
    %cst_124 = arith.constant dense<0.000000e+00> : vector<16x256xf32>
    %154 = tpu.matmul %73, %153, %cst_124 {dimension_numbers = #tpu.dot_dimension_numbers<[1], [0], [0], [1], [0, 0, 1, 1], [], []>} : vector<16x8xbf16>, vector<8x256xbf16>, vector<16x256xf32> -> vector<16x256xf32>
    %155 = arith.addf %150, %154 : vector<16x256xf32>
    %c0_125 = arith.constant 0 : index
    %c0_126 = arith.constant 0 : index
    %c128_127 = arith.constant 128 : index
    %156 = vector.load %arg10[%c0_125, %c0_126, %c128_127] : memref<1x32x512xf32, #tpu.memory_space<vmem>>, vector<1x8x256xf32>
    %157 = vector.shape_cast %156 : vector<1x8x256xf32> to vector<8x256xf32>
    %158 = arith.truncf %157 : vector<8x256xf32> to vector<8x256xbf16>
    %cst_128 = arith.constant dense<0.000000e+00> : vector<16x256xf32>
    %159 = tpu.matmul %75, %158, %cst_128 {dimension_numbers = #tpu.dot_dimension_numbers<[1], [0], [0], [1], [0, 0, 1, 1], [], []>} : vector<16x8xbf16>, vector<8x256xbf16>, vector<16x256xf32> -> vector<16x256xf32>
    %160 = arith.addf %155, %159 : vector<16x256xf32>
    %c0_129 = arith.constant 0 : index
    %c8_130 = arith.constant 8 : index
    %c128_131 = arith.constant 128 : index
    %161 = vector.load %arg10[%c0_129, %c8_130, %c128_131] : memref<1x32x512xf32, #tpu.memory_space<vmem>>, vector<1x8x256xf32>
    %162 = vector.shape_cast %161 : vector<1x8x256xf32> to vector<8x256xf32>
    %163 = arith.truncf %162 : vector<8x256xf32> to vector<8x256xbf16>
    %cst_132 = arith.constant dense<0.000000e+00> : vector<16x256xf32>
    %164 = tpu.matmul %77, %163, %cst_132 {dimension_numbers = #tpu.dot_dimension_numbers<[1], [0], [0], [1], [0, 0, 1, 1], [], []>} : vector<16x8xbf16>, vector<8x256xbf16>, vector<16x256xf32> -> vector<16x256xf32>
    %165 = arith.addf %160, %164 : vector<16x256xf32>
    %c0_133 = arith.constant 0 : index
    %c0_134 = arith.constant 0 : index
    %c129_135 = arith.constant 129 : index
    %166 = vector.load %arg10[%c0_133, %c0_134, %c129_135] : memref<1x32x512xf32, #tpu.memory_space<vmem>>, vector<1x8x256xf32>
    %167 = vector.shape_cast %166 : vector<1x8x256xf32> to vector<8x256xf32>
    %168 = arith.truncf %167 : vector<8x256xf32> to vector<8x256xbf16>
    %cst_136 = arith.constant dense<0.000000e+00> : vector<16x256xf32>
    %169 = tpu.matmul %79, %168, %cst_136 {dimension_numbers = #tpu.dot_dimension_numbers<[1], [0], [0], [1], [0, 0, 1, 1], [], []>} : vector<16x8xbf16>, vector<8x256xbf16>, vector<16x256xf32> -> vector<16x256xf32>
    %170 = arith.addf %165, %169 : vector<16x256xf32>
    %c0_137 = arith.constant 0 : index
    %c16_138 = arith.constant 16 : index
    %c128_139 = arith.constant 128 : index
    %171 = vector.load %arg10[%c0_137, %c16_138, %c128_139] : memref<1x32x512xf32, #tpu.memory_space<vmem>>, vector<1x8x256xf32>
    %172 = vector.shape_cast %171 : vector<1x8x256xf32> to vector<8x256xf32>
    %173 = arith.truncf %172 : vector<8x256xf32> to vector<8x256xbf16>
    %cst_140 = arith.constant dense<0.000000e+00> : vector<16x256xf32>
    %174 = tpu.matmul %81, %173, %cst_140 {dimension_numbers = #tpu.dot_dimension_numbers<[1], [0], [0], [1], [0, 0, 1, 1], [], []>} : vector<16x8xbf16>, vector<8x256xbf16>, vector<16x256xf32> -> vector<16x256xf32>
    %175 = arith.addf %170, %174 : vector<16x256xf32>
    %c0_141 = arith.constant 0 : index
    %c24_142 = arith.constant 24 : index
    %c128_143 = arith.constant 128 : index
    %176 = vector.load %arg10[%c0_141, %c24_142, %c128_143] : memref<1x32x512xf32, #tpu.memory_space<vmem>>, vector<1x8x256xf32>
    %177 = vector.shape_cast %176 : vector<1x8x256xf32> to vector<8x256xf32>
    %178 = arith.truncf %177 : vector<8x256xf32> to vector<8x256xbf16>
    %cst_144 = arith.constant dense<0.000000e+00> : vector<16x256xf32>
    %179 = tpu.matmul %83, %178, %cst_144 {dimension_numbers = #tpu.dot_dimension_numbers<[1], [0], [0], [1], [0, 0, 1, 1], [], []>} : vector<16x8xbf16>, vector<8x256xbf16>, vector<16x256xf32> -> vector<16x256xf32>
    %180 = arith.addf %175, %179 : vector<16x256xf32>
    %c0_145 = arith.constant 0 : index
    %c16_146 = arith.constant 16 : index
    %c129_147 = arith.constant 129 : index
    %181 = vector.load %arg10[%c0_145, %c16_146, %c129_147] : memref<1x32x512xf32, #tpu.memory_space<vmem>>, vector<1x8x256xf32>
    %182 = vector.shape_cast %181 : vector<1x8x256xf32> to vector<8x256xf32>
    %183 = arith.truncf %182 : vector<8x256xf32> to vector<8x256xbf16>
    %cst_148 = arith.constant dense<0.000000e+00> : vector<16x256xf32>
    %184 = tpu.matmul %85, %183, %cst_148 {dimension_numbers = #tpu.dot_dimension_numbers<[1], [0], [0], [1], [0, 0, 1, 1], [], []>} : vector<16x8xbf16>, vector<8x256xbf16>, vector<16x256xf32> -> vector<16x256xf32>
    %185 = arith.addf %180, %184 : vector<16x256xf32>
    %186 = vector.broadcast %86 : vector<16x1xf32> to vector<16x256xf32>
    %187 = arith.addf %185, %186 : vector<16x256xf32>
    %cst_149 = arith.constant 0.000000e+00 : f32
    %188 = vector.broadcast %cst_149 : f32 to vector<16x256xf32>
    %189 = arith.maximumf %187, %188 : vector<16x256xf32>
    %cst_150 = arith.constant 0.000000e+00 : f32
    %190 = vector.shape_cast %2 : vector<1x256xi1> to vector<1x256xi1>
    %191 = vector.broadcast %190 : vector<1x256xi1> to vector<16x256xi1>
    %192 = vector.broadcast %cst_150 : f32 to vector<16x256xf32>
    %193 = arith.select %191, %189, %192 : vector<16x256xi1>, vector<16x256xf32>
    %c1_151 = arith.constant 1 : index
    %c0_152 = arith.constant 0 : index
    %c128_153 = arith.constant 128 : index
    %194 = vector.load %arg11[%c1_151, %c0_152, %c128_153] : memref<4x16x512xf32, #tpu.memory_space<vmem>>, vector<1x16x256xf32>
    %195 = vector.shape_cast %194 : vector<1x16x256xf32> to vector<16x256xf32>
    %196 = vector.shape_cast %193 : vector<16x256xf32> to vector<1x16x256xf32>
    tpu.vector_store %arg11[%c1_151, %c0_152, %c128_153], %196 {strides = array<i32>} : memref<4x16x512xf32, #tpu.memory_space<vmem>>, vector<1x16x256xf32>,
    %c0_154 = arith.constant 0 : index
    %c8_155 = arith.constant 8 : index
    %c127_156 = arith.constant 127 : index
    %197 = vector.load %arg10[%c0_154, %c8_155, %c127_156] : memref<1x32x512xf32, #tpu.memory_space<vmem>>, vector<1x8x256xf32>
    %198 = vector.shape_cast %197 : vector<1x8x256xf32> to vector<8x256xf32>
    %199 = arith.truncf %198 : vector<8x256xf32> to vector<8x256xbf16>
    %cst_157 = arith.constant dense<0.000000e+00> : vector<16x256xf32>
    %200 = tpu.matmul %69, %199, %cst_157 {dimension_numbers = #tpu.dot_dimension_numbers<[1], [0], [0], [1], [0, 0, 1, 1], [], []>} : vector<16x8xbf16>, vector<8x256xbf16>, vector<16x256xf32> -> vector<16x256xf32>
    %c0_158 = arith.constant 0 : index
    %c0_159 = arith.constant 0 : index
    %c128_160 = arith.constant 128 : index
    %201 = vector.load %arg10[%c0_158, %c0_159, %c128_160] : memref<1x32x512xf32, #tpu.memory_space<vmem>>, vector<1x8x256xf32>
    %202 = vector.shape_cast %201 : vector<1x8x256xf32> to vector<8x256xf32>
    %203 = arith.truncf %202 : vector<8x256xf32> to vector<8x256xbf16>
    %cst_161 = arith.constant dense<0.000000e+00> : vector<16x256xf32>
    %204 = tpu.matmul %71, %203, %cst_161 {dimension_numbers = #tpu.dot_dimension_numbers<[1], [0], [0], [1], [0, 0, 1, 1], [], []>} : vector<16x8xbf16>, vector<8x256xbf16>, vector<16x256xf32> -> vector<16x256xf32>
    %205 = arith.addf %200, %204 : vector<16x256xf32>
    %c0_162 = arith.constant 0 : index
    %c8_163 = arith.constant 8 : index
    %c128_164 = arith.constant 128 : index
    %206 = vector.load %arg10[%c0_162, %c8_163, %c128_164] : memref<1x32x512xf32, #tpu.memory_space<vmem>>, vector<1x8x256xf32>
    %207 = vector.shape_cast %206 : vector<1x8x256xf32> to vector<8x256xf32>
    %208 = arith.truncf %207 : vector<8x256xf32> to vector<8x256xbf16>
    %cst_165 = arith.constant dense<0.000000e+00> : vector<16x256xf32>
    %209 = tpu.matmul %73, %208, %cst_165 {dimension_numbers = #tpu.dot_dimension_numbers<[1], [0], [0], [1], [0, 0, 1, 1], [], []>} : vector<16x8xbf16>, vector<8x256xbf16>, vector<16x256xf32> -> vector<16x256xf32>
    %210 = arith.addf %205, %209 : vector<16x256xf32>
    %c0_166 = arith.constant 0 : index
    %c24_167 = arith.constant 24 : index
    %c127_168 = arith.constant 127 : index
    %211 = vector.load %arg10[%c0_166, %c24_167, %c127_168] : memref<1x32x512xf32, #tpu.memory_space<vmem>>, vector<1x8x256xf32>
    %212 = vector.shape_cast %211 : vector<1x8x256xf32> to vector<8x256xf32>
    %213 = arith.truncf %212 : vector<8x256xf32> to vector<8x256xbf16>
    %cst_169 = arith.constant dense<0.000000e+00> : vector<16x256xf32>
    %214 = tpu.matmul %75, %213, %cst_169 {dimension_numbers = #tpu.dot_dimension_numbers<[1], [0], [0], [1], [0, 0, 1, 1], [], []>} : vector<16x8xbf16>, vector<8x256xbf16>, vector<16x256xf32> -> vector<16x256xf32>
    %215 = arith.addf %210, %214 : vector<16x256xf32>
    %c0_170 = arith.constant 0 : index
    %c16_171 = arith.constant 16 : index
    %c128_172 = arith.constant 128 : index
    %216 = vector.load %arg10[%c0_170, %c16_171, %c128_172] : memref<1x32x512xf32, #tpu.memory_space<vmem>>, vector<1x8x256xf32>
    %217 = vector.shape_cast %216 : vector<1x8x256xf32> to vector<8x256xf32>
    %218 = arith.truncf %217 : vector<8x256xf32> to vector<8x256xbf16>
    %cst_173 = arith.constant dense<0.000000e+00> : vector<16x256xf32>
    %219 = tpu.matmul %77, %218, %cst_173 {dimension_numbers = #tpu.dot_dimension_numbers<[1], [0], [0], [1], [0, 0, 1, 1], [], []>} : vector<16x8xbf16>, vector<8x256xbf16>, vector<16x256xf32> -> vector<16x256xf32>
    %220 = arith.addf %215, %219 : vector<16x256xf32>
    %c0_174 = arith.constant 0 : index
    %c24_175 = arith.constant 24 : index
    %c128_176 = arith.constant 128 : index
    %221 = vector.load %arg10[%c0_174, %c24_175, %c128_176] : memref<1x32x512xf32, #tpu.memory_space<vmem>>, vector<1x8x256xf32>
    %222 = vector.shape_cast %221 : vector<1x8x256xf32> to vector<8x256xf32>
    %223 = arith.truncf %222 : vector<8x256xf32> to vector<8x256xbf16>
    %cst_177 = arith.constant dense<0.000000e+00> : vector<16x256xf32>
    %224 = tpu.matmul %79, %223, %cst_177 {dimension_numbers = #tpu.dot_dimension_numbers<[1], [0], [0], [1], [0, 0, 1, 1], [], []>} : vector<16x8xbf16>, vector<8x256xbf16>, vector<16x256xf32> -> vector<16x256xf32>
    %225 = arith.addf %220, %224 : vector<16x256xf32>
    %c0_178 = arith.constant 0 : index
    %c8_179 = arith.constant 8 : index
    %c137_180 = arith.constant 137 : index
    %226 = vector.load %arg10[%c0_178, %c8_179, %c137_180] : memref<1x32x512xf32, #tpu.memory_space<vmem>>, vector<1x8x256xf32>
    %227 = vector.shape_cast %226 : vector<1x8x256xf32> to vector<8x256xf32>
    %228 = arith.truncf %227 : vector<8x256xf32> to vector<8x256xbf16>
    %cst_181 = arith.constant dense<0.000000e+00> : vector<16x256xf32>
    %229 = tpu.matmul %81, %228, %cst_181 {dimension_numbers = #tpu.dot_dimension_numbers<[1], [0], [0], [1], [0, 0, 1, 1], [], []>} : vector<16x8xbf16>, vector<8x256xbf16>, vector<16x256xf32> -> vector<16x256xf32>
    %230 = arith.addf %225, %229 : vector<16x256xf32>
    %c0_182 = arith.constant 0 : index
    %c0_183 = arith.constant 0 : index
    %c138_184 = arith.constant 138 : index
    %231 = vector.load %arg10[%c0_182, %c0_183, %c138_184] : memref<1x32x512xf32, #tpu.memory_space<vmem>>, vector<1x8x256xf32>
    %232 = vector.shape_cast %231 : vector<1x8x256xf32> to vector<8x256xf32>
    %233 = arith.truncf %232 : vector<8x256xf32> to vector<8x256xbf16>
    %cst_185 = arith.constant dense<0.000000e+00> : vector<16x256xf32>
    %234 = tpu.matmul %83, %233, %cst_185 {dimension_numbers = #tpu.dot_dimension_numbers<[1], [0], [0], [1], [0, 0, 1, 1], [], []>} : vector<16x8xbf16>, vector<8x256xbf16>, vector<16x256xf32> -> vector<16x256xf32>
    %235 = arith.addf %230, %234 : vector<16x256xf32>
    %c0_186 = arith.constant 0 : index
    %c8_187 = arith.constant 8 : index
    %c138_188 = arith.constant 138 : index
    %236 = vector.load %arg10[%c0_186, %c8_187, %c138_188] : memref<1x32x512xf32, #tpu.memory_space<vmem>>, vector<1x8x256xf32>
    %237 = vector.shape_cast %236 : vector<1x8x256xf32> to vector<8x256xf32>
    %238 = arith.truncf %237 : vector<8x256xf32> to vector<8x256xbf16>
    %cst_189 = arith.constant dense<0.000000e+00> : vector<16x256xf32>
    %239 = tpu.matmul %85, %238, %cst_189 {dimension_numbers = #tpu.dot_dimension_numbers<[1], [0], [0], [1], [0, 0, 1, 1], [], []>} : vector<16x8xbf16>, vector<8x256xbf16>, vector<16x256xf32> -> vector<16x256xf32>
    %240 = arith.addf %235, %239 : vector<16x256xf32>
    %241 = vector.broadcast %86 : vector<16x1xf32> to vector<16x256xf32>
    %242 = arith.addf %240, %241 : vector<16x256xf32>
    %cst_190 = arith.constant 0.000000e+00 : f32
    %243 = vector.broadcast %cst_190 : f32 to vector<16x256xf32>
    %244 = arith.maximumf %242, %243 : vector<16x256xf32>
    %cst_191 = arith.constant 0.000000e+00 : f32
    %245 = vector.shape_cast %2 : vector<1x256xi1> to vector<1x256xi1>
    %246 = vector.broadcast %245 : vector<1x256xi1> to vector<16x256xi1>
    %247 = vector.broadcast %cst_191 : f32 to vector<16x256xf32>
    %248 = arith.select %246, %244, %247 : vector<16x256xi1>, vector<16x256xf32>
    %c2_192 = arith.constant 2 : index
    %c0_193 = arith.constant 0 : index
    %c128_194 = arith.constant 128 : index
    %249 = vector.load %arg11[%c2_192, %c0_193, %c128_194] : memref<4x16x512xf32, #tpu.memory_space<vmem>>, vector<1x16x256xf32>
    %250 = vector.shape_cast %249 : vector<1x16x256xf32> to vector<16x256xf32>
    %251 = vector.shape_cast %248 : vector<16x256xf32> to vector<1x16x256xf32>
    tpu.vector_store %arg11[%c2_192, %c0_193, %c128_194], %251 {strides = array<i32>} : memref<4x16x512xf32, #tpu.memory_space<vmem>>, vector<1x16x256xf32>,
    %c0_195 = arith.constant 0 : index
    %c0_196 = arith.constant 0 : index
    %c128_197 = arith.constant 128 : index
    %252 = vector.load %arg10[%c0_195, %c0_196, %c128_197] : memref<1x32x512xf32, #tpu.memory_space<vmem>>, vector<1x8x256xf32>
    %253 = vector.shape_cast %252 : vector<1x8x256xf32> to vector<8x256xf32>
    %254 = arith.truncf %253 : vector<8x256xf32> to vector<8x256xbf16>
    %cst_198 = arith.constant dense<0.000000e+00> : vector<16x256xf32>
    %255 = tpu.matmul %69, %254, %cst_198 {dimension_numbers = #tpu.dot_dimension_numbers<[1], [0], [0], [1], [0, 0, 1, 1], [], []>} : vector<16x8xbf16>, vector<8x256xbf16>, vector<16x256xf32> -> vector<16x256xf32>
    %c0_199 = arith.constant 0 : index
    %c8_200 = arith.constant 8 : index
    %c128_201 = arith.constant 128 : index
    %256 = vector.load %arg10[%c0_199, %c8_200, %c128_201] : memref<1x32x512xf32, #tpu.memory_space<vmem>>, vector<1x8x256xf32>
    %257 = vector.shape_cast %256 : vector<1x8x256xf32> to vector<8x256xf32>
    %258 = arith.truncf %257 : vector<8x256xf32> to vector<8x256xbf16>
    %cst_202 = arith.constant dense<0.000000e+00> : vector<16x256xf32>
    %259 = tpu.matmul %71, %258, %cst_202 {dimension_numbers = #tpu.dot_dimension_numbers<[1], [0], [0], [1], [0, 0, 1, 1], [], []>} : vector<16x8xbf16>, vector<8x256xbf16>, vector<16x256xf32> -> vector<16x256xf32>
    %260 = arith.addf %255, %259 : vector<16x256xf32>
    %c0_203 = arith.constant 0 : index
    %c0_204 = arith.constant 0 : index
    %c129_205 = arith.constant 129 : index
    %261 = vector.load %arg10[%c0_203, %c0_204, %c129_205] : memref<1x32x512xf32, #tpu.memory_space<vmem>>, vector<1x8x256xf32>
    %262 = vector.shape_cast %261 : vector<1x8x256xf32> to vector<8x256xf32>
    %263 = arith.truncf %262 : vector<8x256xf32> to vector<8x256xbf16>
    %cst_206 = arith.constant dense<0.000000e+00> : vector<16x256xf32>
    %264 = tpu.matmul %73, %263, %cst_206 {dimension_numbers = #tpu.dot_dimension_numbers<[1], [0], [0], [1], [0, 0, 1, 1], [], []>} : vector<16x8xbf16>, vector<8x256xbf16>, vector<16x256xf32> -> vector<16x256xf32>
    %265 = arith.addf %260, %264 : vector<16x256xf32>
    %c0_207 = arith.constant 0 : index
    %c16_208 = arith.constant 16 : index
    %c128_209 = arith.constant 128 : index
    %266 = vector.load %arg10[%c0_207, %c16_208, %c128_209] : memref<1x32x512xf32, #tpu.memory_space<vmem>>, vector<1x8x256xf32>
    %267 = vector.shape_cast %266 : vector<1x8x256xf32> to vector<8x256xf32>
    %268 = arith.truncf %267 : vector<8x256xf32> to vector<8x256xbf16>
    %cst_210 = arith.constant dense<0.000000e+00> : vector<16x256xf32>
    %269 = tpu.matmul %75, %268, %cst_210 {dimension_numbers = #tpu.dot_dimension_numbers<[1], [0], [0], [1], [0, 0, 1, 1], [], []>} : vector<16x8xbf16>, vector<8x256xbf16>, vector<16x256xf32> -> vector<16x256xf32>
    %270 = arith.addf %265, %269 : vector<16x256xf32>
    %c0_211 = arith.constant 0 : index
    %c24_212 = arith.constant 24 : index
    %c128_213 = arith.constant 128 : index
    %271 = vector.load %arg10[%c0_211, %c24_212, %c128_213] : memref<1x32x512xf32, #tpu.memory_space<vmem>>, vector<1x8x256xf32>
    %272 = vector.shape_cast %271 : vector<1x8x256xf32> to vector<8x256xf32>
    %273 = arith.truncf %272 : vector<8x256xf32> to vector<8x256xbf16>
    %cst_214 = arith.constant dense<0.000000e+00> : vector<16x256xf32>
    %274 = tpu.matmul %77, %273, %cst_214 {dimension_numbers = #tpu.dot_dimension_numbers<[1], [0], [0], [1], [0, 0, 1, 1], [], []>} : vector<16x8xbf16>, vector<8x256xbf16>, vector<16x256xf32> -> vector<16x256xf32>
    %275 = arith.addf %270, %274 : vector<16x256xf32>
    %c0_215 = arith.constant 0 : index
    %c16_216 = arith.constant 16 : index
    %c129_217 = arith.constant 129 : index
    %276 = vector.load %arg10[%c0_215, %c16_216, %c129_217] : memref<1x32x512xf32, #tpu.memory_space<vmem>>, vector<1x8x256xf32>
    %277 = vector.shape_cast %276 : vector<1x8x256xf32> to vector<8x256xf32>
    %278 = arith.truncf %277 : vector<8x256xf32> to vector<8x256xbf16>
    %cst_218 = arith.constant dense<0.000000e+00> : vector<16x256xf32>
    %279 = tpu.matmul %79, %278, %cst_218 {dimension_numbers = #tpu.dot_dimension_numbers<[1], [0], [0], [1], [0, 0, 1, 1], [], []>} : vector<16x8xbf16>, vector<8x256xbf16>, vector<16x256xf32> -> vector<16x256xf32>
    %280 = arith.addf %275, %279 : vector<16x256xf32>
    %c0_219 = arith.constant 0 : index
    %c0_220 = arith.constant 0 : index
    %c138_221 = arith.constant 138 : index
    %281 = vector.load %arg10[%c0_219, %c0_220, %c138_221] : memref<1x32x512xf32, #tpu.memory_space<vmem>>, vector<1x8x256xf32>
    %282 = vector.shape_cast %281 : vector<1x8x256xf32> to vector<8x256xf32>
    %283 = arith.truncf %282 : vector<8x256xf32> to vector<8x256xbf16>
    %cst_222 = arith.constant dense<0.000000e+00> : vector<16x256xf32>
    %284 = tpu.matmul %81, %283, %cst_222 {dimension_numbers = #tpu.dot_dimension_numbers<[1], [0], [0], [1], [0, 0, 1, 1], [], []>} : vector<16x8xbf16>, vector<8x256xbf16>, vector<16x256xf32> -> vector<16x256xf32>
    %285 = arith.addf %280, %284 : vector<16x256xf32>
    %c0_223 = arith.constant 0 : index
    %c8_224 = arith.constant 8 : index
    %c138_225 = arith.constant 138 : index
    %286 = vector.load %arg10[%c0_223, %c8_224, %c138_225] : memref<1x32x512xf32, #tpu.memory_space<vmem>>, vector<1x8x256xf32>
    %287 = vector.shape_cast %286 : vector<1x8x256xf32> to vector<8x256xf32>
    %288 = arith.truncf %287 : vector<8x256xf32> to vector<8x256xbf16>
    %cst_226 = arith.constant dense<0.000000e+00> : vector<16x256xf32>
    %289 = tpu.matmul %83, %288, %cst_226 {dimension_numbers = #tpu.dot_dimension_numbers<[1], [0], [0], [1], [0, 0, 1, 1], [], []>} : vector<16x8xbf16>, vector<8x256xbf16>, vector<16x256xf32> -> vector<16x256xf32>
    %290 = arith.addf %285, %289 : vector<16x256xf32>
    %c0_227 = arith.constant 0 : index
    %c0_228 = arith.constant 0 : index
    %c139_229 = arith.constant 139 : index
    %291 = vector.load %arg10[%c0_227, %c0_228, %c139_229] : memref<1x32x512xf32, #tpu.memory_space<vmem>>, vector<1x8x256xf32>
    %292 = vector.shape_cast %291 : vector<1x8x256xf32> to vector<8x256xf32>
    %293 = arith.truncf %292 : vector<8x256xf32> to vector<8x256xbf16>
    %cst_230 = arith.constant dense<0.000000e+00> : vector<16x256xf32>
    %294 = tpu.matmul %85, %293, %cst_230 {dimension_numbers = #tpu.dot_dimension_numbers<[1], [0], [0], [1], [0, 0, 1, 1], [], []>} : vector<16x8xbf16>, vector<8x256xbf16>, vector<16x256xf32> -> vector<16x256xf32>
    %295 = arith.addf %290, %294 : vector<16x256xf32>
    %296 = vector.broadcast %86 : vector<16x1xf32> to vector<16x256xf32>
    %297 = arith.addf %295, %296 : vector<16x256xf32>
    %cst_231 = arith.constant 0.000000e+00 : f32
    %298 = vector.broadcast %cst_231 : f32 to vector<16x256xf32>
    %299 = arith.maximumf %297, %298 : vector<16x256xf32>
    %cst_232 = arith.constant 0.000000e+00 : f32
    %300 = vector.shape_cast %2 : vector<1x256xi1> to vector<1x256xi1>
    %301 = vector.broadcast %300 : vector<1x256xi1> to vector<16x256xi1>
    %302 = vector.broadcast %cst_232 : f32 to vector<16x256xf32>
    %303 = arith.select %301, %299, %302 : vector<16x256xi1>, vector<16x256xf32>
    %c3_233 = arith.constant 3 : index
    %c0_234 = arith.constant 0 : index
    %c128_235 = arith.constant 128 : index
    %304 = vector.load %arg11[%c3_233, %c0_234, %c128_235] : memref<4x16x512xf32, #tpu.memory_space<vmem>>, vector<1x16x256xf32>
    %305 = vector.shape_cast %304 : vector<1x16x256xf32> to vector<16x256xf32>
    %306 = vector.shape_cast %303 : vector<16x256xf32> to vector<1x16x256xf32>
    tpu.vector_store %arg11[%c3_233, %c0_234, %c128_235], %306 {strides = array<i32>} : memref<4x16x512xf32, #tpu.memory_space<vmem>>, vector<1x16x256xf32>,
    %c0_236 = arith.constant 0 : index
    %c0_237 = arith.constant 0 : index
    %c0_238 = arith.constant 0 : index
    %307 = vector.load %arg7[%c0_236, %c0_237, %c0_238] : memref<9x16x4xbf16, #tpu.memory_space<vmem>>, vector<1x16x4xbf16>
    %308 = vector.shape_cast %307 : vector<1x16x4xbf16> to vector<16x4xbf16>
    %c1_239 = arith.constant 1 : index
    %c0_240 = arith.constant 0 : index
    %c0_241 = arith.constant 0 : index
    %309 = vector.load %arg7[%c1_239, %c0_240, %c0_241] : memref<9x16x4xbf16, #tpu.memory_space<vmem>>, vector<1x16x4xbf16>
    %310 = vector.shape_cast %309 : vector<1x16x4xbf16> to vector<16x4xbf16>
    %c2_242 = arith.constant 2 : index
    %c0_243 = arith.constant 0 : index
    %c0_244 = arith.constant 0 : index
    %311 = vector.load %arg7[%c2_242, %c0_243, %c0_244] : memref<9x16x4xbf16, #tpu.memory_space<vmem>>, vector<1x16x4xbf16>
    %312 = vector.shape_cast %311 : vector<1x16x4xbf16> to vector<16x4xbf16>
    %c3_245 = arith.constant 3 : index
    %c0_246 = arith.constant 0 : index
    %c0_247 = arith.constant 0 : index
    %313 = vector.load %arg7[%c3_245, %c0_246, %c0_247] : memref<9x16x4xbf16, #tpu.memory_space<vmem>>, vector<1x16x4xbf16>
    %314 = vector.shape_cast %313 : vector<1x16x4xbf16> to vector<16x4xbf16>
    %c4_248 = arith.constant 4 : index
    %c0_249 = arith.constant 0 : index
    %c0_250 = arith.constant 0 : index
    %315 = vector.load %arg7[%c4_248, %c0_249, %c0_250] : memref<9x16x4xbf16, #tpu.memory_space<vmem>>, vector<1x16x4xbf16>
    %316 = vector.shape_cast %315 : vector<1x16x4xbf16> to vector<16x4xbf16>
    %c5_251 = arith.constant 5 : index
    %c0_252 = arith.constant 0 : index
    %c0_253 = arith.constant 0 : index
    %317 = vector.load %arg7[%c5_251, %c0_252, %c0_253] : memref<9x16x4xbf16, #tpu.memory_space<vmem>>, vector<1x16x4xbf16>
    %318 = vector.shape_cast %317 : vector<1x16x4xbf16> to vector<16x4xbf16>
    %c6_254 = arith.constant 6 : index
    %c0_255 = arith.constant 0 : index
    %c0_256 = arith.constant 0 : index
    %319 = vector.load %arg7[%c6_254, %c0_255, %c0_256] : memref<9x16x4xbf16, #tpu.memory_space<vmem>>, vector<1x16x4xbf16>
    %320 = vector.shape_cast %319 : vector<1x16x4xbf16> to vector<16x4xbf16>
    %c7_257 = arith.constant 7 : index
    %c0_258 = arith.constant 0 : index
    %c0_259 = arith.constant 0 : index
    %321 = vector.load %arg7[%c7_257, %c0_258, %c0_259] : memref<9x16x4xbf16, #tpu.memory_space<vmem>>, vector<1x16x4xbf16>
    %322 = vector.shape_cast %321 : vector<1x16x4xbf16> to vector<16x4xbf16>
    %c8_260 = arith.constant 8 : index
    %c0_261 = arith.constant 0 : index
    %c0_262 = arith.constant 0 : index
    %323 = vector.load %arg7[%c8_260, %c0_261, %c0_262] : memref<9x16x4xbf16, #tpu.memory_space<vmem>>, vector<1x16x4xbf16>
    %324 = vector.shape_cast %323 : vector<1x16x4xbf16> to vector<16x4xbf16>
    %c0_263 = arith.constant 0 : index
    %c0_264 = arith.constant 0 : index
    %325 = vector.load %arg8[%c0_263, %c0_264] : memref<16x1xf32, #tpu.memory_space<vmem>>, vector<16x1xf32>
    %c3_265 = arith.constant 3 : index
    %c12 = arith.constant 12 : index
    %c117_266 = arith.constant 117 : index
    %326 = vector.load %arg11[%c3_265, %c12, %c117_266] : memref<4x16x512xf32, #tpu.memory_space<vmem>>, vector<1x4x256xf32>
    %327 = vector.shape_cast %326 : vector<1x4x256xf32> to vector<4x256xf32>
    %328 = arith.truncf %327 : vector<4x256xf32> to vector<4x256xbf16>
    %cst_267 = arith.constant dense<0.000000e+00> : vector<16x256xf32>
    %329 = tpu.matmul %308, %328, %cst_267 {dimension_numbers = #tpu.dot_dimension_numbers<[1], [0], [0], [1], [0, 0, 1, 1], [], []>} : vector<16x4xbf16>, vector<4x256xbf16>, vector<16x256xf32> -> vector<16x256xf32>
    %c2_268 = arith.constant 2 : index
    %c8_269 = arith.constant 8 : index
    %c118_270 = arith.constant 118 : index
    %330 = vector.load %arg11[%c2_268, %c8_269, %c118_270] : memref<4x16x512xf32, #tpu.memory_space<vmem>>, vector<1x4x256xf32>
    %331 = vector.shape_cast %330 : vector<1x4x256xf32> to vector<4x256xf32>
    %332 = arith.truncf %331 : vector<4x256xf32> to vector<4x256xbf16>
    %cst_271 = arith.constant dense<0.000000e+00> : vector<16x256xf32>
    %333 = tpu.matmul %310, %332, %cst_271 {dimension_numbers = #tpu.dot_dimension_numbers<[1], [0], [0], [1], [0, 0, 1, 1], [], []>} : vector<16x4xbf16>, vector<4x256xbf16>, vector<16x256xf32> -> vector<16x256xf32>
    %334 = arith.addf %329, %333 : vector<16x256xf32>
    %c2_272 = arith.constant 2 : index
    %c12_273 = arith.constant 12 : index
    %c118_274 = arith.constant 118 : index
    %335 = vector.load %arg11[%c2_272, %c12_273, %c118_274] : memref<4x16x512xf32, #tpu.memory_space<vmem>>, vector<1x4x256xf32>
    %336 = vector.shape_cast %335 : vector<1x4x256xf32> to vector<4x256xf32>
    %337 = arith.truncf %336 : vector<4x256xf32> to vector<4x256xbf16>
    %cst_275 = arith.constant dense<0.000000e+00> : vector<16x256xf32>
    %338 = tpu.matmul %312, %337, %cst_275 {dimension_numbers = #tpu.dot_dimension_numbers<[1], [0], [0], [1], [0, 0, 1, 1], [], []>} : vector<16x4xbf16>, vector<4x256xbf16>, vector<16x256xf32> -> vector<16x256xf32>
    %339 = arith.addf %334, %338 : vector<16x256xf32>
    %c1_276 = arith.constant 1 : index
    %c4_277 = arith.constant 4 : index
    %c127_278 = arith.constant 127 : index
    %340 = vector.load %arg11[%c1_276, %c4_277, %c127_278] : memref<4x16x512xf32, #tpu.memory_space<vmem>>, vector<1x4x256xf32>
    %341 = vector.shape_cast %340 : vector<1x4x256xf32> to vector<4x256xf32>
    %342 = arith.truncf %341 : vector<4x256xf32> to vector<4x256xbf16>
    %cst_279 = arith.constant dense<0.000000e+00> : vector<16x256xf32>
    %343 = tpu.matmul %314, %342, %cst_279 {dimension_numbers = #tpu.dot_dimension_numbers<[1], [0], [0], [1], [0, 0, 1, 1], [], []>} : vector<16x4xbf16>, vector<4x256xbf16>, vector<16x256xf32> -> vector<16x256xf32>
    %344 = arith.addf %339, %343 : vector<16x256xf32>
    %c0_280 = arith.constant 0 : index
    %c0_281 = arith.constant 0 : index
    %c128_282 = arith.constant 128 : index
    %345 = vector.load %arg11[%c0_280, %c0_281, %c128_282] : memref<4x16x512xf32, #tpu.memory_space<vmem>>, vector<1x4x256xf32>
    %346 = vector.shape_cast %345 : vector<1x4x256xf32> to vector<4x256xf32>
    %347 = arith.truncf %346 : vector<4x256xf32> to vector<4x256xbf16>
    %cst_283 = arith.constant dense<0.000000e+00> : vector<16x256xf32>
    %348 = tpu.matmul %316, %347, %cst_283 {dimension_numbers = #tpu.dot_dimension_numbers<[1], [0], [0], [1], [0, 0, 1, 1], [], []>} : vector<16x4xbf16>, vector<4x256xbf16>, vector<16x256xf32> -> vector<16x256xf32>
    %349 = arith.addf %344, %348 : vector<16x256xf32>
    %c0_284 = arith.constant 0 : index
    %c4_285 = arith.constant 4 : index
    %c128_286 = arith.constant 128 : index
    %350 = vector.load %arg11[%c0_284, %c4_285, %c128_286] : memref<4x16x512xf32, #tpu.memory_space<vmem>>, vector<1x4x256xf32>
    %351 = vector.shape_cast %350 : vector<1x4x256xf32> to vector<4x256xf32>
    %352 = arith.truncf %351 : vector<4x256xf32> to vector<4x256xbf16>
    %cst_287 = arith.constant dense<0.000000e+00> : vector<16x256xf32>
    %353 = tpu.matmul %318, %352, %cst_287 {dimension_numbers = #tpu.dot_dimension_numbers<[1], [0], [0], [1], [0, 0, 1, 1], [], []>} : vector<16x4xbf16>, vector<4x256xbf16>, vector<16x256xf32> -> vector<16x256xf32>
    %354 = arith.addf %349, %353 : vector<16x256xf32>
    %c1_288 = arith.constant 1 : index
    %c12_289 = arith.constant 12 : index
    %c127_290 = arith.constant 127 : index
    %355 = vector.load %arg11[%c1_288, %c12_289, %c127_290] : memref<4x16x512xf32, #tpu.memory_space<vmem>>, vector<1x4x256xf32>
    %356 = vector.shape_cast %355 : vector<1x4x256xf32> to vector<4x256xf32>
    %357 = arith.truncf %356 : vector<4x256xf32> to vector<4x256xbf16>
    %cst_291 = arith.constant dense<0.000000e+00> : vector<16x256xf32>
    %358 = tpu.matmul %320, %357, %cst_291 {dimension_numbers = #tpu.dot_dimension_numbers<[1], [0], [0], [1], [0, 0, 1, 1], [], []>} : vector<16x4xbf16>, vector<4x256xbf16>, vector<16x256xf32> -> vector<16x256xf32>
    %359 = arith.addf %354, %358 : vector<16x256xf32>
    %c0_292 = arith.constant 0 : index
    %c8_293 = arith.constant 8 : index
    %c128_294 = arith.constant 128 : index
    %360 = vector.load %arg11[%c0_292, %c8_293, %c128_294] : memref<4x16x512xf32, #tpu.memory_space<vmem>>, vector<1x4x256xf32>
    %361 = vector.shape_cast %360 : vector<1x4x256xf32> to vector<4x256xf32>
    %362 = arith.truncf %361 : vector<4x256xf32> to vector<4x256xbf16>
    %cst_295 = arith.constant dense<0.000000e+00> : vector<16x256xf32>
    %363 = tpu.matmul %322, %362, %cst_295 {dimension_numbers = #tpu.dot_dimension_numbers<[1], [0], [0], [1], [0, 0, 1, 1], [], []>} : vector<16x4xbf16>, vector<4x256xbf16>, vector<16x256xf32> -> vector<16x256xf32>
    %364 = arith.addf %359, %363 : vector<16x256xf32>
    %c0_296 = arith.constant 0 : index
    %c12_297 = arith.constant 12 : index
    %c128_298 = arith.constant 128 : index
    %365 = vector.load %arg11[%c0_296, %c12_297, %c128_298] : memref<4x16x512xf32, #tpu.memory_space<vmem>>, vector<1x4x256xf32>
    %366 = vector.shape_cast %365 : vector<1x4x256xf32> to vector<4x256xf32>
    %367 = arith.truncf %366 : vector<4x256xf32> to vector<4x256xbf16>
    %cst_299 = arith.constant dense<0.000000e+00> : vector<16x256xf32>
    %368 = tpu.matmul %324, %367, %cst_299 {dimension_numbers = #tpu.dot_dimension_numbers<[1], [0], [0], [1], [0, 0, 1, 1], [], []>} : vector<16x4xbf16>, vector<4x256xbf16>, vector<16x256xf32> -> vector<16x256xf32>
    %369 = arith.addf %364, %368 : vector<16x256xf32>
    %370 = vector.broadcast %325 : vector<16x1xf32> to vector<16x256xf32>
    %371 = arith.addf %369, %370 : vector<16x256xf32>
    %372 = math.tanh %371 : vector<16x256xf32>
    %cst_300 = arith.constant 0.000000e+00 : f32
    %373 = vector.shape_cast %2 : vector<1x256xi1> to vector<1x256xi1>
    %374 = vector.broadcast %373 : vector<1x256xi1> to vector<16x256xi1>
    %375 = vector.broadcast %cst_300 : f32 to vector<16x256xf32>
    %376 = arith.select %374, %372, %375 : vector<16x256xi1>, vector<16x256xf32>
    %c0_301 = arith.constant 0 : index
    %c0_302 = arith.constant 0 : index
    %c0_303 = arith.constant 0 : index
    %377 = vector.load %arg9[%c0_301, %c0_302, %c0_303] : memref<16x16x256xf32, #tpu.memory_space<vmem>>, vector<1x16x256xf32>
    %378 = vector.shape_cast %377 : vector<1x16x256xf32> to vector<16x256xf32>
    %379 = vector.shape_cast %376 : vector<16x256xf32> to vector<1x16x256xf32>
    tpu.vector_store %arg9[%c0_301, %c0_302, %c0_303], %379 {strides = array<i32>} : memref<16x16x256xf32, #tpu.memory_space<vmem>>, vector<1x16x256xf32>,
    %c2_304 = arith.constant 2 : index
    %c8_305 = arith.constant 8 : index
    %c118_306 = arith.constant 118 : index
    %380 = vector.load %arg11[%c2_304, %c8_305, %c118_306] : memref<4x16x512xf32, #tpu.memory_space<vmem>>, vector<1x4x256xf32>
    %381 = vector.shape_cast %380 : vector<1x4x256xf32> to vector<4x256xf32>
    %382 = arith.truncf %381 : vector<4x256xf32> to vector<4x256xbf16>
    %cst_307 = arith.constant dense<0.000000e+00> : vector<16x256xf32>
    %383 = tpu.matmul %308, %382, %cst_307 {dimension_numbers = #tpu.dot_dimension_numbers<[1], [0], [0], [1], [0, 0, 1, 1], [], []>} : vector<16x4xbf16>, vector<4x256xbf16>, vector<16x256xf32> -> vector<16x256xf32>
    %c2_308 = arith.constant 2 : index
    %c12_309 = arith.constant 12 : index
    %c118_310 = arith.constant 118 : index
    %384 = vector.load %arg11[%c2_308, %c12_309, %c118_310] : memref<4x16x512xf32, #tpu.memory_space<vmem>>, vector<1x4x256xf32>
    %385 = vector.shape_cast %384 : vector<1x4x256xf32> to vector<4x256xf32>
    %386 = arith.truncf %385 : vector<4x256xf32> to vector<4x256xbf16>
    %cst_311 = arith.constant dense<0.000000e+00> : vector<16x256xf32>
    %387 = tpu.matmul %310, %386, %cst_311 {dimension_numbers = #tpu.dot_dimension_numbers<[1], [0], [0], [1], [0, 0, 1, 1], [], []>} : vector<16x4xbf16>, vector<4x256xbf16>, vector<16x256xf32> -> vector<16x256xf32>
    %388 = arith.addf %383, %387 : vector<16x256xf32>
    %c3_312 = arith.constant 3 : index
    %c8_313 = arith.constant 8 : index
    %c118_314 = arith.constant 118 : index
    %389 = vector.load %arg11[%c3_312, %c8_313, %c118_314] : memref<4x16x512xf32, #tpu.memory_space<vmem>>, vector<1x4x256xf32>
    %390 = vector.shape_cast %389 : vector<1x4x256xf32> to vector<4x256xf32>
    %391 = arith.truncf %390 : vector<4x256xf32> to vector<4x256xbf16>
    %cst_315 = arith.constant dense<0.000000e+00> : vector<16x256xf32>
    %392 = tpu.matmul %312, %391, %cst_315 {dimension_numbers = #tpu.dot_dimension_numbers<[1], [0], [0], [1], [0, 0, 1, 1], [], []>} : vector<16x4xbf16>, vector<4x256xbf16>, vector<16x256xf32> -> vector<16x256xf32>
    %393 = arith.addf %388, %392 : vector<16x256xf32>
    %c0_316 = arith.constant 0 : index
    %c0_317 = arith.constant 0 : index
    %c128_318 = arith.constant 128 : index
    %394 = vector.load %arg11[%c0_316, %c0_317, %c128_318] : memref<4x16x512xf32, #tpu.memory_space<vmem>>, vector<1x4x256xf32>
    %395 = vector.shape_cast %394 : vector<1x4x256xf32> to vector<4x256xf32>
    %396 = arith.truncf %395 : vector<4x256xf32> to vector<4x256xbf16>
    %cst_319 = arith.constant dense<0.000000e+00> : vector<16x256xf32>
    %397 = tpu.matmul %314, %396, %cst_319 {dimension_numbers = #tpu.dot_dimension_numbers<[1], [0], [0], [1], [0, 0, 1, 1], [], []>} : vector<16x4xbf16>, vector<4x256xbf16>, vector<16x256xf32> -> vector<16x256xf32>
    %398 = arith.addf %393, %397 : vector<16x256xf32>
    %c0_320 = arith.constant 0 : index
    %c4_321 = arith.constant 4 : index
    %c128_322 = arith.constant 128 : index
    %399 = vector.load %arg11[%c0_320, %c4_321, %c128_322] : memref<4x16x512xf32, #tpu.memory_space<vmem>>, vector<1x4x256xf32>
    %400 = vector.shape_cast %399 : vector<1x4x256xf32> to vector<4x256xf32>
    %401 = arith.truncf %400 : vector<4x256xf32> to vector<4x256xbf16>
    %cst_323 = arith.constant dense<0.000000e+00> : vector<16x256xf32>
    %402 = tpu.matmul %316, %401, %cst_323 {dimension_numbers = #tpu.dot_dimension_numbers<[1], [0], [0], [1], [0, 0, 1, 1], [], []>} : vector<16x4xbf16>, vector<4x256xbf16>, vector<16x256xf32> -> vector<16x256xf32>
    %403 = arith.addf %398, %402 : vector<16x256xf32>
    %c1_324 = arith.constant 1 : index
    %c0_325 = arith.constant 0 : index
    %c128_326 = arith.constant 128 : index
    %404 = vector.load %arg11[%c1_324, %c0_325, %c128_326] : memref<4x16x512xf32, #tpu.memory_space<vmem>>, vector<1x4x256xf32>
    %405 = vector.shape_cast %404 : vector<1x4x256xf32> to vector<4x256xf32>
    %406 = arith.truncf %405 : vector<4x256xf32> to vector<4x256xbf16>
    %cst_327 = arith.constant dense<0.000000e+00> : vector<16x256xf32>
    %407 = tpu.matmul %318, %406, %cst_327 {dimension_numbers = #tpu.dot_dimension_numbers<[1], [0], [0], [1], [0, 0, 1, 1], [], []>} : vector<16x4xbf16>, vector<4x256xbf16>, vector<16x256xf32> -> vector<16x256xf32>
    %408 = arith.addf %403, %407 : vector<16x256xf32>
    %c0_328 = arith.constant 0 : index
    %c8_329 = arith.constant 8 : index
    %c128_330 = arith.constant 128 : index
    %409 = vector.load %arg11[%c0_328, %c8_329, %c128_330] : memref<4x16x512xf32, #tpu.memory_space<vmem>>, vector<1x4x256xf32>
    %410 = vector.shape_cast %409 : vector<1x4x256xf32> to vector<4x256xf32>
    %411 = arith.truncf %410 : vector<4x256xf32> to vector<4x256xbf16>
    %cst_331 = arith.constant dense<0.000000e+00> : vector<16x256xf32>
    %412 = tpu.matmul %320, %411, %cst_331 {dimension_numbers = #tpu.dot_dimension_numbers<[1], [0], [0], [1], [0, 0, 1, 1], [], []>} : vector<16x4xbf16>, vector<4x256xbf16>, vector<16x256xf32> -> vector<16x256xf32>
    %413 = arith.addf %408, %412 : vector<16x256xf32>
    %c0_332 = arith.constant 0 : index
    %c12_333 = arith.constant 12 : index
    %c128_334 = arith.constant 128 : index
    %414 = vector.load %arg11[%c0_332, %c12_333, %c128_334] : memref<4x16x512xf32, #tpu.memory_space<vmem>>, vector<1x4x256xf32>
    %415 = vector.shape_cast %414 : vector<1x4x256xf32> to vector<4x256xf32>
    %416 = arith.truncf %415 : vector<4x256xf32> to vector<4x256xbf16>
    %cst_335 = arith.constant dense<0.000000e+00> : vector<16x256xf32>
    %417 = tpu.matmul %322, %416, %cst_335 {dimension_numbers = #tpu.dot_dimension_numbers<[1], [0], [0], [1], [0, 0, 1, 1], [], []>} : vector<16x4xbf16>, vector<4x256xbf16>, vector<16x256xf32> -> vector<16x256xf32>
    %418 = arith.addf %413, %417 : vector<16x256xf32>
    %c1_336 = arith.constant 1 : index
    %c8_337 = arith.constant 8 : index
    %c128_338 = arith.constant 128 : index
    %419 = vector.load %arg11[%c1_336, %c8_337, %c128_338] : memref<4x16x512xf32, #tpu.memory_space<vmem>>, vector<1x4x256xf32>
    %420 = vector.shape_cast %419 : vector<1x4x256xf32> to vector<4x256xf32>
    %421 = arith.truncf %420 : vector<4x256xf32> to vector<4x256xbf16>
    %cst_339 = arith.constant dense<0.000000e+00> : vector<16x256xf32>
    %422 = tpu.matmul %324, %421, %cst_339 {dimension_numbers = #tpu.dot_dimension_numbers<[1], [0], [0], [1], [0, 0, 1, 1], [], []>} : vector<16x4xbf16>, vector<4x256xbf16>, vector<16x256xf32> -> vector<16x256xf32>
    %423 = arith.addf %418, %422 : vector<16x256xf32>
    %424 = vector.broadcast %325 : vector<16x1xf32> to vector<16x256xf32>
    %425 = arith.addf %423, %424 : vector<16x256xf32>
    %426 = math.tanh %425 : vector<16x256xf32>
    %cst_340 = arith.constant 0.000000e+00 : f32
    %427 = vector.shape_cast %2 : vector<1x256xi1> to vector<1x256xi1>
    %428 = vector.broadcast %427 : vector<1x256xi1> to vector<16x256xi1>
    %429 = vector.broadcast %cst_340 : f32 to vector<16x256xf32>
    %430 = arith.select %428, %426, %429 : vector<16x256xi1>, vector<16x256xf32>
    %c1_341 = arith.constant 1 : index
    %c0_342 = arith.constant 0 : index
    %c0_343 = arith.constant 0 : index
    %431 = vector.load %arg9[%c1_341, %c0_342, %c0_343] : memref<16x16x256xf32, #tpu.memory_space<vmem>>, vector<1x16x256xf32>
    %432 = vector.shape_cast %431 : vector<1x16x256xf32> to vector<16x256xf32>
    %433 = vector.shape_cast %430 : vector<16x256xf32> to vector<1x16x256xf32>
    tpu.vector_store %arg9[%c1_341, %c0_342, %c0_343], %433 {strides = array<i32>} : memref<16x16x256xf32, #tpu.memory_space<vmem>>, vector<1x16x256xf32>,
    %c2_344 = arith.constant 2 : index
    %c12_345 = arith.constant 12 : index
    %c118_346 = arith.constant 118 : index
    %434 = vector.load %arg11[%c2_344, %c12_345, %c118_346] : memref<4x16x512xf32, #tpu.memory_space<vmem>>, vector<1x4x256xf32>
    %435 = vector.shape_cast %434 : vector<1x4x256xf32> to vector<4x256xf32>
    %436 = arith.truncf %435 : vector<4x256xf32> to vector<4x256xbf16>
    %cst_347 = arith.constant dense<0.000000e+00> : vector<16x256xf32>
    %437 = tpu.matmul %308, %436, %cst_347 {dimension_numbers = #tpu.dot_dimension_numbers<[1], [0], [0], [1], [0, 0, 1, 1], [], []>} : vector<16x4xbf16>, vector<4x256xbf16>, vector<16x256xf32> -> vector<16x256xf32>
    %c3_348 = arith.constant 3 : index
    %c8_349 = arith.constant 8 : index
    %c118_350 = arith.constant 118 : index
    %438 = vector.load %arg11[%c3_348, %c8_349, %c118_350] : memref<4x16x512xf32, #tpu.memory_space<vmem>>, vector<1x4x256xf32>
    %439 = vector.shape_cast %438 : vector<1x4x256xf32> to vector<4x256xf32>
    %440 = arith.truncf %439 : vector<4x256xf32> to vector<4x256xbf16>
    %cst_351 = arith.constant dense<0.000000e+00> : vector<16x256xf32>
    %441 = tpu.matmul %310, %440, %cst_351 {dimension_numbers = #tpu.dot_dimension_numbers<[1], [0], [0], [1], [0, 0, 1, 1], [], []>} : vector<16x4xbf16>, vector<4x256xbf16>, vector<16x256xf32> -> vector<16x256xf32>
    %442 = arith.addf %437, %441 : vector<16x256xf32>
    %c3_352 = arith.constant 3 : index
    %c12_353 = arith.constant 12 : index
    %c118_354 = arith.constant 118 : index
    %443 = vector.load %arg11[%c3_352, %c12_353, %c118_354] : memref<4x16x512xf32, #tpu.memory_space<vmem>>, vector<1x4x256xf32>
    %444 = vector.shape_cast %443 : vector<1x4x256xf32> to vector<4x256xf32>
    %445 = arith.truncf %444 : vector<4x256xf32> to vector<4x256xbf16>
    %cst_355 = arith.constant dense<0.000000e+00> : vector<16x256xf32>
    %446 = tpu.matmul %312, %445, %cst_355 {dimension_numbers = #tpu.dot_dimension_numbers<[1], [0], [0], [1], [0, 0, 1, 1], [], []>} : vector<16x4xbf16>, vector<4x256xbf16>, vector<16x256xf32> -> vector<16x256xf32>
    %447 = arith.addf %442, %446 : vector<16x256xf32>
    %c0_356 = arith.constant 0 : index
    %c4_357 = arith.constant 4 : index
    %c128_358 = arith.constant 128 : index
    %448 = vector.load %arg11[%c0_356, %c4_357, %c128_358] : memref<4x16x512xf32, #tpu.memory_space<vmem>>, vector<1x4x256xf32>
    %449 = vector.shape_cast %448 : vector<1x4x256xf32> to vector<4x256xf32>
    %450 = arith.truncf %449 : vector<4x256xf32> to vector<4x256xbf16>
    %cst_359 = arith.constant dense<0.000000e+00> : vector<16x256xf32>
    %451 = tpu.matmul %314, %450, %cst_359 {dimension_numbers = #tpu.dot_dimension_numbers<[1], [0], [0], [1], [0, 0, 1, 1], [], []>} : vector<16x4xbf16>, vector<4x256xbf16>, vector<16x256xf32> -> vector<16x256xf32>
    %452 = arith.addf %447, %451 : vector<16x256xf32>
    %c1_360 = arith.constant 1 : index
    %c0_361 = arith.constant 0 : index
    %c128_362 = arith.constant 128 : index
    %453 = vector.load %arg11[%c1_360, %c0_361, %c128_362] : memref<4x16x512xf32, #tpu.memory_space<vmem>>, vector<1x4x256xf32>
    %454 = vector.shape_cast %453 : vector<1x4x256xf32> to vector<4x256xf32>
    %455 = arith.truncf %454 : vector<4x256xf32> to vector<4x256xbf16>
    %cst_363 = arith.constant dense<0.000000e+00> : vector<16x256xf32>
    %456 = tpu.matmul %316, %455, %cst_363 {dimension_numbers = #tpu.dot_dimension_numbers<[1], [0], [0], [1], [0, 0, 1, 1], [], []>} : vector<16x4xbf16>, vector<4x256xbf16>, vector<16x256xf32> -> vector<16x256xf32>
    %457 = arith.addf %452, %456 : vector<16x256xf32>
    %c1_364 = arith.constant 1 : index
    %c4_365 = arith.constant 4 : index
    %c128_366 = arith.constant 128 : index
    %458 = vector.load %arg11[%c1_364, %c4_365, %c128_366] : memref<4x16x512xf32, #tpu.memory_space<vmem>>, vector<1x4x256xf32>
    %459 = vector.shape_cast %458 : vector<1x4x256xf32> to vector<4x256xf32>
    %460 = arith.truncf %459 : vector<4x256xf32> to vector<4x256xbf16>
    %cst_367 = arith.constant dense<0.000000e+00> : vector<16x256xf32>
    %461 = tpu.matmul %318, %460, %cst_367 {dimension_numbers = #tpu.dot_dimension_numbers<[1], [0], [0], [1], [0, 0, 1, 1], [], []>} : vector<16x4xbf16>, vector<4x256xbf16>, vector<16x256xf32> -> vector<16x256xf32>
    %462 = arith.addf %457, %461 : vector<16x256xf32>
    %c0_368 = arith.constant 0 : index
    %c12_369 = arith.constant 12 : index
    %c128_370 = arith.constant 128 : index
    %463 = vector.load %arg11[%c0_368, %c12_369, %c128_370] : memref<4x16x512xf32, #tpu.memory_space<vmem>>, vector<1x4x256xf32>
    %464 = vector.shape_cast %463 : vector<1x4x256xf32> to vector<4x256xf32>
    %465 = arith.truncf %464 : vector<4x256xf32> to vector<4x256xbf16>
    %cst_371 = arith.constant dense<0.000000e+00> : vector<16x256xf32>
    %466 = tpu.matmul %320, %465, %cst_371 {dimension_numbers = #tpu.dot_dimension_numbers<[1], [0], [0], [1], [0, 0, 1, 1], [], []>} : vector<16x4xbf16>, vector<4x256xbf16>, vector<16x256xf32> -> vector<16x256xf32>
    %467 = arith.addf %462, %466 : vector<16x256xf32>
    %c1_372 = arith.constant 1 : index
    %c8_373 = arith.constant 8 : index
    %c128_374 = arith.constant 128 : index
    %468 = vector.load %arg11[%c1_372, %c8_373, %c128_374] : memref<4x16x512xf32, #tpu.memory_space<vmem>>, vector<1x4x256xf32>
    %469 = vector.shape_cast %468 : vector<1x4x256xf32> to vector<4x256xf32>
    %470 = arith.truncf %469 : vector<4x256xf32> to vector<4x256xbf16>
    %cst_375 = arith.constant dense<0.000000e+00> : vector<16x256xf32>
    %471 = tpu.matmul %322, %470, %cst_375 {dimension_numbers = #tpu.dot_dimension_numbers<[1], [0], [0], [1], [0, 0, 1, 1], [], []>} : vector<16x4xbf16>, vector<4x256xbf16>, vector<16x256xf32> -> vector<16x256xf32>
    %472 = arith.addf %467, %471 : vector<16x256xf32>
    %c1_376 = arith.constant 1 : index
    %c12_377 = arith.constant 12 : index
    %c128_378 = arith.constant 128 : index
    %473 = vector.load %arg11[%c1_376, %c12_377, %c128_378] : memref<4x16x512xf32, #tpu.memory_space<vmem>>, vector<1x4x256xf32>
    %474 = vector.shape_cast %473 : vector<1x4x256xf32> to vector<4x256xf32>
    %475 = arith.truncf %474 : vector<4x256xf32> to vector<4x256xbf16>
    %cst_379 = arith.constant dense<0.000000e+00> : vector<16x256xf32>
    %476 = tpu.matmul %324, %475, %cst_379 {dimension_numbers = #tpu.dot_dimension_numbers<[1], [0], [0], [1], [0, 0, 1, 1], [], []>} : vector<16x4xbf16>, vector<4x256xbf16>, vector<16x256xf32> -> vector<16x256xf32>
    %477 = arith.addf %472, %476 : vector<16x256xf32>
    %478 = vector.broadcast %325 : vector<16x1xf32> to vector<16x256xf32>
    %479 = arith.addf %477, %478 : vector<16x256xf32>
    %480 = math.tanh %479 : vector<16x256xf32>
    %cst_380 = arith.constant 0.000000e+00 : f32
    %481 = vector.shape_cast %2 : vector<1x256xi1> to vector<1x256xi1>
    %482 = vector.broadcast %481 : vector<1x256xi1> to vector<16x256xi1>
    %483 = vector.broadcast %cst_380 : f32 to vector<16x256xf32>
    %484 = arith.select %482, %480, %483 : vector<16x256xi1>, vector<16x256xf32>
    %c2_381 = arith.constant 2 : index
    %c0_382 = arith.constant 0 : index
    %c0_383 = arith.constant 0 : index
    %485 = vector.load %arg9[%c2_381, %c0_382, %c0_383] : memref<16x16x256xf32, #tpu.memory_space<vmem>>, vector<1x16x256xf32>
    %486 = vector.shape_cast %485 : vector<1x16x256xf32> to vector<16x256xf32>
    %487 = vector.shape_cast %484 : vector<16x256xf32> to vector<1x16x256xf32>
    tpu.vector_store %arg9[%c2_381, %c0_382, %c0_383], %487 {strides = array<i32>} : memref<16x16x256xf32, #tpu.memory_space<vmem>>, vector<1x16x256xf32>,
    %c3_384 = arith.constant 3 : index
    %c8_385 = arith.constant 8 : index
    %c118_386 = arith.constant 118 : index
    %488 = vector.load %arg11[%c3_384, %c8_385, %c118_386] : memref<4x16x512xf32, #tpu.memory_space<vmem>>, vector<1x4x256xf32>
    %489 = vector.shape_cast %488 : vector<1x4x256xf32> to vector<4x256xf32>
    %490 = arith.truncf %489 : vector<4x256xf32> to vector<4x256xbf16>
    %cst_387 = arith.constant dense<0.000000e+00> : vector<16x256xf32>
    %491 = tpu.matmul %308, %490, %cst_387 {dimension_numbers = #tpu.dot_dimension_numbers<[1], [0], [0], [1], [0, 0, 1, 1], [], []>} : vector<16x4xbf16>, vector<4x256xbf16>, vector<16x256xf32> -> vector<16x256xf32>
    %c3_388 = arith.constant 3 : index
    %c12_389 = arith.constant 12 : index
    %c118_390 = arith.constant 118 : index
    %492 = vector.load %arg11[%c3_388, %c12_389, %c118_390] : memref<4x16x512xf32, #tpu.memory_space<vmem>>, vector<1x4x256xf32>
    %493 = vector.shape_cast %492 : vector<1x4x256xf32> to vector<4x256xf32>
    %494 = arith.truncf %493 : vector<4x256xf32> to vector<4x256xbf16>
    %cst_391 = arith.constant dense<0.000000e+00> : vector<16x256xf32>
    %495 = tpu.matmul %310, %494, %cst_391 {dimension_numbers = #tpu.dot_dimension_numbers<[1], [0], [0], [1], [0, 0, 1, 1], [], []>} : vector<16x4xbf16>, vector<4x256xbf16>, vector<16x256xf32> -> vector<16x256xf32>
    %496 = arith.addf %491, %495 : vector<16x256xf32>
    %c2_392 = arith.constant 2 : index
    %c8_393 = arith.constant 8 : index
    %c119_394 = arith.constant 119 : index
    %497 = vector.load %arg11[%c2_392, %c8_393, %c119_394] : memref<4x16x512xf32, #tpu.memory_space<vmem>>, vector<1x4x256xf32>
    %498 = vector.shape_cast %497 : vector<1x4x256xf32> to vector<4x256xf32>
    %499 = arith.truncf %498 : vector<4x256xf32> to vector<4x256xbf16>
    %cst_395 = arith.constant dense<0.000000e+00> : vector<16x256xf32>
    %500 = tpu.matmul %312, %499, %cst_395 {dimension_numbers = #tpu.dot_dimension_numbers<[1], [0], [0], [1], [0, 0, 1, 1], [], []>} : vector<16x4xbf16>, vector<4x256xbf16>, vector<16x256xf32> -> vector<16x256xf32>
    %501 = arith.addf %496, %500 : vector<16x256xf32>
    %c1_396 = arith.constant 1 : index
    %c0_397 = arith.constant 0 : index
    %c128_398 = arith.constant 128 : index
    %502 = vector.load %arg11[%c1_396, %c0_397, %c128_398] : memref<4x16x512xf32, #tpu.memory_space<vmem>>, vector<1x4x256xf32>
    %503 = vector.shape_cast %502 : vector<1x4x256xf32> to vector<4x256xf32>
    %504 = arith.truncf %503 : vector<4x256xf32> to vector<4x256xbf16>
    %cst_399 = arith.constant dense<0.000000e+00> : vector<16x256xf32>
    %505 = tpu.matmul %314, %504, %cst_399 {dimension_numbers = #tpu.dot_dimension_numbers<[1], [0], [0], [1], [0, 0, 1, 1], [], []>} : vector<16x4xbf16>, vector<4x256xbf16>, vector<16x256xf32> -> vector<16x256xf32>
    %506 = arith.addf %501, %505 : vector<16x256xf32>
    %c1_400 = arith.constant 1 : index
    %c4_401 = arith.constant 4 : index
    %c128_402 = arith.constant 128 : index
    %507 = vector.load %arg11[%c1_400, %c4_401, %c128_402] : memref<4x16x512xf32, #tpu.memory_space<vmem>>, vector<1x4x256xf32>
    %508 = vector.shape_cast %507 : vector<1x4x256xf32> to vector<4x256xf32>
    %509 = arith.truncf %508 : vector<4x256xf32> to vector<4x256xbf16>
    %cst_403 = arith.constant dense<0.000000e+00> : vector<16x256xf32>
    %510 = tpu.matmul %316, %509, %cst_403 {dimension_numbers = #tpu.dot_dimension_numbers<[1], [0], [0], [1], [0, 0, 1, 1], [], []>} : vector<16x4xbf16>, vector<4x256xbf16>, vector<16x256xf32> -> vector<16x256xf32>
    %511 = arith.addf %506, %510 : vector<16x256xf32>
    %c0_404 = arith.constant 0 : index
    %c0_405 = arith.constant 0 : index
    %c129_406 = arith.constant 129 : index
    %512 = vector.load %arg11[%c0_404, %c0_405, %c129_406] : memref<4x16x512xf32, #tpu.memory_space<vmem>>, vector<1x4x256xf32>
    %513 = vector.shape_cast %512 : vector<1x4x256xf32> to vector<4x256xf32>
    %514 = arith.truncf %513 : vector<4x256xf32> to vector<4x256xbf16>
    %cst_407 = arith.constant dense<0.000000e+00> : vector<16x256xf32>
    %515 = tpu.matmul %318, %514, %cst_407 {dimension_numbers = #tpu.dot_dimension_numbers<[1], [0], [0], [1], [0, 0, 1, 1], [], []>} : vector<16x4xbf16>, vector<4x256xbf16>, vector<16x256xf32> -> vector<16x256xf32>
    %516 = arith.addf %511, %515 : vector<16x256xf32>
    %c1_408 = arith.constant 1 : index
    %c8_409 = arith.constant 8 : index
    %c128_410 = arith.constant 128 : index
    %517 = vector.load %arg11[%c1_408, %c8_409, %c128_410] : memref<4x16x512xf32, #tpu.memory_space<vmem>>, vector<1x4x256xf32>
    %518 = vector.shape_cast %517 : vector<1x4x256xf32> to vector<4x256xf32>
    %519 = arith.truncf %518 : vector<4x256xf32> to vector<4x256xbf16>
    %cst_411 = arith.constant dense<0.000000e+00> : vector<16x256xf32>
    %520 = tpu.matmul %320, %519, %cst_411 {dimension_numbers = #tpu.dot_dimension_numbers<[1], [0], [0], [1], [0, 0, 1, 1], [], []>} : vector<16x4xbf16>, vector<4x256xbf16>, vector<16x256xf32> -> vector<16x256xf32>
    %521 = arith.addf %516, %520 : vector<16x256xf32>
    %c1_412 = arith.constant 1 : index
    %c12_413 = arith.constant 12 : index
    %c128_414 = arith.constant 128 : index
    %522 = vector.load %arg11[%c1_412, %c12_413, %c128_414] : memref<4x16x512xf32, #tpu.memory_space<vmem>>, vector<1x4x256xf32>
    %523 = vector.shape_cast %522 : vector<1x4x256xf32> to vector<4x256xf32>
    %524 = arith.truncf %523 : vector<4x256xf32> to vector<4x256xbf16>
    %cst_415 = arith.constant dense<0.000000e+00> : vector<16x256xf32>
    %525 = tpu.matmul %322, %524, %cst_415 {dimension_numbers = #tpu.dot_dimension_numbers<[1], [0], [0], [1], [0, 0, 1, 1], [], []>} : vector<16x4xbf16>, vector<4x256xbf16>, vector<16x256xf32> -> vector<16x256xf32>
    %526 = arith.addf %521, %525 : vector<16x256xf32>
    %c0_416 = arith.constant 0 : index
    %c8_417 = arith.constant 8 : index
    %c129_418 = arith.constant 129 : index
    %527 = vector.load %arg11[%c0_416, %c8_417, %c129_418] : memref<4x16x512xf32, #tpu.memory_space<vmem>>, vector<1x4x256xf32>
    %528 = vector.shape_cast %527 : vector<1x4x256xf32> to vector<4x256xf32>
    %529 = arith.truncf %528 : vector<4x256xf32> to vector<4x256xbf16>
    %cst_419 = arith.constant dense<0.000000e+00> : vector<16x256xf32>
    %530 = tpu.matmul %324, %529, %cst_419 {dimension_numbers = #tpu.dot_dimension_numbers<[1], [0], [0], [1], [0, 0, 1, 1], [], []>} : vector<16x4xbf16>, vector<4x256xbf16>, vector<16x256xf32> -> vector<16x256xf32>
    %531 = arith.addf %526, %530 : vector<16x256xf32>
    %532 = vector.broadcast %325 : vector<16x1xf32> to vector<16x256xf32>
    %533 = arith.addf %531, %532 : vector<16x256xf32>
    %534 = math.tanh %533 : vector<16x256xf32>
    %cst_420 = arith.constant 0.000000e+00 : f32
    %535 = vector.shape_cast %2 : vector<1x256xi1> to vector<1x256xi1>
    %536 = vector.broadcast %535 : vector<1x256xi1> to vector<16x256xi1>
    %537 = vector.broadcast %cst_420 : f32 to vector<16x256xf32>
    %538 = arith.select %536, %534, %537 : vector<16x256xi1>, vector<16x256xf32>
    %c3_421 = arith.constant 3 : index
    %c0_422 = arith.constant 0 : index
    %c0_423 = arith.constant 0 : index
    %539 = vector.load %arg9[%c3_421, %c0_422, %c0_423] : memref<16x16x256xf32, #tpu.memory_space<vmem>>, vector<1x16x256xf32>
    %540 = vector.shape_cast %539 : vector<1x16x256xf32> to vector<16x256xf32>
    %541 = vector.shape_cast %538 : vector<16x256xf32> to vector<1x16x256xf32>
    tpu.vector_store %arg9[%c3_421, %c0_422, %c0_423], %541 {strides = array<i32>} : memref<16x16x256xf32, #tpu.memory_space<vmem>>, vector<1x16x256xf32>,
    %c1_424 = arith.constant 1 : index
    %c4_425 = arith.constant 4 : index
    %c127_426 = arith.constant 127 : index
    %542 = vector.load %arg11[%c1_424, %c4_425, %c127_426] : memref<4x16x512xf32, #tpu.memory_space<vmem>>, vector<1x4x256xf32>
    %543 = vector.shape_cast %542 : vector<1x4x256xf32> to vector<4x256xf32>
    %544 = arith.truncf %543 : vector<4x256xf32> to vector<4x256xbf16>
    %cst_427 = arith.constant dense<0.000000e+00> : vector<16x256xf32>
    %545 = tpu.matmul %308, %544, %cst_427 {dimension_numbers = #tpu.dot_dimension_numbers<[1], [0], [0], [1], [0, 0, 1, 1], [], []>} : vector<16x4xbf16>, vector<4x256xbf16>, vector<16x256xf32> -> vector<16x256xf32>
    %c0_428 = arith.constant 0 : index
    %c0_429 = arith.constant 0 : index
    %c128_430 = arith.constant 128 : index
    %546 = vector.load %arg11[%c0_428, %c0_429, %c128_430] : memref<4x16x512xf32, #tpu.memory_space<vmem>>, vector<1x4x256xf32>
    %547 = vector.shape_cast %546 : vector<1x4x256xf32> to vector<4x256xf32>
    %548 = arith.truncf %547 : vector<4x256xf32> to vector<4x256xbf16>
    %cst_431 = arith.constant dense<0.000000e+00> : vector<16x256xf32>
    %549 = tpu.matmul %310, %548, %cst_431 {dimension_numbers = #tpu.dot_dimension_numbers<[1], [0], [0], [1], [0, 0, 1, 1], [], []>} : vector<16x4xbf16>, vector<4x256xbf16>, vector<16x256xf32> -> vector<16x256xf32>
    %550 = arith.addf %545, %549 : vector<16x256xf32>
    %c0_432 = arith.constant 0 : index
    %c4_433 = arith.constant 4 : index
    %c128_434 = arith.constant 128 : index
    %551 = vector.load %arg11[%c0_432, %c4_433, %c128_434] : memref<4x16x512xf32, #tpu.memory_space<vmem>>, vector<1x4x256xf32>
    %552 = vector.shape_cast %551 : vector<1x4x256xf32> to vector<4x256xf32>
    %553 = arith.truncf %552 : vector<4x256xf32> to vector<4x256xbf16>
    %cst_435 = arith.constant dense<0.000000e+00> : vector<16x256xf32>
    %554 = tpu.matmul %312, %553, %cst_435 {dimension_numbers = #tpu.dot_dimension_numbers<[1], [0], [0], [1], [0, 0, 1, 1], [], []>} : vector<16x4xbf16>, vector<4x256xbf16>, vector<16x256xf32> -> vector<16x256xf32>
    %555 = arith.addf %550, %554 : vector<16x256xf32>
    %c1_436 = arith.constant 1 : index
    %c12_437 = arith.constant 12 : index
    %c127_438 = arith.constant 127 : index
    %556 = vector.load %arg11[%c1_436, %c12_437, %c127_438] : memref<4x16x512xf32, #tpu.memory_space<vmem>>, vector<1x4x256xf32>
    %557 = vector.shape_cast %556 : vector<1x4x256xf32> to vector<4x256xf32>
    %558 = arith.truncf %557 : vector<4x256xf32> to vector<4x256xbf16>
    %cst_439 = arith.constant dense<0.000000e+00> : vector<16x256xf32>
    %559 = tpu.matmul %314, %558, %cst_439 {dimension_numbers = #tpu.dot_dimension_numbers<[1], [0], [0], [1], [0, 0, 1, 1], [], []>} : vector<16x4xbf16>, vector<4x256xbf16>, vector<16x256xf32> -> vector<16x256xf32>
    %560 = arith.addf %555, %559 : vector<16x256xf32>
    %c0_440 = arith.constant 0 : index
    %c8_441 = arith.constant 8 : index
    %c128_442 = arith.constant 128 : index
    %561 = vector.load %arg11[%c0_440, %c8_441, %c128_442] : memref<4x16x512xf32, #tpu.memory_space<vmem>>, vector<1x4x256xf32>
    %562 = vector.shape_cast %561 : vector<1x4x256xf32> to vector<4x256xf32>
    %563 = arith.truncf %562 : vector<4x256xf32> to vector<4x256xbf16>
    %cst_443 = arith.constant dense<0.000000e+00> : vector<16x256xf32>
    %564 = tpu.matmul %316, %563, %cst_443 {dimension_numbers = #tpu.dot_dimension_numbers<[1], [0], [0], [1], [0, 0, 1, 1], [], []>} : vector<16x4xbf16>, vector<4x256xbf16>, vector<16x256xf32> -> vector<16x256xf32>
    %565 = arith.addf %560, %564 : vector<16x256xf32>
    %c0_444 = arith.constant 0 : index
    %c12_445 = arith.constant 12 : index
    %c128_446 = arith.constant 128 : index
    %566 = vector.load %arg11[%c0_444, %c12_445, %c128_446] : memref<4x16x512xf32, #tpu.memory_space<vmem>>, vector<1x4x256xf32>
    %567 = vector.shape_cast %566 : vector<1x4x256xf32> to vector<4x256xf32>
    %568 = arith.truncf %567 : vector<4x256xf32> to vector<4x256xbf16>
    %cst_447 = arith.constant dense<0.000000e+00> : vector<16x256xf32>
    %569 = tpu.matmul %318, %568, %cst_447 {dimension_numbers = #tpu.dot_dimension_numbers<[1], [0], [0], [1], [0, 0, 1, 1], [], []>} : vector<16x4xbf16>, vector<4x256xbf16>, vector<16x256xf32> -> vector<16x256xf32>
    %570 = arith.addf %565, %569 : vector<16x256xf32>
    %c3_448 = arith.constant 3 : index
    %c4_449 = arith.constant 4 : index
    %c127_450 = arith.constant 127 : index
    %571 = vector.load %arg11[%c3_448, %c4_449, %c127_450] : memref<4x16x512xf32, #tpu.memory_space<vmem>>, vector<1x4x256xf32>
    %572 = vector.shape_cast %571 : vector<1x4x256xf32> to vector<4x256xf32>
    %573 = arith.truncf %572 : vector<4x256xf32> to vector<4x256xbf16>
    %cst_451 = arith.constant dense<0.000000e+00> : vector<16x256xf32>
    %574 = tpu.matmul %320, %573, %cst_451 {dimension_numbers = #tpu.dot_dimension_numbers<[1], [0], [0], [1], [0, 0, 1, 1], [], []>} : vector<16x4xbf16>, vector<4x256xbf16>, vector<16x256xf32> -> vector<16x256xf32>
    %575 = arith.addf %570, %574 : vector<16x256xf32>
    %c2_452 = arith.constant 2 : index
    %c0_453 = arith.constant 0 : index
    %c128_454 = arith.constant 128 : index
    %576 = vector.load %arg11[%c2_452, %c0_453, %c128_454] : memref<4x16x512xf32, #tpu.memory_space<vmem>>, vector<1x4x256xf32>
    %577 = vector.shape_cast %576 : vector<1x4x256xf32> to vector<4x256xf32>
    %578 = arith.truncf %577 : vector<4x256xf32> to vector<4x256xbf16>
    %cst_455 = arith.constant dense<0.000000e+00> : vector<16x256xf32>
    %579 = tpu.matmul %322, %578, %cst_455 {dimension_numbers = #tpu.dot_dimension_numbers<[1], [0], [0], [1], [0, 0, 1, 1], [], []>} : vector<16x4xbf16>, vector<4x256xbf16>, vector<16x256xf32> -> vector<16x256xf32>
    %580 = arith.addf %575, %579 : vector<16x256xf32>
    %c2_456 = arith.constant 2 : index
    %c4_457 = arith.constant 4 : index
    %c128_458 = arith.constant 128 : index
    %581 = vector.load %arg11[%c2_456, %c4_457, %c128_458] : memref<4x16x512xf32, #tpu.memory_space<vmem>>, vector<1x4x256xf32>
    %582 = vector.shape_cast %581 : vector<1x4x256xf32> to vector<4x256xf32>
    %583 = arith.truncf %582 : vector<4x256xf32> to vector<4x256xbf16>
    %cst_459 = arith.constant dense<0.000000e+00> : vector<16x256xf32>
    %584 = tpu.matmul %324, %583, %cst_459 {dimension_numbers = #tpu.dot_dimension_numbers<[1], [0], [0], [1], [0, 0, 1, 1], [], []>} : vector<16x4xbf16>, vector<4x256xbf16>, vector<16x256xf32> -> vector<16x256xf32>
    %585 = arith.addf %580, %584 : vector<16x256xf32>
    %586 = vector.broadcast %325 : vector<16x1xf32> to vector<16x256xf32>
    %587 = arith.addf %585, %586 : vector<16x256xf32>
    %588 = math.tanh %587 : vector<16x256xf32>
    %cst_460 = arith.constant 0.000000e+00 : f32
    %589 = vector.shape_cast %2 : vector<1x256xi1> to vector<1x256xi1>
    %590 = vector.broadcast %589 : vector<1x256xi1> to vector<16x256xi1>
    %591 = vector.broadcast %cst_460 : f32 to vector<16x256xf32>
    %592 = arith.select %590, %588, %591 : vector<16x256xi1>, vector<16x256xf32>
    %c4_461 = arith.constant 4 : index
    %c0_462 = arith.constant 0 : index
    %c0_463 = arith.constant 0 : index
    %593 = vector.load %arg9[%c4_461, %c0_462, %c0_463] : memref<16x16x256xf32, #tpu.memory_space<vmem>>, vector<1x16x256xf32>
    %594 = vector.shape_cast %593 : vector<1x16x256xf32> to vector<16x256xf32>
    %595 = vector.shape_cast %592 : vector<16x256xf32> to vector<1x16x256xf32>
    tpu.vector_store %arg9[%c4_461, %c0_462, %c0_463], %595 {strides = array<i32>} : memref<16x16x256xf32, #tpu.memory_space<vmem>>, vector<1x16x256xf32>,
    %c0_464 = arith.constant 0 : index
    %c0_465 = arith.constant 0 : index
    %c128_466 = arith.constant 128 : index
    %596 = vector.load %arg11[%c0_464, %c0_465, %c128_466] : memref<4x16x512xf32, #tpu.memory_space<vmem>>, vector<1x4x256xf32>
    %597 = vector.shape_cast %596 : vector<1x4x256xf32> to vector<4x256xf32>
    %598 = arith.truncf %597 : vector<4x256xf32> to vector<4x256xbf16>
    %cst_467 = arith.constant dense<0.000000e+00> : vector<16x256xf32>
    %599 = tpu.matmul %308, %598, %cst_467 {dimension_numbers = #tpu.dot_dimension_numbers<[1], [0], [0], [1], [0, 0, 1, 1], [], []>} : vector<16x4xbf16>, vector<4x256xbf16>, vector<16x256xf32> -> vector<16x256xf32>
    %c0_468 = arith.constant 0 : index
    %c4_469 = arith.constant 4 : index
    %c128_470 = arith.constant 128 : index
    %600 = vector.load %arg11[%c0_468, %c4_469, %c128_470] : memref<4x16x512xf32, #tpu.memory_space<vmem>>, vector<1x4x256xf32>
    %601 = vector.shape_cast %600 : vector<1x4x256xf32> to vector<4x256xf32>
    %602 = arith.truncf %601 : vector<4x256xf32> to vector<4x256xbf16>
    %cst_471 = arith.constant dense<0.000000e+00> : vector<16x256xf32>
    %603 = tpu.matmul %310, %602, %cst_471 {dimension_numbers = #tpu.dot_dimension_numbers<[1], [0], [0], [1], [0, 0, 1, 1], [], []>} : vector<16x4xbf16>, vector<4x256xbf16>, vector<16x256xf32> -> vector<16x256xf32>
    %604 = arith.addf %599, %603 : vector<16x256xf32>
    %c1_472 = arith.constant 1 : index
    %c0_473 = arith.constant 0 : index
    %c128_474 = arith.constant 128 : index
    %605 = vector.load %arg11[%c1_472, %c0_473, %c128_474] : memref<4x16x512xf32, #tpu.memory_space<vmem>>, vector<1x4x256xf32>
    %606 = vector.shape_cast %605 : vector<1x4x256xf32> to vector<4x256xf32>
    %607 = arith.truncf %606 : vector<4x256xf32> to vector<4x256xbf16>
    %cst_475 = arith.constant dense<0.000000e+00> : vector<16x256xf32>
    %608 = tpu.matmul %312, %607, %cst_475 {dimension_numbers = #tpu.dot_dimension_numbers<[1], [0], [0], [1], [0, 0, 1, 1], [], []>} : vector<16x4xbf16>, vector<4x256xbf16>, vector<16x256xf32> -> vector<16x256xf32>
    %609 = arith.addf %604, %608 : vector<16x256xf32>
    %c0_476 = arith.constant 0 : index
    %c8_477 = arith.constant 8 : index
    %c128_478 = arith.constant 128 : index
    %610 = vector.load %arg11[%c0_476, %c8_477, %c128_478] : memref<4x16x512xf32, #tpu.memory_space<vmem>>, vector<1x4x256xf32>
    %611 = vector.shape_cast %610 : vector<1x4x256xf32> to vector<4x256xf32>
    %612 = arith.truncf %611 : vector<4x256xf32> to vector<4x256xbf16>
    %cst_479 = arith.constant dense<0.000000e+00> : vector<16x256xf32>
    %613 = tpu.matmul %314, %612, %cst_479 {dimension_numbers = #tpu.dot_dimension_numbers<[1], [0], [0], [1], [0, 0, 1, 1], [], []>} : vector<16x4xbf16>, vector<4x256xbf16>, vector<16x256xf32> -> vector<16x256xf32>
    %614 = arith.addf %609, %613 : vector<16x256xf32>
    %c0_480 = arith.constant 0 : index
    %c12_481 = arith.constant 12 : index
    %c128_482 = arith.constant 128 : index
    %615 = vector.load %arg11[%c0_480, %c12_481, %c128_482] : memref<4x16x512xf32, #tpu.memory_space<vmem>>, vector<1x4x256xf32>
    %616 = vector.shape_cast %615 : vector<1x4x256xf32> to vector<4x256xf32>
    %617 = arith.truncf %616 : vector<4x256xf32> to vector<4x256xbf16>
    %cst_483 = arith.constant dense<0.000000e+00> : vector<16x256xf32>
    %618 = tpu.matmul %316, %617, %cst_483 {dimension_numbers = #tpu.dot_dimension_numbers<[1], [0], [0], [1], [0, 0, 1, 1], [], []>} : vector<16x4xbf16>, vector<4x256xbf16>, vector<16x256xf32> -> vector<16x256xf32>
    %619 = arith.addf %614, %618 : vector<16x256xf32>
    %c1_484 = arith.constant 1 : index
    %c8_485 = arith.constant 8 : index
    %c128_486 = arith.constant 128 : index
    %620 = vector.load %arg11[%c1_484, %c8_485, %c128_486] : memref<4x16x512xf32, #tpu.memory_space<vmem>>, vector<1x4x256xf32>
    %621 = vector.shape_cast %620 : vector<1x4x256xf32> to vector<4x256xf32>
    %622 = arith.truncf %621 : vector<4x256xf32> to vector<4x256xbf16>
    %cst_487 = arith.constant dense<0.000000e+00> : vector<16x256xf32>
    %623 = tpu.matmul %318, %622, %cst_487 {dimension_numbers = #tpu.dot_dimension_numbers<[1], [0], [0], [1], [0, 0, 1, 1], [], []>} : vector<16x4xbf16>, vector<4x256xbf16>, vector<16x256xf32> -> vector<16x256xf32>
    %624 = arith.addf %619, %623 : vector<16x256xf32>
    %c2_488 = arith.constant 2 : index
    %c0_489 = arith.constant 0 : index
    %c128_490 = arith.constant 128 : index
    %625 = vector.load %arg11[%c2_488, %c0_489, %c128_490] : memref<4x16x512xf32, #tpu.memory_space<vmem>>, vector<1x4x256xf32>
    %626 = vector.shape_cast %625 : vector<1x4x256xf32> to vector<4x256xf32>
    %627 = arith.truncf %626 : vector<4x256xf32> to vector<4x256xbf16>
    %cst_491 = arith.constant dense<0.000000e+00> : vector<16x256xf32>
    %628 = tpu.matmul %320, %627, %cst_491 {dimension_numbers = #tpu.dot_dimension_numbers<[1], [0], [0], [1], [0, 0, 1, 1], [], []>} : vector<16x4xbf16>, vector<4x256xbf16>, vector<16x256xf32> -> vector<16x256xf32>
    %629 = arith.addf %624, %628 : vector<16x256xf32>
    %c2_492 = arith.constant 2 : index
    %c4_493 = arith.constant 4 : index
    %c128_494 = arith.constant 128 : index
    %630 = vector.load %arg11[%c2_492, %c4_493, %c128_494] : memref<4x16x512xf32, #tpu.memory_space<vmem>>, vector<1x4x256xf32>
    %631 = vector.shape_cast %630 : vector<1x4x256xf32> to vector<4x256xf32>
    %632 = arith.truncf %631 : vector<4x256xf32> to vector<4x256xbf16>
    %cst_495 = arith.constant dense<0.000000e+00> : vector<16x256xf32>
    %633 = tpu.matmul %322, %632, %cst_495 {dimension_numbers = #tpu.dot_dimension_numbers<[1], [0], [0], [1], [0, 0, 1, 1], [], []>} : vector<16x4xbf16>, vector<4x256xbf16>, vector<16x256xf32> -> vector<16x256xf32>
    %634 = arith.addf %629, %633 : vector<16x256xf32>
    %c3_496 = arith.constant 3 : index
    %c0_497 = arith.constant 0 : index
    %c128_498 = arith.constant 128 : index
    %635 = vector.load %arg11[%c3_496, %c0_497, %c128_498] : memref<4x16x512xf32, #tpu.memory_space<vmem>>, vector<1x4x256xf32>
    %636 = vector.shape_cast %635 : vector<1x4x256xf32> to vector<4x256xf32>
    %637 = arith.truncf %636 : vector<4x256xf32> to vector<4x256xbf16>
    %cst_499 = arith.constant dense<0.000000e+00> : vector<16x256xf32>
    %638 = tpu.matmul %324, %637, %cst_499 {dimension_numbers = #tpu.dot_dimension_numbers<[1], [0], [0], [1], [0, 0, 1, 1], [], []>} : vector<16x4xbf16>, vector<4x256xbf16>, vector<16x256xf32> -> vector<16x256xf32>
    %639 = arith.addf %634, %638 : vector<16x256xf32>
    %640 = vector.broadcast %325 : vector<16x1xf32> to vector<16x256xf32>
    %641 = arith.addf %639, %640 : vector<16x256xf32>
    %642 = math.tanh %641 : vector<16x256xf32>
    %cst_500 = arith.constant 0.000000e+00 : f32
    %643 = vector.shape_cast %2 : vector<1x256xi1> to vector<1x256xi1>
    %644 = vector.broadcast %643 : vector<1x256xi1> to vector<16x256xi1>
    %645 = vector.broadcast %cst_500 : f32 to vector<16x256xf32>
    %646 = arith.select %644, %642, %645 : vector<16x256xi1>, vector<16x256xf32>
    %c5_501 = arith.constant 5 : index
    %c0_502 = arith.constant 0 : index
    %c0_503 = arith.constant 0 : index
    %647 = vector.load %arg9[%c5_501, %c0_502, %c0_503] : memref<16x16x256xf32, #tpu.memory_space<vmem>>, vector<1x16x256xf32>
    %648 = vector.shape_cast %647 : vector<1x16x256xf32> to vector<16x256xf32>
    %649 = vector.shape_cast %646 : vector<16x256xf32> to vector<1x16x256xf32>
    tpu.vector_store %arg9[%c5_501, %c0_502, %c0_503], %649 {strides = array<i32>} : memref<16x16x256xf32, #tpu.memory_space<vmem>>, vector<1x16x256xf32>,
    %c0_504 = arith.constant 0 : index
    %c4_505 = arith.constant 4 : index
    %c128_506 = arith.constant 128 : index
    %650 = vector.load %arg11[%c0_504, %c4_505, %c128_506] : memref<4x16x512xf32, #tpu.memory_space<vmem>>, vector<1x4x256xf32>
    %651 = vector.shape_cast %650 : vector<1x4x256xf32> to vector<4x256xf32>
    %652 = arith.truncf %651 : vector<4x256xf32> to vector<4x256xbf16>
    %cst_507 = arith.constant dense<0.000000e+00> : vector<16x256xf32>
    %653 = tpu.matmul %308, %652, %cst_507 {dimension_numbers = #tpu.dot_dimension_numbers<[1], [0], [0], [1], [0, 0, 1, 1], [], []>} : vector<16x4xbf16>, vector<4x256xbf16>, vector<16x256xf32> -> vector<16x256xf32>
    %c1_508 = arith.constant 1 : index
    %c0_509 = arith.constant 0 : index
    %c128_510 = arith.constant 128 : index
    %654 = vector.load %arg11[%c1_508, %c0_509, %c128_510] : memref<4x16x512xf32, #tpu.memory_space<vmem>>, vector<1x4x256xf32>
    %655 = vector.shape_cast %654 : vector<1x4x256xf32> to vector<4x256xf32>
    %656 = arith.truncf %655 : vector<4x256xf32> to vector<4x256xbf16>
    %cst_511 = arith.constant dense<0.000000e+00> : vector<16x256xf32>
    %657 = tpu.matmul %310, %656, %cst_511 {dimension_numbers = #tpu.dot_dimension_numbers<[1], [0], [0], [1], [0, 0, 1, 1], [], []>} : vector<16x4xbf16>, vector<4x256xbf16>, vector<16x256xf32> -> vector<16x256xf32>
    %658 = arith.addf %653, %657 : vector<16x256xf32>
    %c1_512 = arith.constant 1 : index
    %c4_513 = arith.constant 4 : index
    %c128_514 = arith.constant 128 : index
    %659 = vector.load %arg11[%c1_512, %c4_513, %c128_514] : memref<4x16x512xf32, #tpu.memory_space<vmem>>, vector<1x4x256xf32>
    %660 = vector.shape_cast %659 : vector<1x4x256xf32> to vector<4x256xf32>
    %661 = arith.truncf %660 : vector<4x256xf32> to vector<4x256xbf16>
    %cst_515 = arith.constant dense<0.000000e+00> : vector<16x256xf32>
    %662 = tpu.matmul %312, %661, %cst_515 {dimension_numbers = #tpu.dot_dimension_numbers<[1], [0], [0], [1], [0, 0, 1, 1], [], []>} : vector<16x4xbf16>, vector<4x256xbf16>, vector<16x256xf32> -> vector<16x256xf32>
    %663 = arith.addf %658, %662 : vector<16x256xf32>
    %c0_516 = arith.constant 0 : index
    %c12_517 = arith.constant 12 : index
    %c128_518 = arith.constant 128 : index
    %664 = vector.load %arg11[%c0_516, %c12_517, %c128_518] : memref<4x16x512xf32, #tpu.memory_space<vmem>>, vector<1x4x256xf32>
    %665 = vector.shape_cast %664 : vector<1x4x256xf32> to vector<4x256xf32>
    %666 = arith.truncf %665 : vector<4x256xf32> to vector<4x256xbf16>
    %cst_519 = arith.constant dense<0.000000e+00> : vector<16x256xf32>
    %667 = tpu.matmul %314, %666, %cst_519 {dimension_numbers = #tpu.dot_dimension_numbers<[1], [0], [0], [1], [0, 0, 1, 1], [], []>} : vector<16x4xbf16>, vector<4x256xbf16>, vector<16x256xf32> -> vector<16x256xf32>
    %668 = arith.addf %663, %667 : vector<16x256xf32>
    %c1_520 = arith.constant 1 : index
    %c8_521 = arith.constant 8 : index
    %c128_522 = arith.constant 128 : index
    %669 = vector.load %arg11[%c1_520, %c8_521, %c128_522] : memref<4x16x512xf32, #tpu.memory_space<vmem>>, vector<1x4x256xf32>
    %670 = vector.shape_cast %669 : vector<1x4x256xf32> to vector<4x256xf32>
    %671 = arith.truncf %670 : vector<4x256xf32> to vector<4x256xbf16>
    %cst_523 = arith.constant dense<0.000000e+00> : vector<16x256xf32>
    %672 = tpu.matmul %316, %671, %cst_523 {dimension_numbers = #tpu.dot_dimension_numbers<[1], [0], [0], [1], [0, 0, 1, 1], [], []>} : vector<16x4xbf16>, vector<4x256xbf16>, vector<16x256xf32> -> vector<16x256xf32>
    %673 = arith.addf %668, %672 : vector<16x256xf32>
    %c1_524 = arith.constant 1 : index
    %c12_525 = arith.constant 12 : index
    %c128_526 = arith.constant 128 : index
    %674 = vector.load %arg11[%c1_524, %c12_525, %c128_526] : memref<4x16x512xf32, #tpu.memory_space<vmem>>, vector<1x4x256xf32>
    %675 = vector.shape_cast %674 : vector<1x4x256xf32> to vector<4x256xf32>
    %676 = arith.truncf %675 : vector<4x256xf32> to vector<4x256xbf16>
    %cst_527 = arith.constant dense<0.000000e+00> : vector<16x256xf32>
    %677 = tpu.matmul %318, %676, %cst_527 {dimension_numbers = #tpu.dot_dimension_numbers<[1], [0], [0], [1], [0, 0, 1, 1], [], []>} : vector<16x4xbf16>, vector<4x256xbf16>, vector<16x256xf32> -> vector<16x256xf32>
    %678 = arith.addf %673, %677 : vector<16x256xf32>
    %c2_528 = arith.constant 2 : index
    %c4_529 = arith.constant 4 : index
    %c128_530 = arith.constant 128 : index
    %679 = vector.load %arg11[%c2_528, %c4_529, %c128_530] : memref<4x16x512xf32, #tpu.memory_space<vmem>>, vector<1x4x256xf32>
    %680 = vector.shape_cast %679 : vector<1x4x256xf32> to vector<4x256xf32>
    %681 = arith.truncf %680 : vector<4x256xf32> to vector<4x256xbf16>
    %cst_531 = arith.constant dense<0.000000e+00> : vector<16x256xf32>
    %682 = tpu.matmul %320, %681, %cst_531 {dimension_numbers = #tpu.dot_dimension_numbers<[1], [0], [0], [1], [0, 0, 1, 1], [], []>} : vector<16x4xbf16>, vector<4x256xbf16>, vector<16x256xf32> -> vector<16x256xf32>
    %683 = arith.addf %678, %682 : vector<16x256xf32>
    %c3_532 = arith.constant 3 : index
    %c0_533 = arith.constant 0 : index
    %c128_534 = arith.constant 128 : index
    %684 = vector.load %arg11[%c3_532, %c0_533, %c128_534] : memref<4x16x512xf32, #tpu.memory_space<vmem>>, vector<1x4x256xf32>
    %685 = vector.shape_cast %684 : vector<1x4x256xf32> to vector<4x256xf32>
    %686 = arith.truncf %685 : vector<4x256xf32> to vector<4x256xbf16>
    %cst_535 = arith.constant dense<0.000000e+00> : vector<16x256xf32>
    %687 = tpu.matmul %322, %686, %cst_535 {dimension_numbers = #tpu.dot_dimension_numbers<[1], [0], [0], [1], [0, 0, 1, 1], [], []>} : vector<16x4xbf16>, vector<4x256xbf16>, vector<16x256xf32> -> vector<16x256xf32>
    %688 = arith.addf %683, %687 : vector<16x256xf32>
    %c3_536 = arith.constant 3 : index
    %c4_537 = arith.constant 4 : index
    %c128_538 = arith.constant 128 : index
    %689 = vector.load %arg11[%c3_536, %c4_537, %c128_538] : memref<4x16x512xf32, #tpu.memory_space<vmem>>, vector<1x4x256xf32>
    %690 = vector.shape_cast %689 : vector<1x4x256xf32> to vector<4x256xf32>
    %691 = arith.truncf %690 : vector<4x256xf32> to vector<4x256xbf16>
    %cst_539 = arith.constant dense<0.000000e+00> : vector<16x256xf32>
    %692 = tpu.matmul %324, %691, %cst_539 {dimension_numbers = #tpu.dot_dimension_numbers<[1], [0], [0], [1], [0, 0, 1, 1], [], []>} : vector<16x4xbf16>, vector<4x256xbf16>, vector<16x256xf32> -> vector<16x256xf32>
    %693 = arith.addf %688, %692 : vector<16x256xf32>
    %694 = vector.broadcast %325 : vector<16x1xf32> to vector<16x256xf32>
    %695 = arith.addf %693, %694 : vector<16x256xf32>
    %696 = math.tanh %695 : vector<16x256xf32>
    %cst_540 = arith.constant 0.000000e+00 : f32
    %697 = vector.shape_cast %2 : vector<1x256xi1> to vector<1x256xi1>
    %698 = vector.broadcast %697 : vector<1x256xi1> to vector<16x256xi1>
    %699 = vector.broadcast %cst_540 : f32 to vector<16x256xf32>
    %700 = arith.select %698, %696, %699 : vector<16x256xi1>, vector<16x256xf32>
    %c6_541 = arith.constant 6 : index
    %c0_542 = arith.constant 0 : index
    %c0_543 = arith.constant 0 : index
    %701 = vector.load %arg9[%c6_541, %c0_542, %c0_543] : memref<16x16x256xf32, #tpu.memory_space<vmem>>, vector<1x16x256xf32>
    %702 = vector.shape_cast %701 : vector<1x16x256xf32> to vector<16x256xf32>
    %703 = vector.shape_cast %700 : vector<16x256xf32> to vector<1x16x256xf32>
    tpu.vector_store %arg9[%c6_541, %c0_542, %c0_543], %703 {strides = array<i32>} : memref<16x16x256xf32, #tpu.memory_space<vmem>>, vector<1x16x256xf32>,
    %c1_544 = arith.constant 1 : index
    %c0_545 = arith.constant 0 : index
    %c128_546 = arith.constant 128 : index
    %704 = vector.load %arg11[%c1_544, %c0_545, %c128_546] : memref<4x16x512xf32, #tpu.memory_space<vmem>>, vector<1x4x256xf32>
    %705 = vector.shape_cast %704 : vector<1x4x256xf32> to vector<4x256xf32>
    %706 = arith.truncf %705 : vector<4x256xf32> to vector<4x256xbf16>
    %cst_547 = arith.constant dense<0.000000e+00> : vector<16x256xf32>
    %707 = tpu.matmul %308, %706, %cst_547 {dimension_numbers = #tpu.dot_dimension_numbers<[1], [0], [0], [1], [0, 0, 1, 1], [], []>} : vector<16x4xbf16>, vector<4x256xbf16>, vector<16x256xf32> -> vector<16x256xf32>
    %c1_548 = arith.constant 1 : index
    %c4_549 = arith.constant 4 : index
    %c128_550 = arith.constant 128 : index
    %708 = vector.load %arg11[%c1_548, %c4_549, %c128_550] : memref<4x16x512xf32, #tpu.memory_space<vmem>>, vector<1x4x256xf32>
    %709 = vector.shape_cast %708 : vector<1x4x256xf32> to vector<4x256xf32>
    %710 = arith.truncf %709 : vector<4x256xf32> to vector<4x256xbf16>
    %cst_551 = arith.constant dense<0.000000e+00> : vector<16x256xf32>
    %711 = tpu.matmul %310, %710, %cst_551 {dimension_numbers = #tpu.dot_dimension_numbers<[1], [0], [0], [1], [0, 0, 1, 1], [], []>} : vector<16x4xbf16>, vector<4x256xbf16>, vector<16x256xf32> -> vector<16x256xf32>
    %712 = arith.addf %707, %711 : vector<16x256xf32>
    %c0_552 = arith.constant 0 : index
    %c0_553 = arith.constant 0 : index
    %c129_554 = arith.constant 129 : index
    %713 = vector.load %arg11[%c0_552, %c0_553, %c129_554] : memref<4x16x512xf32, #tpu.memory_space<vmem>>, vector<1x4x256xf32>
    %714 = vector.shape_cast %713 : vector<1x4x256xf32> to vector<4x256xf32>
    %715 = arith.truncf %714 : vector<4x256xf32> to vector<4x256xbf16>
    %cst_555 = arith.constant dense<0.000000e+00> : vector<16x256xf32>
    %716 = tpu.matmul %312, %715, %cst_555 {dimension_numbers = #tpu.dot_dimension_numbers<[1], [0], [0], [1], [0, 0, 1, 1], [], []>} : vector<16x4xbf16>, vector<4x256xbf16>, vector<16x256xf32> -> vector<16x256xf32>
    %717 = arith.addf %712, %716 : vector<16x256xf32>
    %c1_556 = arith.constant 1 : index
    %c8_557 = arith.constant 8 : index
    %c128_558 = arith.constant 128 : index
    %718 = vector.load %arg11[%c1_556, %c8_557, %c128_558] : memref<4x16x512xf32, #tpu.memory_space<vmem>>, vector<1x4x256xf32>
    %719 = vector.shape_cast %718 : vector<1x4x256xf32> to vector<4x256xf32>
    %720 = arith.truncf %719 : vector<4x256xf32> to vector<4x256xbf16>
    %cst_559 = arith.constant dense<0.000000e+00> : vector<16x256xf32>
    %721 = tpu.matmul %314, %720, %cst_559 {dimension_numbers = #tpu.dot_dimension_numbers<[1], [0], [0], [1], [0, 0, 1, 1], [], []>} : vector<16x4xbf16>, vector<4x256xbf16>, vector<16x256xf32> -> vector<16x256xf32>
    %722 = arith.addf %717, %721 : vector<16x256xf32>
    %c1_560 = arith.constant 1 : index
    %c12_561 = arith.constant 12 : index
    %c128_562 = arith.constant 128 : index
    %723 = vector.load %arg11[%c1_560, %c12_561, %c128_562] : memref<4x16x512xf32, #tpu.memory_space<vmem>>, vector<1x4x256xf32>
    %724 = vector.shape_cast %723 : vector<1x4x256xf32> to vector<4x256xf32>
    %725 = arith.truncf %724 : vector<4x256xf32> to vector<4x256xbf16>
    %cst_563 = arith.constant dense<0.000000e+00> : vector<16x256xf32>
    %726 = tpu.matmul %316, %725, %cst_563 {dimension_numbers = #tpu.dot_dimension_numbers<[1], [0], [0], [1], [0, 0, 1, 1], [], []>} : vector<16x4xbf16>, vector<4x256xbf16>, vector<16x256xf32> -> vector<16x256xf32>
    %727 = arith.addf %722, %726 : vector<16x256xf32>
    %c0_564 = arith.constant 0 : index
    %c8_565 = arith.constant 8 : index
    %c129_566 = arith.constant 129 : index
    %728 = vector.load %arg11[%c0_564, %c8_565, %c129_566] : memref<4x16x512xf32, #tpu.memory_space<vmem>>, vector<1x4x256xf32>
    %729 = vector.shape_cast %728 : vector<1x4x256xf32> to vector<4x256xf32>
    %730 = arith.truncf %729 : vector<4x256xf32> to vector<4x256xbf16>
    %cst_567 = arith.constant dense<0.000000e+00> : vector<16x256xf32>
    %731 = tpu.matmul %318, %730, %cst_567 {dimension_numbers = #tpu.dot_dimension_numbers<[1], [0], [0], [1], [0, 0, 1, 1], [], []>} : vector<16x4xbf16>, vector<4x256xbf16>, vector<16x256xf32> -> vector<16x256xf32>
    %732 = arith.addf %727, %731 : vector<16x256xf32>
    %c3_568 = arith.constant 3 : index
    %c0_569 = arith.constant 0 : index
    %c128_570 = arith.constant 128 : index
    %733 = vector.load %arg11[%c3_568, %c0_569, %c128_570] : memref<4x16x512xf32, #tpu.memory_space<vmem>>, vector<1x4x256xf32>
    %734 = vector.shape_cast %733 : vector<1x4x256xf32> to vector<4x256xf32>
    %735 = arith.truncf %734 : vector<4x256xf32> to vector<4x256xbf16>
    %cst_571 = arith.constant dense<0.000000e+00> : vector<16x256xf32>
    %736 = tpu.matmul %320, %735, %cst_571 {dimension_numbers = #tpu.dot_dimension_numbers<[1], [0], [0], [1], [0, 0, 1, 1], [], []>} : vector<16x4xbf16>, vector<4x256xbf16>, vector<16x256xf32> -> vector<16x256xf32>
    %737 = arith.addf %732, %736 : vector<16x256xf32>
    %c3_572 = arith.constant 3 : index
    %c4_573 = arith.constant 4 : index
    %c128_574 = arith.constant 128 : index
    %738 = vector.load %arg11[%c3_572, %c4_573, %c128_574] : memref<4x16x512xf32, #tpu.memory_space<vmem>>, vector<1x4x256xf32>
    %739 = vector.shape_cast %738 : vector<1x4x256xf32> to vector<4x256xf32>
    %740 = arith.truncf %739 : vector<4x256xf32> to vector<4x256xbf16>
    %cst_575 = arith.constant dense<0.000000e+00> : vector<16x256xf32>
    %741 = tpu.matmul %322, %740, %cst_575 {dimension_numbers = #tpu.dot_dimension_numbers<[1], [0], [0], [1], [0, 0, 1, 1], [], []>} : vector<16x4xbf16>, vector<4x256xbf16>, vector<16x256xf32> -> vector<16x256xf32>
    %742 = arith.addf %737, %741 : vector<16x256xf32>
    %c2_576 = arith.constant 2 : index
    %c0_577 = arith.constant 0 : index
    %c129_578 = arith.constant 129 : index
    %743 = vector.load %arg11[%c2_576, %c0_577, %c129_578] : memref<4x16x512xf32, #tpu.memory_space<vmem>>, vector<1x4x256xf32>
    %744 = vector.shape_cast %743 : vector<1x4x256xf32> to vector<4x256xf32>
    %745 = arith.truncf %744 : vector<4x256xf32> to vector<4x256xbf16>
    %cst_579 = arith.constant dense<0.000000e+00> : vector<16x256xf32>
    %746 = tpu.matmul %324, %745, %cst_579 {dimension_numbers = #tpu.dot_dimension_numbers<[1], [0], [0], [1], [0, 0, 1, 1], [], []>} : vector<16x4xbf16>, vector<4x256xbf16>, vector<16x256xf32> -> vector<16x256xf32>
    %747 = arith.addf %742, %746 : vector<16x256xf32>
    %748 = vector.broadcast %325 : vector<16x1xf32> to vector<16x256xf32>
    %749 = arith.addf %747, %748 : vector<16x256xf32>
    %750 = math.tanh %749 : vector<16x256xf32>
    %cst_580 = arith.constant 0.000000e+00 : f32
    %751 = vector.shape_cast %2 : vector<1x256xi1> to vector<1x256xi1>
    %752 = vector.broadcast %751 : vector<1x256xi1> to vector<16x256xi1>
    %753 = vector.broadcast %cst_580 : f32 to vector<16x256xf32>
    %754 = arith.select %752, %750, %753 : vector<16x256xi1>, vector<16x256xf32>
    %c7_581 = arith.constant 7 : index
    %c0_582 = arith.constant 0 : index
    %c0_583 = arith.constant 0 : index
    %755 = vector.load %arg9[%c7_581, %c0_582, %c0_583] : memref<16x16x256xf32, #tpu.memory_space<vmem>>, vector<1x16x256xf32>
    %756 = vector.shape_cast %755 : vector<1x16x256xf32> to vector<16x256xf32>
    %757 = vector.shape_cast %754 : vector<16x256xf32> to vector<1x16x256xf32>
    tpu.vector_store %arg9[%c7_581, %c0_582, %c0_583], %757 {strides = array<i32>} : memref<16x16x256xf32, #tpu.memory_space<vmem>>, vector<1x16x256xf32>,
    %c1_584 = arith.constant 1 : index
    %c12_585 = arith.constant 12 : index
    %c127_586 = arith.constant 127 : index
    %758 = vector.load %arg11[%c1_584, %c12_585, %c127_586] : memref<4x16x512xf32, #tpu.memory_space<vmem>>, vector<1x4x256xf32>
    %759 = vector.shape_cast %758 : vector<1x4x256xf32> to vector<4x256xf32>
    %760 = arith.truncf %759 : vector<4x256xf32> to vector<4x256xbf16>
    %cst_587 = arith.constant dense<0.000000e+00> : vector<16x256xf32>
    %761 = tpu.matmul %308, %760, %cst_587 {dimension_numbers = #tpu.dot_dimension_numbers<[1], [0], [0], [1], [0, 0, 1, 1], [], []>} : vector<16x4xbf16>, vector<4x256xbf16>, vector<16x256xf32> -> vector<16x256xf32>
    %c0_588 = arith.constant 0 : index
    %c8_589 = arith.constant 8 : index
    %c128_590 = arith.constant 128 : index
    %762 = vector.load %arg11[%c0_588, %c8_589, %c128_590] : memref<4x16x512xf32, #tpu.memory_space<vmem>>, vector<1x4x256xf32>
    %763 = vector.shape_cast %762 : vector<1x4x256xf32> to vector<4x256xf32>
    %764 = arith.truncf %763 : vector<4x256xf32> to vector<4x256xbf16>
    %cst_591 = arith.constant dense<0.000000e+00> : vector<16x256xf32>
    %765 = tpu.matmul %310, %764, %cst_591 {dimension_numbers = #tpu.dot_dimension_numbers<[1], [0], [0], [1], [0, 0, 1, 1], [], []>} : vector<16x4xbf16>, vector<4x256xbf16>, vector<16x256xf32> -> vector<16x256xf32>
    %766 = arith.addf %761, %765 : vector<16x256xf32>
    %c0_592 = arith.constant 0 : index
    %c12_593 = arith.constant 12 : index
    %c128_594 = arith.constant 128 : index
    %767 = vector.load %arg11[%c0_592, %c12_593, %c128_594] : memref<4x16x512xf32, #tpu.memory_space<vmem>>, vector<1x4x256xf32>
    %768 = vector.shape_cast %767 : vector<1x4x256xf32> to vector<4x256xf32>
    %769 = arith.truncf %768 : vector<4x256xf32> to vector<4x256xbf16>
    %cst_595 = arith.constant dense<0.000000e+00> : vector<16x256xf32>
    %770 = tpu.matmul %312, %769, %cst_595 {dimension_numbers = #tpu.dot_dimension_numbers<[1], [0], [0], [1], [0, 0, 1, 1], [], []>} : vector<16x4xbf16>, vector<4x256xbf16>, vector<16x256xf32> -> vector<16x256xf32>
    %771 = arith.addf %766, %770 : vector<16x256xf32>
    %c3_596 = arith.constant 3 : index
    %c4_597 = arith.constant 4 : index
    %c127_598 = arith.constant 127 : index
    %772 = vector.load %arg11[%c3_596, %c4_597, %c127_598] : memref<4x16x512xf32, #tpu.memory_space<vmem>>, vector<1x4x256xf32>
    %773 = vector.shape_cast %772 : vector<1x4x256xf32> to vector<4x256xf32>
    %774 = arith.truncf %773 : vector<4x256xf32> to vector<4x256xbf16>
    %cst_599 = arith.constant dense<0.000000e+00> : vector<16x256xf32>
    %775 = tpu.matmul %314, %774, %cst_599 {dimension_numbers = #tpu.dot_dimension_numbers<[1], [0], [0], [1], [0, 0, 1, 1], [], []>} : vector<16x4xbf16>, vector<4x256xbf16>, vector<16x256xf32> -> vector<16x256xf32>
    %776 = arith.addf %771, %775 : vector<16x256xf32>
    %c2_600 = arith.constant 2 : index
    %c0_601 = arith.constant 0 : index
    %c128_602 = arith.constant 128 : index
    %777 = vector.load %arg11[%c2_600, %c0_601, %c128_602] : memref<4x16x512xf32, #tpu.memory_space<vmem>>, vector<1x4x256xf32>
    %778 = vector.shape_cast %777 : vector<1x4x256xf32> to vector<4x256xf32>
    %779 = arith.truncf %778 : vector<4x256xf32> to vector<4x256xbf16>
    %cst_603 = arith.constant dense<0.000000e+00> : vector<16x256xf32>
    %780 = tpu.matmul %316, %779, %cst_603 {dimension_numbers = #tpu.dot_dimension_numbers<[1], [0], [0], [1], [0, 0, 1, 1], [], []>} : vector<16x4xbf16>, vector<4x256xbf16>, vector<16x256xf32> -> vector<16x256xf32>
    %781 = arith.addf %776, %780 : vector<16x256xf32>
    %c2_604 = arith.constant 2 : index
    %c4_605 = arith.constant 4 : index
    %c128_606 = arith.constant 128 : index
    %782 = vector.load %arg11[%c2_604, %c4_605, %c128_606] : memref<4x16x512xf32, #tpu.memory_space<vmem>>, vector<1x4x256xf32>
    %783 = vector.shape_cast %782 : vector<1x4x256xf32> to vector<4x256xf32>
    %784 = arith.truncf %783 : vector<4x256xf32> to vector<4x256xbf16>
    %cst_607 = arith.constant dense<0.000000e+00> : vector<16x256xf32>
    %785 = tpu.matmul %318, %784, %cst_607 {dimension_numbers = #tpu.dot_dimension_numbers<[1], [0], [0], [1], [0, 0, 1, 1], [], []>} : vector<16x4xbf16>, vector<4x256xbf16>, vector<16x256xf32> -> vector<16x256xf32>
    %786 = arith.addf %781, %785 : vector<16x256xf32>
    %c3_608 = arith.constant 3 : index
    %c12_609 = arith.constant 12 : index
    %c127_610 = arith.constant 127 : index
    %787 = vector.load %arg11[%c3_608, %c12_609, %c127_610] : memref<4x16x512xf32, #tpu.memory_space<vmem>>, vector<1x4x256xf32>
    %788 = vector.shape_cast %787 : vector<1x4x256xf32> to vector<4x256xf32>
    %789 = arith.truncf %788 : vector<4x256xf32> to vector<4x256xbf16>
    %cst_611 = arith.constant dense<0.000000e+00> : vector<16x256xf32>
    %790 = tpu.matmul %320, %789, %cst_611 {dimension_numbers = #tpu.dot_dimension_numbers<[1], [0], [0], [1], [0, 0, 1, 1], [], []>} : vector<16x4xbf16>, vector<4x256xbf16>, vector<16x256xf32> -> vector<16x256xf32>
    %791 = arith.addf %786, %790 : vector<16x256xf32>
    %c2_612 = arith.constant 2 : index
    %c8_613 = arith.constant 8 : index
    %c128_614 = arith.constant 128 : index
    %792 = vector.load %arg11[%c2_612, %c8_613, %c128_614] : memref<4x16x512xf32, #tpu.memory_space<vmem>>, vector<1x4x256xf32>
    %793 = vector.shape_cast %792 : vector<1x4x256xf32> to vector<4x256xf32>
    %794 = arith.truncf %793 : vector<4x256xf32> to vector<4x256xbf16>
    %cst_615 = arith.constant dense<0.000000e+00> : vector<16x256xf32>
    %795 = tpu.matmul %322, %794, %cst_615 {dimension_numbers = #tpu.dot_dimension_numbers<[1], [0], [0], [1], [0, 0, 1, 1], [], []>} : vector<16x4xbf16>, vector<4x256xbf16>, vector<16x256xf32> -> vector<16x256xf32>
    %796 = arith.addf %791, %795 : vector<16x256xf32>
    %c2_616 = arith.constant 2 : index
    %c12_617 = arith.constant 12 : index
    %c128_618 = arith.constant 128 : index
    %797 = vector.load %arg11[%c2_616, %c12_617, %c128_618] : memref<4x16x512xf32, #tpu.memory_space<vmem>>, vector<1x4x256xf32>
    %798 = vector.shape_cast %797 : vector<1x4x256xf32> to vector<4x256xf32>
    %799 = arith.truncf %798 : vector<4x256xf32> to vector<4x256xbf16>
    %cst_619 = arith.constant dense<0.000000e+00> : vector<16x256xf32>
    %800 = tpu.matmul %324, %799, %cst_619 {dimension_numbers = #tpu.dot_dimension_numbers<[1], [0], [0], [1], [0, 0, 1, 1], [], []>} : vector<16x4xbf16>, vector<4x256xbf16>, vector<16x256xf32> -> vector<16x256xf32>
    %801 = arith.addf %796, %800 : vector<16x256xf32>
    %802 = vector.broadcast %325 : vector<16x1xf32> to vector<16x256xf32>
    %803 = arith.addf %801, %802 : vector<16x256xf32>
    %804 = math.tanh %803 : vector<16x256xf32>
    %cst_620 = arith.constant 0.000000e+00 : f32
    %805 = vector.shape_cast %2 : vector<1x256xi1> to vector<1x256xi1>
    %806 = vector.broadcast %805 : vector<1x256xi1> to vector<16x256xi1>
    %807 = vector.broadcast %cst_620 : f32 to vector<16x256xf32>
    %808 = arith.select %806, %804, %807 : vector<16x256xi1>, vector<16x256xf32>
    %c8_621 = arith.constant 8 : index
    %c0_622 = arith.constant 0 : index
    %c0_623 = arith.constant 0 : index
    %809 = vector.load %arg9[%c8_621, %c0_622, %c0_623] : memref<16x16x256xf32, #tpu.memory_space<vmem>>, vector<1x16x256xf32>
    %810 = vector.shape_cast %809 : vector<1x16x256xf32> to vector<16x256xf32>
    %811 = vector.shape_cast %808 : vector<16x256xf32> to vector<1x16x256xf32>
    tpu.vector_store %arg9[%c8_621, %c0_622, %c0_623], %811 {strides = array<i32>} : memref<16x16x256xf32, #tpu.memory_space<vmem>>, vector<1x16x256xf32>,
    %c0_624 = arith.constant 0 : index
    %c8_625 = arith.constant 8 : index
    %c128_626 = arith.constant 128 : index
    %812 = vector.load %arg11[%c0_624, %c8_625, %c128_626] : memref<4x16x512xf32, #tpu.memory_space<vmem>>, vector<1x4x256xf32>
    %813 = vector.shape_cast %812 : vector<1x4x256xf32> to vector<4x256xf32>
    %814 = arith.truncf %813 : vector<4x256xf32> to vector<4x256xbf16>
    %cst_627 = arith.constant dense<0.000000e+00> : vector<16x256xf32>
    %815 = tpu.matmul %308, %814, %cst_627 {dimension_numbers = #tpu.dot_dimension_numbers<[1], [0], [0], [1], [0, 0, 1, 1], [], []>} : vector<16x4xbf16>, vector<4x256xbf16>, vector<16x256xf32> -> vector<16x256xf32>
    %c0_628 = arith.constant 0 : index
    %c12_629 = arith.constant 12 : index
    %c128_630 = arith.constant 128 : index
    %816 = vector.load %arg11[%c0_628, %c12_629, %c128_630] : memref<4x16x512xf32, #tpu.memory_space<vmem>>, vector<1x4x256xf32>
    %817 = vector.shape_cast %816 : vector<1x4x256xf32> to vector<4x256xf32>
    %818 = arith.truncf %817 : vector<4x256xf32> to vector<4x256xbf16>
    %cst_631 = arith.constant dense<0.000000e+00> : vector<16x256xf32>
    %819 = tpu.matmul %310, %818, %cst_631 {dimension_numbers = #tpu.dot_dimension_numbers<[1], [0], [0], [1], [0, 0, 1, 1], [], []>} : vector<16x4xbf16>, vector<4x256xbf16>, vector<16x256xf32> -> vector<16x256xf32>
    %820 = arith.addf %815, %819 : vector<16x256xf32>
    %c1_632 = arith.constant 1 : index
    %c8_633 = arith.constant 8 : index
    %c128_634 = arith.constant 128 : index
    %821 = vector.load %arg11[%c1_632, %c8_633, %c128_634] : memref<4x16x512xf32, #tpu.memory_space<vmem>>, vector<1x4x256xf32>
    %822 = vector.shape_cast %821 : vector<1x4x256xf32> to vector<4x256xf32>
    %823 = arith.truncf %822 : vector<4x256xf32> to vector<4x256xbf16>
    %cst_635 = arith.constant dense<0.000000e+00> : vector<16x256xf32>
    %824 = tpu.matmul %312, %823, %cst_635 {dimension_numbers = #tpu.dot_dimension_numbers<[1], [0], [0], [1], [0, 0, 1, 1], [], []>} : vector<16x4xbf16>, vector<4x256xbf16>, vector<16x256xf32> -> vector<16x256xf32>
    %825 = arith.addf %820, %824 : vector<16x256xf32>
    %c2_636 = arith.constant 2 : index
    %c0_637 = arith.constant 0 : index
    %c128_638 = arith.constant 128 : index
    %826 = vector.load %arg11[%c2_636, %c0_637, %c128_638] : memref<4x16x512xf32, #tpu.memory_space<vmem>>, vector<1x4x256xf32>
    %827 = vector.shape_cast %826 : vector<1x4x256xf32> to vector<4x256xf32>
    %828 = arith.truncf %827 : vector<4x256xf32> to vector<4x256xbf16>
    %cst_639 = arith.constant dense<0.000000e+00> : vector<16x256xf32>
    %829 = tpu.matmul %314, %828, %cst_639 {dimension_numbers = #tpu.dot_dimension_numbers<[1], [0], [0], [1], [0, 0, 1, 1], [], []>} : vector<16x4xbf16>, vector<4x256xbf16>, vector<16x256xf32> -> vector<16x256xf32>
    %830 = arith.addf %825, %829 : vector<16x256xf32>
    %c2_640 = arith.constant 2 : index
    %c4_641 = arith.constant 4 : index
    %c128_642 = arith.constant 128 : index
    %831 = vector.load %arg11[%c2_640, %c4_641, %c128_642] : memref<4x16x512xf32, #tpu.memory_space<vmem>>, vector<1x4x256xf32>
    %832 = vector.shape_cast %831 : vector<1x4x256xf32> to vector<4x256xf32>
    %833 = arith.truncf %832 : vector<4x256xf32> to vector<4x256xbf16>
    %cst_643 = arith.constant dense<0.000000e+00> : vector<16x256xf32>
    %834 = tpu.matmul %316, %833, %cst_643 {dimension_numbers = #tpu.dot_dimension_numbers<[1], [0], [0], [1], [0, 0, 1, 1], [], []>} : vector<16x4xbf16>, vector<4x256xbf16>, vector<16x256xf32> -> vector<16x256xf32>
    %835 = arith.addf %830, %834 : vector<16x256xf32>
    %c3_644 = arith.constant 3 : index
    %c0_645 = arith.constant 0 : index
    %c128_646 = arith.constant 128 : index
    %836 = vector.load %arg11[%c3_644, %c0_645, %c128_646] : memref<4x16x512xf32, #tpu.memory_space<vmem>>, vector<1x4x256xf32>
    %837 = vector.shape_cast %836 : vector<1x4x256xf32> to vector<4x256xf32>
    %838 = arith.truncf %837 : vector<4x256xf32> to vector<4x256xbf16>
    %cst_647 = arith.constant dense<0.000000e+00> : vector<16x256xf32>
    %839 = tpu.matmul %318, %838, %cst_647 {dimension_numbers = #tpu.dot_dimension_numbers<[1], [0], [0], [1], [0, 0, 1, 1], [], []>} : vector<16x4xbf16>, vector<4x256xbf16>, vector<16x256xf32> -> vector<16x256xf32>
    %840 = arith.addf %835, %839 : vector<16x256xf32>
    %c2_648 = arith.constant 2 : index
    %c8_649 = arith.constant 8 : index
    %c128_650 = arith.constant 128 : index
    %841 = vector.load %arg11[%c2_648, %c8_649, %c128_650] : memref<4x16x512xf32, #tpu.memory_space<vmem>>, vector<1x4x256xf32>
    %842 = vector.shape_cast %841 : vector<1x4x256xf32> to vector<4x256xf32>
    %843 = arith.truncf %842 : vector<4x256xf32> to vector<4x256xbf16>
    %cst_651 = arith.constant dense<0.000000e+00> : vector<16x256xf32>
    %844 = tpu.matmul %320, %843, %cst_651 {dimension_numbers = #tpu.dot_dimension_numbers<[1], [0], [0], [1], [0, 0, 1, 1], [], []>} : vector<16x4xbf16>, vector<4x256xbf16>, vector<16x256xf32> -> vector<16x256xf32>
    %845 = arith.addf %840, %844 : vector<16x256xf32>
    %c2_652 = arith.constant 2 : index
    %c12_653 = arith.constant 12 : index
    %c128_654 = arith.constant 128 : index
    %846 = vector.load %arg11[%c2_652, %c12_653, %c128_654] : memref<4x16x512xf32, #tpu.memory_space<vmem>>, vector<1x4x256xf32>
    %847 = vector.shape_cast %846 : vector<1x4x256xf32> to vector<4x256xf32>
    %848 = arith.truncf %847 : vector<4x256xf32> to vector<4x256xbf16>
    %cst_655 = arith.constant dense<0.000000e+00> : vector<16x256xf32>
    %849 = tpu.matmul %322, %848, %cst_655 {dimension_numbers = #tpu.dot_dimension_numbers<[1], [0], [0], [1], [0, 0, 1, 1], [], []>} : vector<16x4xbf16>, vector<4x256xbf16>, vector<16x256xf32> -> vector<16x256xf32>
    %850 = arith.addf %845, %849 : vector<16x256xf32>
    %c3_656 = arith.constant 3 : index
    %c8_657 = arith.constant 8 : index
    %c128_658 = arith.constant 128 : index
    %851 = vector.load %arg11[%c3_656, %c8_657, %c128_658] : memref<4x16x512xf32, #tpu.memory_space<vmem>>, vector<1x4x256xf32>
    %852 = vector.shape_cast %851 : vector<1x4x256xf32> to vector<4x256xf32>
    %853 = arith.truncf %852 : vector<4x256xf32> to vector<4x256xbf16>
    %cst_659 = arith.constant dense<0.000000e+00> : vector<16x256xf32>
    %854 = tpu.matmul %324, %853, %cst_659 {dimension_numbers = #tpu.dot_dimension_numbers<[1], [0], [0], [1], [0, 0, 1, 1], [], []>} : vector<16x4xbf16>, vector<4x256xbf16>, vector<16x256xf32> -> vector<16x256xf32>
    %855 = arith.addf %850, %854 : vector<16x256xf32>
    %856 = vector.broadcast %325 : vector<16x1xf32> to vector<16x256xf32>
    %857 = arith.addf %855, %856 : vector<16x256xf32>
    %858 = math.tanh %857 : vector<16x256xf32>
    %cst_660 = arith.constant 0.000000e+00 : f32
    %859 = vector.shape_cast %2 : vector<1x256xi1> to vector<1x256xi1>
    %860 = vector.broadcast %859 : vector<1x256xi1> to vector<16x256xi1>
    %861 = vector.broadcast %cst_660 : f32 to vector<16x256xf32>
    %862 = arith.select %860, %858, %861 : vector<16x256xi1>, vector<16x256xf32>
    %c9 = arith.constant 9 : index
    %c0_661 = arith.constant 0 : index
    %c0_662 = arith.constant 0 : index
    %863 = vector.load %arg9[%c9, %c0_661, %c0_662] : memref<16x16x256xf32, #tpu.memory_space<vmem>>, vector<1x16x256xf32>
    %864 = vector.shape_cast %863 : vector<1x16x256xf32> to vector<16x256xf32>
    %865 = vector.shape_cast %862 : vector<16x256xf32> to vector<1x16x256xf32>
    tpu.vector_store %arg9[%c9, %c0_661, %c0_662], %865 {strides = array<i32>} : memref<16x16x256xf32, #tpu.memory_space<vmem>>, vector<1x16x256xf32>,
    %c0_663 = arith.constant 0 : index
    %c12_664 = arith.constant 12 : index
    %c128_665 = arith.constant 128 : index
    %866 = vector.load %arg11[%c0_663, %c12_664, %c128_665] : memref<4x16x512xf32, #tpu.memory_space<vmem>>, vector<1x4x256xf32>
    %867 = vector.shape_cast %866 : vector<1x4x256xf32> to vector<4x256xf32>
    %868 = arith.truncf %867 : vector<4x256xf32> to vector<4x256xbf16>
    %cst_666 = arith.constant dense<0.000000e+00> : vector<16x256xf32>
    %869 = tpu.matmul %308, %868, %cst_666 {dimension_numbers = #tpu.dot_dimension_numbers<[1], [0], [0], [1], [0, 0, 1, 1], [], []>} : vector<16x4xbf16>, vector<4x256xbf16>, vector<16x256xf32> -> vector<16x256xf32>
    %c1_667 = arith.constant 1 : index
    %c8_668 = arith.constant 8 : index
    %c128_669 = arith.constant 128 : index
    %870 = vector.load %arg11[%c1_667, %c8_668, %c128_669] : memref<4x16x512xf32, #tpu.memory_space<vmem>>, vector<1x4x256xf32>
    %871 = vector.shape_cast %870 : vector<1x4x256xf32> to vector<4x256xf32>
    %872 = arith.truncf %871 : vector<4x256xf32> to vector<4x256xbf16>
    %cst_670 = arith.constant dense<0.000000e+00> : vector<16x256xf32>
    %873 = tpu.matmul %310, %872, %cst_670 {dimension_numbers = #tpu.dot_dimension_numbers<[1], [0], [0], [1], [0, 0, 1, 1], [], []>} : vector<16x4xbf16>, vector<4x256xbf16>, vector<16x256xf32> -> vector<16x256xf32>
    %874 = arith.addf %869, %873 : vector<16x256xf32>
    %c1_671 = arith.constant 1 : index
    %c12_672 = arith.constant 12 : index
    %c128_673 = arith.constant 128 : index
    %875 = vector.load %arg11[%c1_671, %c12_672, %c128_673] : memref<4x16x512xf32, #tpu.memory_space<vmem>>, vector<1x4x256xf32>
    %876 = vector.shape_cast %875 : vector<1x4x256xf32> to vector<4x256xf32>
    %877 = arith.truncf %876 : vector<4x256xf32> to vector<4x256xbf16>
    %cst_674 = arith.constant dense<0.000000e+00> : vector<16x256xf32>
    %878 = tpu.matmul %312, %877, %cst_674 {dimension_numbers = #tpu.dot_dimension_numbers<[1], [0], [0], [1], [0, 0, 1, 1], [], []>} : vector<16x4xbf16>, vector<4x256xbf16>, vector<16x256xf32> -> vector<16x256xf32>
    %879 = arith.addf %874, %878 : vector<16x256xf32>
    %c2_675 = arith.constant 2 : index
    %c4_676 = arith.constant 4 : index
    %c128_677 = arith.constant 128 : index
    %880 = vector.load %arg11[%c2_675, %c4_676, %c128_677] : memref<4x16x512xf32, #tpu.memory_space<vmem>>, vector<1x4x256xf32>
    %881 = vector.shape_cast %880 : vector<1x4x256xf32> to vector<4x256xf32>
    %882 = arith.truncf %881 : vector<4x256xf32> to vector<4x256xbf16>
    %cst_678 = arith.constant dense<0.000000e+00> : vector<16x256xf32>
    %883 = tpu.matmul %314, %882, %cst_678 {dimension_numbers = #tpu.dot_dimension_numbers<[1], [0], [0], [1], [0, 0, 1, 1], [], []>} : vector<16x4xbf16>, vector<4x256xbf16>, vector<16x256xf32> -> vector<16x256xf32>
    %884 = arith.addf %879, %883 : vector<16x256xf32>
    %c3_679 = arith.constant 3 : index
    %c0_680 = arith.constant 0 : index
    %c128_681 = arith.constant 128 : index
    %885 = vector.load %arg11[%c3_679, %c0_680, %c128_681] : memref<4x16x512xf32, #tpu.memory_space<vmem>>, vector<1x4x256xf32>
    %886 = vector.shape_cast %885 : vector<1x4x256xf32> to vector<4x256xf32>
    %887 = arith.truncf %886 : vector<4x256xf32> to vector<4x256xbf16>
    %cst_682 = arith.constant dense<0.000000e+00> : vector<16x256xf32>
    %888 = tpu.matmul %316, %887, %cst_682 {dimension_numbers = #tpu.dot_dimension_numbers<[1], [0], [0], [1], [0, 0, 1, 1], [], []>} : vector<16x4xbf16>, vector<4x256xbf16>, vector<16x256xf32> -> vector<16x256xf32>
    %889 = arith.addf %884, %888 : vector<16x256xf32>
    %c3_683 = arith.constant 3 : index
    %c4_684 = arith.constant 4 : index
    %c128_685 = arith.constant 128 : index
    %890 = vector.load %arg11[%c3_683, %c4_684, %c128_685] : memref<4x16x512xf32, #tpu.memory_space<vmem>>, vector<1x4x256xf32>
    %891 = vector.shape_cast %890 : vector<1x4x256xf32> to vector<4x256xf32>
    %892 = arith.truncf %891 : vector<4x256xf32> to vector<4x256xbf16>
    %cst_686 = arith.constant dense<0.000000e+00> : vector<16x256xf32>
    %893 = tpu.matmul %318, %892, %cst_686 {dimension_numbers = #tpu.dot_dimension_numbers<[1], [0], [0], [1], [0, 0, 1, 1], [], []>} : vector<16x4xbf16>, vector<4x256xbf16>, vector<16x256xf32> -> vector<16x256xf32>
    %894 = arith.addf %889, %893 : vector<16x256xf32>
    %c2_687 = arith.constant 2 : index
    %c12_688 = arith.constant 12 : index
    %c128_689 = arith.constant 128 : index
    %895 = vector.load %arg11[%c2_687, %c12_688, %c128_689] : memref<4x16x512xf32, #tpu.memory_space<vmem>>, vector<1x4x256xf32>
    %896 = vector.shape_cast %895 : vector<1x4x256xf32> to vector<4x256xf32>
    %897 = arith.truncf %896 : vector<4x256xf32> to vector<4x256xbf16>
    %cst_690 = arith.constant dense<0.000000e+00> : vector<16x256xf32>
    %898 = tpu.matmul %320, %897, %cst_690 {dimension_numbers = #tpu.dot_dimension_numbers<[1], [0], [0], [1], [0, 0, 1, 1], [], []>} : vector<16x4xbf16>, vector<4x256xbf16>, vector<16x256xf32> -> vector<16x256xf32>
    %899 = arith.addf %894, %898 : vector<16x256xf32>
    %c3_691 = arith.constant 3 : index
    %c8_692 = arith.constant 8 : index
    %c128_693 = arith.constant 128 : index
    %900 = vector.load %arg11[%c3_691, %c8_692, %c128_693] : memref<4x16x512xf32, #tpu.memory_space<vmem>>, vector<1x4x256xf32>
    %901 = vector.shape_cast %900 : vector<1x4x256xf32> to vector<4x256xf32>
    %902 = arith.truncf %901 : vector<4x256xf32> to vector<4x256xbf16>
    %cst_694 = arith.constant dense<0.000000e+00> : vector<16x256xf32>
    %903 = tpu.matmul %322, %902, %cst_694 {dimension_numbers = #tpu.dot_dimension_numbers<[1], [0], [0], [1], [0, 0, 1, 1], [], []>} : vector<16x4xbf16>, vector<4x256xbf16>, vector<16x256xf32> -> vector<16x256xf32>
    %904 = arith.addf %899, %903 : vector<16x256xf32>
    %c3_695 = arith.constant 3 : index
    %c12_696 = arith.constant 12 : index
    %c128_697 = arith.constant 128 : index
    %905 = vector.load %arg11[%c3_695, %c12_696, %c128_697] : memref<4x16x512xf32, #tpu.memory_space<vmem>>, vector<1x4x256xf32>
    %906 = vector.shape_cast %905 : vector<1x4x256xf32> to vector<4x256xf32>
    %907 = arith.truncf %906 : vector<4x256xf32> to vector<4x256xbf16>
    %cst_698 = arith.constant dense<0.000000e+00> : vector<16x256xf32>
    %908 = tpu.matmul %324, %907, %cst_698 {dimension_numbers = #tpu.dot_dimension_numbers<[1], [0], [0], [1], [0, 0, 1, 1], [], []>} : vector<16x4xbf16>, vector<4x256xbf16>, vector<16x256xf32> -> vector<16x256xf32>
    %909 = arith.addf %904, %908 : vector<16x256xf32>
    %910 = vector.broadcast %325 : vector<16x1xf32> to vector<16x256xf32>
    %911 = arith.addf %909, %910 : vector<16x256xf32>
    %912 = math.tanh %911 : vector<16x256xf32>
    %cst_699 = arith.constant 0.000000e+00 : f32
    %913 = vector.shape_cast %2 : vector<1x256xi1> to vector<1x256xi1>
    %914 = vector.broadcast %913 : vector<1x256xi1> to vector<16x256xi1>
    %915 = vector.broadcast %cst_699 : f32 to vector<16x256xf32>
    %916 = arith.select %914, %912, %915 : vector<16x256xi1>, vector<16x256xf32>
    %c10 = arith.constant 10 : index
    %c0_700 = arith.constant 0 : index
    %c0_701 = arith.constant 0 : index
    %917 = vector.load %arg9[%c10, %c0_700, %c0_701] : memref<16x16x256xf32, #tpu.memory_space<vmem>>, vector<1x16x256xf32>
    %918 = vector.shape_cast %917 : vector<1x16x256xf32> to vector<16x256xf32>
    %919 = vector.shape_cast %916 : vector<16x256xf32> to vector<1x16x256xf32>
    tpu.vector_store %arg9[%c10, %c0_700, %c0_701], %919 {strides = array<i32>} : memref<16x16x256xf32, #tpu.memory_space<vmem>>, vector<1x16x256xf32>,
    %c1_702 = arith.constant 1 : index
    %c8_703 = arith.constant 8 : index
    %c128_704 = arith.constant 128 : index
    %920 = vector.load %arg11[%c1_702, %c8_703, %c128_704] : memref<4x16x512xf32, #tpu.memory_space<vmem>>, vector<1x4x256xf32>
    %921 = vector.shape_cast %920 : vector<1x4x256xf32> to vector<4x256xf32>
    %922 = arith.truncf %921 : vector<4x256xf32> to vector<4x256xbf16>
    %cst_705 = arith.constant dense<0.000000e+00> : vector<16x256xf32>
    %923 = tpu.matmul %308, %922, %cst_705 {dimension_numbers = #tpu.dot_dimension_numbers<[1], [0], [0], [1], [0, 0, 1, 1], [], []>} : vector<16x4xbf16>, vector<4x256xbf16>, vector<16x256xf32> -> vector<16x256xf32>
    %c1_706 = arith.constant 1 : index
    %c12_707 = arith.constant 12 : index
    %c128_708 = arith.constant 128 : index
    %924 = vector.load %arg11[%c1_706, %c12_707, %c128_708] : memref<4x16x512xf32, #tpu.memory_space<vmem>>, vector<1x4x256xf32>
    %925 = vector.shape_cast %924 : vector<1x4x256xf32> to vector<4x256xf32>
    %926 = arith.truncf %925 : vector<4x256xf32> to vector<4x256xbf16>
    %cst_709 = arith.constant dense<0.000000e+00> : vector<16x256xf32>
    %927 = tpu.matmul %310, %926, %cst_709 {dimension_numbers = #tpu.dot_dimension_numbers<[1], [0], [0], [1], [0, 0, 1, 1], [], []>} : vector<16x4xbf16>, vector<4x256xbf16>, vector<16x256xf32> -> vector<16x256xf32>
    %928 = arith.addf %923, %927 : vector<16x256xf32>
    %c0_710 = arith.constant 0 : index
    %c8_711 = arith.constant 8 : index
    %c129_712 = arith.constant 129 : index
    %929 = vector.load %arg11[%c0_710, %c8_711, %c129_712] : memref<4x16x512xf32, #tpu.memory_space<vmem>>, vector<1x4x256xf32>
    %930 = vector.shape_cast %929 : vector<1x4x256xf32> to vector<4x256xf32>
    %931 = arith.truncf %930 : vector<4x256xf32> to vector<4x256xbf16>
    %cst_713 = arith.constant dense<0.000000e+00> : vector<16x256xf32>
    %932 = tpu.matmul %312, %931, %cst_713 {dimension_numbers = #tpu.dot_dimension_numbers<[1], [0], [0], [1], [0, 0, 1, 1], [], []>} : vector<16x4xbf16>, vector<4x256xbf16>, vector<16x256xf32> -> vector<16x256xf32>
    %933 = arith.addf %928, %932 : vector<16x256xf32>
    %c3_714 = arith.constant 3 : index
    %c0_715 = arith.constant 0 : index
    %c128_716 = arith.constant 128 : index
    %934 = vector.load %arg11[%c3_714, %c0_715, %c128_716] : memref<4x16x512xf32, #tpu.memory_space<vmem>>, vector<1x4x256xf32>
    %935 = vector.shape_cast %934 : vector<1x4x256xf32> to vector<4x256xf32>
    %936 = arith.truncf %935 : vector<4x256xf32> to vector<4x256xbf16>
    %cst_717 = arith.constant dense<0.000000e+00> : vector<16x256xf32>
    %937 = tpu.matmul %314, %936, %cst_717 {dimension_numbers = #tpu.dot_dimension_numbers<[1], [0], [0], [1], [0, 0, 1, 1], [], []>} : vector<16x4xbf16>, vector<4x256xbf16>, vector<16x256xf32> -> vector<16x256xf32>
    %938 = arith.addf %933, %937 : vector<16x256xf32>
    %c3_718 = arith.constant 3 : index
    %c4_719 = arith.constant 4 : index
    %c128_720 = arith.constant 128 : index
    %939 = vector.load %arg11[%c3_718, %c4_719, %c128_720] : memref<4x16x512xf32, #tpu.memory_space<vmem>>, vector<1x4x256xf32>
    %940 = vector.shape_cast %939 : vector<1x4x256xf32> to vector<4x256xf32>
    %941 = arith.truncf %940 : vector<4x256xf32> to vector<4x256xbf16>
    %cst_721 = arith.constant dense<0.000000e+00> : vector<16x256xf32>
    %942 = tpu.matmul %316, %941, %cst_721 {dimension_numbers = #tpu.dot_dimension_numbers<[1], [0], [0], [1], [0, 0, 1, 1], [], []>} : vector<16x4xbf16>, vector<4x256xbf16>, vector<16x256xf32> -> vector<16x256xf32>
    %943 = arith.addf %938, %942 : vector<16x256xf32>
    %c2_722 = arith.constant 2 : index
    %c0_723 = arith.constant 0 : index
    %c129_724 = arith.constant 129 : index
    %944 = vector.load %arg11[%c2_722, %c0_723, %c129_724] : memref<4x16x512xf32, #tpu.memory_space<vmem>>, vector<1x4x256xf32>
    %945 = vector.shape_cast %944 : vector<1x4x256xf32> to vector<4x256xf32>
    %946 = arith.truncf %945 : vector<4x256xf32> to vector<4x256xbf16>
    %cst_725 = arith.constant dense<0.000000e+00> : vector<16x256xf32>
    %947 = tpu.matmul %318, %946, %cst_725 {dimension_numbers = #tpu.dot_dimension_numbers<[1], [0], [0], [1], [0, 0, 1, 1], [], []>} : vector<16x4xbf16>, vector<4x256xbf16>, vector<16x256xf32> -> vector<16x256xf32>
    %948 = arith.addf %943, %947 : vector<16x256xf32>
    %c3_726 = arith.constant 3 : index
    %c8_727 = arith.constant 8 : index
    %c128_728 = arith.constant 128 : index
    %949 = vector.load %arg11[%c3_726, %c8_727, %c128_728] : memref<4x16x512xf32, #tpu.memory_space<vmem>>, vector<1x4x256xf32>
    %950 = vector.shape_cast %949 : vector<1x4x256xf32> to vector<4x256xf32>
    %951 = arith.truncf %950 : vector<4x256xf32> to vector<4x256xbf16>
    %cst_729 = arith.constant dense<0.000000e+00> : vector<16x256xf32>
    %952 = tpu.matmul %320, %951, %cst_729 {dimension_numbers = #tpu.dot_dimension_numbers<[1], [0], [0], [1], [0, 0, 1, 1], [], []>} : vector<16x4xbf16>, vector<4x256xbf16>, vector<16x256xf32> -> vector<16x256xf32>
    %953 = arith.addf %948, %952 : vector<16x256xf32>
    %c3_730 = arith.constant 3 : index
    %c12_731 = arith.constant 12 : index
    %c128_732 = arith.constant 128 : index
    %954 = vector.load %arg11[%c3_730, %c12_731, %c128_732] : memref<4x16x512xf32, #tpu.memory_space<vmem>>, vector<1x4x256xf32>
    %955 = vector.shape_cast %954 : vector<1x4x256xf32> to vector<4x256xf32>
    %956 = arith.truncf %955 : vector<4x256xf32> to vector<4x256xbf16>
    %cst_733 = arith.constant dense<0.000000e+00> : vector<16x256xf32>
    %957 = tpu.matmul %322, %956, %cst_733 {dimension_numbers = #tpu.dot_dimension_numbers<[1], [0], [0], [1], [0, 0, 1, 1], [], []>} : vector<16x4xbf16>, vector<4x256xbf16>, vector<16x256xf32> -> vector<16x256xf32>
    %958 = arith.addf %953, %957 : vector<16x256xf32>
    %c2_734 = arith.constant 2 : index
    %c8_735 = arith.constant 8 : index
    %c129_736 = arith.constant 129 : index
    %959 = vector.load %arg11[%c2_734, %c8_735, %c129_736] : memref<4x16x512xf32, #tpu.memory_space<vmem>>, vector<1x4x256xf32>
    %960 = vector.shape_cast %959 : vector<1x4x256xf32> to vector<4x256xf32>
    %961 = arith.truncf %960 : vector<4x256xf32> to vector<4x256xbf16>
    %cst_737 = arith.constant dense<0.000000e+00> : vector<16x256xf32>
    %962 = tpu.matmul %324, %961, %cst_737 {dimension_numbers = #tpu.dot_dimension_numbers<[1], [0], [0], [1], [0, 0, 1, 1], [], []>} : vector<16x4xbf16>, vector<4x256xbf16>, vector<16x256xf32> -> vector<16x256xf32>
    %963 = arith.addf %958, %962 : vector<16x256xf32>
    %964 = vector.broadcast %325 : vector<16x1xf32> to vector<16x256xf32>
    %965 = arith.addf %963, %964 : vector<16x256xf32>
    %966 = math.tanh %965 : vector<16x256xf32>
    %cst_738 = arith.constant 0.000000e+00 : f32
    %967 = vector.shape_cast %2 : vector<1x256xi1> to vector<1x256xi1>
    %968 = vector.broadcast %967 : vector<1x256xi1> to vector<16x256xi1>
    %969 = vector.broadcast %cst_738 : f32 to vector<16x256xf32>
    %970 = arith.select %968, %966, %969 : vector<16x256xi1>, vector<16x256xf32>
    %c11 = arith.constant 11 : index
    %c0_739 = arith.constant 0 : index
    %c0_740 = arith.constant 0 : index
    %971 = vector.load %arg9[%c11, %c0_739, %c0_740] : memref<16x16x256xf32, #tpu.memory_space<vmem>>, vector<1x16x256xf32>
    %972 = vector.shape_cast %971 : vector<1x16x256xf32> to vector<16x256xf32>
    %973 = vector.shape_cast %970 : vector<16x256xf32> to vector<1x16x256xf32>
    tpu.vector_store %arg9[%c11, %c0_739, %c0_740], %973 {strides = array<i32>} : memref<16x16x256xf32, #tpu.memory_space<vmem>>, vector<1x16x256xf32>,
    %c3_741 = arith.constant 3 : index
    %c4_742 = arith.constant 4 : index
    %c127_743 = arith.constant 127 : index
    %974 = vector.load %arg11[%c3_741, %c4_742, %c127_743] : memref<4x16x512xf32, #tpu.memory_space<vmem>>, vector<1x4x256xf32>
    %975 = vector.shape_cast %974 : vector<1x4x256xf32> to vector<4x256xf32>
    %976 = arith.truncf %975 : vector<4x256xf32> to vector<4x256xbf16>
    %cst_744 = arith.constant dense<0.000000e+00> : vector<16x256xf32>
    %977 = tpu.matmul %308, %976, %cst_744 {dimension_numbers = #tpu.dot_dimension_numbers<[1], [0], [0], [1], [0, 0, 1, 1], [], []>} : vector<16x4xbf16>, vector<4x256xbf16>, vector<16x256xf32> -> vector<16x256xf32>
    %c2_745 = arith.constant 2 : index
    %c0_746 = arith.constant 0 : index
    %c128_747 = arith.constant 128 : index
    %978 = vector.load %arg11[%c2_745, %c0_746, %c128_747] : memref<4x16x512xf32, #tpu.memory_space<vmem>>, vector<1x4x256xf32>
    %979 = vector.shape_cast %978 : vector<1x4x256xf32> to vector<4x256xf32>
    %980 = arith.truncf %979 : vector<4x256xf32> to vector<4x256xbf16>
    %cst_748 = arith.constant dense<0.000000e+00> : vector<16x256xf32>
    %981 = tpu.matmul %310, %980, %cst_748 {dimension_numbers = #tpu.dot_dimension_numbers<[1], [0], [0], [1], [0, 0, 1, 1], [], []>} : vector<16x4xbf16>, vector<4x256xbf16>, vector<16x256xf32> -> vector<16x256xf32>
    %982 = arith.addf %977, %981 : vector<16x256xf32>
    %c2_749 = arith.constant 2 : index
    %c4_750 = arith.constant 4 : index
    %c128_751 = arith.constant 128 : index
    %983 = vector.load %arg11[%c2_749, %c4_750, %c128_751] : memref<4x16x512xf32, #tpu.memory_space<vmem>>, vector<1x4x256xf32>
    %984 = vector.shape_cast %983 : vector<1x4x256xf32> to vector<4x256xf32>
    %985 = arith.truncf %984 : vector<4x256xf32> to vector<4x256xbf16>
    %cst_752 = arith.constant dense<0.000000e+00> : vector<16x256xf32>
    %986 = tpu.matmul %312, %985, %cst_752 {dimension_numbers = #tpu.dot_dimension_numbers<[1], [0], [0], [1], [0, 0, 1, 1], [], []>} : vector<16x4xbf16>, vector<4x256xbf16>, vector<16x256xf32> -> vector<16x256xf32>
    %987 = arith.addf %982, %986 : vector<16x256xf32>
    %c3_753 = arith.constant 3 : index
    %c12_754 = arith.constant 12 : index
    %c127_755 = arith.constant 127 : index
    %988 = vector.load %arg11[%c3_753, %c12_754, %c127_755] : memref<4x16x512xf32, #tpu.memory_space<vmem>>, vector<1x4x256xf32>
    %989 = vector.shape_cast %988 : vector<1x4x256xf32> to vector<4x256xf32>
    %990 = arith.truncf %989 : vector<4x256xf32> to vector<4x256xbf16>
    %cst_756 = arith.constant dense<0.000000e+00> : vector<16x256xf32>
    %991 = tpu.matmul %314, %990, %cst_756 {dimension_numbers = #tpu.dot_dimension_numbers<[1], [0], [0], [1], [0, 0, 1, 1], [], []>} : vector<16x4xbf16>, vector<4x256xbf16>, vector<16x256xf32> -> vector<16x256xf32>
    %992 = arith.addf %987, %991 : vector<16x256xf32>
    %c2_757 = arith.constant 2 : index
    %c8_758 = arith.constant 8 : index
    %c128_759 = arith.constant 128 : index
    %993 = vector.load %arg11[%c2_757, %c8_758, %c128_759] : memref<4x16x512xf32, #tpu.memory_space<vmem>>, vector<1x4x256xf32>
    %994 = vector.shape_cast %993 : vector<1x4x256xf32> to vector<4x256xf32>
    %995 = arith.truncf %994 : vector<4x256xf32> to vector<4x256xbf16>
    %cst_760 = arith.constant dense<0.000000e+00> : vector<16x256xf32>
    %996 = tpu.matmul %316, %995, %cst_760 {dimension_numbers = #tpu.dot_dimension_numbers<[1], [0], [0], [1], [0, 0, 1, 1], [], []>} : vector<16x4xbf16>, vector<4x256xbf16>, vector<16x256xf32> -> vector<16x256xf32>
    %997 = arith.addf %992, %996 : vector<16x256xf32>
    %c2_761 = arith.constant 2 : index
    %c12_762 = arith.constant 12 : index
    %c128_763 = arith.constant 128 : index
    %998 = vector.load %arg11[%c2_761, %c12_762, %c128_763] : memref<4x16x512xf32, #tpu.memory_space<vmem>>, vector<1x4x256xf32>
    %999 = vector.shape_cast %998 : vector<1x4x256xf32> to vector<4x256xf32>
    %1000 = arith.truncf %999 : vector<4x256xf32> to vector<4x256xbf16>
    %cst_764 = arith.constant dense<0.000000e+00> : vector<16x256xf32>
    %1001 = tpu.matmul %318, %1000, %cst_764 {dimension_numbers = #tpu.dot_dimension_numbers<[1], [0], [0], [1], [0, 0, 1, 1], [], []>} : vector<16x4xbf16>, vector<4x256xbf16>, vector<16x256xf32> -> vector<16x256xf32>
    %1002 = arith.addf %997, %1001 : vector<16x256xf32>
    %c1_765 = arith.constant 1 : index
    %c4_766 = arith.constant 4 : index
    %c137_767 = arith.constant 137 : index
    %1003 = vector.load %arg11[%c1_765, %c4_766, %c137_767] : memref<4x16x512xf32, #tpu.memory_space<vmem>>, vector<1x4x256xf32>
    %1004 = vector.shape_cast %1003 : vector<1x4x256xf32> to vector<4x256xf32>
    %1005 = arith.truncf %1004 : vector<4x256xf32> to vector<4x256xbf16>
    %cst_768 = arith.constant dense<0.000000e+00> : vector<16x256xf32>
    %1006 = tpu.matmul %320, %1005, %cst_768 {dimension_numbers = #tpu.dot_dimension_numbers<[1], [0], [0], [1], [0, 0, 1, 1], [], []>} : vector<16x4xbf16>, vector<4x256xbf16>, vector<16x256xf32> -> vector<16x256xf32>
    %1007 = arith.addf %1002, %1006 : vector<16x256xf32>
    %c0_769 = arith.constant 0 : index
    %c0_770 = arith.constant 0 : index
    %c138_771 = arith.constant 138 : index
    %1008 = vector.load %arg11[%c0_769, %c0_770, %c138_771] : memref<4x16x512xf32, #tpu.memory_space<vmem>>, vector<1x4x256xf32>
    %1009 = vector.shape_cast %1008 : vector<1x4x256xf32> to vector<4x256xf32>
    %1010 = arith.truncf %1009 : vector<4x256xf32> to vector<4x256xbf16>
    %cst_772 = arith.constant dense<0.000000e+00> : vector<16x256xf32>
    %1011 = tpu.matmul %322, %1010, %cst_772 {dimension_numbers = #tpu.dot_dimension_numbers<[1], [0], [0], [1], [0, 0, 1, 1], [], []>} : vector<16x4xbf16>, vector<4x256xbf16>, vector<16x256xf32> -> vector<16x256xf32>
    %1012 = arith.addf %1007, %1011 : vector<16x256xf32>
    %c0_773 = arith.constant 0 : index
    %c4_774 = arith.constant 4 : index
    %c138_775 = arith.constant 138 : index
    %1013 = vector.load %arg11[%c0_773, %c4_774, %c138_775] : memref<4x16x512xf32, #tpu.memory_space<vmem>>, vector<1x4x256xf32>
    %1014 = vector.shape_cast %1013 : vector<1x4x256xf32> to vector<4x256xf32>
    %1015 = arith.truncf %1014 : vector<4x256xf32> to vector<4x256xbf16>
    %cst_776 = arith.constant dense<0.000000e+00> : vector<16x256xf32>
    %1016 = tpu.matmul %324, %1015, %cst_776 {dimension_numbers = #tpu.dot_dimension_numbers<[1], [0], [0], [1], [0, 0, 1, 1], [], []>} : vector<16x4xbf16>, vector<4x256xbf16>, vector<16x256xf32> -> vector<16x256xf32>
    %1017 = arith.addf %1012, %1016 : vector<16x256xf32>
    %1018 = vector.broadcast %325 : vector<16x1xf32> to vector<16x256xf32>
    %1019 = arith.addf %1017, %1018 : vector<16x256xf32>
    %1020 = math.tanh %1019 : vector<16x256xf32>
    %cst_777 = arith.constant 0.000000e+00 : f32
    %1021 = vector.shape_cast %2 : vector<1x256xi1> to vector<1x256xi1>
    %1022 = vector.broadcast %1021 : vector<1x256xi1> to vector<16x256xi1>
    %1023 = vector.broadcast %cst_777 : f32 to vector<16x256xf32>
    %1024 = arith.select %1022, %1020, %1023 : vector<16x256xi1>, vector<16x256xf32>
    %c12_778 = arith.constant 12 : index
    %c0_779 = arith.constant 0 : index
    %c0_780 = arith.constant 0 : index
    %1025 = vector.load %arg9[%c12_778, %c0_779, %c0_780] : memref<16x16x256xf32, #tpu.memory_space<vmem>>, vector<1x16x256xf32>
    %1026 = vector.shape_cast %1025 : vector<1x16x256xf32> to vector<16x256xf32>
    %1027 = vector.shape_cast %1024 : vector<16x256xf32> to vector<1x16x256xf32>
    tpu.vector_store %arg9[%c12_778, %c0_779, %c0_780], %1027 {strides = array<i32>} : memref<16x16x256xf32, #tpu.memory_space<vmem>>, vector<1x16x256xf32>,
    %c2_781 = arith.constant 2 : index
    %c0_782 = arith.constant 0 : index
    %c128_783 = arith.constant 128 : index
    %1028 = vector.load %arg11[%c2_781, %c0_782, %c128_783] : memref<4x16x512xf32, #tpu.memory_space<vmem>>, vector<1x4x256xf32>
    %1029 = vector.shape_cast %1028 : vector<1x4x256xf32> to vector<4x256xf32>
    %1030 = arith.truncf %1029 : vector<4x256xf32> to vector<4x256xbf16>
    %cst_784 = arith.constant dense<0.000000e+00> : vector<16x256xf32>
    %1031 = tpu.matmul %308, %1030, %cst_784 {dimension_numbers = #tpu.dot_dimension_numbers<[1], [0], [0], [1], [0, 0, 1, 1], [], []>} : vector<16x4xbf16>, vector<4x256xbf16>, vector<16x256xf32> -> vector<16x256xf32>
    %c2_785 = arith.constant 2 : index
    %c4_786 = arith.constant 4 : index
    %c128_787 = arith.constant 128 : index
    %1032 = vector.load %arg11[%c2_785, %c4_786, %c128_787] : memref<4x16x512xf32, #tpu.memory_space<vmem>>, vector<1x4x256xf32>
    %1033 = vector.shape_cast %1032 : vector<1x4x256xf32> to vector<4x256xf32>
    %1034 = arith.truncf %1033 : vector<4x256xf32> to vector<4x256xbf16>
    %cst_788 = arith.constant dense<0.000000e+00> : vector<16x256xf32>
    %1035 = tpu.matmul %310, %1034, %cst_788 {dimension_numbers = #tpu.dot_dimension_numbers<[1], [0], [0], [1], [0, 0, 1, 1], [], []>} : vector<16x4xbf16>, vector<4x256xbf16>, vector<16x256xf32> -> vector<16x256xf32>
    %1036 = arith.addf %1031, %1035 : vector<16x256xf32>
    %c3_789 = arith.constant 3 : index
    %c0_790 = arith.constant 0 : index
    %c128_791 = arith.constant 128 : index
    %1037 = vector.load %arg11[%c3_789, %c0_790, %c128_791] : memref<4x16x512xf32, #tpu.memory_space<vmem>>, vector<1x4x256xf32>
    %1038 = vector.shape_cast %1037 : vector<1x4x256xf32> to vector<4x256xf32>
    %1039 = arith.truncf %1038 : vector<4x256xf32> to vector<4x256xbf16>
    %cst_792 = arith.constant dense<0.000000e+00> : vector<16x256xf32>
    %1040 = tpu.matmul %312, %1039, %cst_792 {dimension_numbers = #tpu.dot_dimension_numbers<[1], [0], [0], [1], [0, 0, 1, 1], [], []>} : vector<16x4xbf16>, vector<4x256xbf16>, vector<16x256xf32> -> vector<16x256xf32>
    %1041 = arith.addf %1036, %1040 : vector<16x256xf32>
    %c2_793 = arith.constant 2 : index
    %c8_794 = arith.constant 8 : index
    %c128_795 = arith.constant 128 : index
    %1042 = vector.load %arg11[%c2_793, %c8_794, %c128_795] : memref<4x16x512xf32, #tpu.memory_space<vmem>>, vector<1x4x256xf32>
    %1043 = vector.shape_cast %1042 : vector<1x4x256xf32> to vector<4x256xf32>
    %1044 = arith.truncf %1043 : vector<4x256xf32> to vector<4x256xbf16>
    %cst_796 = arith.constant dense<0.000000e+00> : vector<16x256xf32>
    %1045 = tpu.matmul %314, %1044, %cst_796 {dimension_numbers = #tpu.dot_dimension_numbers<[1], [0], [0], [1], [0, 0, 1, 1], [], []>} : vector<16x4xbf16>, vector<4x256xbf16>, vector<16x256xf32> -> vector<16x256xf32>
    %1046 = arith.addf %1041, %1045 : vector<16x256xf32>
    %c2_797 = arith.constant 2 : index
    %c12_798 = arith.constant 12 : index
    %c128_799 = arith.constant 128 : index
    %1047 = vector.load %arg11[%c2_797, %c12_798, %c128_799] : memref<4x16x512xf32, #tpu.memory_space<vmem>>, vector<1x4x256xf32>
    %1048 = vector.shape_cast %1047 : vector<1x4x256xf32> to vector<4x256xf32>
    %1049 = arith.truncf %1048 : vector<4x256xf32> to vector<4x256xbf16>
    %cst_800 = arith.constant dense<0.000000e+00> : vector<16x256xf32>
    %1050 = tpu.matmul %316, %1049, %cst_800 {dimension_numbers = #tpu.dot_dimension_numbers<[1], [0], [0], [1], [0, 0, 1, 1], [], []>} : vector<16x4xbf16>, vector<4x256xbf16>, vector<16x256xf32> -> vector<16x256xf32>
    %1051 = arith.addf %1046, %1050 : vector<16x256xf32>
    %c3_801 = arith.constant 3 : index
    %c8_802 = arith.constant 8 : index
    %c128_803 = arith.constant 128 : index
    %1052 = vector.load %arg11[%c3_801, %c8_802, %c128_803] : memref<4x16x512xf32, #tpu.memory_space<vmem>>, vector<1x4x256xf32>
    %1053 = vector.shape_cast %1052 : vector<1x4x256xf32> to vector<4x256xf32>
    %1054 = arith.truncf %1053 : vector<4x256xf32> to vector<4x256xbf16>
    %cst_804 = arith.constant dense<0.000000e+00> : vector<16x256xf32>
    %1055 = tpu.matmul %318, %1054, %cst_804 {dimension_numbers = #tpu.dot_dimension_numbers<[1], [0], [0], [1], [0, 0, 1, 1], [], []>} : vector<16x4xbf16>, vector<4x256xbf16>, vector<16x256xf32> -> vector<16x256xf32>
    %1056 = arith.addf %1051, %1055 : vector<16x256xf32>
    %c0_805 = arith.constant 0 : index
    %c0_806 = arith.constant 0 : index
    %c138_807 = arith.constant 138 : index
    %1057 = vector.load %arg11[%c0_805, %c0_806, %c138_807] : memref<4x16x512xf32, #tpu.memory_space<vmem>>, vector<1x4x256xf32>
    %1058 = vector.shape_cast %1057 : vector<1x4x256xf32> to vector<4x256xf32>
    %1059 = arith.truncf %1058 : vector<4x256xf32> to vector<4x256xbf16>
    %cst_808 = arith.constant dense<0.000000e+00> : vector<16x256xf32>
    %1060 = tpu.matmul %320, %1059, %cst_808 {dimension_numbers = #tpu.dot_dimension_numbers<[1], [0], [0], [1], [0, 0, 1, 1], [], []>} : vector<16x4xbf16>, vector<4x256xbf16>, vector<16x256xf32> -> vector<16x256xf32>
    %1061 = arith.addf %1056, %1060 : vector<16x256xf32>
    %c0_809 = arith.constant 0 : index
    %c4_810 = arith.constant 4 : index
    %c138_811 = arith.constant 138 : index
    %1062 = vector.load %arg11[%c0_809, %c4_810, %c138_811] : memref<4x16x512xf32, #tpu.memory_space<vmem>>, vector<1x4x256xf32>
    %1063 = vector.shape_cast %1062 : vector<1x4x256xf32> to vector<4x256xf32>
    %1064 = arith.truncf %1063 : vector<4x256xf32> to vector<4x256xbf16>
    %cst_812 = arith.constant dense<0.000000e+00> : vector<16x256xf32>
    %1065 = tpu.matmul %322, %1064, %cst_812 {dimension_numbers = #tpu.dot_dimension_numbers<[1], [0], [0], [1], [0, 0, 1, 1], [], []>} : vector<16x4xbf16>, vector<4x256xbf16>, vector<16x256xf32> -> vector<16x256xf32>
    %1066 = arith.addf %1061, %1065 : vector<16x256xf32>
    %c1_813 = arith.constant 1 : index
    %c0_814 = arith.constant 0 : index
    %c138_815 = arith.constant 138 : index
    %1067 = vector.load %arg11[%c1_813, %c0_814, %c138_815] : memref<4x16x512xf32, #tpu.memory_space<vmem>>, vector<1x4x256xf32>
    %1068 = vector.shape_cast %1067 : vector<1x4x256xf32> to vector<4x256xf32>
    %1069 = arith.truncf %1068 : vector<4x256xf32> to vector<4x256xbf16>
    %cst_816 = arith.constant dense<0.000000e+00> : vector<16x256xf32>
    %1070 = tpu.matmul %324, %1069, %cst_816 {dimension_numbers = #tpu.dot_dimension_numbers<[1], [0], [0], [1], [0, 0, 1, 1], [], []>} : vector<16x4xbf16>, vector<4x256xbf16>, vector<16x256xf32> -> vector<16x256xf32>
    %1071 = arith.addf %1066, %1070 : vector<16x256xf32>
    %1072 = vector.broadcast %325 : vector<16x1xf32> to vector<16x256xf32>
    %1073 = arith.addf %1071, %1072 : vector<16x256xf32>
    %1074 = math.tanh %1073 : vector<16x256xf32>
    %cst_817 = arith.constant 0.000000e+00 : f32
    %1075 = vector.shape_cast %2 : vector<1x256xi1> to vector<1x256xi1>
    %1076 = vector.broadcast %1075 : vector<1x256xi1> to vector<16x256xi1>
    %1077 = vector.broadcast %cst_817 : f32 to vector<16x256xf32>
    %1078 = arith.select %1076, %1074, %1077 : vector<16x256xi1>, vector<16x256xf32>
    %c13 = arith.constant 13 : index
    %c0_818 = arith.constant 0 : index
    %c0_819 = arith.constant 0 : index
    %1079 = vector.load %arg9[%c13, %c0_818, %c0_819] : memref<16x16x256xf32, #tpu.memory_space<vmem>>, vector<1x16x256xf32>
    %1080 = vector.shape_cast %1079 : vector<1x16x256xf32> to vector<16x256xf32>
    %1081 = vector.shape_cast %1078 : vector<16x256xf32> to vector<1x16x256xf32>
    tpu.vector_store %arg9[%c13, %c0_818, %c0_819], %1081 {strides = array<i32>} : memref<16x16x256xf32, #tpu.memory_space<vmem>>, vector<1x16x256xf32>,
    %c2_820 = arith.constant 2 : index
    %c4_821 = arith.constant 4 : index
    %c128_822 = arith.constant 128 : index
    %1082 = vector.load %arg11[%c2_820, %c4_821, %c128_822] : memref<4x16x512xf32, #tpu.memory_space<vmem>>, vector<1x4x256xf32>
    %1083 = vector.shape_cast %1082 : vector<1x4x256xf32> to vector<4x256xf32>
    %1084 = arith.truncf %1083 : vector<4x256xf32> to vector<4x256xbf16>
    %cst_823 = arith.constant dense<0.000000e+00> : vector<16x256xf32>
    %1085 = tpu.matmul %308, %1084, %cst_823 {dimension_numbers = #tpu.dot_dimension_numbers<[1], [0], [0], [1], [0, 0, 1, 1], [], []>} : vector<16x4xbf16>, vector<4x256xbf16>, vector<16x256xf32> -> vector<16x256xf32>
    %c3_824 = arith.constant 3 : index
    %c0_825 = arith.constant 0 : index
    %c128_826 = arith.constant 128 : index
    %1086 = vector.load %arg11[%c3_824, %c0_825, %c128_826] : memref<4x16x512xf32, #tpu.memory_space<vmem>>, vector<1x4x256xf32>
    %1087 = vector.shape_cast %1086 : vector<1x4x256xf32> to vector<4x256xf32>
    %1088 = arith.truncf %1087 : vector<4x256xf32> to vector<4x256xbf16>
    %cst_827 = arith.constant dense<0.000000e+00> : vector<16x256xf32>
    %1089 = tpu.matmul %310, %1088, %cst_827 {dimension_numbers = #tpu.dot_dimension_numbers<[1], [0], [0], [1], [0, 0, 1, 1], [], []>} : vector<16x4xbf16>, vector<4x256xbf16>, vector<16x256xf32> -> vector<16x256xf32>
    %1090 = arith.addf %1085, %1089 : vector<16x256xf32>
    %c3_828 = arith.constant 3 : index
    %c4_829 = arith.constant 4 : index
    %c128_830 = arith.constant 128 : index
    %1091 = vector.load %arg11[%c3_828, %c4_829, %c128_830] : memref<4x16x512xf32, #tpu.memory_space<vmem>>, vector<1x4x256xf32>
    %1092 = vector.shape_cast %1091 : vector<1x4x256xf32> to vector<4x256xf32>
    %1093 = arith.truncf %1092 : vector<4x256xf32> to vector<4x256xbf16>
    %cst_831 = arith.constant dense<0.000000e+00> : vector<16x256xf32>
    %1094 = tpu.matmul %312, %1093, %cst_831 {dimension_numbers = #tpu.dot_dimension_numbers<[1], [0], [0], [1], [0, 0, 1, 1], [], []>} : vector<16x4xbf16>, vector<4x256xbf16>, vector<16x256xf32> -> vector<16x256xf32>
    %1095 = arith.addf %1090, %1094 : vector<16x256xf32>
    %c2_832 = arith.constant 2 : index
    %c12_833 = arith.constant 12 : index
    %c128_834 = arith.constant 128 : index
    %1096 = vector.load %arg11[%c2_832, %c12_833, %c128_834] : memref<4x16x512xf32, #tpu.memory_space<vmem>>, vector<1x4x256xf32>
    %1097 = vector.shape_cast %1096 : vector<1x4x256xf32> to vector<4x256xf32>
    %1098 = arith.truncf %1097 : vector<4x256xf32> to vector<4x256xbf16>
    %cst_835 = arith.constant dense<0.000000e+00> : vector<16x256xf32>
    %1099 = tpu.matmul %314, %1098, %cst_835 {dimension_numbers = #tpu.dot_dimension_numbers<[1], [0], [0], [1], [0, 0, 1, 1], [], []>} : vector<16x4xbf16>, vector<4x256xbf16>, vector<16x256xf32> -> vector<16x256xf32>
    %1100 = arith.addf %1095, %1099 : vector<16x256xf32>
    %c3_836 = arith.constant 3 : index
    %c8_837 = arith.constant 8 : index
    %c128_838 = arith.constant 128 : index
    %1101 = vector.load %arg11[%c3_836, %c8_837, %c128_838] : memref<4x16x512xf32, #tpu.memory_space<vmem>>, vector<1x4x256xf32>
    %1102 = vector.shape_cast %1101 : vector<1x4x256xf32> to vector<4x256xf32>
    %1103 = arith.truncf %1102 : vector<4x256xf32> to vector<4x256xbf16>
    %cst_839 = arith.constant dense<0.000000e+00> : vector<16x256xf32>
    %1104 = tpu.matmul %316, %1103, %cst_839 {dimension_numbers = #tpu.dot_dimension_numbers<[1], [0], [0], [1], [0, 0, 1, 1], [], []>} : vector<16x4xbf16>, vector<4x256xbf16>, vector<16x256xf32> -> vector<16x256xf32>
    %1105 = arith.addf %1100, %1104 : vector<16x256xf32>
    %c3_840 = arith.constant 3 : index
    %c12_841 = arith.constant 12 : index
    %c128_842 = arith.constant 128 : index
    %1106 = vector.load %arg11[%c3_840, %c12_841, %c128_842] : memref<4x16x512xf32, #tpu.memory_space<vmem>>, vector<1x4x256xf32>
    %1107 = vector.shape_cast %1106 : vector<1x4x256xf32> to vector<4x256xf32>
    %1108 = arith.truncf %1107 : vector<4x256xf32> to vector<4x256xbf16>
    %cst_843 = arith.constant dense<0.000000e+00> : vector<16x256xf32>
    %1109 = tpu.matmul %318, %1108, %cst_843 {dimension_numbers = #tpu.dot_dimension_numbers<[1], [0], [0], [1], [0, 0, 1, 1], [], []>} : vector<16x4xbf16>, vector<4x256xbf16>, vector<16x256xf32> -> vector<16x256xf32>
    %1110 = arith.addf %1105, %1109 : vector<16x256xf32>
    %c0_844 = arith.constant 0 : index
    %c4_845 = arith.constant 4 : index
    %c138_846 = arith.constant 138 : index
    %1111 = vector.load %arg11[%c0_844, %c4_845, %c138_846] : memref<4x16x512xf32, #tpu.memory_space<vmem>>, vector<1x4x256xf32>
    %1112 = vector.shape_cast %1111 : vector<1x4x256xf32> to vector<4x256xf32>
    %1113 = arith.truncf %1112 : vector<4x256xf32> to vector<4x256xbf16>
    %cst_847 = arith.constant dense<0.000000e+00> : vector<16x256xf32>
    %1114 = tpu.matmul %320, %1113, %cst_847 {dimension_numbers = #tpu.dot_dimension_numbers<[1], [0], [0], [1], [0, 0, 1, 1], [], []>} : vector<16x4xbf16>, vector<4x256xbf16>, vector<16x256xf32> -> vector<16x256xf32>
    %1115 = arith.addf %1110, %1114 : vector<16x256xf32>
    %c1_848 = arith.constant 1 : index
    %c0_849 = arith.constant 0 : index
    %c138_850 = arith.constant 138 : index
    %1116 = vector.load %arg11[%c1_848, %c0_849, %c138_850] : memref<4x16x512xf32, #tpu.memory_space<vmem>>, vector<1x4x256xf32>
    %1117 = vector.shape_cast %1116 : vector<1x4x256xf32> to vector<4x256xf32>
    %1118 = arith.truncf %1117 : vector<4x256xf32> to vector<4x256xbf16>
    %cst_851 = arith.constant dense<0.000000e+00> : vector<16x256xf32>
    %1119 = tpu.matmul %322, %1118, %cst_851 {dimension_numbers = #tpu.dot_dimension_numbers<[1], [0], [0], [1], [0, 0, 1, 1], [], []>} : vector<16x4xbf16>, vector<4x256xbf16>, vector<16x256xf32> -> vector<16x256xf32>
    %1120 = arith.addf %1115, %1119 : vector<16x256xf32>
    %c1_852 = arith.constant 1 : index
    %c4_853 = arith.constant 4 : index
    %c138_854 = arith.constant 138 : index
    %1121 = vector.load %arg11[%c1_852, %c4_853, %c138_854] : memref<4x16x512xf32, #tpu.memory_space<vmem>>, vector<1x4x256xf32>
    %1122 = vector.shape_cast %1121 : vector<1x4x256xf32> to vector<4x256xf32>
    %1123 = arith.truncf %1122 : vector<4x256xf32> to vector<4x256xbf16>
    %cst_855 = arith.constant dense<0.000000e+00> : vector<16x256xf32>
    %1124 = tpu.matmul %324, %1123, %cst_855 {dimension_numbers = #tpu.dot_dimension_numbers<[1], [0], [0], [1], [0, 0, 1, 1], [], []>} : vector<16x4xbf16>, vector<4x256xbf16>, vector<16x256xf32> -> vector<16x256xf32>
    %1125 = arith.addf %1120, %1124 : vector<16x256xf32>
    %1126 = vector.broadcast %325 : vector<16x1xf32> to vector<16x256xf32>
    %1127 = arith.addf %1125, %1126 : vector<16x256xf32>
    %1128 = math.tanh %1127 : vector<16x256xf32>
    %cst_856 = arith.constant 0.000000e+00 : f32
    %1129 = vector.shape_cast %2 : vector<1x256xi1> to vector<1x256xi1>
    %1130 = vector.broadcast %1129 : vector<1x256xi1> to vector<16x256xi1>
    %1131 = vector.broadcast %cst_856 : f32 to vector<16x256xf32>
    %1132 = arith.select %1130, %1128, %1131 : vector<16x256xi1>, vector<16x256xf32>
    %c14 = arith.constant 14 : index
    %c0_857 = arith.constant 0 : index
    %c0_858 = arith.constant 0 : index
    %1133 = vector.load %arg9[%c14, %c0_857, %c0_858] : memref<16x16x256xf32, #tpu.memory_space<vmem>>, vector<1x16x256xf32>
    %1134 = vector.shape_cast %1133 : vector<1x16x256xf32> to vector<16x256xf32>
    %1135 = vector.shape_cast %1132 : vector<16x256xf32> to vector<1x16x256xf32>
    tpu.vector_store %arg9[%c14, %c0_857, %c0_858], %1135 {strides = array<i32>} : memref<16x16x256xf32, #tpu.memory_space<vmem>>, vector<1x16x256xf32>,
    %c3_859 = arith.constant 3 : index
    %c0_860 = arith.constant 0 : index
    %c128_861 = arith.constant 128 : index
    %1136 = vector.load %arg11[%c3_859, %c0_860, %c128_861] : memref<4x16x512xf32, #tpu.memory_space<vmem>>, vector<1x4x256xf32>
    %1137 = vector.shape_cast %1136 : vector<1x4x256xf32> to vector<4x256xf32>
    %1138 = arith.truncf %1137 : vector<4x256xf32> to vector<4x256xbf16>
    %cst_862 = arith.constant dense<0.000000e+00> : vector<16x256xf32>
    %1139 = tpu.matmul %308, %1138, %cst_862 {dimension_numbers = #tpu.dot_dimension_numbers<[1], [0], [0], [1], [0, 0, 1, 1], [], []>} : vector<16x4xbf16>, vector<4x256xbf16>, vector<16x256xf32> -> vector<16x256xf32>
    %c3_863 = arith.constant 3 : index
    %c4_864 = arith.constant 4 : index
    %c128_865 = arith.constant 128 : index
    %1140 = vector.load %arg11[%c3_863, %c4_864, %c128_865] : memref<4x16x512xf32, #tpu.memory_space<vmem>>, vector<1x4x256xf32>
    %1141 = vector.shape_cast %1140 : vector<1x4x256xf32> to vector<4x256xf32>
    %1142 = arith.truncf %1141 : vector<4x256xf32> to vector<4x256xbf16>
    %cst_866 = arith.constant dense<0.000000e+00> : vector<16x256xf32>
    %1143 = tpu.matmul %310, %1142, %cst_866 {dimension_numbers = #tpu.dot_dimension_numbers<[1], [0], [0], [1], [0, 0, 1, 1], [], []>} : vector<16x4xbf16>, vector<4x256xbf16>, vector<16x256xf32> -> vector<16x256xf32>
    %1144 = arith.addf %1139, %1143 : vector<16x256xf32>
    %c2_867 = arith.constant 2 : index
    %c0_868 = arith.constant 0 : index
    %c129_869 = arith.constant 129 : index
    %1145 = vector.load %arg11[%c2_867, %c0_868, %c129_869] : memref<4x16x512xf32, #tpu.memory_space<vmem>>, vector<1x4x256xf32>
    %1146 = vector.shape_cast %1145 : vector<1x4x256xf32> to vector<4x256xf32>
    %1147 = arith.truncf %1146 : vector<4x256xf32> to vector<4x256xbf16>
    %cst_870 = arith.constant dense<0.000000e+00> : vector<16x256xf32>
    %1148 = tpu.matmul %312, %1147, %cst_870 {dimension_numbers = #tpu.dot_dimension_numbers<[1], [0], [0], [1], [0, 0, 1, 1], [], []>} : vector<16x4xbf16>, vector<4x256xbf16>, vector<16x256xf32> -> vector<16x256xf32>
    %1149 = arith.addf %1144, %1148 : vector<16x256xf32>
    %c3_871 = arith.constant 3 : index
    %c8_872 = arith.constant 8 : index
    %c128_873 = arith.constant 128 : index
    %1150 = vector.load %arg11[%c3_871, %c8_872, %c128_873] : memref<4x16x512xf32, #tpu.memory_space<vmem>>, vector<1x4x256xf32>
    %1151 = vector.shape_cast %1150 : vector<1x4x256xf32> to vector<4x256xf32>
    %1152 = arith.truncf %1151 : vector<4x256xf32> to vector<4x256xbf16>
    %cst_874 = arith.constant dense<0.000000e+00> : vector<16x256xf32>
    %1153 = tpu.matmul %314, %1152, %cst_874 {dimension_numbers = #tpu.dot_dimension_numbers<[1], [0], [0], [1], [0, 0, 1, 1], [], []>} : vector<16x4xbf16>, vector<4x256xbf16>, vector<16x256xf32> -> vector<16x256xf32>
    %1154 = arith.addf %1149, %1153 : vector<16x256xf32>
    %c3_875 = arith.constant 3 : index
    %c12_876 = arith.constant 12 : index
    %c128_877 = arith.constant 128 : index
    %1155 = vector.load %arg11[%c3_875, %c12_876, %c128_877] : memref<4x16x512xf32, #tpu.memory_space<vmem>>, vector<1x4x256xf32>
    %1156 = vector.shape_cast %1155 : vector<1x4x256xf32> to vector<4x256xf32>
    %1157 = arith.truncf %1156 : vector<4x256xf32> to vector<4x256xbf16>
    %cst_878 = arith.constant dense<0.000000e+00> : vector<16x256xf32>
    %1158 = tpu.matmul %316, %1157, %cst_878 {dimension_numbers = #tpu.dot_dimension_numbers<[1], [0], [0], [1], [0, 0, 1, 1], [], []>} : vector<16x4xbf16>, vector<4x256xbf16>, vector<16x256xf32> -> vector<16x256xf32>
    %1159 = arith.addf %1154, %1158 : vector<16x256xf32>
    %c2_879 = arith.constant 2 : index
    %c8_880 = arith.constant 8 : index
    %c129_881 = arith.constant 129 : index
    %1160 = vector.load %arg11[%c2_879, %c8_880, %c129_881] : memref<4x16x512xf32, #tpu.memory_space<vmem>>, vector<1x4x256xf32>
    %1161 = vector.shape_cast %1160 : vector<1x4x256xf32> to vector<4x256xf32>
    %1162 = arith.truncf %1161 : vector<4x256xf32> to vector<4x256xbf16>
    %cst_882 = arith.constant dense<0.000000e+00> : vector<16x256xf32>
    %1163 = tpu.matmul %318, %1162, %cst_882 {dimension_numbers = #tpu.dot_dimension_numbers<[1], [0], [0], [1], [0, 0, 1, 1], [], []>} : vector<16x4xbf16>, vector<4x256xbf16>, vector<16x256xf32> -> vector<16x256xf32>
    %1164 = arith.addf %1159, %1163 : vector<16x256xf32>
    %c1_883 = arith.constant 1 : index
    %c0_884 = arith.constant 0 : index
    %c138_885 = arith.constant 138 : index
    %1165 = vector.load %arg11[%c1_883, %c0_884, %c138_885] : memref<4x16x512xf32, #tpu.memory_space<vmem>>, vector<1x4x256xf32>
    %1166 = vector.shape_cast %1165 : vector<1x4x256xf32> to vector<4x256xf32>
    %1167 = arith.truncf %1166 : vector<4x256xf32> to vector<4x256xbf16>
    %cst_886 = arith.constant dense<0.000000e+00> : vector<16x256xf32>
    %1168 = tpu.matmul %320, %1167, %cst_886 {dimension_numbers = #tpu.dot_dimension_numbers<[1], [0], [0], [1], [0, 0, 1, 1], [], []>} : vector<16x4xbf16>, vector<4x256xbf16>, vector<16x256xf32> -> vector<16x256xf32>
    %1169 = arith.addf %1164, %1168 : vector<16x256xf32>
    %c1_887 = arith.constant 1 : index
    %c4_888 = arith.constant 4 : index
    %c138_889 = arith.constant 138 : index
    %1170 = vector.load %arg11[%c1_887, %c4_888, %c138_889] : memref<4x16x512xf32, #tpu.memory_space<vmem>>, vector<1x4x256xf32>
    %1171 = vector.shape_cast %1170 : vector<1x4x256xf32> to vector<4x256xf32>
    %1172 = arith.truncf %1171 : vector<4x256xf32> to vector<4x256xbf16>
    %cst_890 = arith.constant dense<0.000000e+00> : vector<16x256xf32>
    %1173 = tpu.matmul %322, %1172, %cst_890 {dimension_numbers = #tpu.dot_dimension_numbers<[1], [0], [0], [1], [0, 0, 1, 1], [], []>} : vector<16x4xbf16>, vector<4x256xbf16>, vector<16x256xf32> -> vector<16x256xf32>
    %1174 = arith.addf %1169, %1173 : vector<16x256xf32>
    %c0_891 = arith.constant 0 : index
    %c0_892 = arith.constant 0 : index
    %c139_893 = arith.constant 139 : index
    %1175 = vector.load %arg11[%c0_891, %c0_892, %c139_893] : memref<4x16x512xf32, #tpu.memory_space<vmem>>, vector<1x4x256xf32>
    %1176 = vector.shape_cast %1175 : vector<1x4x256xf32> to vector<4x256xf32>
    %1177 = arith.truncf %1176 : vector<4x256xf32> to vector<4x256xbf16>
    %cst_894 = arith.constant dense<0.000000e+00> : vector<16x256xf32>
    %1178 = tpu.matmul %324, %1177, %cst_894 {dimension_numbers = #tpu.dot_dimension_numbers<[1], [0], [0], [1], [0, 0, 1, 1], [], []>} : vector<16x4xbf16>, vector<4x256xbf16>, vector<16x256xf32> -> vector<16x256xf32>
    %1179 = arith.addf %1174, %1178 : vector<16x256xf32>
    %1180 = vector.broadcast %325 : vector<16x1xf32> to vector<16x256xf32>
    %1181 = arith.addf %1179, %1180 : vector<16x256xf32>
    %1182 = math.tanh %1181 : vector<16x256xf32>
    %cst_895 = arith.constant 0.000000e+00 : f32
    %1183 = vector.shape_cast %2 : vector<1x256xi1> to vector<1x256xi1>
    %1184 = vector.broadcast %1183 : vector<1x256xi1> to vector<16x256xi1>
    %1185 = vector.broadcast %cst_895 : f32 to vector<16x256xf32>
    %1186 = arith.select %1184, %1182, %1185 : vector<16x256xi1>, vector<16x256xf32>
    %c15 = arith.constant 15 : index
    %c0_896 = arith.constant 0 : index
    %c0_897 = arith.constant 0 : index
    %1187 = vector.load %arg9[%c15, %c0_896, %c0_897] : memref<16x16x256xf32, #tpu.memory_space<vmem>>, vector<1x16x256xf32>
    %1188 = vector.shape_cast %1187 : vector<1x16x256xf32> to vector<16x256xf32>
    %1189 = vector.shape_cast %1186 : vector<16x256xf32> to vector<1x16x256xf32>
    tpu.vector_store %arg9[%c15, %c0_896, %c0_897], %1189 {strides = array<i32>} : memref<16x16x256xf32, #tpu.memory_space<vmem>>, vector<1x16x256xf32>,
    return
  }
  func.func @transform_0(%arg0: i32) -> (i32, i32) {
    %c0_i32 = arith.constant 0 : i32
    %c0_i32_0 = arith.constant 0 : i32
    %c0_i32_1 = arith.constant 0 : i32
    return %c0_i32, %c0_i32_0 : i32, i32
  }
  func.func @transform_1(%arg0: i32) -> (i32, i32) {
    %c0_i32 = arith.constant 0 : i32
    %c0_i32_0 = arith.constant 0 : i32
    %c0_i32_1 = arith.constant 0 : i32
    return %c0_i32, %c0_i32_0 : i32, i32
  }
  func.func @transform_2(%arg0: i32) -> (i32, i32, i32) {
    %c0_i32 = arith.constant 0 : i32
    %c0_i32_0 = arith.constant 0 : i32
    %c0_i32_1 = arith.constant 0 : i32
    %c0_i32_2 = arith.constant 0 : i32
    return %c0_i32, %c0_i32_0, %c0_i32_1 : i32, i32, i32
  }
  func.func @transform_3(%arg0: i32) -> (i32, i32) {
    %c0_i32 = arith.constant 0 : i32
    %c0_i32_0 = arith.constant 0 : i32
    %c0_i32_1 = arith.constant 0 : i32
    return %c0_i32, %c0_i32_0 : i32, i32
  }
  func.func @transform_4(%arg0: i32) -> (i32, i32, i32) {
    %c0_i32 = arith.constant 0 : i32
    %c0_i32_0 = arith.constant 0 : i32
    %c0_i32_1 = arith.constant 0 : i32
    %c0_i32_2 = arith.constant 0 : i32
    return %c0_i32, %c0_i32_0, %c0_i32_1 : i32, i32, i32
  }
  func.func @transform_5(%arg0: i32) -> (i32, i32) {
    %c0_i32 = arith.constant 0 : i32
    %c0_i32_0 = arith.constant 0 : i32
    %c0_i32_1 = arith.constant 0 : i32
    return %c0_i32, %c0_i32_0 : i32, i32
  }
  func.func @transform_6(%arg0: i32) -> (i32, i32, i32) {
    %c0_i32 = arith.constant 0 : i32
    %c0_i32_0 = arith.constant 0 : i32
    %c0_i32_1 = arith.constant 0 : i32
    %c0_i32_2 = arith.constant 0 : i32
    return %c0_i32, %c0_i32_0, %c0_i32_1 : i32, i32, i32
  }
  func.func @transform_7(%arg0: i32) -> (i32, i32) {
    %c0_i32 = arith.constant 0 : i32
    %c0_i32_0 = arith.constant 0 : i32
    %c0_i32_1 = arith.constant 0 : i32
    return %c0_i32, %c0_i32_0 : i32, i32
  }
  func.func @transform_8(%arg0: i32) -> (i32, i32, i32) {
    %c0_i32 = arith.constant 0 : i32
    %c0_i32_0 = arith.constant 0 : i32
    %c0_i32_1 = arith.constant 0 : i32
    %c0_i32_2 = arith.constant 0 : i32
    return %c0_i32, %c0_i32_0, %c0_i32_1 : i32, i32, i32
  }
}

</mosaic_0001>

<bundles_post_ra>
// kernel: _forward.1
= control target key start
LH: loop header
LB: loop body
LE: loop exit
PB: predicated region body
PF: predicated region fallthrough
CT: control target
= control target key end

     0   :  { %13 = vsyncpa [#allocation5], 0  ;;  %s14411_s0 = inlined_call_operand.vmem [shape: f32[16,512], index: 0, kind: input, shape index: {}]   ;;  %s14412_s1 = inlined_call_operand.hbm [shape: f32[1,256], index: 1, kind: input, shape index: {}]   ;;  %s14413_s2 = inlined_call_operand.hbm [shape: bf16[9,32,16], index: 2, kind: input, shape index: {}]   ;;  %s14414_s3 = inlined_call_operand.hbm [shape: f32[32,1], index: 3, kind: input, shape index: {}]   ;;  %s14415_s4 = inlined_call_operand.hbm [shape: bf16[9,16,8], index: 4, kind: input, shape index: {}]   ;;  %s14416_s5 = inlined_call_operand.hbm [shape: f32[16,1], index: 5, kind: input, shape index: {}]   ;;  %s14417_s6 = inlined_call_operand.hbm [shape: bf16[9,16,4], index: 6, kind: input, shape index: {}]   ;;  %s14418_s7 = inlined_call_operand.hbm [shape: f32[16,1], index: 7, kind: input, shape index: {}]   ;;  %s14419_s8 = inlined_call_operand.vmem [shape: f32[16,16,256], index: 8, kind: output, shape index: {}]  }
   0x1   :  { %14 = vsyncpa [#allocation7], 0 }
   0x2   :  { %15 = vsyncpa [#allocation10], 0  ;;  %s34_s29 = sshll.u32 %s14413_s2, 4  ;;  %s35_s29 = int_to_ptr.hbm [resolvable:$true] %s34_s29 }
   0x3   :  { %16 = vsyncpa [#allocation13], 0  ;;  %s10893_s30 = smov [#allocation6]   ;;  %s60_s12 = sshll.u32 %s14415_s4, 4  ;;  %s61_s12 = int_to_ptr.hbm [resolvable:$true] %s60_s12 }
   0x4   :  { %s36_s9 = sshll.u32 %s10893_s30, 4  ;;  %s10894_s13 = smov 64   ;;  %s37_s9 = int_to_ptr.vmem [resolvable:$true] %s36_s9 }
   0x5   :  { %s10895_s14 = smov 4   ;;  %s10896_s15 = smov [#allocation9]  }
   0x6   :  { %42 = dma.hbm_to_vmem [thread:$0]  %s35_s29, 2304, %s37_s9, [#allocation7], %s10894_s13, %s10894_s13, %s10895_s14  }
   0x7   :  { %s62_s16 = sshll.u32 %s10896_s15, 4  ;;  %s86_s19 = sshll.u32 %s14417_s6, 4  ;;  %s63_s16 = int_to_ptr.vmem [resolvable:$true] %s62_s16  ;;  %s87_s19 = int_to_ptr.hbm [resolvable:$true] %s86_s19 }
   0x8   :  { %68 = dma.hbm_to_vmem [thread:$0]  %s61_s12, 1152, %s63_s16, [#allocation10], %s10894_s13, %s10894_s13, %s10895_s14  }
   0x9   :  { %s24_s21 = sshll.u32 %s14412_s1, 4  ;;  %s10897_s22 = smov [#allocation12]   ;;  %s25_s21 = int_to_ptr.hbm [resolvable:$true] %s24_s21 }
   0xa   :  { %s88_s23 = sshll.u32 %s10897_s22, 4  ;;  %s10898_s4 = smov [#allocation4]   ;;  %s89_s23 = int_to_ptr.vmem [resolvable:$true] %s88_s23 }
   0xb   :  { %94 = dma.hbm_to_vmem [thread:$0]  %s87_s19, 1152, %s89_s23, [#allocation13], %s10894_s13, %s10894_s13, %s10895_s14  }
   0xc   :  { %s26_s24 = sshll.u32 %s10898_s4, 4  ;;  %s47_s27 = sshll.u32 %s14414_s3, 4  ;;  %s27_s24 = int_to_ptr.vmem [resolvable:$true] %s26_s24  ;;  %s48_s27 = int_to_ptr.hbm [resolvable:$true] %s47_s27 }
   0xd   :  { %29 = dma.hbm_to_vmem [thread:$0]  %s25_s21, 32, %s27_s24, [#allocation5]  }
   0xe   :  { %s10899_s6 = smov [#allocation8]   ;;  %s73_s1 = sshll.u32 %s14416_s5, 4  ;;  %s74_s1 = int_to_ptr.hbm [resolvable:$true] %s73_s1 }
   0xf   :  { %s49_s28 = sshll.u32 %s10899_s6, 4  ;;  %s10900_s9 = smov 128   ;;  %s50_s28 = int_to_ptr.vmem [resolvable:$true] %s49_s28 }
  0x10   :  { %s10901_s10 = smov 8   ;;  %s10902_s11 = smov [#allocation11]  }
  0x11   :  { %55 = dma.hbm_to_vmem [thread:$0]  %s48_s27, 512, %s50_s28, [#allocation7], %s10900_s9, %s10900_s9, %s10901_s10  }
  0x12   :  { %s75_s12 = sshll.u32 %s10902_s11, 4  ;;  %s99_s3 = sshll.u32 %s14418_s7, 4  ;;  %s76_s12 = int_to_ptr.vmem [resolvable:$true] %s75_s12  ;;  %s100_s3 = int_to_ptr.hbm [resolvable:$true] %s99_s3 }
  0x13   :  { %81 = dma.hbm_to_vmem [thread:$0]  %s74_s1, 256, %s76_s12, [#allocation10], %s10900_s9, %s10900_s9, %s10901_s10  }
  0x14   :  { %s10903_s15 = smov [#allocation14]  }
  0x15   :  { %s101_s16 = sshll.u32 %s10903_s15, 4  ;;  %s102_s16 = int_to_ptr.vmem [resolvable:$true] %s101_s16 }
  0x16   :  { %107 = dma.hbm_to_vmem [thread:$0]  %s100_s3, 256, %s102_s16, [#allocation13], %s10900_s9, %s10900_s9, %s10901_s10  }
  0x17   :  { %10885 = dma.done.wait [#allocation5], 32  }
  0x18   :  { %10886 = vsyncadd [#allocation5], 4294967264 }
  0x19   :  { %10887 = dma.done.wait [#allocation7], 2816  }
  0x1a   :  { %10888 = vsyncadd [#allocation7], 4294964480 }
  0x1b   :  { %10889 = dma.done.wait [#allocation10], 1408  }
  0x1c   :  { %10890 = vsyncadd [#allocation10], 4294965888 }
  0x1d   :  { %10891 = dma.done.wait [#allocation13], 1408  }
  0x1e   :  { %10892 = vsyncadd [#allocation13], 4294965888  ;;  %v189_v0 = vld [vmem:[%s14411_s0 + $0x10] sm:$0xff]  ;;  %v187_v2 = vld [vmem:[%s14411_s0] sm:$0xff]  ;;  %s10904_s25 = smov 10   ;;  %s10905_s26 = smov 11  }
  0x1f   :  { %v192_v1 = vld [vmem:[%s14411_s0 + $0x30] sm:$0xff]  ;;  %v190_v4 = vld [vmem:[%s14411_s0 + $0x20] sm:$0xff]  ;;  %v188_v5 = vld [vmem:[%s14411_s0 + $0x8] sm:$0xff]  ;;  %s10906_s27 = smov 9   ;;  %s10907_s6 = smov 1   ;;  %vm281_vm0 = vcmask 89088  }
  0x20   :  { %v10988_v3 = vpack.c.bf16 %v192_v1, %v189_v0  ;;  %v191_v6 = vld [vmem:[%s14411_s0 + $0x28] sm:$0xff]  ;;  %v193_v7 = vpack.c.bf16 %v190_v4, %v187_v2  ;;  %v540_v9 = vld [vmem:[%s14411_s0 + $0x18] sm:$0xff]  ;;  %s10908_s9 = smov 127   ;;  %s10909_s10 = smov 119   ;;  %vm220_vm1 = vcmask 130048   ;;  %vm215_vm2 = vcmask 80896  }
  0x21   :  { %v10999_v8 = vpack.c.bf16 %v191_v6, %v188_v5  ;;  %v543_v10 = vld [vmem:[%s14411_s0 + $0x38] sm:$0xff]  ;;  %s10910_s0 = smov 118   ;;  %s10911_s11 = smov 117   ;;  %v10485_v15 = vld [vmem:[#allocation6] sm:$0xff]  ;;  %v10486_v18 = vld [vmem:[#allocation6 + $0x8] sm:$0xff]  ;;  %vm346_vm3 = vcmask 72704  }
  0x22   :  { %213 = vrot.lane.b32.xlu1 %v10988_v3, %s10904_s25  ;;  %209 = vrot.lane.b32.xlu0 %v193_v7, %s10904_s25  ;;  %v546_v11 = vpack.c.bf16 %v543_v10, %v540_v9  ;;  %v10487_v24 = vld [vmem:[#allocation6 + $0x10] sm:$0xff]  ;;  %vm419_vm4 = vcmask 7168   ;;  %v10488_v35 = vld [vmem:[#allocation6 + $0x18] sm:$0xff]  ;;  %vm566_vm5 = vcmask 1039360   ;;  %v10489_v43 = vld [vmem:[#allocation6 + $0x20] sm:$0xff]  ;;  %vm639_vm6 = vcmask 973824  }
  0x23   :  { %277 = vrot.lane.b32.xlu2 %v10999_v8, %s10905_s26  ;;  %v10491_v34 = vld [vmem:[#allocation6 + $0x30] sm:$0xff]  ;;  %v10492_v42 = vld [vmem:[#allocation6 + $0x38] sm:$0xff]  ;;  %v10490_v47 = vld [vmem:[#allocation6 + $0x28] sm:$0xff]  ;;  %vm712_vm7 = vcmask 965632   ;;  %v14420_v59 = vmov 0   ;;  %vm785_vm8 = vcmask 957440  }
  0x24   :  { %v10495_v46 = vld [vmem:[#allocation6 + $0x50] sm:$0xff]  ;;  %v10496_v56 = vld [vmem:[#allocation6 + $0x58] sm:$0xff]  ;;  %v10493_v57 = vld [vmem:[#allocation6 + $0x40] sm:$0xff]  ;;  %10542 = vset.pattern.permute.xlu1 %v14420_v59  ;;  %10541 = vset.pattern.permute.xlu0 %v14420_v59  ;;  %vm959_vm12 = vcmask 1043456   ;;  %vm955_vm13 = vcmask 64512   ;;  %vm2796_vm14 = vcmask 1041408  }
  0x25   :  { %v186_v58 = vld [vmem:[#allocation8 + $0x18] sm:$0xff]  ;;  %10543 = vset.pattern.permute.xlu2 %v14420_v59  ;;  %v10499_v62 = vld [vmem:[#allocation6 + $0x70] sm:$0xff]  ;;  %v927_v0 = vld [vmem:[#allocation2 + $0x60] sm:$0xff]  ;;  %vm2792_vm15 = vcmask 31744  }
  0x26   :  { %v933_v60 = vld [vmem:[#allocation2 + $0x48] sm:$0xff]  ;;  %v11095_v2 = vpack.c.bf16 %v927_v0, %v927_v0 }
  0x27   :  { %v11087_v61 = vpack.c.bf16 %v933_v60, %v933_v60  ;;  %v10494_v63 = vld [vmem:[#allocation6 + $0x48] sm:$0xff]  ;;  %v10497_v9 = vld [vmem:[#allocation6 + $0x60] sm:$0xff] }
  0x28   :  { %14441 = vst [vmem:[#allocation20_spill] sm:$0xff] %v11095_v2  ;;  %v1101_v5 = vld [vmem:[#allocation2 + $0x28] sm:$0xff] }
  0x29   :  { %14440 = vst [vmem:[#allocation19_spill] sm:$0xff] %v11087_v61  ;;  %v11100_v6 = vpack.c.bf16 %v1101_v5, %v1101_v5 }
  0x2a   :  { %275 = vrot.lane.b32.xlu1 %v193_v7, %s10905_s26  ;;  %211 = vrot.lane.b32.xlu0 %v10999_v8, %s10904_s25 }
  0x2b   :  { %279 = vrot.lane.b32.xlu2 %v10988_v3, %s10905_s26  ;;  %14442 = vst [vmem:[#allocation21_spill] sm:$0xff] %v11100_v6 }
  0x32   :  { %342 = vrot.lane.b32.xlu1 %v10999_v8, %s10906_s27  ;;  %340 = vrot.lane.b32.xlu0 %v193_v7, %s10906_s27 }
  0x33   :  { %344 = vrot.lane.b32.xlu2 %v10988_v3, %s10906_s27 }
  0x3a   :  { %415 = vrot.lane.b32.xlu1 %v10999_v8, %s10907_s6  ;;  %413 = vrot.lane.b32.xlu0 %v193_v7, %s10907_s6 }
  0x3b   :  { %417 = vrot.lane.b32.xlu2 %v10988_v3, %s10907_s6 }
  0x42   :  { %562 = vrot.lane.b32.xlu1 %v10988_v3, %s10908_s9  ;;  %560 = vrot.lane.b32.xlu0 %v10999_v8, %s10908_s9 }
  0x43   :  { %564 = vrot.lane.b32.xlu2 %v546_v11, %s10908_s9 }
  0x4a   :  { %635 = vrot.lane.b32.xlu1 %v10988_v3, %s10909_s10  ;;  %633 = vrot.lane.b32.xlu0 %v10999_v8, %s10909_s10 }
  0x4b   :  { %637 = vrot.lane.b32.xlu2 %v546_v11, %s10909_s10 }
  0x52   :  { %708 = vrot.lane.b32.xlu1 %v10988_v3, %s10910_s0  ;;  %706 = vrot.lane.b32.xlu0 %v10999_v8, %s10910_s0 }
  0x53   :  { %710 = vrot.lane.b32.xlu2 %v546_v11, %s10910_s0 }
  0x5a   :  { %781 = vrot.lane.b32.xlu1 %v10988_v3, %s10911_s11  ;;  %779 = vrot.lane.b32.xlu0 %v10999_v8, %s10911_s11 }
  0x5b   :  { %783 = vrot.lane.b32.xlu2 %v546_v11, %s10911_s11  ;;  %v183_v11 = vld [vmem:[#allocation8] sm:$0xff] }
  0x62   :  { %859 = vperm.xlu1 %10542, %v186_v58  }
  0x6a   :  { %947 = vrot.lane.b32.xlu1 %v11087_v61, %s10904_s25 }
  0x72   :  { %1002 = vrot.lane.b32.xlu1 %v11095_v2, %s10905_s26 }
  0x7a   :  { %1115 = vrot.lane.b32.xlu1 %v11100_v6, %s10907_s6 }
  0x7d   :  { %v278_v12 = vpop.permute.xlu2 %277 }
  0x82   :  { %1052 = vrot.lane.b32.xlu1 %v11095_v2, %s10904_s25 }
  0x85   :  { %v280_v13 = vpop.permute.xlu2 %279 }
  0x86   :  { %v283_v14 = vsel %vm281_vm0, %v278_v12, %v280_v13 }
  0x87   :  { %318 = vmatpush.bf16.msra.mxu3 %v283_v14  ;;  %v185_v14 = vld [vmem:[#allocation8 + $0x10] sm:$0xff] }
  0x88   :  { %854 = vperm.xlu0 %10541, %v185_v14  }
  0x8a   :  { %9907 = vmatmul.msk.bf16.vlgmr.msra.gmra.mxu3 %vm220_vm1, %v10485_v15  ;;  %844 = vperm.xlu1 %10542, %v183_v11  }
  0x8d   :  { %v345_v25 = vpop.permute.xlu2 %344 }
  0x94   :  { %v214_v16 = vpop.permute.xlu1 %213  ;;  %v210_v17 = vpop.permute.xlu0 %209 }
  0x95   :  { %v418_v30 = vpop.permute.xlu2 %417 }
  0x9a   :  { %9908 = vmatmul.msk.bf16.gmra.mxu3 %vm220_vm1, %v10486_v18 }
  0x9c   :  { %v276_v19 = vpop.permute.xlu1 %275  ;;  %v212_v20 = vpop.permute.xlu0 %211 }
  0x9d   :  { %v282_v21 = vsel %vm281_vm0, %v276_v19, %v278_v12  ;;  %v216_v22 = vsel %vm215_vm2, %v210_v17, %v212_v20  ;;  %v217_v23 = vsel %vm215_vm2, %v212_v20, %v214_v16  ;;  %v565_v37 = vpop.permute.xlu2 %564  ;;  %v10498_v12 = vld [vmem:[#allocation6 + $0x68] sm:$0xff] }
  0x9e   :  { %299 = vmatpush.bf16.msra.mxu2 %v282_v21  ;;  %234 = vmatpush.bf16.msra.mxu0 %v216_v22 }
  0x9f   :  { %253 = vmatpush.bf16.msra.mxu1 %v217_v23 }
  0xa1   :  { %9905 = vmatmul.msk.bf16.vlgmr.msra.gmra.mxu2 %vm220_vm1, %v10485_v15  ;;  %9893 = vmatmul.msk.bf16.vlgmr.msra.gmra.mxu0 %vm220_vm1, %v10487_v24  ;;  %v10501_v15 = vld [vmem:[#allocation6 + $0x80] sm:$0xff] }
  0xa2   :  { %9895 = vmatmul.msk.bf16.vlgmr.msra.gmra.mxu1 %vm220_vm1, %v10487_v24 }
  0xa4   :  { %v343_v26 = vpop.permute.xlu1 %342  ;;  %v341_v27 = vpop.permute.xlu0 %340 }
  0xa5   :  { %v348_v28 = vsel %vm346_vm3, %v343_v26, %v345_v25  ;;  %v347_v29 = vsel %vm346_vm3, %v341_v27, %v343_v26  ;;  %v638_v44 = vpop.permute.xlu2 %637  ;;  %v184_v26 = vld [vmem:[#allocation8 + $0x8] sm:$0xff]  ;;  %v10502_v27 = vld [vmem:[#allocation6 + $0x88] sm:$0xff] }
  0xa6   :  { %383 = vmatpush.bf16.msrb.mxu1 %v348_v28  ;;  %364 = vmatpush.bf16.msrb.mxu0 %v347_v29 }
  0xa7   :  { %849 = vperm.xlu2 %10543, %v184_v26  }
  0xaa   :  { %518 = vmatpush.bf16.msra.mxu1 %v10988_v3  ;;  %499 = vmatpush.bf16.msra.mxu0 %v10999_v8  ;;  %v10500_v8 = vld [vmem:[#allocation6 + $0x78] sm:$0xff] }
  0xac   :  { %v416_v31 = vpop.permute.xlu1 %415  ;;  %v414_v33 = vpop.permute.xlu0 %413 }
  0xad   :  { %v421_v32 = vsel %vm419_vm4, %v416_v31, %v418_v30  ;;  %v420_v36 = vsel %vm419_vm4, %v414_v33, %v416_v31  ;;  %v711_v49 = vpop.permute.xlu2 %710 }
  0xae   :  { %456 = vmatpush.bf16.msrb.mxu3 %v421_v32  ;;  %437 = vmatpush.bf16.msrb.mxu2 %v420_v36 }
  0xb1   :  { %9906 = vmatmul.msk.bf16.gmra.mxu2 %vm220_vm1, %v10486_v18  ;;  %9931 = vmatmul.msk.bf16.vlgmr.msrb.gmra.mxu3 %vm220_vm1, %v10491_v34 }
  0xb2   :  { %9894 = vmatmul.msk.bf16.gmra.mxu0 %vm220_vm1, %v10488_v35  ;;  %9896 = vmatmul.msk.bf16.gmra.mxu1 %vm220_vm1, %v10488_v35 }
  0xb4   :  { %v563_v38 = vpop.permute.xlu1 %562  ;;  %v561_v40 = vpop.permute.xlu0 %560 }
  0xb5   :  { %v568_v39 = vsel %vm566_vm5, %v563_v38, %v565_v37  ;;  %v567_v41 = vsel %vm566_vm5, %v561_v40, %v563_v38  ;;  %v784_v7 = vpop.permute.xlu2 %783 }
  0xb6   :  { %603 = vmatpush.bf16.msra.mxu3 %v568_v39  ;;  %584 = vmatpush.bf16.msra.mxu2 %v567_v41 }
  0xbc   :  { %v636_v45 = vpop.permute.xlu1 %635  ;;  %v634_v48 = vpop.permute.xlu0 %633 }
  0xbd   :  { %v640_v50 = vsel %vm639_vm6, %v634_v48, %v636_v45  ;;  %v641_v52 = vsel %vm639_vm6, %v636_v45, %v638_v44 }
  0xc1   :  { %9929 = vmatmul.msk.bf16.vlgmr.msrb.gmra.mxu2 %vm220_vm1, %v10491_v34  ;;  %9932 = vmatmul.msk.bf16.gmra.mxu3 %vm220_vm1, %v10492_v42 }
  0xc2   :  { %9917 = vmatmul.msk.bf16.vlgmr.msrb.gmra.mxu0 %vm220_vm1, %v10489_v43  ;;  %9919 = vmatmul.msk.bf16.vlgmr.msrb.gmra.mxu1 %vm220_vm1, %v10489_v43 }
  0xc3   :  { %657 = vmatpush.bf16.msrb.mxu0 %v640_v50  ;;  %676 = vmatpush.bf16.msrb.mxu1 %v641_v52 }
  0xc4   :  { %v709_v51 = vpop.permute.xlu1 %708  ;;  %v707_v54 = vpop.permute.xlu0 %706 }
  0xc5   :  { %v714_v53 = vsel %vm712_vm7, %v709_v51, %v711_v49  ;;  %v713_v55 = vsel %vm712_vm7, %v707_v54, %v709_v51 }
  0xc6   :  { %749 = vmatpush.bf16.msrb.mxu3 %v714_v53  ;;  %730 = vmatpush.bf16.msrb.mxu2 %v713_v55 }
  0xcc   :  { %v782_v1 = vpop.permute.xlu1 %781  ;;  %v780_v3 = vpop.permute.xlu0 %779 }
  0xcd   :  { %v786_v4 = vsel %vm785_vm8, %v780_v3, %v782_v1  ;;  %v787_v10 = vsel %vm785_vm8, %v782_v1, %v784_v7 }
  0xd1   :  { %9930 = vmatmul.msk.bf16.gmra.mxu2 %vm220_vm1, %v10492_v42  ;;  %9955 = vmatmul.msk.bf16.vlgmr.msra.gmra.mxu3 %vm220_vm1, %v10495_v46 }
  0xd2   :  { %9918 = vmatmul.msk.bf16.gmra.mxu0 %vm220_vm1, %v10490_v47  ;;  %9920 = vmatmul.msk.bf16.gmra.mxu1 %vm220_vm1, %v10490_v47 }
  0xd4   :  { %v11150_v1 = vpop.permute.xlu1 %859 }
  0xe1   :  { %9953 = vmatmul.msk.bf16.vlgmr.msra.gmra.mxu2 %vm220_vm1, %v10495_v46  ;;  %9956 = vmatmul.msk.bf16.gmra.mxu3 %vm220_vm1, %v10496_v56 }
  0xe2   :  { %9941 = vmatmul.msk.bf16.vlgmr.msra.gmra.mxu0 %vm220_vm1, %v10493_v57  ;;  %9943 = vmatmul.msk.bf16.vlgmr.msra.gmra.mxu1 %vm220_vm1, %v10493_v57 }
  0xe3   :  { %803 = vmatpush.bf16.msra.mxu0 %v786_v4  ;;  %822 = vmatpush.bf16.msra.mxu1 %v787_v10 }
  0xf1   :  { %9954 = vmatmul.msk.bf16.gmra.mxu2 %vm220_vm1, %v10496_v56  ;;  %9979 = vmatmul.msk.bf16.vlgmr.msrb.gmra.mxu3 %vm220_vm1, %v10499_v62 }
  0xf2   :  { %9942 = vmatmul.msk.bf16.gmra.mxu0 %vm220_vm1, %v10494_v63  ;;  %9944 = vmatmul.msk.bf16.gmra.mxu1 %vm220_vm1, %v10494_v63 }
 0x101   :  { %9977 = vmatmul.msk.bf16.vlgmr.msrb.gmra.mxu2 %vm220_vm1, %v10499_v62  ;;  %9980 = vmatmul.msk.bf16.gmra.mxu3 %vm220_vm1, %v10500_v8 }
 0x102   :  { %9965 = vmatmul.msk.bf16.vlgmr.msrb.gmra.mxu0 %vm220_vm1, %v10497_v9  ;;  %9967 = vmatmul.msk.bf16.vlgmr.msrb.gmra.mxu1 %vm220_vm1, %v10497_v9 }
 0x10d   :  { %v320_v13 = vpop.f32.mrf.mxu3 }
 0x111   :  { %9978 = vmatmul.msk.bf16.gmra.mxu2 %vm220_vm1, %v10500_v8  ;;  %v11154_v8 = vpop.permute.xlu1 %947 }
 0x112   :  { %9966 = vmatmul.msk.bf16.gmra.mxu0 %vm220_vm1, %v10498_v12  ;;  %9968 = vmatmul.msk.bf16.gmra.mxu1 %vm220_vm1, %v10498_v12  ;;  %14443 = vst [vmem:[#allocation22_spill] sm:$0xff] %v11154_v8 }
 0x115   :  { %v11116_v19 = vpop.f32.mrf.mxu3 }
 0x11d   :  { %v325_v25 = vpop.f32.mrf.mxu3 }
 0x11e   :  { %v236_v16 = vpop.f32.mrf.mxu0 }
 0x11f   :  { %v255_v17 = vpop.f32.mrf.mxu1 }
 0x120   :  { %v321_v18 = vadd.f32 %v320_v13, %v255_v17 }
 0x122   :  { %9989 = vmatmul.msk.bf16.vlgmr.msra.gmra.mxu0 %vm220_vm1, %v10501_v15  ;;  %9991 = vmatmul.msk.bf16.vlgmr.msra.gmra.mxu1 %vm220_vm1, %v10501_v15  ;;  %v11164_v15 = vpop.permute.xlu1 %1002 }
 0x123   :  { %14444 = vst [vmem:[#allocation23_spill] sm:$0xff] %v11164_v15 }
 0x124   :  { %v301_v20 = vpop.f32.mrf.mxu2 }
 0x125   :  { %v302_v21 = vadd.f32 %v301_v20, %v236_v16  ;;  %v11130_v35 = vpop.f32.mrf.mxu3 }
 0x126   :  { %v11118_v22 = vpop.f32.mrf.mxu0 }
 0x127   :  { %v11120_v23 = vpop.f32.mrf.mxu1 }
 0x12c   :  { %v11122_v24 = vpop.f32.mrf.mxu2 }
 0x12f   :  { %v241_v28 = vpop.f32.mrf.mxu0  ;;  %v260_v29 = vpop.f32.mrf.mxu1 }
 0x130   :  { %v326_v30 = vadd.f32 %v325_v25, %v260_v29  ;;  %v323_v29 = vadd.f32 %v11116_v19, %v11120_v23  ;;  %v14447_v23 = vmov 0  }
 0x132   :  { %9990 = vmatmul.msk.bf16.gmra.mxu0 %vm220_vm1, %v10502_v27  ;;  %9992 = vmatmul.msk.bf16.gmra.mxu1 %vm220_vm1, %v10502_v27 }
 0x134   :  { %v306_v31 = vpop.f32.mrf.mxu2  ;;  %v458_v41 = vpop.f32.mrf.mxu3 }
 0x135   :  { %v307_v32 = vadd.f32 %v306_v31, %v241_v28 }
 0x137   :  { %v11126_v33 = vpop.f32.mrf.mxu0  ;;  %v11128_v34 = vpop.f32.mrf.mxu1 }
 0x13c   :  { %v11132_v36 = vpop.f32.mrf.mxu2  ;;  %v460_v45 = vpop.f32.mrf.mxu3 }
 0x13f   :  { %v366_v37 = vpop.f32.mrf.mxu0  ;;  %v385_v38 = vpop.f32.mrf.mxu1 }
 0x140   :  { %v395_v39 = vadd.f32 %v366_v37, %v302_v21  ;;  %v396_v40 = vadd.f32 %v385_v38, %v321_v18  ;;  %v11170_v21 = vpop.permute.xlu1 %1115  ;;  %v137_v37 = vld [vmem:[#allocation4] sm:$0x3] }
 0x141   :  { %14445 = vst [vmem:[#allocation24_spill] sm:$0xff] %v11170_v21  ;;  %vm138_vm9 = vcmp.gt.f32.partialorder %v137_v37, 0.0 }
 0x142   :  { %v469_v27 = vadd.f32 %v458_v41, %v396_v40  ;;  %v304_v40 = vadd.f32 %v11122_v24, %v11118_v22 }
 0x144   :  { %v439_v42 = vpop.f32.mrf.mxu2  ;;  %v11138_v51 = vpop.f32.mrf.mxu3 }
 0x145   :  { %v468_v38 = vadd.f32 %v439_v42, %v395_v39 }
 0x147   :  { %v368_v43 = vpop.f32.mrf.mxu0  ;;  %v387_v44 = vpop.f32.mrf.mxu1 }
 0x14c   :  { %v441_v46 = vpop.f32.mrf.mxu2  ;;  %v11146_v57 = vpop.f32.mrf.mxu3 }
 0x14f   :  { %v371_v47 = vpop.f32.mrf.mxu0  ;;  %v390_v48 = vpop.f32.mrf.mxu1 }
 0x150   :  { %v11134_v49 = vadd.f32 %v371_v47, %v307_v32  ;;  %v11136_v50 = vadd.f32 %v390_v48, %v326_v30  ;;  %v11178_v32 = vpop.permute.xlu1 %1052  ;;  %v398_v47 = vadd.f32 %v387_v44, %v323_v29 }
 0x151   :  { %14446 = vst [vmem:[#allocation25_spill] sm:$0xff] %v11178_v32 }
 0x152   :  { %v471_v41 = vadd.f32 %v460_v45, %v398_v47 }
 0x154   :  { %v11144_v54 = vpop.f32.mrf.mxu2  ;;  %v605_v63 = vpop.f32.mrf.mxu3 }
 0x157   :  { %v11140_v52 = vpop.f32.mrf.mxu0  ;;  %v11142_v53 = vpop.f32.mrf.mxu1 }
 0x158   :  { %v845_v2 = vpop.permute.xlu1 %844 }
 0x15c   :  { %v11148_v58 = vpop.f32.mrf.mxu2  ;;  %v607_v5 = vpop.f32.mrf.mxu3 }
 0x15f   :  { %v501_v55 = vpop.f32.mrf.mxu0  ;;  %v520_v56 = vpop.f32.mrf.mxu1 }
 0x160   :  { %v531_v30 = vadd.f32 %v520_v56, %v469_v27  ;;  %v530_v21 = vadd.f32 %v501_v55, %v468_v38  ;;  %v878_v56 = vsel %vm138_vm9, 1, %v14447_v23  ;;  %v397_v27 = vadd.f32 %v368_v43, %v304_v40 }
 0x161   :  { %v879_v55 = vperm.slane %v878_v56, 0 }
 0x162   :  { %v616_v15 = vadd.f32 %v605_v63, %v531_v30  ;;  %v470_v42 = vadd.f32 %v441_v46, %v397_v27  ;;  %v880_v63 = vperm.slane %v878_v56, 1 }
 0x163   :  { %vm11189_vm10 = vcmp.eq.s32.totalorder %v879_v55, 1 }
 0x164   :  { %v586_v0 = vpop.f32.mrf.mxu2  ;;  %v11160_v11 = vpop.f32.mrf.mxu3  ;;  %vm11193_vm11 = vcmp.eq.s32.totalorder %v880_v63, 1 }
 0x165   :  { %v615_v8 = vadd.f32 %v586_v0, %v530_v21  ;;  %v473_v0 = vadd.f32 %v11138_v51, %v11136_v50  ;;  %v472_v50 = vadd.f32 %v11144_v54, %v11134_v49  ;;  %v309_v54 = vadd.f32 %v11132_v36, %v11126_v33 }
 0x167   :  { %v503_v60 = vpop.f32.mrf.mxu0  ;;  %v522_v62 = vpop.f32.mrf.mxu1 }
 0x168   :  { %v533_v32 = vadd.f32 %v522_v62, %v471_v41  ;;  %v532_v38 = vadd.f32 %v503_v60, %v470_v42  ;;  %v328_v60 = vadd.f32 %v11130_v35, %v11128_v34  ;;  %v850_v34 = vpop.permute.xlu2 %849 }
 0x16a   :  { %v618_v22 = vadd.f32 %v607_v5, %v533_v32 }
 0x16c   :  { %v588_v7 = vpop.f32.mrf.mxu2  ;;  %v11166_v18 = vpop.f32.mrf.mxu3 }
 0x16d   :  { %v617_v43 = vadd.f32 %v588_v7, %v532_v38 }
 0x16f   :  { %v11152_v3 = vpop.f32.mrf.mxu0  ;;  %v525_v4 = vpop.f32.mrf.mxu1 }
 0x170   :  { %v535_v5 = vadd.f32 %v525_v4, %v473_v0 }
 0x172   :  { %v620_v49 = vadd.f32 %v11160_v11, %v535_v5 }
 0x174   :  { %v11162_v14 = vpop.f32.mrf.mxu2  ;;  %v751_v28 = vpop.f32.mrf.mxu3 }
 0x177   :  { %v11156_v9 = vpop.f32.mrf.mxu0  ;;  %v11158_v10 = vpop.f32.mrf.mxu1 }
 0x17c   :  { %v11168_v20 = vpop.f32.mrf.mxu2  ;;  %v753_v39 = vpop.f32.mrf.mxu3 }
 0x17f   :  { %v659_v12 = vpop.f32.mrf.mxu0  ;;  %v678_v13 = vpop.f32.mrf.mxu1 }
 0x180   :  { %v689_v19 = vadd.f32 %v678_v13, %v616_v15  ;;  %v688_v6 = vadd.f32 %v659_v12, %v615_v8 }
 0x182   :  { %v762_v44 = vadd.f32 %v751_v28, %v689_v19 }
 0x184   :  { %v732_v31 = vpop.f32.mrf.mxu2  ;;  %v756_v32 = vpop.f32.mrf.mxu3 }
 0x185   :  { %v761_v29 = vadd.f32 %v732_v31, %v688_v6 }
 0x187   :  { %v661_v16 = vpop.f32.mrf.mxu0  ;;  %v680_v17 = vpop.f32.mrf.mxu1 }
 0x188   :  { %v691_v62 = vadd.f32 %v680_v17, %v618_v22  ;;  %v690_v13 = vadd.f32 %v661_v16, %v617_v43  ;;  %v534_v16 = vadd.f32 %v11152_v3, %v472_v50  ;;  %v401_v3 = vadd.f32 %v11140_v52, %v309_v54 }
 0x18a   :  { %v764_v51 = vadd.f32 %v753_v39, %v691_v62  ;;  %v619_v40 = vadd.f32 %v11162_v14, %v534_v16  ;;  %v474_v33 = vadd.f32 %v11148_v58, %v401_v3 }
 0x18c   :  { %v734_v61 = vpop.f32.mrf.mxu2  ;;  %v758_v38 = vpop.f32.mrf.mxu3 }
 0x18d   :  { %v763_v7 = vadd.f32 %v734_v61, %v690_v13 }
 0x18f   :  { %v11172_v25 = vpop.f32.mrf.mxu0  ;;  %v11174_v26 = vpop.f32.mrf.mxu1 }
 0x190   :  { %v693_v41 = vadd.f32 %v11174_v26, %v620_v49  ;;  %v692_v56 = vadd.f32 %v11172_v25, %v619_v40  ;;  %v855_v26 = vpop.permute.xlu0 %854  ;;  %v1797_v49 = vld [vmem:[#allocation2 + $0x58] sm:$0xff] }
 0x191   :  { %v14455_v40 = vld [vmem:[#allocation22_spill] sm:$0xff] }
 0x192   :  { %v766_v36 = vadd.f32 %v756_v32, %v693_v41  ;;  %v14454_v32 = vld [vmem:[#allocation21_spill] sm:$0xff] }
 0x194   :  { %v737_v47 = vpop.f32.mrf.mxu2 }
 0x197   :  { %v11180_v48 = vpop.f32.mrf.mxu0  ;;  %v11182_v59 = vpop.f32.mrf.mxu1 }
 0x19c   :  { %v739_v22 = vpop.f32.mrf.mxu2 }
 0x19f   :  { %v805_v30 = vpop.f32.mrf.mxu0  ;;  %v824_v37 = vpop.f32.mrf.mxu1 }
 0x1a0   :  { %v834_v24 = vadd.f32 %v805_v30, %v761_v29  ;;  %v835_v45 = vadd.f32 %v824_v37, %v762_v44 }
 0x1a2   :  { %v862_v8 = vadd.f32 %v845_v2, %v834_v24  ;;  %v863_v12 = vadd.f32 %v845_v2, %v835_v45  ;;  %v402_v2 = vadd.f32 %v11142_v53, %v328_v60 }
 0x1a4   :  { %v870_v15 = vmax.f32 %v862_v8, 0.0  ;;  %v871_v21 = vmax.f32 %v863_v12, 0.0  ;;  %v475_v31 = vadd.f32 %v11146_v57, %v402_v2  ;;  %v765_v57 = vadd.f32 %v737_v47, %v692_v56 }
 0x1a6   :  { %v11204_v17 = vsel %vm11189_vm10, %v870_v15, 0.0  ;;  %v11208_v28 = vsel %vm11193_vm11, %v871_v21, 0.0  ;;  %v537_v11 = vadd.f32 %v11158_v10, %v475_v31  ;;  %v536_v10 = vadd.f32 %v11156_v9, %v474_v33  ;;  %v14457_v33 = vld [vmem:[#allocation24_spill] sm:$0xff] }
 0x1a7   :  { %891 = vst [vmem:[#allocation2 + $0x68] sm:$0xff] %v11204_v17  ;;  %v807_v35 = vpop.f32.mrf.mxu0  ;;  %v826_v4 = vpop.f32.mrf.mxu1  ;;  %v11303_v54 = vpack.c.bf16 %v11208_v28, %v11208_v28  ;;  %v11307_v31 = vpack.c.bf16 %v11204_v17, %v11204_v17  ;;  %v2131_v17 = vld [vmem:[#allocation2 + $0x50] sm:$0xff] }
 0x1a8   :  { %892 = vst [vmem:[#allocation2 + $0x8] sm:$0xff] %v11208_v28  ;;  %v836_v61 = vadd.f32 %v807_v35, %v763_v7  ;;  %v837_v53 = vadd.f32 %v826_v4, %v764_v51  ;;  %v622_v25 = vadd.f32 %v11166_v18, %v537_v11  ;;  %v621_v58 = vadd.f32 %v11168_v20, %v536_v10  ;;  %v14452_v35 = vld [vmem:[#allocation20_spill] sm:$0xff]  ;;  %v14456_v11 = vld [vmem:[#allocation23_spill] sm:$0xff] }
 0x1a9   :  { %v1666_v4 = vld [vmem:[#allocation2 + $0x70] sm:$0xff]  ;;  %v2134_v28 = vpack.c.bf16 %v2131_v17, %v2131_v17  ;;  %v926_v17 = vld [vmem:[#allocation11 + $0x8] sm:$0xff] }
 0x1aa   :  { %v864_v19 = vadd.f32 %v850_v34, %v836_v61  ;;  %v865_v23 = vadd.f32 %v850_v34, %v837_v53  ;;  %v695_v63 = vadd.f32 %v11182_v59, %v622_v25  ;;  %v694_v24 = vadd.f32 %v11180_v48, %v621_v58  ;;  %v14453_v53 = vld [vmem:[#allocation19_spill] sm:$0xff]  ;;  %v14458_v25 = vld [vmem:[#allocation25_spill] sm:$0xff] }
 0x1ab   :  { %v11282_v16 = vpack.c.bf16 %v1666_v4, %v1666_v4  ;;  %v1800_v61 = vpack.c.bf16 %v1797_v49, %v1797_v49  ;;  %v11375_v58 = vld [vmem:[#allocation9 + $0x10] sm:$0xff] }
 0x1ac   :  { %v872_v27 = vmax.f32 %v864_v19, 0.0  ;;  %v873_v39 = vmax.f32 %v865_v23, 0.0  ;;  %v768_v43 = vadd.f32 %v758_v38, %v695_v63  ;;  %v767_v62 = vadd.f32 %v739_v22, %v694_v24  ;;  %v11334_v23 = vld [vmem:[#allocation9 + $0x8] sm:$0xff]  ;;  %v11394_v22 = vld [vmem:[#allocation9 + $0x18] sm:$0xff] }
 0x1ad   :  { %v11379_v63 = vsel %vm959_vm12, %v11307_v31, 0 }
 0x1ae   :  { %v885_v42 = vsel %vm11189_vm10, %v872_v27, 0.0  ;;  %v886_v14 = vsel %vm11193_vm11, %v873_v39, 0.0 }
 0x1af   :  { %893 = vst [vmem:[#allocation2 + $0x18] sm:$0xff] %v885_v42  ;;  %v810_v44 = vpop.f32.mrf.mxu0  ;;  %v829_v52 = vpop.f32.mrf.mxu1  ;;  %v11262_v34 = vpack.c.bf16 %v885_v42, %v885_v42 }
 0x1b0   :  { %894 = vst [vmem:[#allocation2 + $0x30] sm:$0xff] %v886_v14  ;;  %v838_v29 = vadd.f32 %v810_v44, %v765_v57  ;;  %v839_v55 = vadd.f32 %v829_v52, %v766_v36  ;;  %v11355_v57 = vld [vmem:[#allocation9] sm:$0xff] }
 0x1b2   :  { %v866_v30 = vadd.f32 %v855_v26, %v838_v29  ;;  %v867_v37 = vadd.f32 %v855_v26, %v839_v55 }
 0x1b4   :  { %v874_v45 = vmax.f32 %v866_v30, 0.0  ;;  %v875_v0 = vmax.f32 %v867_v37, 0.0 }
 0x1b6   :  { %v887_v9 = vsel %vm11189_vm10, %v874_v45, 0.0  ;;  %v888_v18 = vsel %vm11193_vm11, %v875_v0, 0.0 }
 0x1b7   :  { %895 = vst [vmem:[#allocation2 + $0x20] sm:$0xff] %v887_v9  ;;  %v812_v20 = vpop.f32.mrf.mxu0  ;;  %v831_v8 = vpop.f32.mrf.mxu1  ;;  %v11236_v59 = vpack.c.bf16 %v888_v18, %v888_v18  ;;  %v11238_v12 = vpack.c.bf16 %v887_v9, %v887_v9 }
 0x1b8   :  { %896 = vst [vmem:[#allocation2 + $0x38] sm:$0xff] %v888_v18  ;;  %v840_v60 = vadd.f32 %v812_v20, %v767_v62  ;;  %v841_v48 = vadd.f32 %v831_v8, %v768_v43  ;;  %v11410_v62 = vld [vmem:[#allocation9 + $0x20] sm:$0xff] }
 0x1b9   :  { %951 = vrot.lane.b32.xlu0 %v11236_v59, %s10904_s25  ;;  %949 = vrot.lane.b32.xlu2 %v11238_v12, %s10904_s25  ;;  %v11402_v24 = vsel %vm959_vm12, %v11238_v12, 0 }
 0x1ba   :  { %v868_v5 = vadd.f32 %v11150_v1, %v840_v60  ;;  %v869_v13 = vadd.f32 %v11150_v1, %v841_v48  ;;  %v11260_v1 = vpack.c.bf16 %v886_v14, %v886_v14  ;;  %v11364_v14 = vsel %vm959_vm12, %v11262_v34, 0 }
 0x1bb   :  { %v11429_v48 = vsel %vm959_vm12, %v11303_v54, 0 }
 0x1bc   :  { %v876_v15 = vmax.f32 %v868_v5, 0.0  ;;  %v877_v21 = vmax.f32 %v869_v13, 0.0  ;;  %v11418_v9 = vsel %vm959_vm12, %v11260_v1, 0  ;;  %v11431_v5 = vld [vmem:[#allocation9 + $0x28] sm:$0xff] }
 0x1be   :  { %v889_v50 = vsel %vm11189_vm10, %v876_v15, 0.0  ;;  %v890_v2 = vsel %vm11193_vm11, %v877_v21, 0.0 }
 0x1bf   :  { %897 = vst [vmem:[#allocation2 + $0x10] sm:$0xff] %v889_v50  ;;  %v11250_v51 = vpack.c.bf16 %v890_v2, %v890_v2  ;;  %v11252_v7 = vpack.c.bf16 %v889_v50, %v889_v50 }
 0x1c0   :  { %898 = vst [vmem:[#allocation2 + $0x40] sm:$0xff] %v890_v2 }
 0x1c1   :  { %1269 = vrot.lane.b32.xlu1 %v11250_v51, %s10907_s6  ;;  %1006 = vrot.lane.b32.xlu0 %v11250_v51, %s10905_s26 }
 0x1c2   :  { %1004 = vrot.lane.b32.xlu2 %v11252_v7, %s10905_s26 }
 0x1c9   :  { %1451 = vrot.lane.b32.xlu1 %v11250_v51, %s10904_s25  ;;  %1119 = vrot.lane.b32.xlu0 %v11260_v1, %s10907_s6 }
 0x1ca   :  { %1117 = vrot.lane.b32.xlu2 %v11262_v34, %s10907_s6 }
 0x1d1   :  { %1538 = vrot.lane.b32.xlu1 %v11236_v59, %s10906_s27  ;;  %1056 = vrot.lane.b32.xlu0 %v11250_v51, %s10904_s25 }
 0x1d2   :  { %1054 = vrot.lane.b32.xlu2 %v11252_v7, %s10904_s25 }
 0x1d9   :  { %1496 = vrot.lane.b32.xlu1 %v11236_v59, %s10904_s25  ;;  %1267 = vrot.lane.b32.xlu0 %v11252_v7, %s10907_s6 }
 0x1da   :  { %1265 = vrot.lane.b32.xlu2 %v14452_v35, %s10907_s6 }
 0x1e1   :  { %1677 = vrot.lane.b32.xlu1 %v11282_v16, %s10908_s9  ;;  %1449 = vrot.lane.b32.xlu0 %v11252_v7, %s10904_s25 }
 0x1e2   :  { %1447 = vrot.lane.b32.xlu2 %v14452_v35, %s10904_s25 }
 0x1e9   :  { %1808 = vrot.lane.b32.xlu1 %v1800_v61, %s10908_s9  ;;  %1536 = vrot.lane.b32.xlu0 %v11238_v12, %s10906_s27 }
 0x1ea   :  { %1534 = vrot.lane.b32.xlu2 %v14453_v53, %s10906_s27 }
 0x1f1   :  { %1918 = vrot.lane.b32.xlu1 %v11260_v1, %s10907_s6  ;;  %1494 = vrot.lane.b32.xlu0 %v11238_v12, %s10904_s25 }
 0x1f2   :  { %1492 = vrot.lane.b32.xlu2 %v14453_v53, %s10904_s25 }
 0x1f9   :  { %2007 = vrot.lane.b32.xlu1 %v11250_v51, %s10907_s6  ;;  %1675 = vrot.lane.b32.xlu0 %v11303_v54, %s10908_s9 }
 0x1fa   :  { %1673 = vrot.lane.b32.xlu2 %v11307_v31, %s10908_s9 }
 0x201   :  { %1806 = vrot.lane.b32.xlu0 %v11236_v59, %s10908_s9  ;;  %2197 = vrot.lane.b32.xlu1 %v11282_v16, %s10910_s0 }
 0x202   :  { %1804 = vrot.lane.b32.xlu2 %v11238_v12, %s10908_s9 }
 0x209   :  { %1916 = vrot.lane.b32.xlu0 %v11262_v34, %s10907_s6  ;;  %2142 = vrot.lane.b32.xlu1 %v2134_v28, %s10909_s10 }
 0x20a   :  { %1914 = vrot.lane.b32.xlu2 %v14454_v32, %s10907_s6 }
 0x211   :  { %2005 = vrot.lane.b32.xlu0 %v11252_v7, %s10907_s6  ;;  %2243 = vrot.lane.b32.xlu1 %v2134_v28, %s10910_s0 }
 0x212   :  { %2003 = vrot.lane.b32.xlu2 %v14452_v35, %s10907_s6  ;;  %v11448_v35 = vsel %vm959_vm12, %v11252_v7, 0 }
 0x213   :  { %v950_v47 = vpop.permute.xlu2 %949 }
 0x214   :  { %v953_v41 = vsel %vm215_vm2, %v14455_v40, %v950_v47  ;;  %v2764_v40 = vld [vmem:[#allocation3 + $0xa0] sm:$0xf0] }
 0x215   :  { %v961_v19 = vsel %vm959_vm12, %v953_v41, 0 }
 0x216   :  { %973 = vmatpush.bf16.msra.mxu2 %v961_v19  ;;  %v2767_v19 = vpack.c.bf16 %v2764_v40, %v2764_v40 }
 0x219   :  { %9997 = vmatmul.msk.bf16.vlgmr.msra.gmra.mxu2 %vm955_vm13, %v11334_v23  ;;  %2195 = vrot.lane.b32.xlu0 %v11303_v54, %s10910_s0 }
 0x21a   :  { %2193 = vrot.lane.b32.xlu2 %v11307_v31, %s10910_s0  ;;  %2391 = vrot.lane.b32.xlu1 %v11282_v16, %s10908_s9 }
 0x21c   :  { %v1005_v3 = vpop.permute.xlu2 %1004 }
 0x21d   :  { %v1008_v56 = vsel %vm281_vm0, %v14456_v11, %v1005_v3  ;;  %v11482_v11 = vld [vmem:[#allocation9 + $0x40] sm:$0xff] }
 0x21e   :  { %v1014_v27 = vsel %vm959_vm12, %v1008_v56, 0 }
 0x21f   :  { %1026 = vmatpush.bf16.msrb.mxu2 %v1014_v27 }
 0x221   :  { %2140 = vrot.lane.b32.xlu0 %v11260_v1, %s10909_s10 }
 0x222   :  { %2138 = vrot.lane.b32.xlu2 %v11262_v34, %s10909_s10  ;;  %2576 = vrot.lane.b32.xlu1 %v11282_v16, %s10910_s0 }
 0x224   :  { %v1118_v39 = vpop.permute.xlu2 %1117 }
 0x225   :  { %v1121_v36 = vsel %vm419_vm4, %v14457_v33, %v1118_v39 }
 0x226   :  { %v1127_v42 = vsel %vm959_vm12, %v1121_v36, 0  ;;  %v2770_v36 = vld [vmem:[#allocation3 + $0xa8] sm:$0xf] }
 0x227   :  { %1139 = vmatpush.bf16.msra.mxu2 %v1127_v42 }
 0x229   :  { %10003 = vmatmul.msk.bf16.vlgmr.msrb.gmra.mxu2 %vm955_vm13, %v11355_v57  ;;  %2241 = vrot.lane.b32.xlu0 %v11260_v1, %s10910_s0 }
 0x22a   :  { %2239 = vrot.lane.b32.xlu2 %v11262_v34, %s10910_s0  ;;  %2530 = vrot.lane.b32.xlu1 %v1800_v61, %s10908_s9  ;;  %v11459_v61 = vsel %vm959_vm12, %v11236_v59, 0 }
 0x22b   :  { %1235 = vmatpush.bf16.msrb.mxu2 %v11364_v14  ;;  %v952_v26 = vpop.permute.xlu0 %951 }
 0x22c   :  { %v954_v44 = vsel %vm215_vm2, %v950_v47, %v952_v26  ;;  %v1055_v52 = vpop.permute.xlu2 %1054 }
 0x22d   :  { %v964_v10 = vsel %vm959_vm12, %v954_v44, 0  ;;  %v1058_v29 = vsel %vm215_vm2, %v14458_v25, %v1055_v52  ;;  %v2773_v44 = vpack.c.bf16 %v2770_v36, %v2770_v36 }
 0x22e   :  { %987 = vmatpush.bf16.msra.mxu3 %v964_v10  ;;  %v1064_v55 = vsel %vm959_vm12, %v1058_v29, 0  ;;  %v2953_v29 = vld [vmem:[#allocation3 + $0xf0] sm:$0xf0] }
 0x22f   :  { %1076 = vmatpush.bf16.msrb.mxu0 %v1064_v55  ;;  %v2956_v55 = vpack.c.bf16 %v2953_v29, %v2953_v29 }
 0x231   :  { %9998 = vmatmul.msk.bf16.vlgmr.msra.gmra.mxu3 %vm955_vm13, %v11334_v23  ;;  %2389 = vrot.lane.b32.xlu0 %v11303_v54, %s10908_s9 }
 0x232   :  { %10009 = vmatmul.msk.bf16.vlgmr.msrb.gmra.mxu0 %vm955_vm13, %v11375_v58  ;;  %2387 = vrot.lane.b32.xlu2 %v11307_v31, %s10908_s9 }
 0x233   :  { %1189 = vmatpush.bf16.msra.mxu0 %v11379_v63  ;;  %v1007_v30 = vpop.permute.xlu0 %1006  ;;  %2677 = vrot.lane.b32.xlu1 %v11282_v16, %s10911_s11  ;;  %v1270_v13 = vpop.permute.xlu1 %1269  ;;  %v11451_v16 = vld [vmem:[#allocation9 + $0x30] sm:$0xff] }
 0x234   :  { %v1009_v37 = vsel %vm281_vm0, %v1005_v3, %v1007_v30  ;;  %v1266_v8 = vpop.permute.xlu2 %1265 }
 0x235   :  { %v1017_v38 = vsel %vm959_vm12, %v1009_v37, 0 }
 0x236   :  { %1040 = vmatpush.bf16.msrb.mxu3 %v1017_v38  ;;  %v2967_v38 = vrot.slane %v2956_v55, 2 }
 0x239   :  { %2574 = vrot.lane.b32.xlu0 %v11303_v54, %s10910_s0  ;;  %10015 = vmatmul.msk.bf16.vlgmr.msra.gmra.mxu2 %vm955_vm13, %v11394_v22 }
 0x23a   :  { %1335 = vmatpush.bf16.msra.mxu2 %v11402_v24  ;;  %2572 = vrot.lane.b32.xlu2 %v11307_v31, %s10910_s0 }
 0x23b   :  { %v1120_v45 = vpop.permute.xlu0 %1119  ;;  %2631 = vrot.lane.b32.xlu1 %v2134_v28, %s10910_s0  ;;  %v1452_v49 = vpop.permute.xlu1 %1451 }
 0x23c   :  { %v1122_v0 = vsel %vm419_vm4, %v1118_v39, %v1120_v45  ;;  %v1448_v4 = vpop.permute.xlu2 %1447 }
 0x23d   :  { %v1130_v43 = vsel %vm959_vm12, %v1122_v0, 0 }
 0x23e   :  { %1153 = vmatpush.bf16.msra.mxu3 %v1130_v43 }
 0x241   :  { %10004 = vmatmul.msk.bf16.vlgmr.msrb.gmra.mxu3 %vm955_vm13, %v11355_v57  ;;  %2528 = vrot.lane.b32.xlu0 %v11236_v59, %s10908_s9 }
 0x242   :  { %1249 = vmatpush.bf16.msrb.mxu3 %v11418_v9  ;;  %2526 = vrot.lane.b32.xlu2 %v11238_v12, %s10908_s9 }
 0x243   :  { %10021 = vmatmul.msk.bf16.vlgmr.msra.gmra.mxu0 %vm955_vm13, %v11410_v62  ;;  %v1057_v18 = vpop.permute.xlu0 %1056  ;;  %v1539_v28 = vpop.permute.xlu1 %1538 }
 0x244   :  { %v1059_v20 = vsel %vm215_vm2, %v1055_v52, %v1057_v18  ;;  %v1535_v59 = vpop.permute.xlu2 %1534 }
 0x245   :  { %v1067_v60 = vsel %vm959_vm12, %v1059_v20, 0  ;;  %v2887_v20 = vld [vmem:[#allocation3 + $0xa8] sm:$0xf0] }
 0x246   :  { %1090 = vmatpush.bf16.msrb.mxu1 %v1067_v60 }
 0x249   :  { %2675 = vrot.lane.b32.xlu0 %v11303_v54, %s10911_s11  ;;  %10010 = vmatmul.msk.bf16.vlgmr.msrb.gmra.mxu1 %vm955_vm13, %v11375_v58  ;;  %v925_v54 = vld [vmem:[#allocation11] sm:$0xff] }
 0x24a   :  { %1203 = vmatpush.bf16.msra.mxu1 %v11429_v48  ;;  %10027 = vmatmul.msk.bf16.vlgmr.msrb.gmra.mxu2 %vm955_vm13, %v11431_v5 }
 0x24b   :  { %2673 = vrot.lane.b32.xlu2 %v11307_v31, %s10911_s11  ;;  %v1268_v12 = vpop.permute.xlu0 %1267  ;;  %v11468_v31 = vld [vmem:[#allocation9 + $0x38] sm:$0xff]  ;;  %v1497_v42 = vpop.permute.xlu1 %1496 }
 0x24c   :  { %v1271_v15 = vsel %vm419_vm4, %v1266_v8, %v1268_v12  ;;  %v1272_v21 = vsel %vm419_vm4, %v1268_v12, %v1270_v13  ;;  %v1493_v27 = vpop.permute.xlu2 %1492  ;;  %v2890_v8 = vpack.c.bf16 %v2887_v20, %v2887_v20  ;;  %v3123_v12 = vld [vmem:[#allocation3 + $0x18] sm:$0xf0] }
 0x24d   :  { %v1277_v50 = vsel %vm959_vm12, %v1271_v15, 0  ;;  %v1280_v2 = vsel %vm959_vm12, %v1272_v21, 0  ;;  %v3126_v21 = vpack.c.bf16 %v3123_v12, %v3123_v12 }
 0x24e   :  { %1289 = vmatpush.bf16.msrb.mxu0 %v1277_v50  ;;  %1303 = vmatpush.bf16.msrb.mxu1 %v1280_v2  ;;  %v2901_v60 = vrot.slane %v2890_v8, 2  ;;  %v3325_v2 = vld [vmem:[#allocation3 + $0xa8] sm:$0xf0] }
 0x24f   :  { %v3137_v50 = vrot.slane %v3126_v21, 2  ;;  %v4210_v21 = vld [vmem:[#allocation3 + $0xa0] sm:$0xf0] }
 0x251   :  { %2629 = vrot.lane.b32.xlu0 %v11260_v1, %s10910_s0  ;;  %10016 = vmatmul.msk.bf16.vlgmr.msra.gmra.mxu3 %vm955_vm13, %v11394_v22 }
 0x252   :  { %1381 = vmatpush.bf16.msra.mxu0 %v11448_v35  ;;  %1349 = vmatpush.bf16.msra.mxu3 %v11459_v61 }
 0x253   :  { %2627 = vrot.lane.b32.xlu2 %v11262_v34, %s10910_s0  ;;  %10033 = vmatmul.msk.bf16.vlgmr.msrb.gmra.mxu0 %vm955_vm13, %v11451_v16  ;;  %v1450_v7 = vpop.permute.xlu0 %1449  ;;  %v11474_v34 = vsel %vm959_vm12, %v11250_v51, 0  ;;  %v2839_v51 = vrot.slane %v2767_v19, 2 }
 0x254   :  { %v1453_v53 = vsel %vm215_vm2, %v1448_v4, %v1450_v7  ;;  %v1454_v3 = vsel %vm215_vm2, %v1450_v7, %v1452_v49  ;;  %v1674_v37 = vpop.permute.xlu2 %1673  ;;  %v1678_v4 = vpop.permute.xlu1 %1677  ;;  %v3328_v49 = vpack.c.bf16 %v3325_v2, %v3325_v2  ;;  %v4213_v2 = vpack.c.bf16 %v4210_v21, %v4210_v21 }
 0x255   :  { %v1456_v1 = vsel %vm959_vm12, %v1453_v53, 0  ;;  %v1459_v56 = vsel %vm959_vm12, %v1454_v3, 0  ;;  %2842 = vrot.lane.b32.xlu1 %v2839_v51, %s10905_s26  ;;  %v3319_v3 = vld [vmem:[#allocation3 + $0xa8] sm:$0xf] }
 0x256   :  { %1468 = vmatpush.bf16.msrb.mxu2 %v1456_v1  ;;  %v3322_v51 = vpack.c.bf16 %v3319_v3, %v3319_v3 }
 0x259   :  { %1408 = vperm.xlu0 %10541, %v925_v54   ;;  %10022 = vmatmul.msk.bf16.vlgmr.msra.gmra.mxu1 %vm955_vm13, %v11410_v62 }
 0x25a   :  { %10039 = vmatmul.msk.bf16.vlgmr.msra.gmra.mxu2 %vm955_vm13, %v11468_v31  ;;  %1395 = vmatpush.bf16.msra.mxu1 %v11474_v34 }
 0x25b   :  { %1413 = vperm.xlu2 %10543, %v926_v17   ;;  %v1537_v32 = vpop.permute.xlu0 %1536  ;;  %v3334_v17 = vrot.slane %v3328_v49, 2 }
 0x25c   :  { %v1540_v47 = vsel %vm346_vm3, %v1535_v59, %v1537_v32  ;;  %v1541_v30 = vsel %vm346_vm3, %v1537_v32, %v1539_v28  ;;  %v1805_v13 = vpop.permute.xlu2 %1804 }
 0x25d   :  { %v1543_v41 = vsel %vm959_vm12, %v1540_v47, 0  ;;  %2784 = vrot.lane.b32.xlu1 %v2773_v44, %s10904_s25  ;;  %v1546_v0 = vsel %vm959_vm12, %v1541_v30, 0  ;;  %v3424_v47 = vld [vmem:[#allocation3 + $0xa0] sm:$0xf] }
 0x25e   :  { %1555 = vmatpush.bf16.msra.mxu2 %v1543_v41  ;;  %v3427_v41 = vpack.c.bf16 %v3424_v47, %v3424_v47  ;;  %v3762_v30 = vld [vmem:[#allocation3 + $0xa0] sm:$0xf] }
 0x261   :  { %10028 = vmatmul.msk.bf16.vlgmr.msrb.gmra.mxu3 %vm955_vm13, %v11431_v5 }
 0x262   :  { %1482 = vmatpush.bf16.msrb.mxu3 %v1459_v56 }
 0x263   :  { %10045 = vmatmul.msk.bf16.vlgmr.msra.gmra.mxu0 %vm955_vm13, %v11482_v11  ;;  %v1495_v39 = vpop.permute.xlu0 %1494 }
 0x264   :  { %v1498_v33 = vsel %vm215_vm2, %v1493_v27, %v1495_v39  ;;  %v1499_v52 = vsel %vm215_vm2, %v1495_v39, %v1497_v42  ;;  %v1915_v7 = vpop.permute.xlu2 %1914  ;;  %v3756_v42 = vld [vmem:[#allocation3 + $0xa8] sm:$0xf0] }
 0x265   :  { %v1501_v26 = vsel %vm959_vm12, %v1498_v33, 0  ;;  %v1504_v10 = vsel %vm959_vm12, %v1499_v52, 0  ;;  %2970 = vrot.lane.b32.xlu1 %v2967_v38, %s10907_s6  ;;  %v1809_v33 = vpop.permute.xlu1 %1808 }
 0x266   :  { %1513 = vmatpush.bf16.msrb.mxu0 %v1501_v26  ;;  %v3759_v26 = vpack.c.bf16 %v3756_v42, %v3756_v42  ;;  %v4204_v42 = vld [vmem:[#allocation3 + $0xa0] sm:$0xf] }
 0x268   :  { %v3816_v52 = vrot.slane %v3759_v26, 2 }
 0x269   :  { %10034 = vmatmul.msk.bf16.vlgmr.msrb.gmra.mxu1 %vm955_vm13, %v11451_v16 }
 0x26a   :  { %1597 = vmatpush.bf16.msra.mxu0 %v11379_v63  ;;  %10047 = vmatmul.msk.bf16.vlgmr.msrb.gmra.mxu2 %vm955_vm13, %v11334_v23 }
 0x26b   :  { %1527 = vmatpush.bf16.msrb.mxu1 %v1504_v10  ;;  %1639 = vmatpush.bf16.msrb.mxu2 %v11364_v14  ;;  %v1676_v25 = vpop.permute.xlu0 %1675 }
 0x26c   :  { %v1679_v45 = vsel %vm566_vm5, %v1674_v37, %v1676_v25  ;;  %v1680_v53 = vsel %vm566_vm5, %v1676_v25, %v1678_v4  ;;  %v2004_v32 = vpop.permute.xlu2 %2003  ;;  %v3765_v37 = vpack.c.bf16 %v3762_v30, %v3762_v30 }
 0x26d   :  { %v1682_v43 = vsel %vm959_vm12, %v1679_v45, 0  ;;  %2904 = vrot.lane.b32.xlu1 %v2901_v60, %s10904_s25  ;;  %v1685_v59 = vsel %vm959_vm12, %v1680_v53, 0  ;;  %v1919_v45 = vpop.permute.xlu1 %1918 }
 0x271   :  { %10040 = vmatmul.msk.bf16.vlgmr.msra.gmra.mxu3 %vm955_vm13, %v11468_v31 }
 0x272   :  { %1569 = vmatpush.bf16.msra.mxu3 %v1546_v0 }
 0x273   :  { %10049 = vmatmul.msk.bf16.vlgmr.msrb.gmra.mxu0 %vm955_vm13, %v11355_v57  ;;  %v1807_v18 = vpop.permute.xlu0 %1806 }
 0x274   :  { %1694 = vmatpush.bf16.msrb.mxu0 %v1682_v43  ;;  %v1810_v1 = vsel %vm566_vm5, %v1805_v13, %v1807_v18  ;;  %v11550_v56 = vpop.permute.xlu2 %2193  ;;  %v1811_v36 = vsel %vm566_vm5, %v1807_v18, %v1809_v33  ;;  %v3861_v18 = vld [vmem:[#allocation3 + $0xa0] sm:$0xf0] }
 0x275   :  { %3140 = vrot.lane.b32.xlu1 %v3137_v50, %s10907_s6  ;;  %v1813_v28 = vsel %vm959_vm12, %v1810_v1, 0  ;;  %v1816_v44 = vsel %vm959_vm12, %v1811_v36, 0  ;;  %v3864_v60 = vpack.c.bf16 %v3861_v18, %v3861_v18  ;;  %v2008_v1 = vpop.permute.xlu1 %2007 }
 0x277   :  { %v3870_v13 = vrot.slane %v3864_v60, 2 }
 0x279   :  { %10046 = vmatmul.msk.bf16.vlgmr.msra.gmra.mxu1 %vm955_vm13, %v11482_v11 }
 0x27a   :  { %10051 = vmatmul.msk.bf16.vlgmr.msra.gmra.mxu2 %vm955_vm13, %v11375_v58  ;;  %1611 = vmatpush.bf16.msra.mxu1 %v11429_v48 }
 0x27b   :  { %1732 = vmatpush.bf16.msra.mxu2 %v11402_v24  ;;  %v11517_v15 = vpop.permute.xlu0 %1916 }
 0x27c   :  { %v1920_v19 = vsel %vm419_vm4, %v1915_v7, %v11517_v15  ;;  %v2139_v10 = vpop.permute.xlu2 %2138  ;;  %v1921_v0 = vsel %vm419_vm4, %v11517_v15, %v1919_v45  ;;  %v4219_v7 = vrot.slane %v4213_v2, 2 }
 0x27d   :  { %3337 = vrot.lane.b32.xlu1 %v3334_v17, %s10904_s25  ;;  %v1923_v27 = vsel %vm959_vm12, %v1920_v19, 0  ;;  %v2198_v26 = vpop.permute.xlu1 %2197 }
 0x281   :  { %10048 = vmatmul.msk.bf16.vlgmr.msrb.gmra.mxu3 %vm955_vm13, %v11334_v23 }
 0x282   :  { %1653 = vmatpush.bf16.msrb.mxu3 %v11418_v9 }
 0x283   :  { %10053 = vmatmul.msk.bf16.vlgmr.msra.gmra.mxu0 %vm955_vm13, %v11394_v22  ;;  %v11528_v54 = vpop.permute.xlu0 %2005 }
 0x284   :  { %1770 = vmatpush.bf16.msra.mxu0 %v11448_v35  ;;  %v2009_v55 = vsel %vm419_vm4, %v2004_v32, %v11528_v54  ;;  %v11584_v43 = vpop.permute.xlu2 %2239  ;;  %v2010_v17 = vsel %vm419_vm4, %v11528_v54, %v2008_v1  ;;  %v4309_v32 = vld [vmem:[#allocation3 + $0xa8] sm:$0xf] }
 0x285   :  { %3433 = vrot.lane.b32.xlu1 %v3427_v41, %s10904_s25  ;;  %v2012_v38 = vsel %vm959_vm12, %v2009_v55, 0 }
 0x289   :  { %10050 = vmatmul.msk.bf16.vlgmr.msrb.gmra.mxu1 %vm955_vm13, %v11355_v57 }
 0x28a   :  { %10055 = vmatmul.msk.bf16.vlgmr.msrb.gmra.mxu2 %vm955_vm13, %v11410_v62  ;;  %1708 = vmatpush.bf16.msrb.mxu1 %v1685_v59 }
 0x28b   :  { %1825 = vmatpush.bf16.msrb.mxu2 %v1813_v28  ;;  %v11537_v40 = vpop.permute.xlu0 %2195 }
 0x28c   :  { %v11597_v4 = vpop.permute.xlu2 %2387 }
 0x28d   :  { %3382 = vrot.lane.b32.xlu1 %v3322_v51, %s10904_s25 }
 0x291   :  { %10052 = vmatmul.msk.bf16.vlgmr.msra.gmra.mxu3 %vm955_vm13, %v11375_v58 }
 0x292   :  { %1746 = vmatpush.bf16.msra.mxu3 %v11459_v61 }
 0x293   :  { %10057 = vmatmul.msk.bf16.vlgmr.msrb.gmra.mxu0 %vm955_vm13, %v11431_v5  ;;  %v11556_v39 = vpop.permute.xlu0 %2140 }
 0x294   :  { %1890 = vmatpush.bf16.msrb.mxu0 %v11379_v63  ;;  %v2144_v59 = vsel %vm639_vm6, %v2139_v10, %v11556_v39  ;;  %v11617_v47 = vpop.permute.xlu2 %2572 }
 0x295   :  { %3819 = vrot.lane.b32.xlu1 %v3816_v52, %s10904_s25  ;;  %v2147_v54 = vsel %vm959_vm12, %v2144_v59, 0 }
 0x299   :  { %10054 = vmatmul.msk.bf16.vlgmr.msra.gmra.mxu1 %vm955_vm13, %v11394_v22 }
 0x29a   :  { %10059 = vmatmul.msk.bf16.vlgmr.msra.gmra.mxu2 %vm955_vm13, %v11451_v16  ;;  %1784 = vmatpush.bf16.msra.mxu1 %v11474_v34 }
 0x29b   :  { %1935 = vmatpush.bf16.msra.mxu2 %v1923_v27  ;;  %v11571_v29 = vpop.permute.xlu0 %2241  ;;  %v2199_v27 = vsel %vm712_vm7, %v11550_v56, %v11537_v40 }
 0x29c   :  { %v11559_v63 = vpop.f32.mrf.mxu2  ;;  %v2202_v52 = vsel %vm959_vm12, %v2199_v27, 0  ;;  %v11640_v56 = vpop.permute.xlu2 %2526 }
 0x29d   :  { %3771 = vrot.lane.b32.xlu1 %v3765_v37, %s10904_s25 }
 0x2a1   :  { %10056 = vmatmul.msk.bf16.vlgmr.msrb.gmra.mxu3 %vm955_vm13, %v11410_v62 }
 0x2a2   :  { %1839 = vmatpush.bf16.msrb.mxu3 %v1816_v44  ;;  %v4207_v44 = vpack.c.bf16 %v4204_v42, %v4204_v42 }
 0x2a3   :  { %10061 = vmatmul.msk.bf16.vlgmr.msra.gmra.mxu0 %vm955_vm13, %v11468_v31  ;;  %v11586_v20 = vpop.permute.xlu0 %2389 }
 0x2a4   :  { %1969 = vmatpush.bf16.msra.mxu0 %v11364_v14  ;;  %v11569_v25 = vpop.f32.mrf.mxu2 }
 0x2a5   :  { %3873 = vrot.lane.b32.xlu1 %v3870_v13, %s10904_s25 }
 0x2a9   :  { %10058 = vmatmul.msk.bf16.vlgmr.msrb.gmra.mxu1 %vm955_vm13, %v11431_v5 }
 0x2aa   :  { %10063 = vmatmul.msk.bf16.vlgmr.msrb.gmra.mxu2 %vm955_vm13, %v11482_v11  ;;  %1904 = vmatpush.bf16.msrb.mxu1 %v11429_v48  ;;  %v1926_v48 = vsel %vm959_vm12, %v1921_v0, 0  ;;  %v2143_v0 = vpop.permute.xlu1 %2142 }
 0x2ab   :  { %2024 = vmatpush.bf16.msrb.mxu2 %v2012_v38  ;;  %v11599_v49 = vpop.permute.xlu0 %2574  ;;  %v2245_v38 = vsel %vm712_vm7, %v11584_v43, %v11571_v29 }
 0x2ac   :  { %v1028_v14 = vpop.f32.mrf.mxu2  ;;  %v2248_v18 = vsel %vm959_vm12, %v2245_v38, 0 }
 0x2ad   :  { %4222 = vrot.lane.b32.xlu1 %v4219_v7, %s10904_s25  ;;  %v1029_v33 = vadd.f32 %v1028_v14, %v11559_v63 }
 0x2af   :  { %v1078_v8 = vpop.f32.mrf.mxu0 }
 0x2b0   :  { %v1097_v63 = vadd.f32 %v1078_v8, %v1029_v33  ;;  %v2306_v8 = vld [vmem:[#allocation2 + $0x18] sm:$0xff] }
 0x2b1   :  { %10060 = vmatmul.msk.bf16.vlgmr.msra.gmra.mxu3 %vm955_vm13, %v11451_v16  ;;  %v2308_v2 = vpack.c.bf16 %v2306_v8, %v2306_v8 }
 0x2b2   :  { %1949 = vmatpush.bf16.msra.mxu3 %v1926_v48 }
 0x2b3   :  { %10065 = vmatmul.msk.bf16.vlgmr.msrb.gmra.mxu0 %vm955_vm13, %v11334_v23  ;;  %v11619_v41 = vpop.permute.xlu0 %2528 }
 0x2b4   :  { %2066 = vmatpush.bf16.msrb.mxu0 %v11402_v24  ;;  %v11595_v12 = vpop.f32.mrf.mxu3  ;;  %v1030_v15 = vpop.f32.mrf.mxu2 }
 0x2b7   :  { %v1080_v50 = vpop.f32.mrf.mxu0 }
 0x2b9   :  { %10062 = vmatmul.msk.bf16.vlgmr.msra.gmra.mxu1 %vm955_vm13, %v11468_v31 }
 0x2ba   :  { %10067 = vmatmul.msk.bf16.vlgmr.msra.gmra.mxu2 %vm955_vm13, %v11355_v57  ;;  %1983 = vmatpush.bf16.msra.mxu1 %v11418_v9  ;;  %v2015_v9 = vsel %vm959_vm12, %v2010_v17, 0 }
 0x2bb   :  { %2104 = vmatpush.bf16.msra.mxu2 %v11448_v35  ;;  %v4312_v35 = vpack.c.bf16 %v4309_v32, %v4309_v32  ;;  %v11644_v30 = vpop.permute.xlu0 %2675  ;;  %v2302_v32 = vld [vmem:[#allocation2 + $0x68] sm:$0xff] }
 0x2bc   :  { %v11608_v24 = vpop.f32.mrf.mxu3  ;;  %v1141_v53 = vpop.f32.mrf.mxu2  ;;  %v2304_v27 = vpack.c.bf16 %v2302_v32, %v2302_v32 }
 0x2bd   :  { %4318 = vrot.lane.b32.xlu1 %v4312_v35, %s10906_s27  ;;  %v1160_v14 = vadd.f32 %v1141_v53, %v1097_v63  ;;  %v2200_v35 = vsel %vm712_vm7, %v11537_v40, %v2198_v26 }
 0x2be   :  { %v2345_v38 = vsel %vm959_vm12, %v2304_v27, 0 }
 0x2c0   :  { %v1191_v28 = vpop.f32.mrf.mxu0 }
 0x2c1   :  { %10064 = vmatmul.msk.bf16.vlgmr.msrb.gmra.mxu3 %vm955_vm13, %v11482_v11  ;;  %v1210_v48 = vadd.f32 %v1191_v28, %v1160_v14 }
 0x2c2   :  { %2038 = vmatpush.bf16.msrb.mxu3 %v2015_v9 }
 0x2c3   :  { %10069 = vmatmul.msk.bf16.vlgmr.msra.gmra.mxu0 %vm955_vm13, %v11375_v58 }
 0x2c4   :  { %2159 = vmatpush.bf16.msra.mxu0 %v2147_v54  ;;  %v11625_v19 = vpop.f32.mrf.mxu3  ;;  %v1143_v3 = vpop.f32.mrf.mxu2 }
 0x2c5   :  { %4267 = vrot.lane.b32.xlu1 %v4207_v44, %s10904_s25  ;;  %v1043_v40 = vadd.f32 %v11625_v19, %v11595_v12  ;;  %v2393_v12 = vsel %vm566_vm5, %v11597_v4, %v11586_v20 }
 0x2c6   :  { %v11627_v51 = vpop.f32.mrf.mxu1  ;;  %v2396_v4 = vsel %vm959_vm12, %v2393_v12, 0  ;;  %v4667_v12 = vld [vmem:[#allocation3 + $0xf0] sm:$0xf0] }
 0x2c7   :  { %v1098_v19 = vadd.f32 %v11627_v51, %v1043_v40  ;;  %v2307_v51 = vld [vmem:[#allocation2 + $0x30] sm:$0xff] }
 0x2c8   :  { %v1193_v36 = vpop.f32.mrf.mxu0  ;;  %v2309_v32 = vpack.c.bf16 %v2307_v51, %v2307_v51  ;;  %v2475_v40 = vld [vmem:[#allocation2 + $0x10] sm:$0xff] }
 0x2c9   :  { %10066 = vmatmul.msk.bf16.vlgmr.msrb.gmra.mxu1 %vm955_vm13, %v11334_v23 }
 0x2ca   :  { %10071 = vmatmul.msk.bf16.vlgmr.msrb.gmra.mxu2 %vm955_vm13, %v11394_v22  ;;  %2080 = vmatpush.bf16.msrb.mxu1 %v11459_v61  ;;  %v1031_v61 = vadd.f32 %v1030_v15, %v11569_v25  ;;  %v2145_v25 = vsel %vm639_vm6, %v11556_v39, %v2143_v0  ;;  %v11660_v15 = vpop.permute.xlu2 %2673  ;;  %v2311_v39 = vsel %vm959_vm12, %v2308_v2, 0 }
 0x2cb   :  { %2214 = vmatpush.bf16.msrb.mxu2 %v2202_v52 }
 0x2cc   :  { %v11642_v10 = vpop.f32.mrf.mxu3  ;;  %v1099_v60 = vadd.f32 %v1080_v50, %v1031_v61  ;;  %v2150_v50 = vsel %vm959_vm12, %v2145_v25, 0 }
 0x2cd   :  { %v1237_v55 = vpop.f32.mrf.mxu2 }
 0x2ce   :  { %v11646_v37 = vpop.f32.mrf.mxu1  ;;  %v1162_v7 = vadd.f32 %v1143_v3, %v1099_v60  ;;  %v1256_v53 = vadd.f32 %v1237_v55, %v1210_v48  ;;  %v2244_v55 = vpop.permute.xlu1 %2243 }
 0x2d0   :  { %v1291_v45 = vpop.f32.mrf.mxu0  ;;  %v1212_v17 = vadd.f32 %v1193_v36, %v1162_v7  ;;  %v2205_v36 = vsel %vm959_vm12, %v2200_v35, 0 }
 0x2d1   :  { %10068 = vmatmul.msk.bf16.vlgmr.msra.gmra.mxu3 %vm955_vm13, %v11355_v57  ;;  %v1310_v59 = vadd.f32 %v1291_v45, %v1256_v53  ;;  %v1045_v53 = vadd.f32 %v11642_v10, %v11608_v24 }
 0x2d2   :  { %2118 = vmatpush.bf16.msra.mxu3 %v11474_v34  ;;  %v11662_v34 = vpop.permute.xlu0 %2629  ;;  %v11674_v33 = vpop.permute.xlu2 %2627 }
 0x2d3   :  { %10073 = vmatmul.msk.bf16.vlgmr.msrb.gmra.mxu0 %vm955_vm13, %v11410_v62  ;;  %v1100_v35 = vadd.f32 %v11646_v37, %v1045_v53 }
 0x2d4   :  { %2260 = vmatpush.bf16.msrb.mxu0 %v2248_v18  ;;  %v1155_v43 = vpop.f32.mrf.mxu3  ;;  %v2246_v18 = vsel %vm712_vm7, %v11571_v29, %v2244_v55  ;;  %v2303_v55 = vld [vmem:[#allocation2 + $0x8] sm:$0xff] }
 0x2d5   :  { %v1239_v13 = vpop.f32.mrf.mxu2  ;;  %v1161_v25 = vadd.f32 %v1155_v43, %v1098_v19  ;;  %v2251_v29 = vsel %vm959_vm12, %v2246_v18, 0 }
 0x2d6   :  { %v1205_v21 = vpop.f32.mrf.mxu1  ;;  %v1258_v42 = vadd.f32 %v1239_v13, %v1212_v17 }
 0x2d8   :  { %v1293_v1 = vpop.f32.mrf.mxu0 }
 0x2d9   :  { %10070 = vmatmul.msk.bf16.vlgmr.msra.gmra.mxu1 %vm955_vm13, %v11375_v58  ;;  %v1312_v61 = vadd.f32 %v1293_v1, %v1258_v42 }
 0x2da   :  { %10075 = vmatmul.msk.bf16.vlgmr.msra.gmra.mxu2 %vm955_vm13, %v11431_v5  ;;  %2173 = vmatpush.bf16.msra.mxu1 %v2150_v50  ;;  %v11679_v63 = vpop.permute.xlu0 %1408  ;;  %v11698_v7 = vpop.permute.xlu2 %1413  ;;  %v2433_v50 = vld [vmem:[#allocation2 + $0x20] sm:$0xff] }
 0x2db   :  { %2323 = vmatpush.bf16.msra.mxu2 %v2311_v39  ;;  %v1211_v39 = vadd.f32 %v1205_v21, %v1161_v25  ;;  %v2314_v21 = vsel %vm959_vm12, %v2309_v32, 0 }
 0x2dc   :  { %v1157_v28 = vpop.f32.mrf.mxu3 }
 0x2dd   :  { %v1337_v9 = vpop.f32.mrf.mxu2 }
 0x2de   :  { %v1356_v54 = vadd.f32 %v1337_v9, %v1310_v59  ;;  %v11672_v3 = vpop.f32.mrf.mxu1 }
 0x2e0   :  { %v1383_v44 = vpop.f32.mrf.mxu0 }
 0x2e1   :  { %v1402_v52 = vadd.f32 %v1383_v44, %v1356_v54  ;;  %10072 = vmatmul.msk.bf16.vlgmr.msrb.gmra.mxu3 %vm955_vm13, %v11394_v22  ;;  %v2435_v44 = vpack.c.bf16 %v2433_v50, %v2433_v50 }
 0x2e2   :  { %2228 = vmatpush.bf16.msrb.mxu3 %v2205_v36 }
 0x2e3   :  { %v1416_v26 = vadd.f32 %v11679_v63, %v1402_v52  ;;  %10077 = vmatmul.msk.bf16.vlgmr.msra.gmra.mxu0 %vm955_vm13, %v11451_v16  ;;  %v1163_v52 = vadd.f32 %v1157_v28, %v1100_v35  ;;  %v2438_v36 = vsel %vm959_vm12, %v2435_v44, 0 }
 0x2e4   :  { %2357 = vmatpush.bf16.msra.mxu0 %v2345_v38  ;;  %v1251_v14 = vpop.f32.mrf.mxu3 }
 0x2e5   :  { %v1420_v45 = vmax.f32 %v1416_v26, 0.0  ;;  %v1339_v0 = vpop.f32.mrf.mxu2  ;;  %v1257_v54 = vadd.f32 %v1251_v14, %v1211_v39  ;;  %v1213_v28 = vadd.f32 %v11672_v3, %v1163_v52 }
 0x2e6   :  { %v1358_v8 = vadd.f32 %v1339_v0, %v1312_v61  ;;  %v1305_v60 = vpop.f32.mrf.mxu1  ;;  %v2477_v0 = vpack.c.bf16 %v2475_v40, %v2475_v40 }
 0x2e7   :  { %v1424_v48 = vsel %vm11189_vm10, %v1420_v45, 0.0  ;;  %v1311_v37 = vadd.f32 %v1305_v60, %v1257_v54  ;;  %v2305_v45 = vpack.c.bf16 %v2303_v55, %v2303_v55  ;;  %v4805_v54 = vld [vmem:[#allocation3 + $0x18] sm:$0xf0] }
 0x2e8   :  { %1428 = vst [vmem:[#allocation3 + $0x60] sm:$0xff] %v1424_v48  ;;  %v1385_v13 = vpop.f32.mrf.mxu0  ;;  %v2480_v25 = vsel %vm959_vm12, %v2477_v0, 0 }
 0x2e9   :  { %v1404_v2 = vadd.f32 %v1385_v13, %v1358_v8  ;;  %10074 = vmatmul.msk.bf16.vlgmr.msrb.gmra.mxu1 %vm955_vm13, %v11410_v62  ;;  %v2348_v3 = vsel %vm959_vm12, %v2305_v45, 0 }
 0x2ea   :  { %10079 = vmatmul.msk.bf16.vlgmr.msrb.gmra.mxu2 %vm955_vm13, %v11468_v31  ;;  %2274 = vmatpush.bf16.msrb.mxu1 %v2251_v29  ;;  %v2392_v29 = vpop.permute.xlu1 %2391 }
 0x2eb   :  { %v1418_v43 = vadd.f32 %v11698_v7, %v1404_v2  ;;  %2408 = vmatpush.bf16.msrb.mxu2 %v2396_v4  ;;  %v4670_v2 = vpack.c.bf16 %v4667_v12, %v4667_v12  ;;  %v2394_v39 = vsel %vm566_vm5, %v11586_v20, %v2392_v29  ;;  %v4808_v20 = vpack.c.bf16 %v4805_v54, %v4805_v54 }
 0x2ec   :  { %v1253_v1 = vpop.f32.mrf.mxu3  ;;  %v2399_v44 = vsel %vm959_vm12, %v2394_v39, 0 }
 0x2ed   :  { %v1422_v17 = vmax.f32 %v1418_v43, 0.0  ;;  %v11706_v59 = vpop.f32.mrf.mxu2  ;;  %v1259_v18 = vadd.f32 %v1253_v1, %v1213_v28  ;;  %v4714_v32 = vrot.slane %v4670_v2, 2  ;;  %v2633_v2 = vsel %vm712_vm7, %v11674_v33, %v11662_v34 }
 0x2ee   :  { %v1307_v9 = vpop.f32.mrf.mxu1 }
 0x2ef   :  { %v1426_v27 = vsel %vm11189_vm10, %v1422_v17, 0.0  ;;  %v4452_v42 = vld [vmem:[#allocation3 + $0x60] sm:$0xf]  ;;  %v1313_v4 = vadd.f32 %v1307_v9, %v1259_v18  ;;  %v2532_v9 = vsel %vm566_vm5, %v11640_v56, %v11619_v41  ;;  %v2434_v56 = vld [vmem:[#allocation2 + $0x38] sm:$0xff] }
 0x2f0   :  { %1430 = vst [vmem:[#allocation3 + $0xe8] sm:$0xff] %v1426_v27  ;;  %v11711_v24 = vpop.f32.mrf.mxu0  ;;  %v4455_v10 = vpack.c.bf16 %v4452_v42, %v4452_v42  ;;  %v2436_v28 = vpack.c.bf16 %v2434_v56, %v2434_v56 }
 0x2f1   :  { %10076 = vmatmul.msk.bf16.vlgmr.msra.gmra.mxu3 %vm955_vm13, %v11431_v5 }
 0x2f2   :  { %4461 = vrot.lane.b32.xlu1 %v4455_v10, %s10908_s9  ;;  %2337 = vmatpush.bf16.msra.mxu3 %v2314_v21  ;;  %v2535_v10 = vsel %vm959_vm12, %v2532_v9, 0  ;;  %v2441_v18 = vsel %vm959_vm12, %v2436_v28, 0 }
 0x2f3   :  { %10081 = vmatmul.msk.bf16.vlgmr.msrb.gmra.mxu0 %vm955_vm13, %v11482_v11 }
 0x2f4   :  { %2450 = vmatpush.bf16.msrb.mxu0 %v2438_v36  ;;  %v1351_v26 = vpop.f32.mrf.mxu3 }
 0x2f5   :  { %v1357_v38 = vadd.f32 %v1351_v26, %v1311_v37  ;;  %v11721_v61 = vpop.f32.mrf.mxu2  ;;  %v2577_v37 = vpop.permute.xlu1 %2576  ;;  %v4814_v26 = vrot.slane %v4808_v20, 2 }
 0x2f6   :  { %v1397_v14 = vpop.f32.mrf.mxu1 }
 0x2f7   :  { %v1403_v8 = vadd.f32 %v1397_v14, %v1357_v38  ;;  %v4595_v60 = vld [vmem:[#allocation3 + $0xe8] sm:$0xf]  ;;  %v2578_v38 = vsel %vm712_vm7, %v11617_v47, %v11599_v49  ;;  %v4951_v14 = vld [vmem:[#allocation3 + $0x50] sm:$0xf0] }
 0x2f8   :  { %v11723_v19 = vpop.f32.mrf.mxu0  ;;  %v4598_v48 = vpack.c.bf16 %v4595_v60, %v4595_v60  ;;  %v2581_v0 = vsel %vm959_vm12, %v2578_v38, 0  ;;  %v2476_v60 = vld [vmem:[#allocation2 + $0x40] sm:$0xff] }
 0x2f9   :  { %v1417_v13 = vadd.f32 %v11679_v63, %v1403_v8  ;;  %10078 = vmatmul.msk.bf16.vlgmr.msra.gmra.mxu1 %vm955_vm13, %v11451_v16  ;;  %v4954_v8 = vpack.c.bf16 %v4951_v14, %v4951_v14 }
 0x2fa   :  { %4604 = vrot.lane.b32.xlu1 %v4598_v48, %s10908_s9  ;;  %10083 = vmatmul.msk.bf16.vlgmr.msra.gmra.mxu2 %vm955_vm13, %v11334_v23  ;;  %v2478_v48 = vpack.c.bf16 %v2476_v60, %v2476_v60 }
 0x2fb   :  { %v1421_v51 = vmax.f32 %v1417_v13, 0.0  ;;  %2371 = vmatpush.bf16.msra.mxu1 %v2348_v3  ;;  %2492 = vmatpush.bf16.msra.mxu2 %v2480_v25  ;;  %v4960_v3 = vrot.slane %v4954_v8, 2 }
 0x2fc   :  { %v1353_v53 = vpop.f32.mrf.mxu3 }
 0x2fd   :  { %v1425_v43 = vsel %vm11193_vm11, %v1421_v51, 0.0  ;;  %v1359_v1 = vadd.f32 %v1353_v53, %v1313_v4  ;;  %v11735_v50 = vpop.f32.mrf.mxu2  ;;  %v2531_v25 = vpop.permute.xlu1 %2530  ;;  %v2483_v4 = vsel %vm959_vm12, %v2478_v48, 0  ;;  %v2636_v51 = vsel %vm959_vm12, %v2633_v2, 0 }
 0x2fe   :  { %1429 = vst [vmem:[#allocation3 + $0xc0] sm:$0xff] %v1425_v43  ;;  %v1399_v17 = vpop.f32.mrf.mxu1  ;;  %v1516_v53 = vadd.f32 %v11711_v24, %v11706_v59 }
 0x2ff   :  { %v1405_v35 = vadd.f32 %v1399_v17, %v1359_v1  ;;  %v6004_v1 = vld [vmem:[#allocation3 + $0x60] sm:$0xf]  ;;  %v2679_v17 = vsel %vm785_vm8, %v11660_v15, %v11644_v30 }
 0x300   :  { %v11742_v27 = vpop.f32.mrf.mxu0  ;;  %v6007_v54 = vpack.c.bf16 %v6004_v1, %v6004_v1  ;;  %v2682_v24 = vsel %vm959_vm12, %v2679_v17, 0 }
 0x301   :  { %v1419_v42 = vadd.f32 %v11698_v7, %v1405_v35  ;;  %10080 = vmatmul.msk.bf16.vlgmr.msrb.gmra.mxu3 %vm955_vm13, %v11468_v31 }
 0x302   :  { %4717 = vrot.lane.b32.xlu1 %v4714_v32, %s10907_s6  ;;  %2422 = vmatpush.bf16.msrb.mxu3 %v2399_v44  ;;  %v1576_v32 = vadd.f32 %v11735_v50, %v1516_v53  ;;  %v6147_v44 = vld [vmem:[#allocation3 + $0xe8] sm:$0xf] }
 0x303   :  { %v1423_v52 = vmax.f32 %v1419_v42, 0.0  ;;  %10085 = vmatmul.msk.bf16.vlgmr.msra.gmra.mxu0 %vm955_vm13, %v11355_v57 }
 0x304   :  { %2547 = vmatpush.bf16.msra.mxu0 %v2535_v10  ;;  %v11752_v21 = vpop.f32.mrf.mxu3  ;;  %v1618_v15 = vadd.f32 %v11742_v27, %v1576_v32 }
 0x305   :  { %v1427_v36 = vsel %vm11193_vm11, %v1423_v52, 0.0  ;;  %v1559_v55 = vpop.f32.mrf.mxu2  ;;  %v2678_v9 = vpop.permute.xlu1 %2677 }
 0x306   :  { %1431 = vst [vmem:[#allocation3 + $0x30] sm:$0xff] %v1427_v36  ;;  %v11756_v40 = vpop.f32.mrf.mxu1  ;;  %v6150_v36 = vpack.c.bf16 %v6147_v44, %v6147_v44 }
 0x308   :  { %v1601_v45 = vpop.f32.mrf.mxu0 }
 0x309   :  { %10082 = vmatmul.msk.bf16.vlgmr.msrb.gmra.mxu1 %vm955_vm13, %v11482_v11 }
 0x30a   :  { %4817 = vrot.lane.b32.xlu1 %v4814_v26, %s10907_s6  ;;  %10087 = vmatmul.msk.bf16.vlgmr.msrb.gmra.mxu2 %vm955_vm13, %v11375_v58 }
 0x30b   :  { %2464 = vmatpush.bf16.msrb.mxu1 %v2441_v18  ;;  %2593 = vmatpush.bf16.msrb.mxu2 %v2581_v0 }
 0x30c   :  { %v11768_v12 = vpop.f32.mrf.mxu3 }
 0x30d   :  { %v1641_v47 = vpop.f32.mrf.mxu2 }
 0x30e   :  { %v11770_v13 = vpop.f32.mrf.mxu1  ;;  %v1660_v52 = vadd.f32 %v1641_v47, %v1618_v15 }
 0x310   :  { %v1696_v29 = vpop.f32.mrf.mxu0 }
 0x311   :  { %10084 = vmatmul.msk.bf16.vlgmr.msra.gmra.mxu3 %vm955_vm13, %v11334_v23  ;;  %v2533_v23 = vsel %vm566_vm5, %v11619_v41, %v2531_v25  ;;  %v1518_v41 = vadd.f32 %v11723_v19, %v11721_v61  ;;  %v2632_v61 = vpop.permute.xlu1 %2631 }
 0x312   :  { %4963 = vrot.lane.b32.xlu1 %v4960_v3, %s10907_s6  ;;  %2506 = vmatpush.bf16.msra.mxu3 %v2483_v4  ;;  %v2538_v59 = vsel %vm959_vm12, %v2533_v23, 0 }
 0x313   :  { %10089 = vmatmul.msk.bf16.vlgmr.msrb.gmra.mxu0 %vm955_vm13, %v11394_v22  ;;  %v1578_v10 = vadd.f32 %v1559_v55, %v1518_v41  ;;  %v2634_v55 = vsel %vm712_vm7, %v11662_v34, %v2632_v61  ;;  %v2680_v34 = vsel %vm785_vm8, %v11644_v30, %v2678_v9 }
 0x314   :  { %2648 = vmatpush.bf16.msrb.mxu0 %v2636_v51  ;;  %v1571_v43 = vpop.f32.mrf.mxu3 }
 0x315   :  { %v1643_v33 = vpop.f32.mrf.mxu2  ;;  %v1620_v19 = vadd.f32 %v1601_v45, %v1578_v10 }
 0x316   :  { %v11784_v39 = vpop.f32.mrf.mxu1 }
 0x317   :  { %v1662_v38 = vadd.f32 %v1643_v33, %v1620_v19 }
 0x318   :  { %v1698_v35 = vpop.f32.mrf.mxu0 }
 0x319   :  { %10086 = vmatmul.msk.bf16.vlgmr.msra.gmra.mxu1 %vm955_vm13, %v11355_v57  ;;  %v2579_v57 = vsel %vm712_vm7, %v11599_v49, %v2577_v37  ;;  %v1715_v49 = vadd.f32 %v1696_v29, %v1660_v52  ;;  %v1717_v45 = vadd.f32 %v1698_v35, %v1662_v38  ;;  %v1530_v29 = vadd.f32 %v11756_v40, %v11752_v21 }
 0x31a   :  { %6013 = vrot.lane.b32.xlu1 %v6007_v54, %s10908_s9  ;;  %10091 = vmatmul.msk.bf16.vlgmr.msra.gmra.mxu2 %vm955_vm13, %v11410_v62  ;;  %v2584_v26 = vsel %vm959_vm12, %v2579_v57, 0 }
 0x31b   :  { %2561 = vmatpush.bf16.msra.mxu1 %v2538_v59  ;;  %2694 = vmatpush.bf16.msra.mxu2 %v2682_v24  ;;  %v1577_v51 = vadd.f32 %v1571_v43, %v1530_v29  ;;  %v1532_v43 = vadd.f32 %v11770_v13, %v11768_v12 }
 0x31c   :  { %v1573_v50 = vpop.f32.mrf.mxu3 }
 0x31d   :  { %v1734_v42 = vpop.f32.mrf.mxu2  ;;  %v1619_v21 = vadd.f32 %v11784_v39, %v1577_v51  ;;  %v1579_v54 = vadd.f32 %v1573_v50, %v1532_v43 }
 0x31e   :  { %v11804_v20 = vpop.f32.mrf.mxu1  ;;  %v1753_v14 = vadd.f32 %v1734_v42, %v1715_v49 }
 0x31f   :  { %v1621_v15 = vadd.f32 %v11804_v20, %v1579_v54  ;;  %v11849_v20 = vpop.permute.xlu1 %2842 }
 0x320   :  { %v1772_v56 = vpop.f32.mrf.mxu0 }
 0x321   :  { %10088 = vmatmul.msk.bf16.vlgmr.msrb.gmra.mxu3 %vm955_vm13, %v11375_v58  ;;  %v2639_v58 = vsel %vm959_vm12, %v2634_v55, 0  ;;  %v1791_v18 = vadd.f32 %v1772_v56, %v1753_v14 }
 0x322   :  { %6156 = vrot.lane.b32.xlu1 %v6150_v36, %s10908_s9  ;;  %2607 = vmatpush.bf16.msrb.mxu3 %v2584_v26 }
 0x323   :  { %10093 = vmatmul.msk.bf16.vlgmr.msra.gmra.mxu0 %vm955_vm13, %v11431_v5 }
 0x324   :  { %v1655_v27 = vpop.f32.mrf.mxu3 }
 0x325   :  { %v1736_v37 = vpop.f32.mrf.mxu2  ;;  %v1661_v32 = vadd.f32 %v1655_v27, %v1619_v21 }
 0x326   :  { %v1710_v28 = vpop.f32.mrf.mxu1  ;;  %v1755_v3 = vadd.f32 %v1736_v37, %v1717_v45 }
 0x327   :  { %v1716_v39 = vadd.f32 %v1710_v28, %v1661_v32 }
 0x328   :  { %v1774_v0 = vpop.f32.mrf.mxu0 }
 0x329   :  { %10090 = vmatmul.msk.bf16.vlgmr.msrb.gmra.mxu1 %vm955_vm13, %v11394_v22  ;;  %v2685_v22 = vsel %vm959_vm12, %v2680_v34, 0  ;;  %v1793_v30 = vadd.f32 %v1774_v0, %v1755_v3  ;;  %v11858_v0 = vpop.permute.xlu1 %2784 }
 0x32a   :  { %10095 = vmatmul.msk.bf16.vlgmr.msrb.gmra.mxu2 %vm955_vm13, %v11451_v16  ;;  %2662 = vmatpush.bf16.msrb.mxu1 %v2639_v58 }
 0x32c   :  { %v1657_v8 = vpop.f32.mrf.mxu3 }
 0x32d   :  { %v1827_v60 = vpop.f32.mrf.mxu2  ;;  %v1663_v42 = vadd.f32 %v1657_v8, %v1621_v15 }
 0x32e   :  { %v1846_v47 = vadd.f32 %v1827_v60, %v1791_v18  ;;  %v1712_v48 = vpop.f32.mrf.mxu1 }
 0x32f   :  { %v1718_v57 = vadd.f32 %v1712_v48, %v1663_v42 }
 0x330   :  { %v1850_v25 = vadd.f32 %v1846_v47, %v11679_v63  ;;  %v11822_v2 = vpop.f32.mrf.mxu0 }
 0x331   :  { %10092 = vmatmul.msk.bf16.vlgmr.msra.gmra.mxu3 %vm955_vm13, %v11410_v62  ;;  %v11861_v3 = vpop.permute.xlu1 %2970 }
 0x332   :  { %v1854_v4 = vmax.f32 %v1850_v25, 0.0  ;;  %2708 = vmatpush.bf16.msra.mxu3 %v2685_v22 }
 0x333   :  { %10097 = vmatmul.msk.bf16.vlgmr.msrb.gmra.mxu0 %vm955_vm13, %v11468_v31 }
 0x334   :  { %v1858_v53 = vsel %vm11189_vm10, %v1854_v4, 0.0  ;;  %v1748_v33 = vpop.f32.mrf.mxu3 }
 0x335   :  { %1863 = vst [vmem:[#allocation3 + $0x58] sm:$0xff] %v1858_v53  ;;  %v1829_v1 = vpop.f32.mrf.mxu2  ;;  %v1754_v12 = vadd.f32 %v1748_v33, %v1716_v39 }
 0x336   :  { %v1848_v23 = vadd.f32 %v1829_v1, %v1793_v30  ;;  %v1786_v17 = vpop.f32.mrf.mxu1 }
 0x338   :  { %v1852_v40 = vadd.f32 %v1848_v23, %v11698_v7  ;;  %v1894_v62 = vpop.f32.mrf.mxu0 }
 0x339   :  { %10094 = vmatmul.msk.bf16.vlgmr.msra.gmra.mxu1 %vm955_vm13, %v11431_v5  ;;  %v1792_v5 = vadd.f32 %v1786_v17, %v1754_v12  ;;  %v11863_v17 = vpop.permute.xlu1 %2904 }
 0x33a   :  { %v1856_v35 = vmax.f32 %v1852_v40, 0.0  ;;  %10099 = vmatmul.msk.bf16.vlgmr.msra.gmra.mxu2 %vm955_vm13, %v11482_v11 }
 0x33c   :  { %v1860_v9 = vsel %vm11189_vm10, %v1856_v35, 0.0  ;;  %v1750_v59 = vpop.f32.mrf.mxu3 }
 0x33d   :  { %1865 = vst [vmem:[#allocation3 + $0x28] sm:$0xff] %v1860_v9  ;;  %v1937_v24 = vpop.f32.mrf.mxu2  ;;  %v1756_v56 = vadd.f32 %v1750_v59, %v1718_v57 }
 0x33e   :  { %v1788_v41 = vpop.f32.mrf.mxu1  ;;  %v1938_v18 = vadd.f32 %v1937_v24, %v11822_v2 }
 0x33f   :  { %v1794_v19 = vadd.f32 %v1788_v41, %v1756_v56 }
 0x340   :  { %v1971_v13 = vpop.f32.mrf.mxu0 }
 0x341   :  { %10096 = vmatmul.msk.bf16.vlgmr.msrb.gmra.mxu3 %vm955_vm13, %v11451_v16  ;;  %v1990_v34 = vadd.f32 %v1971_v13, %v1938_v18  ;;  %v11865_v39 = vpop.permute.xlu1 %3140 }
 0x344   :  { %v1841_v44 = vpop.f32.mrf.mxu3 }
 0x345   :  { %v1847_v50 = vadd.f32 %v1841_v44, %v1792_v5  ;;  %v1939_v10 = vpop.f32.mrf.mxu2 }
 0x346   :  { %v1906_v52 = vpop.f32.mrf.mxu1  ;;  %v1940_v25 = vadd.f32 %v1939_v10, %v1894_v62 }
 0x347   :  { %v1851_v36 = vadd.f32 %v1847_v50, %v11679_v63 }
 0x348   :  { %v1973_v26 = vpop.f32.mrf.mxu0 }
 0x349   :  { %v1855_v61 = vmax.f32 %v1851_v36, 0.0  ;;  %10098 = vmatmul.msk.bf16.vlgmr.msrb.gmra.mxu1 %vm955_vm13, %v11468_v31  ;;  %v1992_v4 = vadd.f32 %v1973_v26, %v1940_v25 }
 0x34b   :  { %v1859_v16 = vsel %vm11193_vm11, %v1855_v61, 0.0 }
 0x34c   :  { %1864 = vst [vmem:[#allocation3 + $0x10] sm:$0xff] %v1859_v16  ;;  %v1843_v49 = vpop.f32.mrf.mxu3 }
 0x34d   :  { %v1849_v27 = vadd.f32 %v1843_v49, %v1794_v19  ;;  %v2026_v37 = vpop.f32.mrf.mxu2  ;;  %v11871_v19 = vpop.permute.xlu1 %3337 }
 0x34e   :  { %v1908_v55 = vpop.f32.mrf.mxu1  ;;  %v2045_v22 = vadd.f32 %v2026_v37, %v1990_v34 }
 0x34f   :  { %v1853_v28 = vadd.f32 %v1849_v27, %v11698_v7 }
 0x350   :  { %v2068_v38 = vpop.f32.mrf.mxu0 }
 0x351   :  { %v1857_v14 = vmax.f32 %v1853_v28, 0.0  ;;  %10100 = vmatmul.msk.bf16.vlgmr.msra.gmra.mxu3 %vm955_vm13, %v11482_v11  ;;  %v2087_v51 = vadd.f32 %v2068_v38, %v2045_v22 }
 0x353   :  { %v1861_v31 = vsel %vm11193_vm11, %v1857_v14, 0.0 }
 0x354   :  { %1866 = vst [vmem:[#allocation3 + $0x70] sm:$0xff] %v1861_v31  ;;  %v1951_v58 = vpop.f32.mrf.mxu3 }
 0x355   :  { %v2028_v45 = vpop.f32.mrf.mxu2  ;;  %v1952_v41 = vadd.f32 %v1951_v58, %v1906_v52  ;;  %v6362_v58 = vld [vmem:[#allocation3 + $0x18] sm:$0xf0]  ;;  %v11876_v22 = vpop.permute.xlu1 %3433 }
 0x356   :  { %v1985_v8 = vpop.f32.mrf.mxu1  ;;  %v2047_v33 = vadd.f32 %v2028_v45, %v1992_v4 }
 0x357   :  { %v1991_v57 = vadd.f32 %v1985_v8, %v1952_v41  ;;  %v6365_v8 = vpack.c.bf16 %v6362_v58, %v6362_v58 }
 0x358   :  { %v2070_v60 = vpop.f32.mrf.mxu0 }
 0x359   :  { %v2089_v21 = vadd.f32 %v2070_v60, %v2047_v33 }
 0x35c   :  { %v1953_v47 = vpop.f32.mrf.mxu3 }
 0x35d   :  { %v2106_v48 = vpop.f32.mrf.mxu2  ;;  %v1954_v26 = vadd.f32 %v1953_v47, %v1908_v55 }
 0x35e   :  { %v1987_v11 = vpop.f32.mrf.mxu1  ;;  %v2125_v1 = vadd.f32 %v2106_v48, %v2087_v51 }
 0x35f   :  { %v1993_v28 = vadd.f32 %v1987_v11, %v1954_v26  ;;  %v7699_v26 = vld [vmem:[#allocation3 + $0xe8] sm:$0xf] }
 0x360   :  { %v2161_v29 = vpop.f32.mrf.mxu0 }
 0x361   :  { %v2180_v40 = vadd.f32 %v2161_v29, %v2125_v1  ;;  %v6409_v29 = vrot.slane %v6365_v8, 2 }
 0x364   :  { %v2040_v30 = vpop.f32.mrf.mxu3 }
 0x365   :  { %v2108_v53 = vpop.f32.mrf.mxu2  ;;  %v2046_v56 = vadd.f32 %v2040_v30, %v1991_v57  ;;  %v6500_v30 = vld [vmem:[#allocation3 + $0x50] sm:$0xf0] }
 0x366   :  { %v2082_v23 = vpop.f32.mrf.mxu1  ;;  %v2127_v35 = vadd.f32 %v2108_v53, %v2089_v21  ;;  %v6503_v1 = vpack.c.bf16 %v6500_v30, %v6500_v30 }
 0x367   :  { %v2088_v16 = vadd.f32 %v2082_v23, %v2046_v56 }
 0x368   :  { %v2163_v2 = vpop.f32.mrf.mxu0 }
 0x369   :  { %v2182_v24 = vadd.f32 %v2163_v2, %v2127_v35 }
 0x36c   :  { %v2042_v43 = vpop.f32.mrf.mxu3 }
 0x36d   :  { %v2216_v32 = vpop.f32.mrf.mxu2  ;;  %v2048_v55 = vadd.f32 %v2042_v43, %v1993_v28 }
 0x36e   :  { %v2235_v54 = vadd.f32 %v2216_v32, %v2180_v40  ;;  %v2084_v62 = vpop.f32.mrf.mxu1 }
 0x36f   :  { %v2090_v47 = vadd.f32 %v2084_v62, %v2048_v55 }
 0x370   :  { %v2262_v9 = vpop.f32.mrf.mxu0 }
 0x371   :  { %v2281_v59 = vadd.f32 %v2262_v9, %v2235_v54  ;;  %v6509_v54 = vrot.slane %v6503_v1, 2  ;;  %v6646_v9 = vld [vmem:[#allocation3 + $0xa0] sm:$0xf0] }
 0x373   :  { %v2285_v15 = vadd.f32 %v2281_v59, %v11679_v63  ;;  %v11882_v59 = vpop.permute.xlu1 %3382 }
 0x374   :  { %v2120_v12 = vpop.f32.mrf.mxu3 }
 0x375   :  { %v2289_v13 = vmax.f32 %v2285_v15, 0.0  ;;  %v2218_v42 = vpop.f32.mrf.mxu2  ;;  %v2126_v38 = vadd.f32 %v2120_v12, %v2088_v16  ;;  %v6649_v15 = vpack.c.bf16 %v6646_v9, %v6646_v9 }
 0x376   :  { %v2237_v5 = vadd.f32 %v2218_v42, %v2182_v24  ;;  %v2175_v44 = vpop.f32.mrf.mxu1 }
 0x377   :  { %v2293_v50 = vsel %vm11189_vm10, %v2289_v13, 0.0  ;;  %v2181_v60 = vadd.f32 %v2175_v44, %v2126_v38  ;;  %v6655_v57 = vrot.slane %v6649_v15, 2 }
 0x378   :  { %2298 = vst [vmem:[#allocation3 + $0x90] sm:$0xff] %v2293_v50  ;;  %v2264_v10 = vpop.f32.mrf.mxu0 }
 0x379   :  { %v2283_v36 = vadd.f32 %v2264_v10, %v2237_v5 }
 0x37b   :  { %v2287_v61 = vadd.f32 %v2283_v36, %v11698_v7  ;;  %v11888_v10 = vpop.permute.xlu1 %3819 }
 0x37c   :  { %v2122_v52 = vpop.f32.mrf.mxu3 }
 0x37d   :  { %v2291_v49 = vmax.f32 %v2287_v61, 0.0  ;;  %v2325_v27 = vpop.f32.mrf.mxu2  ;;  %v2128_v4 = vadd.f32 %v2122_v52, %v2090_v47  ;;  %v7702_v52 = vpack.c.bf16 %v7699_v26, %v7699_v26 }
 0x37e   :  { %v2177_v37 = vpop.f32.mrf.mxu1 }
 0x37f   :  { %v2295_v14 = vsel %vm11189_vm10, %v2291_v49, 0.0  ;;  %v6290_v31 = vld [vmem:[#allocation3 + $0x90] sm:$0xf]  ;;  %v2183_v23 = vadd.f32 %v2177_v37, %v2128_v4 }
 0x380   :  { %2300 = vst [vmem:[#allocation3 + $0xe0] sm:$0xff] %v2295_v14  ;;  %v6293_v45 = vpack.c.bf16 %v6290_v31, %v6290_v31  ;;  %v2359_v18 = vpop.f32.mrf.mxu0  ;;  %v7842_v14 = vld [vmem:[#allocation3 + $0x90] sm:$0xf] }
 0x381   :  { %v2360_v37 = vadd.f32 %v2359_v18, %v2325_v27 }
 0x382   :  { %6299 = vrot.lane.b32.xlu1 %v6293_v45, %s10908_s9  ;;  %v7845_v45 = vpack.c.bf16 %v7842_v14, %v7842_v14 }
 0x383   :  { %v11896_v49 = vpop.permute.xlu1 %3771 }
 0x384   :  { %v2230_v34 = vpop.f32.mrf.mxu3 }
 0x385   :  { %v2236_v48 = vadd.f32 %v2230_v34, %v2181_v60  ;;  %v2327_v25 = vpop.f32.mrf.mxu2 }
 0x386   :  { %v2276_v11 = vpop.f32.mrf.mxu1 }
 0x387   :  { %v2282_v51 = vadd.f32 %v2276_v11, %v2236_v48  ;;  %v7985_v47 = vld [vmem:[#allocation3 + $0xe0] sm:$0xf] }
 0x388   :  { %v2361_v53 = vpop.f32.mrf.mxu0  ;;  %v7988_v18 = vpack.c.bf16 %v7985_v47, %v7985_v47 }
 0x389   :  { %v2286_v33 = vadd.f32 %v2282_v51, %v11679_v63  ;;  %v2362_v55 = vadd.f32 %v2361_v53, %v2327_v25 }
 0x38a   :  { %6412 = vrot.lane.b32.xlu1 %v6409_v29, %s10907_s6  ;;  %v8057_v29 = vld [vmem:[#allocation3 + $0x50] sm:$0xf0] }
 0x38b   :  { %v2290_v2 = vmax.f32 %v2286_v33, 0.0  ;;  %v11899_v11 = vpop.permute.xlu1 %3873  ;;  %v8060_v30 = vpack.c.bf16 %v8057_v29, %v8057_v29 }
 0x38c   :  { %v2232_v21 = vpop.f32.mrf.mxu3 }
 0x38d   :  { %v2294_v40 = vsel %vm11193_vm11, %v2290_v2, 0.0  ;;  %v2238_v43 = vadd.f32 %v2232_v21, %v2183_v23  ;;  %v2410_v32 = vpop.f32.mrf.mxu2  ;;  %v8104_v25 = vrot.slane %v8060_v30, 2  ;;  %v8195_v21 = vld [vmem:[#allocation3 + $0xa0] sm:$0xf0] }
 0x38e   :  { %2299 = vst [vmem:[#allocation3 + $0x68] sm:$0xff] %v2294_v40  ;;  %v2278_v35 = vpop.f32.mrf.mxu1  ;;  %v2429_v58 = vadd.f32 %v2410_v32, %v2360_v37 }
 0x38f   :  { %v2284_v62 = vadd.f32 %v2278_v35, %v2238_v43 }
 0x390   :  { %v2452_v24 = vpop.f32.mrf.mxu0 }
 0x391   :  { %v2288_v41 = vadd.f32 %v2284_v62, %v11698_v7  ;;  %v2471_v8 = vadd.f32 %v2452_v24, %v2429_v58 }
 0x392   :  { %6512 = vrot.lane.b32.xlu1 %v6509_v54, %s10907_s6  ;;  %v8198_v54 = vpack.c.bf16 %v8195_v21, %v8195_v21 }
 0x393   :  { %v2292_v12 = vmax.f32 %v2288_v41, 0.0  ;;  %v11902_v40 = vpop.permute.xlu1 %4222 }
 0x394   :  { %v2339_v13 = vpop.f32.mrf.mxu3 }
 0x395   :  { %v2296_v42 = vsel %vm11193_vm11, %v2292_v12, 0.0  ;;  %v2412_v5 = vpop.f32.mrf.mxu2  ;;  %v8204_v12 = vrot.slane %v8198_v54, 2 }
 0x396   :  { %2301 = vst [vmem:[#allocation3 + $0x8] sm:$0xff] %v2296_v42  ;;  %v2373_v44 = vpop.f32.mrf.mxu1  ;;  %v2431_v4 = vadd.f32 %v2412_v5, %v2362_v55 }
 0x398   :  { %v2454_v50 = vpop.f32.mrf.mxu0 }
 0x399   :  { %v2473_v33 = vadd.f32 %v2454_v50, %v2431_v4 }
 0x39a   :  { %6658 = vrot.lane.b32.xlu1 %v6655_v57, %s10907_s6  ;;  %v2374_v57 = vadd.f32 %v2373_v44, %v2339_v13 }
 0x39c   :  { %v11891_v56 = vpop.f32.mrf.mxu3 }
 0x39d   :  { %v2494_v36 = vpop.f32.mrf.mxu2 }
 0x39e   :  { %v11893_v61 = vpop.f32.mrf.mxu1  ;;  %v2513_v51 = vadd.f32 %v2494_v36, %v2471_v8  ;;  %v11906_v36 = vpop.permute.xlu1 %4318 }
 0x3a0   :  { %v2549_v16 = vpop.f32.mrf.mxu0 }
 0x3a1   :  { %v2568_v1 = vadd.f32 %v2549_v16, %v2513_v51 }
 0x3a2   :  { %7708 = vrot.lane.b32.xlu1 %v7702_v52, %s10908_s9 }
 0x3a4   :  { %v2424_v28 = vpop.f32.mrf.mxu3 }
 0x3a5   :  { %v2496_v38 = vpop.f32.mrf.mxu2  ;;  %v2430_v52 = vadd.f32 %v2424_v28, %v2374_v57  ;;  %v2771_v57 = vld [vmem:[#allocation3 + $0xe0] sm:$0xf] }
 0x3a6   :  { %v2466_v31 = vpop.f32.mrf.mxu1  ;;  %v2515_v43 = vadd.f32 %v2496_v38, %v2473_v33  ;;  %v11915_v4 = vpop.permute.xlu1 %4267 }
 0x3a7   :  { %v2472_v8 = vadd.f32 %v2466_v31, %v2430_v52 }
 0x3a8   :  { %v2551_v48 = vpop.f32.mrf.mxu0 }
 0x3a9   :  { %v2570_v62 = vadd.f32 %v2551_v48, %v2515_v43  ;;  %v8341_v48 = vld [vmem:[#allocation3 + $0x58] sm:$0xf0] }
 0x3aa   :  { %7851 = vrot.lane.b32.xlu1 %v7845_v45, %s10908_s9  ;;  %v8399_v45 = vld [vmem:[#allocation3 + $0x60] sm:$0xf]  ;;  %v8344_v30 = vpack.c.bf16 %v8341_v48, %v8341_v48 }
 0x3ab   :  { %v8402_v44 = vpack.c.bf16 %v8399_v45, %v8399_v45 }
 0x3ac   :  { %v2426_v60 = vpop.f32.mrf.mxu3 }
 0x3ad   :  { %v2595_v34 = vpop.f32.mrf.mxu2 }
 0x3ae   :  { %v2468_v27 = vpop.f32.mrf.mxu1  ;;  %v2614_v32 = vadd.f32 %v2595_v34, %v2568_v1  ;;  %v2376_v34 = vadd.f32 %v11893_v61, %v11891_v56  ;;  %v8454_v61 = vld [vmem:[#allocation3 + $0x60] sm:$0xf0] }
 0x3af   :  { %v8457_v21 = vpack.c.bf16 %v8454_v61, %v8454_v61 }
 0x3b0   :  { %v2650_v53 = vpop.f32.mrf.mxu0  ;;  %v2432_v29 = vadd.f32 %v2426_v60, %v2376_v34 }
 0x3b1   :  { %v2669_v9 = vadd.f32 %v2650_v53, %v2614_v32 }
 0x3b2   :  { %7994 = vrot.lane.b32.xlu1 %v7988_v18, %s10908_s9  ;;  %v2474_v1 = vadd.f32 %v2468_v27, %v2432_v29 }
 0x3b4   :  { %v2508_v23 = vpop.f32.mrf.mxu3 }
 0x3b5   :  { %v2597_v2 = vpop.f32.mrf.mxu2  ;;  %v2514_v47 = vadd.f32 %v2508_v23, %v2472_v8 }
 0x3b6   :  { %v2563_v35 = vpop.f32.mrf.mxu1  ;;  %v2616_v42 = vadd.f32 %v2597_v2, %v2570_v62  ;;  %v11920_v62 = vpop.permute.xlu1 %4461 }
 0x3b7   :  { %v2569_v31 = vadd.f32 %v2563_v35, %v2514_v47 }
 0x3b8   :  { %v2652_v50 = vpop.f32.mrf.mxu0 }
 0x3b9   :  { %v2671_v38 = vadd.f32 %v2652_v50, %v2616_v42 }
 0x3ba   :  { %8107 = vrot.lane.b32.xlu1 %v8104_v25, %s10907_s6  ;;  %v8350_v25 = vrot.slane %v8344_v30, 2 }
 0x3bc   :  { %v2510_v24 = vpop.f32.mrf.mxu3 }
 0x3bd   :  { %v2696_v41 = vpop.f32.mrf.mxu2  ;;  %v2516_v56 = vadd.f32 %v2510_v24, %v2474_v1 }
 0x3be   :  { %v2715_v15 = vadd.f32 %v2696_v41, %v2669_v9  ;;  %v2565_v37 = vpop.f32.mrf.mxu1 }
 0x3bf   :  { %v2571_v43 = vadd.f32 %v2565_v37, %v2516_v56 }
 0x3c0   :  { %v2719_v5 = vadd.f32 %v2715_v15, %v11679_v63  ;;  %v8463_v15 = vrot.slane %v8457_v21, 2  ;;  %v9226_v21 = vld [vmem:[#allocation3 + $0x60] sm:$0xf0] }
 0x3c2   :  { %v2723_v26 = vmax.f32 %v2719_v5, 0.0  ;;  %8207 = vrot.lane.b32.xlu1 %v8204_v12, %s10907_s6 }
 0x3c4   :  { %v2727_v16 = vsel %vm11189_vm10, %v2723_v26, 0.0  ;;  %v2609_v14 = vpop.f32.mrf.mxu3  ;;  %v8781_v26 = vld [vmem:[#allocation3 + $0x60] sm:$0xf] }
 0x3c5   :  { %2732 = vst [vmem:[#allocation3 + $0x88] sm:$0xff] %v2727_v16  ;;  %v2698_v58 = vpop.f32.mrf.mxu2  ;;  %v2615_v2 = vadd.f32 %v2609_v14, %v2569_v31  ;;  %v11928_v16 = vpop.permute.xlu1 %4604  ;;  %v8784_v37 = vpack.c.bf16 %v8781_v26, %v8781_v26  ;;  %v3124_v31 = vld [vmem:[#allocation3 + $0x28] sm:$0xf0]  ;;  %v3125_v26 = vld [vmem:[#allocation3 + $0x70] sm:$0xf0] }
 0x3c6   :  { %v2717_v55 = vadd.f32 %v2698_v58, %v2671_v38  ;;  %v2664_v33 = vpop.f32.mrf.mxu1  ;;  %v2954_v38 = vld [vmem:[#allocation3 + $0x58] sm:$0xf0]  ;;  %v3127_v1 = vpack.c.bf16 %v3124_v31, %v3124_v31 }
 0x3c7   :  { %v2670_v23 = vadd.f32 %v2664_v33, %v2615_v2  ;;  %v2957_v45 = vpack.c.bf16 %v2954_v38, %v2954_v38  ;;  %v2772_v33 = vld [vmem:[#allocation3 + $0x8] sm:$0xf]  ;;  %v3320_v38 = vld [vmem:[#allocation3 + $0xe0] sm:$0xf] }
 0x3c8   :  { %v2721_v13 = vadd.f32 %v2717_v55, %v11698_v7  ;;  %v8894_v55 = vld [vmem:[#allocation3 + $0x58] sm:$0xf]  ;;  %v2775_v56 = vpack.c.bf16 %v2772_v33, %v2772_v33  ;;  %v3138_v61 = vrot.slane %v3127_v1, 2  ;;  %v9637_v33 = vld [vmem:[#allocation3 + $0xe0] sm:$0xf] }
 0x3c9   :  { %v2968_v8 = vrot.slane %v2957_v45, 2  ;;  %v3323_v45 = vpack.c.bf16 %v3320_v38, %v3320_v38  ;;  %v4310_v38 = vld [vmem:[#allocation3 + $0xe0] sm:$0xf] }
 0x3ca   :  { %v2725_v28 = vmax.f32 %v2721_v13, 0.0  ;;  %8408 = vrot.lane.b32.xlu1 %v8402_v44, %s10910_s0  ;;  %v8897_v13 = vpack.c.bf16 %v8894_v55, %v8894_v55  ;;  %v2888_v44 = vld [vmem:[#allocation3 + $0xe0] sm:$0xf0]  ;;  %v3327_v55 = vld [vmem:[#allocation3 + $0x8] sm:$0xf0] }
 0x3cb   :  { %v2891_v48 = vpack.c.bf16 %v2888_v44, %v2888_v44 }
 0x3cc   :  { %v2729_v51 = vsel %vm11189_vm10, %v2725_v28, 0.0  ;;  %v2611_v18 = vpop.f32.mrf.mxu3 }
 0x3cd   :  { %2734 = vst [vmem:[#allocation3 + $0xc8] sm:$0xff] %v2729_v51  ;;  %v2617_v9 = vadd.f32 %v2611_v18, %v2571_v43  ;;  %v11935_v34 = vpop.permute.xlu1 %4717  ;;  %v2902_v18 = vrot.slane %v2891_v48, 2  ;;  %v9692_v48 = vld [vmem:[#allocation3 + $0x58] sm:$0xf] }
 0x3ce   :  { %v2666_v27 = vpop.f32.mrf.mxu1 }
 0x3cf   :  { %v2672_v24 = vadd.f32 %v2666_v27, %v2617_v9  ;;  %v2889_v27 = vld [vmem:[#allocation3 + $0x8] sm:$0xf0] }
 0x3d2   :  { %8353 = vrot.lane.b32.xlu1 %v8350_v25, %s10909_s10  ;;  %v9284_v25 = vld [vmem:[#allocation3 + $0x58] sm:$0xf] }
 0x3d4   :  { %v2710_v53 = vpop.f32.mrf.mxu3  ;;  %v2765_v60 = vld [vmem:[#allocation3 + $0xc8] sm:$0xf0]  ;;  %v3763_v31 = vld [vmem:[#allocation3 + $0xc8] sm:$0xf] }
 0x3d5   :  { %v2716_v32 = vadd.f32 %v2710_v53, %v2670_v23  ;;  %v2768_v54 = vpack.c.bf16 %v2765_v60, %v2765_v60  ;;  %v11941_v2 = vpop.permute.xlu1 %4817  ;;  %v2955_v23 = vld [vmem:[#allocation3 + $0x10] sm:$0xf0]  ;;  %v9287_v53 = vpack.c.bf16 %v9284_v25, %v9284_v25  ;;  %v3326_v60 = vld [vmem:[#allocation3 + $0xe0] sm:$0xf0]  ;;  %v3766_v25 = vpack.c.bf16 %v3763_v31, %v3763_v31 }
 0x3d6   :  { %v2958_v43 = vpack.c.bf16 %v2955_v23, %v2955_v23  ;;  %v3321_v23 = vld [vmem:[#allocation3 + $0x8] sm:$0xf] }
 0x3d7   :  { %v2720_v35 = vadd.f32 %v2716_v32, %v11679_v63  ;;  %v2840_v41 = vrot.slane %v2768_v54, 2  ;;  %v2774_v63 = vpack.c.bf16 %v2771_v57, %v2771_v57  ;;  %v3329_v32 = vpack.c.bf16 %v3326_v60, %v3326_v60 }
 0x3d8   :  { %v9229_v54 = vpack.c.bf16 %v9226_v21, %v9226_v21  ;;  %v9805_v21 = vld [vmem:[#allocation3 + $0x60] sm:$0xf] }
 0x3d9   :  { %v2724_v12 = vmax.f32 %v2720_v35, 0.0  ;;  %2844 = vrot.lane.b32.xlu2 %v2840_v41, %s10905_s26  ;;  %v2969_v35 = vrot.slane %v2958_v43, 2  ;;  %v3335_v41 = vrot.slane %v3329_v32, 2  ;;  %v3324_v43 = vpack.c.bf16 %v3321_v23, %v3321_v23  ;;  %v3189_v23 = vld [vmem:[#allocation3 + $0xe8] sm:$0xf] }
 0x3da   :  { %8466 = vrot.lane.b32.xlu1 %v8463_v15, %s10910_s0  ;;  %v9235_v15 = vrot.slane %v9229_v54, 2  ;;  %v3758_v54 = vld [vmem:[#allocation3 + $0x8] sm:$0xf0] }
 0x3db   :  { %v2728_v42 = vsel %vm11193_vm11, %v2724_v12, 0.0  ;;  %v9339_v12 = vld [vmem:[#allocation3 + $0x58] sm:$0xf0] }
 0x3dc   :  { %2733 = vst [vmem:[#allocation3 + $0xb8] sm:$0xff] %v2728_v42  ;;  %v2712_v5 = vpop.f32.mrf.mxu3  ;;  %v3425_v42 = vld [vmem:[#allocation3 + $0xc8] sm:$0xf] }
 0x3dd   :  { %v2718_v50 = vadd.f32 %v2712_v5, %v2672_v24  ;;  %v11946_v9 = vpop.permute.xlu1 %4963  ;;  %v2892_v24 = vpack.c.bf16 %v2889_v27, %v2889_v27  ;;  %v9342_v5 = vpack.c.bf16 %v9339_v12, %v9339_v12  ;;  %v9747_v27 = vld [vmem:[#allocation3 + $0x58] sm:$0xf0] }
 0x3df   :  { %v2722_v52 = vadd.f32 %v2718_v50, %v11698_v7  ;;  %v8836_v7 = vld [vmem:[#allocation3 + $0x60] sm:$0xf0]  ;;  %v2903_v57 = vrot.slane %v2892_v24, 2  ;;  %v3428_v50 = vpack.c.bf16 %v3425_v42, %v3425_v42  ;;  %v9750_v24 = vpack.c.bf16 %v9747_v27, %v9747_v27 }
 0x3e0   :  { %v8839_v29 = vpack.c.bf16 %v8836_v7, %v8836_v7  ;;  %v3330_v7 = vpack.c.bf16 %v3327_v55, %v3327_v55  ;;  %v4313_v55 = vpack.c.bf16 %v4310_v38, %v4310_v38 }
 0x3e1   :  { %v2726_v14 = vmax.f32 %v2722_v52, 0.0  ;;  %2786 = vrot.lane.b32.xlu2 %v2774_v63, %s10904_s25  ;;  %v9348_v63 = vrot.slane %v9342_v5, 2 }
 0x3e2   :  { %8790 = vrot.lane.b32.xlu1 %v8784_v37, %s10910_s0  ;;  %v8845_v30 = vrot.slane %v8839_v29, 2  ;;  %v3128_v37 = vpack.c.bf16 %v3125_v26, %v3125_v26 }
 0x3e3   :  { %v2730_v58 = vsel %vm11193_vm11, %v2726_v14, 0.0  ;;  %v9494_v14 = vld [vmem:[#allocation3 + $0x90] sm:$0xf] }
 0x3e4   :  { %2735 = vst [vmem:[#allocation3 + $0x48] sm:$0xff] %v2730_v58  ;;  %v3139_v58 = vrot.slane %v3128_v37, 2 }
 0x3e5   :  { %v11951_v52 = vpop.permute.xlu1 %6013 }
 0x3e9   :  { %2972 = vrot.lane.b32.xlu2 %v2968_v8, %s10907_s6  ;;  %v9497_v8 = vpack.c.bf16 %v9494_v14, %v9494_v14 }
 0x3ea   :  { %8903 = vrot.lane.b32.xlu1 %v8897_v13, %s10910_s0  ;;  %v3757_v13 = vld [vmem:[#allocation3 + $0xe0] sm:$0xf0] }
 0x3eb   :  { %v2766_v47 = vld [vmem:[#allocation3 + $0x48] sm:$0xf0] }
 0x3ec   :  { %v2769_v28 = vpack.c.bf16 %v2766_v47, %v2766_v47  ;;  %v3760_v47 = vpack.c.bf16 %v3757_v13, %v3757_v13  ;;  %v3863_v13 = vld [vmem:[#allocation3 + $0x48] sm:$0xf0] }
 0x3ed   :  { %v11958_v44 = vpop.permute.xlu1 %6156 }
 0x3ee   :  { %v2841_v51 = vrot.slane %v2769_v28, 2  ;;  %v3336_v28 = vrot.slane %v3330_v7, 2  ;;  %v3817_v29 = vrot.slane %v3760_v47, 2 }
 0x3f0   :  { %2846 = vrot.lane.b32.xlu0 %v2841_v51, %s10905_s26  ;;  %v9695_v51 = vpack.c.bf16 %v9692_v48, %v9692_v48  ;;  %v3069_v48 = vld [vmem:[#allocation3 + $0x60] sm:$0xf0] }
 0x3f1   :  { %2906 = vrot.lane.b32.xlu2 %v2902_v18, %s10904_s25 }
 0x3f2   :  { %8848 = vrot.lane.b32.xlu1 %v8845_v30, %s10910_s0  ;;  %v3426_v30 = vld [vmem:[#allocation3 + $0x48] sm:$0xf] }
 0x3f3   :  { %v3429_v1 = vpack.c.bf16 %v3426_v30, %v3426_v30  ;;  %v11999_v30 = vld [vmem:[#allocation12 + $0x8] sm:$0xff] }
 0x3f5   :  { %v11963_v18 = vpop.permute.xlu1 %6299 }
 0x3f8   :  { %2788 = vrot.lane.b32.xlu0 %v2775_v56, %s10904_s25  ;;  %v9640_v56 = vpack.c.bf16 %v9637_v33, %v9637_v33  ;;  %v3071_v33 = vpack.c.bf16 %v3069_v48, %v3069_v48 }
 0x3f9   :  { %3142 = vrot.lane.b32.xlu2 %v3138_v61, %s10907_s6  ;;  %v3862_v61 = vld [vmem:[#allocation3 + $0xc8] sm:$0xf0] }
 0x3fa   :  { %9293 = vrot.lane.b32.xlu1 %v9287_v53, %s10910_s0  ;;  %v3865_v53 = vpack.c.bf16 %v3862_v61, %v3862_v61 }
 0x3fc   :  { %v3871_v32 = vrot.slane %v3865_v53, 2 }
 0x3fd   :  { %v11969_v60 = vpop.permute.xlu1 %6412 }
 0x400   :  { %2974 = vrot.lane.b32.xlu0 %v2969_v35, %s10907_s6  ;;  %v9808_v35 = vpack.c.bf16 %v9805_v21, %v9805_v21 }
 0x401   :  { %3339 = vrot.lane.b32.xlu2 %v3335_v41, %s10904_s25  ;;  %v4211_v41 = vld [vmem:[#allocation3 + $0xc8] sm:$0xf0] }
 0x402   :  { %9238 = vrot.lane.b32.xlu1 %v9235_v15, %s10910_s0  ;;  %v3761_v15 = vpack.c.bf16 %v3758_v54, %v3758_v54  ;;  %v4214_v12 = vpack.c.bf16 %v4211_v41, %v4211_v41  ;;  %v12013_v54 = vld [vmem:[#allocation12 + $0x18] sm:$0xff] }
 0x404   :  { %v3818_v5 = vrot.slane %v3761_v15, 2 }
 0x405   :  { %v11974_v42 = vpop.permute.xlu1 %6512 }
 0x408   :  { %2908 = vrot.lane.b32.xlu0 %v2903_v57, %s10904_s25  ;;  %v4220_v57 = vrot.slane %v4214_v12, 2  ;;  %v3019_v12 = vld [vmem:[#allocation3 + $0x60] sm:$0xf] }
 0x409   :  { %3435 = vrot.lane.b32.xlu2 %v3428_v50, %s10904_s25  ;;  %v9756_v50 = vrot.slane %v9750_v24, 2  ;;  %v3021_v24 = vpack.c.bf16 %v3019_v12, %v3019_v12 }
 0x40a   :  { %9351 = vrot.lane.b32.xlu1 %v9348_v63, %s10910_s0  ;;  %v3764_v63 = vld [vmem:[#allocation3 + $0x48] sm:$0xf] }
 0x40d   :  { %v11987_v7 = vpop.permute.xlu1 %6658 }
 0x410   :  { %3144 = vrot.lane.b32.xlu0 %v3139_v58, %s10907_s6  ;;  %v11985_v58 = vld [vmem:[#allocation12] sm:$0xff] }
 0x411   :  { %3384 = vrot.lane.b32.xlu2 %v3323_v45, %s10904_s25  ;;  %v3767_v45 = vpack.c.bf16 %v3764_v63, %v3764_v63 }
 0x412   :  { %9503 = vrot.lane.b32.xlu1 %v9497_v8, %s10908_s9  ;;  %v2762_v8 = vld [vmem:[#allocation14] sm:$0xff] }
 0x418   :  { %3341 = vrot.lane.b32.xlu0 %v3336_v28, %s10904_s25 }
 0x419   :  { %3821 = vrot.lane.b32.xlu2 %v3817_v29, %s10904_s25  ;;  %v4205_v29 = vld [vmem:[#allocation3 + $0xc8] sm:$0xf] }
 0x41a   :  { %9701 = vrot.lane.b32.xlu1 %v9695_v51, %s10910_s0 }
 0x420   :  { %3437 = vrot.lane.b32.xlu0 %v3429_v1, %s10904_s25  ;;  %v4208_v1 = vpack.c.bf16 %v4205_v29, %v4205_v29 }
 0x421   :  { %3773 = vrot.lane.b32.xlu2 %v3766_v25, %s10904_s25  ;;  %v4212_v25 = vld [vmem:[#allocation3 + $0x48] sm:$0xf0] }
 0x422   :  { %9646 = vrot.lane.b32.xlu1 %v9640_v56, %s10908_s9  ;;  %v12005_v56 = vpop.permute.xlu1 %7708  ;;  %v4215_v61 = vpack.c.bf16 %v4212_v25, %v4212_v25 }
 0x424   :  { %v4221_v27 = vrot.slane %v4215_v61, 2  ;;  %v4454_v61 = vld [vmem:[#allocation3 + $0x38] sm:$0xf] }
 0x428   :  { %3386 = vrot.lane.b32.xlu0 %v3324_v43, %s10904_s25  ;;  %v4453_v43 = vld [vmem:[#allocation3 + $0xc0] sm:$0xf] }
 0x429   :  { %3875 = vrot.lane.b32.xlu2 %v3871_v32, %s10904_s25  ;;  %v4456_v15 = vpack.c.bf16 %v4453_v43, %v4453_v43 }
 0x42a   :  { %9814 = vrot.lane.b32.xlu1 %v9808_v35, %s10911_s11  ;;  %v3191_v35 = vpack.c.bf16 %v3189_v23, %v3189_v23 }
 0x430   :  { %3823 = vrot.lane.b32.xlu0 %v3818_v5, %s10904_s25 }
 0x431   :  { %4224 = vrot.lane.b32.xlu2 %v4220_v57, %s10904_s25  ;;  %v4311_v57 = vld [vmem:[#allocation3 + $0x8] sm:$0xf] }
 0x432   :  { %9759 = vrot.lane.b32.xlu1 %v9756_v50, %s10910_s0  ;;  %v12023_v50 = vpop.permute.xlu1 %7851 }
 0x433   :  { %v11979_v26 = vpop.permute.xlu2 %2844  ;;  %14459 = vst [vmem:[#allocation20_spill] sm:$0xff] %v12023_v50 }
 0x434   :  { %v2848_v37 = vsel %vm281_vm0, %v11849_v20, %v11979_v26  ;;  %v3866_v20 = vpack.c.bf16 %v3863_v13, %v3863_v13  ;;  %v4668_v13 = vld [vmem:[#allocation3 + $0x58] sm:$0xf0] }
 0x435   :  { %v2854_v14 = vsel %vm2796_vm14, %v2848_v37, 0  ;;  %v4596_v37 = vld [vmem:[#allocation3 + $0x30] sm:$0xf]  ;;  %v4671_v48 = vpack.c.bf16 %v4668_v13, %v4668_v13 }
 0x436   :  { %2866 = vmatpush.bf16.msrb.mxu2 %v2854_v14  ;;  %v3872_v31 = vrot.slane %v3866_v20, 2  ;;  %v12029_v14 = vld [vmem:[#allocation12 + $0x10] sm:$0xff]  ;;  %v4206_v20 = vld [vmem:[#allocation3 + $0x48] sm:$0xf] }
 0x437   :  { %v4715_v25 = vrot.slane %v4671_v48, 2  ;;  %v4669_v48 = vld [vmem:[#allocation3 + $0x10] sm:$0xf0] }
 0x438   :  { %3775 = vrot.lane.b32.xlu0 %v3767_v45, %s10904_s25  ;;  %v3032_v45 = vsel %vm2796_vm14, %v3021_v24, 0  ;;  %v4597_v24 = vld [vmem:[#allocation3 + $0xd0] sm:$0xf] }
 0x439   :  { %10111 = vmatmul.msk.bf16.vlgmr.msrb.gmra.mxu2 %vm2792_vm15, %v11985_v58  ;;  %4320 = vrot.lane.b32.xlu2 %v4313_v55, %s10906_s27  ;;  %v4314_v55 = vpack.c.bf16 %v4311_v57, %v4311_v57 }
 0x43a   :  { %3295 = vperm.xlu1 %10542, %v2762_v8   ;;  %v4599_v8 = vpack.c.bf16 %v4596_v37, %v4596_v37 }
 0x43b   :  { %v11993_v47 = vpop.permute.xlu2 %2786 }
 0x43c   :  { %v2790_v28 = vsel %vm215_vm2, %v11858_v0, %v11993_v47  ;;  %v3080_v0 = vrot.slane %v3071_v33, 2  ;;  %v4209_v33 = vpack.c.bf16 %v4206_v20, %v4206_v20 }
 0x43d   :  { %v2798_v51 = vsel %vm2796_vm14, %v2790_v28, 0 }
 0x43e   :  { %2810 = vmatpush.bf16.msra.mxu0 %v2798_v51  ;;  %v3086_v41 = vsel %vm2796_vm14, %v3080_v0, 0  ;;  %v12042_v51 = vld [vmem:[#allocation12 + $0x28] sm:$0xff]  ;;  %v4806_v0 = vld [vmem:[#allocation3 + $0x28] sm:$0xf0] }
 0x440   :  { %3877 = vrot.lane.b32.xlu0 %v3872_v31, %s10904_s25  ;;  %v12044_v31 = vpop.permute.xlu1 %7994 }
 0x441   :  { %10105 = vmatmul.msk.bf16.vlgmr.msra.gmra.mxu0 %vm2792_vm15, %v11999_v30  ;;  %4269 = vrot.lane.b32.xlu2 %v4208_v1, %s10904_s25  ;;  %14460 = vst [vmem:[#allocation19_spill] sm:$0xff] %v12044_v31  ;;  %v3239_v1 = vld [vmem:[#allocation3 + $0xe8] sm:$0xf0]  ;;  %v4142_v31 = vld [vmem:[#allocation3 + $0x70] sm:$0xf0] }
 0x443   :  { %v12007_v53 = vpop.permute.xlu2 %2972 }
 0x444   :  { %v2976_v21 = vsel %vm419_vm4, %v11861_v3, %v12007_v53  ;;  %v3202_v3 = vsel %vm2796_vm14, %v3191_v35, 0 }
 0x445   :  { %v2982_v32 = vsel %vm2796_vm14, %v2976_v21, 0  ;;  %v4809_v21 = vpack.c.bf16 %v4806_v0, %v4806_v0 }
 0x446   :  { %2994 = vmatpush.bf16.msra.mxu2 %v2982_v32  ;;  %v4457_v32 = vpack.c.bf16 %v4454_v61, %v4454_v61  ;;  %v6005_v61 = vld [vmem:[#allocation3 + $0xc0] sm:$0xf] }
 0x448   :  { %4226 = vrot.lane.b32.xlu0 %v4221_v27, %s10904_s25  ;;  %v12058_v12 = vpop.permute.xlu1 %8107 }
 0x449   :  { %4463 = vrot.lane.b32.xlu2 %v4456_v15, %s10908_s9  ;;  %10123 = vmatmul.msk.bf16.vlgmr.msra.gmra.mxu2 %vm2792_vm15, %v12013_v54  ;;  %v4815_v15 = vrot.slane %v4809_v21, 2  ;;  %14461 = vst [vmem:[#allocation21_spill] sm:$0xff] %v12058_v12  ;;  %v9693_v12 = vld [vmem:[#allocation3 + $0x10] sm:$0xf] }
 0x44a   :  { %3098 = vmatpush.bf16.msrb.mxu2 %v3086_v41  ;;  %v12056_v41 = vld [vmem:[#allocation12 + $0x20] sm:$0xff] }
 0x44b   :  { %v12021_v5 = vpop.permute.xlu2 %2906 }
 0x44c   :  { %v2910_v63 = vsel %vm215_vm2, %v11863_v17, %v12021_v5 }
 0x44d   :  { %v2916_v38 = vsel %vm2796_vm14, %v2910_v63, 0 }
 0x44e   :  { %3214 = vmatpush.bf16.msra.mxu2 %v3202_v3  ;;  %2928 = vmatpush.bf16.msrb.mxu0 %v2916_v38  ;;  %v4952_v3 = vld [vmem:[#allocation3 + $0x88] sm:$0xf0] }
 0x44f   :  { %v4955_v38 = vpack.c.bf16 %v4952_v3, %v4952_v3 }
 0x450   :  { %4322 = vrot.lane.b32.xlu0 %v4314_v55, %s10906_s27  ;;  %v4600_v55 = vpack.c.bf16 %v4597_v24, %v4597_v24 }
 0x451   :  { %4606 = vrot.lane.b32.xlu2 %v4599_v8, %s10908_s9  ;;  %10117 = vmatmul.msk.bf16.vlgmr.msrb.gmra.mxu0 %vm2792_vm15, %v12029_v14  ;;  %v12070_v8 = vld [vmem:[#allocation12 + $0x38] sm:$0xff]  ;;  %v4961_v20 = vrot.slane %v4955_v38, 2 }
 0x452   :  { %3044 = vmatpush.bf16.msra.mxu0 %v3032_v45 }
 0x453   :  { %v12036_v17 = vpop.permute.xlu2 %3142 }
 0x454   :  { %v3146_v28 = vsel %vm419_vm4, %v11865_v39, %v12036_v17  ;;  %v3241_v39 = vpack.c.bf16 %v3239_v1, %v3239_v1 }
 0x455   :  { %v3152_v29 = vsel %vm2796_vm14, %v3146_v28, 0  ;;  %v12082_v28 = vpop.permute.xlu1 %8207 }
 0x456   :  { %3164 = vmatpush.bf16.msrb.mxu0 %v3152_v29  ;;  %v3250_v27 = vrot.slane %v3241_v39, 2  ;;  %14462 = vst [vmem:[#allocation22_spill] sm:$0xff] %v12082_v28  ;;  %v12089_v39 = vld [vmem:[#allocation12 + $0x30] sm:$0xff] }
 0x458   :  { %4271 = vrot.lane.b32.xlu0 %v4209_v33, %s10904_s25  ;;  %v4672_v33 = vpack.c.bf16 %v4669_v48, %v4669_v48 }
 0x459   :  { %4719 = vrot.lane.b32.xlu2 %v4715_v25, %s10907_s6  ;;  %10135 = vmatmul.msk.bf16.vlgmr.msrb.gmra.mxu2 %vm2792_vm15, %v12042_v51 }
 0x45b   :  { %v12050_v23 = vpop.permute.xlu2 %3339 }
 0x45c   :  { %v3343_v43 = vsel %vm215_vm2, %v11871_v19, %v12050_v23  ;;  %v3256_v19 = vsel %vm2796_vm14, %v3250_v27, 0  ;;  %v6008_v27 = vpack.c.bf16 %v6005_v61, %v6005_v61 }
 0x45d   :  { %v3346_v35 = vsel %vm2796_vm14, %v3343_v43, 0 }
 0x45e   :  { %3358 = vmatpush.bf16.msrb.mxu2 %v3346_v35  ;;  %v3521_v35 = vld [vmem:[#allocation3 + $0x60] sm:$0xf0] }
 0x460   :  { %4465 = vrot.lane.b32.xlu0 %v4457_v32, %s10908_s9  ;;  %v4716_v32 = vrot.slane %v4672_v33, 2  ;;  %v3020_v33 = vld [vmem:[#allocation3 + $0xc0] sm:$0xf] }
 0x461   :  { %4819 = vrot.lane.b32.xlu2 %v4815_v15, %s10907_s6  ;;  %10129 = vmatmul.msk.bf16.vlgmr.msra.gmra.mxu0 %vm2792_vm15, %v12056_v41  ;;  %v4807_v15 = vld [vmem:[#allocation3 + $0x70] sm:$0xf0]  ;;  %v3022_v61 = vpack.c.bf16 %v3020_v33, %v3020_v33 }
 0x462   :  { %3268 = vmatpush.bf16.msra.mxu0 %v3256_v19  ;;  %v2847_v57 = vpop.permute.xlu0 %2846  ;;  %v3523_v19 = vpack.c.bf16 %v3521_v35, %v3521_v35  ;;  %v4810_v24 = vpack.c.bf16 %v4807_v15, %v4807_v15 }
 0x463   :  { %v2849_v63 = vsel %vm281_vm0, %v11979_v26, %v2847_v57  ;;  %v12067_v37 = vpop.permute.xlu2 %3435  ;;  %v3190_v57 = vld [vmem:[#allocation3 + $0x30] sm:$0xf] }
 0x464   :  { %v2857_v45 = vsel %vm2796_vm14, %v2849_v63, 0  ;;  %v3439_v13 = vsel %vm215_vm2, %v11876_v22, %v12067_v37  ;;  %v3070_v22 = vld [vmem:[#allocation3 + $0xc0] sm:$0xf0]  ;;  %v3527_v48 = vrot.slane %v3523_v19, 2  ;;  %v12123_v19 = vld [vmem:[#allocation12 + $0x40] sm:$0xff] }
 0x465   :  { %2880 = vmatpush.bf16.msrb.mxu3 %v2857_v45  ;;  %v3442_v26 = vsel %vm2796_vm14, %v3439_v13, 0  ;;  %v3072_v21 = vpack.c.bf16 %v3070_v22, %v3070_v22  ;;  %v12105_v45 = vpop.permute.xlu1 %8408  ;;  %v6148_v13 = vld [vmem:[#allocation3 + $0x30] sm:$0xf] }
 0x466   :  { %14463 = vst [vmem:[#allocation23_spill] sm:$0xff] %v12105_v45  ;;  %v6151_v22 = vpack.c.bf16 %v6148_v13, %v6148_v13  ;;  %v6006_v13 = vld [vmem:[#allocation3 + $0x38] sm:$0xf]  ;;  %v4053_v45 = vld [vmem:[#allocation3 + $0xe8] sm:$0xf0] }
 0x467   :  { %v3081_v3 = vrot.slane %v3072_v21, 2 }
 0x468   :  { %4608 = vrot.lane.b32.xlu0 %v4600_v55, %s10908_s9  ;;  %10112 = vmatmul.msk.bf16.vlgmr.msrb.gmra.mxu3 %vm2792_vm15, %v11985_v58 }
 0x469   :  { %4965 = vrot.lane.b32.xlu2 %v4961_v20, %s10907_s6  ;;  %10147 = vmatmul.msk.bf16.vlgmr.msra.gmra.mxu2 %vm2792_vm15, %v12070_v8  ;;  %v3089_v20 = vsel %vm2796_vm14, %v3081_v3, 0  ;;  %v3035_v3 = vsel %vm2796_vm14, %v3022_v61, 0 }
 0x46a   :  { %3454 = vmatpush.bf16.msra.mxu2 %v3442_v26  ;;  %v2789_v29 = vpop.permute.xlu0 %2788  ;;  %v3192_v26 = vpack.c.bf16 %v3190_v57, %v3190_v57 }
 0x46b   :  { %v2791_v1 = vsel %vm215_vm2, %v11993_v47, %v2789_v29  ;;  %v12086_v25 = vpop.permute.xlu2 %3384  ;;  %v4816_v29 = vrot.slane %v4810_v24, 2 }
 0x46c   :  { %v2801_v0 = vsel %vm2796_vm14, %v2791_v1, 0  ;;  %v3388_v43 = vsel %vm215_vm2, %v11882_v59, %v12086_v25  ;;  %v4953_v1 = vld [vmem:[#allocation3 + $0xb8] sm:$0xf0] }
 0x46d   :  { %2824 = vmatpush.bf16.msra.mxu1 %v2801_v0  ;;  %v3391_v47 = vsel %vm2796_vm14, %v3388_v43, 0  ;;  %v3205_v0 = vsel %vm2796_vm14, %v3192_v26, 0  ;;  %v4956_v43 = vpack.c.bf16 %v4953_v1, %v4953_v1  ;;  %v12125_v24 = vpop.permute.xlu1 %8353  ;;  %v6009_v1 = vpack.c.bf16 %v6006_v13, %v6006_v13 }
 0x46e   :  { %14464 = vst [vmem:[#allocation24_spill] sm:$0xff] %v12125_v24 }
 0x46f   :  { %v4962_v57 = vrot.slane %v4956_v43, 2  ;;  %v6501_v43 = vld [vmem:[#allocation3 + $0x88] sm:$0xf0] }
 0x470   :  { %4721 = vrot.lane.b32.xlu0 %v4716_v32, %s10907_s6  ;;  %10106 = vmatmul.msk.bf16.vlgmr.msra.gmra.mxu1 %vm2792_vm15, %v11999_v30  ;;  %v3479_v32 = vld [vmem:[#allocation3 + $0x60] sm:$0xf] }
 0x471   :  { %6015 = vrot.lane.b32.xlu2 %v6008_v27, %s10908_s9  ;;  %10141 = vmatmul.msk.bf16.vlgmr.msrb.gmra.mxu0 %vm2792_vm15, %v12089_v39 }
 0x472   :  { %3403 = vmatpush.bf16.msrb.mxu0 %v3391_v47  ;;  %v2975_v59 = vpop.permute.xlu0 %2974  ;;  %v6291_v47 = vld [vmem:[#allocation3 + $0x68] sm:$0xf] }
 0x473   :  { %v2977_v63 = vsel %vm419_vm4, %v12007_v53, %v2975_v59  ;;  %v12103_v38 = vpop.permute.xlu2 %3821  ;;  %v3530_v53 = vsel %vm2796_vm14, %v3527_v48, 0  ;;  %v3481_v59 = vpack.c.bf16 %v3479_v32, %v3479_v32  ;;  %v3609_v48 = vld [vmem:[#allocation3 + $0xe8] sm:$0xf] }
 0x474   :  { %v2985_v55 = vsel %vm2796_vm14, %v2977_v63, 0  ;;  %v6294_v63 = vpack.c.bf16 %v6291_v47, %v6291_v47 }
 0x475   :  { %3008 = vmatpush.bf16.msra.mxu3 %v2985_v55  ;;  %v3484_v55 = vsel %vm2796_vm14, %v3481_v59, 0  ;;  %v6504_v59 = vpack.c.bf16 %v6501_v43, %v6501_v43 }
 0x478   :  { %4821 = vrot.lane.b32.xlu0 %v4816_v29, %s10907_s6  ;;  %10124 = vmatmul.msk.bf16.vlgmr.msra.gmra.mxu3 %vm2792_vm15, %v12013_v54 }
 0x479   :  { %3112 = vmatpush.bf16.msrb.mxu3 %v3089_v20  ;;  %6158 = vrot.lane.b32.xlu2 %v6151_v22, %s10908_s9 }
 0x47a   :  { %10155 = vmatmul.msk.bf16.vlgmr.msrb.gmra.mxu2 %vm2792_vm15, %v11999_v30  ;;  %v2909_v21 = vpop.permute.xlu0 %2908 }
 0x47b   :  { %3542 = vmatpush.bf16.msrb.mxu2 %v3530_v53  ;;  %v2911_v35 = vsel %vm215_vm2, %v12021_v5, %v2909_v21  ;;  %v12119_v27 = vpop.permute.xlu2 %3773  ;;  %v6363_v5 = vld [vmem:[#allocation3 + $0x28] sm:$0xf0]  ;;  %v3611_v53 = vpack.c.bf16 %v3609_v48, %v3609_v48  ;;  %v12139_v21 = vpop.permute.xlu1 %8466 }
 0x47c   :  { %v2919_v15 = vsel %vm2796_vm14, %v2911_v35, 0  ;;  %v6366_v33 = vpack.c.bf16 %v6363_v5, %v6363_v5  ;;  %14465 = vst [vmem:[#allocation25_spill] sm:$0xff] %v12139_v21  ;;  %v6149_v35 = vld [vmem:[#allocation3 + $0xd0] sm:$0xf] }
 0x47d   :  { %3228 = vmatpush.bf16.msra.mxu3 %v3205_v0  ;;  %2942 = vmatpush.bf16.msrb.mxu1 %v2919_v15  ;;  %v3240_v0 = vld [vmem:[#allocation3 + $0x30] sm:$0xf0]  ;;  %v6152_v5 = vpack.c.bf16 %v6149_v35, %v6149_v35 }
 0x47e   :  { %v6410_v61 = vrot.slane %v6366_v33, 2  ;;  %v3242_v32 = vpack.c.bf16 %v3240_v0, %v3240_v0 }
 0x480   :  { %4967 = vrot.lane.b32.xlu0 %v4962_v57, %s10907_s6  ;;  %10118 = vmatmul.msk.bf16.vlgmr.msrb.gmra.mxu1 %vm2792_vm15, %v12029_v14  ;;  %v3567_v57 = vld [vmem:[#allocation3 + $0x58] sm:$0xf] }
 0x481   :  { %3058 = vmatpush.bf16.msra.mxu1 %v3035_v3  ;;  %6301 = vrot.lane.b32.xlu2 %v6294_v63, %s10908_s9  ;;  %v3569_v13 = vpack.c.bf16 %v3567_v57, %v3567_v57 }
 0x482   :  { %10153 = vmatmul.msk.bf16.vlgmr.msra.gmra.mxu0 %vm2792_vm15, %v12123_v19  ;;  %v3145_v20 = vpop.permute.xlu0 %3144 }
 0x483   :  { %3496 = vmatpush.bf16.msra.mxu0 %v3484_v55  ;;  %v3147_v26 = vsel %vm419_vm4, %v12036_v17, %v3145_v20  ;;  %v12136_v29 = vpop.permute.xlu2 %3875  ;;  %v3614_v17 = vsel %vm2796_vm14, %v3611_v53, 0  ;;  %v3251_v55 = vrot.slane %v3242_v32, 2  ;;  %v6510_v20 = vrot.slane %v6504_v59, 2  ;;  %v12158_v33 = vpop.permute.xlu1 %8790 }
 0x484   :  { %v3155_v22 = vsel %vm2796_vm14, %v3147_v26, 0  ;;  %v6647_v26 = vld [vmem:[#allocation3 + $0xc8] sm:$0xf0]  ;;  %14466 = vst [vmem:[#allocation26_spill] sm:$0xff] %v12158_v33 }
 0x485   :  { %3178 = vmatpush.bf16.msrb.mxu1 %v3155_v22  ;;  %v3259_v48 = vsel %vm2796_vm14, %v3251_v55, 0  ;;  %v3572_v22 = vsel %vm2796_vm14, %v3569_v13, 0  ;;  %v6650_v0 = vpack.c.bf16 %v6647_v26, %v6647_v26  ;;  %v3522_v26 = vld [vmem:[#allocation3 + $0xc0] sm:$0xf0]  ;;  %v8197_v33 = vld [vmem:[#allocation3 + $0x48] sm:$0xf0] }
 0x487   :  { %v6656_v35 = vrot.slane %v6650_v0, 2  ;;  %v6502_v0 = vld [vmem:[#allocation3 + $0xb8] sm:$0xf0] }
 0x488   :  { %6017 = vrot.lane.b32.xlu0 %v6009_v1, %s10908_s9  ;;  %10136 = vmatmul.msk.bf16.vlgmr.msrb.gmra.mxu3 %vm2792_vm15, %v12042_v51 }
 0x489   :  { %6414 = vrot.lane.b32.xlu2 %v6410_v61, %s10907_s6  ;;  %v3697_v61 = vld [vmem:[#allocation3 + $0x28] sm:$0xf] }
 0x48a   :  { %10159 = vmatmul.msk.bf16.vlgmr.msra.gmra.mxu2 %vm2792_vm15, %v12029_v14  ;;  %v3342_v15 = vpop.permute.xlu0 %3341 }
 0x48b   :  { %3626 = vmatpush.bf16.msra.mxu2 %v3614_v17  ;;  %v3344_v47 = vsel %vm215_vm2, %v12050_v23, %v3342_v15  ;;  %v12150_v3 = vpop.permute.xlu2 %4224  ;;  %v6292_v23 = vld [vmem:[#allocation3 + $0x40] sm:$0xf]  ;;  %v3699_v17 = vpack.c.bf16 %v3697_v61, %v3697_v61  ;;  %v6364_v15 = vld [vmem:[#allocation3 + $0x70] sm:$0xf0]  ;;  %v12177_v13 = vpop.permute.xlu1 %8903 }
 0x48c   :  { %v3349_v63 = vsel %vm2796_vm14, %v3344_v47, 0  ;;  %v6295_v43 = vpack.c.bf16 %v6292_v23, %v6292_v23  ;;  %v3651_v47 = vld [vmem:[#allocation3 + $0xe8] sm:$0xf0]  ;;  %14467 = vst [vmem:[#allocation27_spill] sm:$0xff] %v12177_v13  ;;  %v8059_v13 = vld [vmem:[#allocation3 + $0xb8] sm:$0xf0] }
 0x48d   :  { %3372 = vmatpush.bf16.msrb.mxu3 %v3349_v63  ;;  %v3702_v57 = vsel %vm2796_vm14, %v3699_v17, 0  ;;  %v6367_v63 = vpack.c.bf16 %v6364_v15, %v6364_v15 }
 0x48f   :  { %v6411_v23 = vrot.slane %v6367_v63, 2  ;;  %v6648_v63 = vld [vmem:[#allocation3 + $0x48] sm:$0xf0] }
 0x490   :  { %6160 = vrot.lane.b32.xlu0 %v6152_v5, %s10908_s9  ;;  %10130 = vmatmul.msk.bf16.vlgmr.msra.gmra.mxu1 %vm2792_vm15, %v12056_v41  ;;  %v3653_v5 = vpack.c.bf16 %v3651_v47, %v3651_v47 }
 0x491   :  { %6514 = vrot.lane.b32.xlu2 %v6510_v20, %s10907_s6  ;;  %3282 = vmatpush.bf16.msra.mxu1 %v3259_v48  ;;  %v7700_v20 = vld [vmem:[#allocation3 + $0x30] sm:$0xf] }
 0x492   :  { %10157 = vmatmul.msk.bf16.vlgmr.msrb.gmra.mxu0 %vm2792_vm15, %v11985_v58  ;;  %v3438_v1 = vpop.permute.xlu0 %3437 }
 0x493   :  { %3584 = vmatpush.bf16.msrb.mxu0 %v3572_v22  ;;  %v12163_v53 = vpop.permute.xlu2 %4320  ;;  %v3440_v32 = vsel %vm215_vm2, %v12067_v37, %v3438_v1  ;;  %v3657_v22 = vrot.slane %v3653_v5, 2  ;;  %v7703_v1 = vpack.c.bf16 %v7700_v20, %v7700_v20  ;;  %v12191_v47 = vpop.permute.xlu1 %8848  ;;  %v3480_v20 = vld [vmem:[#allocation3 + $0xc0] sm:$0xf] }
 0x494   :  { %v3445_v59 = vsel %vm2796_vm14, %v3440_v32, 0  ;;  %v6505_v32 = vpack.c.bf16 %v6502_v0, %v6502_v0  ;;  %14468 = vst [vmem:[#allocation28_spill] sm:$0xff] %v12191_v47  ;;  %v3777_v0 = vsel %vm215_vm2, %v11896_v49, %v12119_v27 }
 0x498   :  { %6303 = vrot.lane.b32.xlu0 %v6295_v43, %s10908_s9  ;;  %10148 = vmatmul.msk.bf16.vlgmr.msra.gmra.mxu3 %vm2792_vm15, %v12070_v8  ;;  %v3524_v43 = vpack.c.bf16 %v3522_v26, %v3522_v26  ;;  %v6651_v26 = vpack.c.bf16 %v6648_v63, %v6648_v63 }
 0x499   :  { %6660 = vrot.lane.b32.xlu2 %v6656_v35, %s10907_s6  ;;  %3468 = vmatpush.bf16.msra.mxu3 %v3445_v59  ;;  %v7843_v35 = vld [vmem:[#allocation3 + $0x68] sm:$0xf]  ;;  %v6511_v59 = vrot.slane %v6505_v32, 2 }
 0x49a   :  { %10163 = vmatmul.msk.bf16.vlgmr.msrb.gmra.mxu2 %vm2792_vm15, %v12056_v41  ;;  %v3387_v37 = vpop.permute.xlu0 %3386  ;;  %v3528_v15 = vrot.slane %v3524_v43, 2  ;;  %v3919_v43 = vld [vmem:[#allocation3 + $0x60] sm:$0xf0] }
 0x49b   :  { %3714 = vmatpush.bf16.msrb.mxu2 %v3702_v57  ;;  %v12175_v55 = vpop.permute.xlu2 %4269  ;;  %v3389_v48 = vsel %vm215_vm2, %v12086_v25, %v3387_v37  ;;  %v3660_v25 = vsel %vm2796_vm14, %v3657_v22, 0  ;;  %v3825_v57 = vsel %vm215_vm2, %v11888_v10, %v12103_v38  ;;  %v7846_v37 = vpack.c.bf16 %v7843_v35, %v7843_v35  ;;  %v8058_v35 = vld [vmem:[#allocation3 + $0x88] sm:$0xf0] }
 0x49c   :  { %v3394_v61 = vsel %vm2796_vm14, %v3389_v48, 0  ;;  %v3533_v5 = vsel %vm2796_vm14, %v3528_v15, 0  ;;  %v3828_v48 = vsel %vm2796_vm14, %v3825_v57, 0  ;;  %v3482_v22 = vpack.c.bf16 %v3480_v20, %v3480_v20  ;;  %v7701_v15 = vld [vmem:[#allocation3 + $0xd0] sm:$0xf] }
 0x49d   :  { %v3780_v57 = vsel %vm2796_vm14, %v3777_v0, 0  ;;  %v3921_v49 = vpack.c.bf16 %v3919_v43, %v3919_v43  ;;  %v8061_v63 = vpack.c.bf16 %v8058_v35, %v8058_v35  ;;  %v3568_v0 = vld [vmem:[#allocation3 + $0x10] sm:$0xf] }
 0x49e   :  { %v3487_v32 = vsel %vm2796_vm14, %v3482_v22, 0  ;;  %v8196_v22 = vld [vmem:[#allocation3 + $0xc8] sm:$0xf0] }
 0x49f   :  { %v8199_v35 = vpack.c.bf16 %v8196_v22, %v8196_v22 }
 0x4a0   :  { %6416 = vrot.lane.b32.xlu0 %v6411_v23, %s10907_s6  ;;  %10142 = vmatmul.msk.bf16.vlgmr.msrb.gmra.mxu1 %vm2792_vm15, %v12089_v39  ;;  %v7986_v23 = vld [vmem:[#allocation3 + $0x8] sm:$0xf] }
 0x4a1   :  { %7710 = vrot.lane.b32.xlu2 %v7703_v1, %s10908_s9  ;;  %3417 = vmatpush.bf16.msrb.mxu1 %v3394_v61  ;;  %v6657_v1 = vrot.slane %v6651_v26, 2  ;;  %v7989_v61 = vpack.c.bf16 %v7986_v23, %v7986_v23  ;;  %v8105_v26 = vrot.slane %v8061_v63, 2  ;;  %v3879_v63 = vsel %vm215_vm2, %v11899_v11, %v12136_v29 }
 0x4a2   :  { %10161 = vmatmul.msk.bf16.vlgmr.msra.gmra.mxu0 %vm2792_vm15, %v12013_v54  ;;  %v3882_v22 = vsel %vm2796_vm14, %v3879_v63, 0  ;;  %v3824_v21 = vpop.permute.xlu0 %3823 }
 0x4a3   :  { %3672 = vmatpush.bf16.msra.mxu0 %v3660_v25  ;;  %v12189_v17 = vpop.permute.xlu2 %4463  ;;  %v12209_v25 = vpop.permute.xlu1 %9293 }
 0x4a4   :  { %14469 = vst [vmem:[#allocation29_spill] sm:$0xff] %v12209_v25 }
 0x4a8   :  { %6516 = vrot.lane.b32.xlu0 %v6511_v59, %s10907_s6  ;;  %10156 = vmatmul.msk.bf16.vlgmr.msrb.gmra.mxu3 %vm2792_vm15, %v11999_v30  ;;  %v3610_v59 = vld [vmem:[#allocation3 + $0x30] sm:$0xf] }
 0x4a9   :  { %7853 = vrot.lane.b32.xlu2 %v7846_v37, %s10908_s9  ;;  %3556 = vmatpush.bf16.msrb.mxu3 %v3533_v5  ;;  %v7704_v5 = vpack.c.bf16 %v7701_v15, %v7701_v15  ;;  %v3612_v20 = vpack.c.bf16 %v3610_v59, %v3610_v59 }
 0x4aa   :  { %10167 = vmatmul.msk.bf16.vlgmr.msra.gmra.mxu2 %vm2792_vm15, %v12089_v39 }
 0x4ab   :  { %3840 = vmatpush.bf16.msra.mxu2 %v3828_v48  ;;  %v12204_v10 = vpop.permute.xlu2 %4606  ;;  %v3925_v48 = vrot.slane %v3921_v49, 2  ;;  %v3617_v23 = vsel %vm2796_vm14, %v3612_v20, 0  ;;  %v4007_v20 = vld [vmem:[#allocation3 + $0x58] sm:$0xf0] }
 0x4ac   :  { %v4009_v11 = vpack.c.bf16 %v4007_v20, %v4007_v20  ;;  %v8342_v20 = vld [vmem:[#allocation3 + $0x10] sm:$0xf0] }
 0x4ad   :  { %v3928_v43 = vsel %vm2796_vm14, %v3925_v48, 0 }
 0x4b0   :  { %6662 = vrot.lane.b32.xlu0 %v6657_v1, %s10907_s6  ;;  %10154 = vmatmul.msk.bf16.vlgmr.msra.gmra.mxu1 %vm2792_vm15, %v12123_v19  ;;  %v7844_v1 = vld [vmem:[#allocation3 + $0x40] sm:$0xf] }
 0x4b1   :  { %7996 = vrot.lane.b32.xlu2 %v7989_v61, %s10908_s9  ;;  %3510 = vmatpush.bf16.msra.mxu1 %v3487_v32  ;;  %v12226_v61 = vpop.permute.xlu1 %9238  ;;  %v7847_v59 = vpack.c.bf16 %v7844_v1, %v7844_v1 }
 0x4b2   :  { %10165 = vmatmul.msk.bf16.vlgmr.msrb.gmra.mxu0 %vm2792_vm15, %v12042_v51  ;;  %14470 = vst [vmem:[#allocation30_spill] sm:$0xff] %v12226_v61  ;;  %v3652_v61 = vld [vmem:[#allocation3 + $0x30] sm:$0xf0] }
 0x4b3   :  { %3792 = vmatpush.bf16.msrb.mxu0 %v3780_v57  ;;  %v12219_v37 = vpop.permute.xlu2 %4719  ;;  %v3570_v57 = vpack.c.bf16 %v3568_v0, %v3568_v0 }
 0x4b5   :  { %v3575_v48 = vsel %vm2796_vm14, %v3570_v57, 0 }
 0x4b8   :  { %7712 = vrot.lane.b32.xlu0 %v7704_v5, %s10908_s9  ;;  %10160 = vmatmul.msk.bf16.vlgmr.msra.gmra.mxu3 %vm2792_vm15, %v12029_v14  ;;  %v8205_v5 = vrot.slane %v8199_v35, 2 }
 0x4b9   :  { %8109 = vrot.lane.b32.xlu2 %v8105_v26, %s10907_s6  ;;  %3640 = vmatpush.bf16.msra.mxu3 %v3617_v23  ;;  %v7987_v26 = vld [vmem:[#allocation3 + $0x98] sm:$0xf]  ;;  %v3698_v23 = vld [vmem:[#allocation3 + $0x70] sm:$0xf]  ;;  %v12250_v0 = vpop.permute.xlu1 %9351 }
 0x4ba   :  { %10171 = vmatmul.msk.bf16.vlgmr.msrb.gmra.mxu2 %vm2792_vm15, %v12123_v19  ;;  %14471 = vst [vmem:[#allocation31_spill] sm:$0xff] %v12250_v0  ;;  %v7990_v35 = vpack.c.bf16 %v7987_v26, %v7987_v26  ;;  %v3700_v57 = vpack.c.bf16 %v3698_v23, %v3698_v23  ;;  %v8062_v23 = vpack.c.bf16 %v8059_v13, %v8059_v13 }
 0x4bb   :  { %3940 = vmatpush.bf16.msrb.mxu2 %v3928_v43  ;;  %v12231_v32 = vpop.permute.xlu2 %4819 }
 0x4bc   :  { %v12233_v15 = vpop.f32.mrf.mxu2  ;;  %v3705_v63 = vsel %vm2796_vm14, %v3700_v57, 0 }
 0x4be   :  { %v12235_v49 = vpop.f32.mrf.mxu0 }
 0x4c0   :  { %7855 = vrot.lane.b32.xlu0 %v7847_v59, %s10908_s9  ;;  %10158 = vmatmul.msk.bf16.vlgmr.msrb.gmra.mxu1 %vm2792_vm15, %v11985_v58  ;;  %v8400_v59 = vld [vmem:[#allocation3 + $0xc0] sm:$0xf] }
 0x4c1   :  { %8209 = vrot.lane.b32.xlu2 %v8205_v5, %s10907_s6  ;;  %3598 = vmatpush.bf16.msrb.mxu1 %v3575_v48  ;;  %v4013_v48 = vrot.slane %v4009_v11, 2  ;;  %v8403_v47 = vpack.c.bf16 %v8400_v59, %v8400_v59  ;;  %v12264_v57 = vpop.permute.xlu1 %9503 }
 0x4c2   :  { %10169 = vmatmul.msk.bf16.vlgmr.msra.gmra.mxu0 %vm2792_vm15, %v12070_v8  ;;  %14472 = vst [vmem:[#allocation32_spill] sm:$0xff] %v12264_v57 }
 0x4c3   :  { %3894 = vmatpush.bf16.msra.mxu0 %v3882_v22  ;;  %v12248_v1 = vpop.permute.xlu2 %4965  ;;  %v3654_v22 = vpack.c.bf16 %v3652_v61, %v3652_v61  ;;  %v4016_v26 = vsel %vm2796_vm14, %v4013_v48, 0  ;;  %v8455_v48 = vld [vmem:[#allocation3 + $0xc0] sm:$0xf0] }
 0x4c4   :  { %v2870_v43 = vpop.f32.mrf.mxu2 }
 0x4c6   :  { %v2814_v5 = vpop.f32.mrf.mxu0 }
 0x4c7   :  { %v2871_v25 = vadd.f32 %v2870_v43, %v2814_v5  ;;  %v8345_v43 = vpack.c.bf16 %v8342_v20, %v8342_v20  ;;  %v3658_v5 = vrot.slane %v3654_v22, 2  ;;  %v8200_v22 = vpack.c.bf16 %v8197_v33, %v8197_v33 }
 0x4c8   :  { %7998 = vrot.lane.b32.xlu0 %v7990_v35, %s10908_s9  ;;  %10164 = vmatmul.msk.bf16.vlgmr.msrb.gmra.mxu3 %vm2792_vm15, %v12056_v41  ;;  %v3965_v35 = vld [vmem:[#allocation3 + $0x58] sm:$0xf] }
 0x4c9   :  { %8410 = vrot.lane.b32.xlu2 %v8403_v47, %s10910_s0  ;;  %3728 = vmatpush.bf16.msrb.mxu3 %v3705_v63  ;;  %v8106_v47 = vrot.slane %v8062_v23, 2  ;;  %v3967_v63 = vpack.c.bf16 %v3965_v35, %v3965_v35  ;;  %v8351_v0 = vrot.slane %v8345_v43, 2  ;;  %v3663_v13 = vsel %vm2796_vm14, %v3658_v5, 0  ;;  %v4099_v43 = vld [vmem:[#allocation3 + $0x28] sm:$0xf]  ;;  %v12280_v28 = vpop.permute.xlu1 %9701 }
 0x4ca   :  { %10179 = vmatmul.msk.bf16.vlgmr.msra.gmra.mxu2 %vm2792_vm15, %v11985_v58  ;;  %v8458_v23 = vpack.c.bf16 %v8455_v48, %v8455_v48  ;;  %v8206_v57 = vrot.slane %v8200_v22, 2  ;;  %v4101_v24 = vpack.c.bf16 %v4099_v43, %v4099_v43  ;;  %14473 = vst [vmem:[#allocation33_spill] sm:$0xff] %v12280_v28  ;;  %v8782_v22 = vld [vmem:[#allocation3 + $0xc0] sm:$0xf]  ;;  %v8343_v43 = vld [vmem:[#allocation3 + $0xb0] sm:$0xf0] }
 0x4cb   :  { %4028 = vmatpush.bf16.msra.mxu2 %v4016_v26  ;;  %v12260_v11 = vpop.permute.xlu2 %6015  ;;  %v3970_v20 = vsel %vm2796_vm14, %v3967_v63, 0  ;;  %v4055_v63 = vpack.c.bf16 %v4053_v45, %v4053_v45  ;;  %v8346_v45 = vpack.c.bf16 %v8343_v43, %v8343_v43  ;;  %v4228_v43 = vsel %vm215_vm2, %v11902_v40, %v12150_v3 }
 0x4cc   :  { %v12262_v59 = vpop.f32.mrf.mxu2  ;;  %v4231_v40 = vsel %vm2796_vm14, %v4228_v43, 0  ;;  %v4008_v43 = vld [vmem:[#allocation3 + $0x10] sm:$0xf0] }
 0x4ce   :  { %v12266_v61 = vpop.f32.mrf.mxu0 }
 0x4d0   :  { %8111 = vrot.lane.b32.xlu0 %v8106_v47, %s10907_s6  ;;  %10162 = vmatmul.msk.bf16.vlgmr.msra.gmra.mxu1 %vm2792_vm15, %v12013_v54  ;;  %v3826_v47 = vsel %vm215_vm2, %v12103_v38, %v3824_v21  ;;  %v8401_v38 = vld [vmem:[#allocation3 + $0x38] sm:$0xf]  ;;  %v3776_v21 = vpop.permute.xlu0 %3775 }
 0x4d1   :  { %8355 = vrot.lane.b32.xlu2 %v8351_v0, %s10909_s10  ;;  %3686 = vmatpush.bf16.msra.mxu1 %v3663_v13  ;;  %v8464_v13 = vrot.slane %v8458_v23, 2  ;;  %v3778_v23 = vsel %vm215_vm2, %v12119_v27, %v3776_v21  ;;  %v8352_v21 = vrot.slane %v8346_v45, 2  ;;  %v8837_v45 = vld [vmem:[#allocation3 + $0xc0] sm:$0xf0] }
 0x4d2   :  { %10177 = vmatmul.msk.bf16.vlgmr.msrb.gmra.mxu0 %vm2792_vm15, %v11999_v30  ;;  %v3831_v30 = vsel %vm2796_vm14, %v3826_v47, 0 }
 0x4d3   :  { %3982 = vmatpush.bf16.msrb.mxu0 %v3970_v20  ;;  %v12276_v26 = vpop.permute.xlu2 %6158 }
 0x4d4   :  { %v2998_v35 = vpop.f32.mrf.mxu2 }
 0x4d6   :  { %v2932_v5 = vpop.f32.mrf.mxu0 }
 0x4d7   :  { %v2951_v0 = vadd.f32 %v2932_v5, %v2871_v25  ;;  %v4104_v25 = vsel %vm2796_vm14, %v4101_v24, 0  ;;  %v4059_v5 = vrot.slane %v4055_v63, 2 }
 0x4d8   :  { %8211 = vrot.lane.b32.xlu0 %v8206_v57, %s10907_s6  ;;  %10168 = vmatmul.msk.bf16.vlgmr.msra.gmra.mxu3 %vm2792_vm15, %v12089_v39  ;;  %v8404_v57 = vpack.c.bf16 %v8401_v38, %v8401_v38 }
 0x4d9   :  { %v3017_v33 = vadd.f32 %v2998_v35, %v2951_v0  ;;  %8468 = vrot.lane.b32.xlu2 %v8464_v13, %s10910_s0  ;;  %3854 = vmatpush.bf16.msra.mxu3 %v3831_v30  ;;  %v3920_v35 = vld [vmem:[#allocation3 + $0xc0] sm:$0xf0]  ;;  %v8785_v0 = vpack.c.bf16 %v8782_v22, %v8782_v22  ;;  %v12301_v13 = vpop.permute.xlu1 %9646  ;;  %v4062_v27 = vsel %vm2796_vm14, %v4059_v5, 0  ;;  %v8456_v22 = vld [vmem:[#allocation3 + $0x38] sm:$0xf0] }
 0x4da   :  { %10183 = vmatmul.msk.bf16.vlgmr.msrb.gmra.mxu2 %vm2792_vm15, %v12013_v54  ;;  %v3783_v54 = vsel %vm2796_vm14, %v3778_v23, 0  ;;  %v3922_v24 = vpack.c.bf16 %v3920_v35, %v3920_v35  ;;  %14474 = vst [vmem:[#allocation34_spill] sm:$0xff] %v12301_v13 }
 0x4db   :  { %4116 = vmatpush.bf16.msrb.mxu2 %v4104_v25  ;;  %v12290_v48 = vpop.permute.xlu2 %6301  ;;  %v8895_v25 = vld [vmem:[#allocation3 + $0x10] sm:$0xf] }
 0x4dc   :  { %v12292_v20 = vpop.f32.mrf.mxu2  ;;  %v3926_v63 = vrot.slane %v3922_v24, 2 }
 0x4de   :  { %v3046_v47 = vpop.f32.mrf.mxu0  ;;  %v3931_v5 = vsel %vm2796_vm14, %v3926_v63, 0 }
 0x4e0   :  { %8412 = vrot.lane.b32.xlu0 %v8404_v57, %s10910_s0  ;;  %10166 = vmatmul.msk.bf16.vlgmr.msrb.gmra.mxu1 %vm2792_vm15, %v12042_v51  ;;  %v2869_v57 = vadd.f32 %v12233_v15, %v12235_v49 }
 0x4e1   :  { %8792 = vrot.lane.b32.xlu2 %v8785_v0, %s10910_s0  ;;  %3806 = vmatpush.bf16.msrb.mxu1 %v3783_v54  ;;  %v4141_v0 = vld [vmem:[#allocation3 + $0x28] sm:$0xf0]  ;;  %v8459_v54 = vpack.c.bf16 %v8456_v22, %v8456_v22  ;;  %v12326_v63 = vpop.permute.xlu1 %9814 }
 0x4e2   :  { %10181 = vmatmul.msk.bf16.vlgmr.msra.gmra.mxu0 %vm2792_vm15, %v12029_v14  ;;  %v8898_v14 = vpack.c.bf16 %v8895_v25, %v8895_v25  ;;  %v2949_v15 = vadd.f32 %v12266_v61, %v2869_v57  ;;  %v4143_v24 = vpack.c.bf16 %v4141_v0, %v4141_v0  ;;  %v8840_v25 = vpack.c.bf16 %v8837_v45, %v8837_v45 }
 0x4e3   :  { %4074 = vmatpush.bf16.msra.mxu0 %v4062_v27  ;;  %v12306_v30 = vpop.permute.xlu2 %6414  ;;  %14475 = vst [vmem:[#allocation35_spill] sm:$0xff] %v12326_v63 }
 0x4e4   :  { %v3102_v38 = vpop.f32.mrf.mxu2  ;;  %v3015_v22 = vadd.f32 %v12262_v59, %v2949_v15 }
 0x4e6   :  { %v3048_v23 = vpop.f32.mrf.mxu0 }
 0x4e7   :  { %v3067_v35 = vadd.f32 %v3048_v23, %v3017_v33  ;;  %v3878_v33 = vpop.permute.xlu0 %3877 }
 0x4e8   :  { %8357 = vrot.lane.b32.xlu0 %v8352_v21, %s10909_s10  ;;  %10172 = vmatmul.msk.bf16.vlgmr.msrb.gmra.mxu3 %vm2792_vm15, %v12123_v19  ;;  %v3880_v57 = vsel %vm215_vm2, %v12136_v29, %v3878_v33  ;;  %v8783_v29 = vld [vmem:[#allocation3 + $0x38] sm:$0xf] }
 0x4e9   :  { %v3121_v49 = vadd.f32 %v3102_v38, %v3067_v35  ;;  %8905 = vrot.lane.b32.xlu2 %v8898_v14, %s10910_s0  ;;  %3954 = vmatpush.bf16.msrb.mxu3 %v3931_v5  ;;  %v8465_v38 = vrot.slane %v8459_v54, 2  ;;  %v4147_v35 = vrot.slane %v4143_v24, 2  ;;  %v8846_v14 = vrot.slane %v8840_v25, 2  ;;  %v9285_v24 = vld [vmem:[#allocation3 + $0x10] sm:$0xf] }
 0x4ea   :  { %10187 = vmatmul.msk.bf16.vlgmr.msra.gmra.mxu2 %vm2792_vm15, %v12042_v51  ;;  %v3885_v0 = vsel %vm2796_vm14, %v3880_v57, 0  ;;  %v4010_v5 = vpack.c.bf16 %v4008_v43, %v4008_v43  ;;  %v3065_v54 = vadd.f32 %v3046_v47, %v3015_v22  ;;  %v8786_v33 = vpack.c.bf16 %v8783_v29, %v8783_v29  ;;  %v12344_v57 = vpop.permute.xlu1 %9759  ;;  %v8896_v29 = vld [vmem:[#allocation3 + $0xb0] sm:$0xf] }
 0x4eb   :  { %4243 = vmatpush.bf16.msra.mxu2 %v4231_v40  ;;  %v12322_v27 = vpop.permute.xlu2 %6514  ;;  %v12324_v21 = vpop.f32.mrf.mxu3  ;;  %v4150_v59 = vsel %vm2796_vm14, %v4147_v35, 0  ;;  %14476 = vst [vmem:[#allocation36_spill] sm:$0xff] %v12344_v57 }
 0x4ec   :  { %v3216_v61 = vpop.f32.mrf.mxu2  ;;  %v4014_v25 = vrot.slane %v4010_v5, 2  ;;  %v9227_v5 = vld [vmem:[#allocation3 + $0xc0] sm:$0xf0] }
 0x4ed   :  { %v12331_v23 = vpop.f32.mrf.mxu1 }
 0x4ee   :  { %v3166_v51 = vpop.f32.mrf.mxu0 }
 0x4f0   :  { %8470 = vrot.lane.b32.xlu0 %v8465_v38, %s10910_s0  ;;  %10170 = vmatmul.msk.bf16.vlgmr.msra.gmra.mxu1 %vm2792_vm15, %v12070_v8  ;;  %v3119_v38 = vadd.f32 %v12292_v20, %v3065_v54 }
 0x4f1   :  { %8850 = vrot.lane.b32.xlu2 %v8846_v14, %s10910_s0  ;;  %3908 = vmatpush.bf16.msra.mxu1 %v3885_v0  ;;  %v9288_v14 = vpack.c.bf16 %v9285_v24, %v9285_v24  ;;  %v4019_v0 = vsel %vm2796_vm14, %v4014_v25, 0 }
 0x4f2   :  { %10185 = vmatmul.msk.bf16.vlgmr.msrb.gmra.mxu0 %vm2792_vm15, %v12056_v41  ;;  %v4324_v41 = vsel %vm346_vm3, %v11906_v36, %v12163_v53  ;;  %v3185_v20 = vadd.f32 %v3166_v51, %v3119_v38  ;;  %v8899_v51 = vpack.c.bf16 %v8896_v29, %v8896_v29  ;;  %v8838_v38 = vld [vmem:[#allocation3 + $0x38] sm:$0xf0] }
 0x4f3   :  { %4162 = vmatpush.bf16.msrb.mxu0 %v4150_v59  ;;  %v12341_v45 = vpop.permute.xlu2 %6660  ;;  %v2884_v15 = vpop.f32.mrf.mxu3  ;;  %v3966_v59 = vld [vmem:[#allocation3 + $0x10] sm:$0xf] }
 0x4f4   :  { %v3218_v40 = vpop.f32.mrf.mxu2  ;;  %v3235_v24 = vadd.f32 %v3216_v61, %v3185_v20  ;;  %v9340_v20 = vld [vmem:[#allocation3 + $0x10] sm:$0xf0] }
 0x4f5   :  { %v2828_v47 = vpop.f32.mrf.mxu1 }
 0x4f6   :  { %v3168_v22 = vpop.f32.mrf.mxu0  ;;  %v2885_v43 = vadd.f32 %v2884_v15, %v2828_v47  ;;  %v4327_v15 = vsel %vm2796_vm14, %v4324_v41, 0 }
 0x4f7   :  { %v3187_v35 = vadd.f32 %v3168_v22, %v3121_v49  ;;  %v4273_v22 = vsel %vm215_vm2, %v11915_v4, %v12175_v55  ;;  %v4100_v4 = vld [vmem:[#allocation3 + $0x70] sm:$0xf] }
 0x4f8   :  { %8794 = vrot.lane.b32.xlu0 %v8786_v33, %s10910_s0  ;;  %10180 = vmatmul.msk.bf16.vlgmr.msra.gmra.mxu3 %vm2792_vm15, %v11985_v58  ;;  %v9230_v58 = vpack.c.bf16 %v9227_v5, %v9227_v5  ;;  %v8841_v5 = vpack.c.bf16 %v8838_v38, %v8838_v38 }
 0x4f9   :  { %v3237_v54 = vadd.f32 %v3218_v40, %v3187_v35  ;;  %9295 = vrot.lane.b32.xlu2 %v9288_v14, %s10910_s0  ;;  %4042 = vmatpush.bf16.msra.mxu3 %v4019_v0  ;;  %v3968_v40 = vpack.c.bf16 %v3966_v59, %v3966_v59  ;;  %v4406_v35 = vld [vmem:[#allocation3 + $0x58] sm:$0xf0]  ;;  %v12368_v14 = vpop.permute.xlu1 %3295  ;;  %v12371_v0 = vld [vmem:[#allocation12 + $0x8] sm:$0xff]  ;;  %v4276_v59 = vsel %vm2796_vm14, %v4273_v22, 0 }
 0x4fa   :  { %10191 = vmatmul.msk.bf16.vlgmr.msrb.gmra.mxu2 %vm2792_vm15, %v12070_v8  ;;  %v9236_v41 = vrot.slane %v9230_v58, 2  ;;  %v8847_v38 = vrot.slane %v8841_v5, 2 }
 0x4fb   :  { %4339 = vmatpush.bf16.msrb.mxu2 %v4327_v15  ;;  %v12357_v36 = vpop.permute.xlu2 %7710  ;;  %v12359_v49 = vpop.f32.mrf.mxu3  ;;  %v3973_v61 = vsel %vm2796_vm14, %v3968_v40, 0  ;;  %v4408_v15 = vpack.c.bf16 %v4406_v35, %v4406_v35  ;;  %v9343_v40 = vpack.c.bf16 %v9340_v20, %v9340_v20  ;;  %v12388_v35 = vld [vmem:[#allocation12 + $0x18] sm:$0xff] }
 0x4fd   :  { %v12361_v33 = vpop.f32.mrf.mxu2  ;;  %v12363_v25 = vpop.f32.mrf.mxu1  ;;  %v4412_v63 = vrot.slane %v4408_v15, 2  ;;  %v9349_v13 = vrot.slane %v9343_v40, 2  ;;  %v9495_v40 = vld [vmem:[#allocation3 + $0x68] sm:$0xf] }
 0x4ff   :  { %v3270_v47 = vpop.f32.mrf.mxu0 }
 0x500   :  { %v3289_v8 = vadd.f32 %v3270_v47, %v3235_v24  ;;  %8907 = vrot.lane.b32.xlu0 %v8899_v51, %s10910_s0  ;;  %10178 = vmatmul.msk.bf16.vlgmr.msrb.gmra.mxu1 %vm2792_vm15, %v12371_v0  ;;  %v4102_v47 = vpack.c.bf16 %v4100_v4, %v4100_v4 }
 0x501   :  { %9240 = vrot.lane.b32.xlu2 %v9236_v41, %s10910_s0  ;;  %3996 = vmatpush.bf16.msrb.mxu1 %v3973_v61  ;;  %v4054_v41 = vld [vmem:[#allocation3 + $0x30] sm:$0xf0] }
 0x502   :  { %v3303_v29 = vadd.f32 %v12368_v14, %v3289_v8  ;;  %10189 = vmatmul.msk.bf16.vlgmr.msra.gmra.mxu0 %vm2792_vm15, %v12089_v39  ;;  %v4107_v20 = vsel %vm2796_vm14, %v4102_v47, 0  ;;  %v4056_v5 = vpack.c.bf16 %v4054_v41, %v4054_v41 }
 0x503   :  { %4288 = vmatpush.bf16.msra.mxu0 %v4276_v59  ;;  %v12381_v58 = vpop.permute.xlu2 %7853  ;;  %v3012_v51 = vpop.f32.mrf.mxu3 }
 0x504   :  { %10544 = vtanh.f32 %v3303_v29  ;;  %14477 = vst [vmem:[#allocation37_spill] sm:$0xff] %v12381_v58  ;;  %v4144_v58 = vpack.c.bf16 %v4142_v31, %v4142_v31 }
 0x505   :  { %v12383_v24 = vpop.f32.mrf.mxu2  ;;  %v2946_v8 = vpop.f32.mrf.mxu1 }
 0x506   :  { %v2952_v61 = vadd.f32 %v2946_v8, %v2885_v43  ;;  %v9286_v43 = vld [vmem:[#allocation3 + $0xb0] sm:$0xf]  ;;  %v9228_v8 = vld [vmem:[#allocation3 + $0x38] sm:$0xf0] }
 0x507   :  { %v3272_v57 = vpop.f32.mrf.mxu0 }
 0x508   :  { %v12385_v22 = vadd.f32 %v3272_v57, %v3237_v54  ;;  %v3018_v39 = vadd.f32 %v3012_v51, %v2952_v61  ;;  %8852 = vrot.lane.b32.xlu0 %v8847_v38, %s10910_s0  ;;  %10184 = vmatmul.msk.bf16.vlgmr.msrb.gmra.mxu3 %vm2792_vm15, %v12388_v35  ;;  %v4415_v54 = vsel %vm2796_vm14, %v4412_v63, 0  ;;  %v9289_v51 = vpack.c.bf16 %v9286_v43, %v9286_v43 }
 0x509   :  { %9353 = vrot.lane.b32.xlu2 %v9349_v13, %s10910_s0  ;;  %4130 = vmatpush.bf16.msrb.mxu3 %v4107_v20  ;;  %v4364_v13 = vld [vmem:[#allocation3 + $0x58] sm:$0xf]  ;;  %v4060_v38 = vrot.slane %v4056_v5, 2  ;;  %v9498_v61 = vpack.c.bf16 %v9495_v40, %v9495_v40  ;;  %v4227_v5 = vpop.permute.xlu0 %4226 }
 0x50a   :  { %v10545_v29 = vpop.eup %10544  ;;  %10199 = vmatmul.msk.bf16.vlgmr.msra.gmra.mxu2 %vm2792_vm15, %v12371_v0  ;;  %v4366_v41 = vpack.c.bf16 %v4364_v13, %v4364_v13  ;;  %v12413_v20 = vld [vmem:[#allocation12 + $0x10] sm:$0xff] }
 0x50b   :  { %v3311_v57 = vsel %vm11189_vm10, %v10545_v29, 0.0  ;;  %4427 = vmatpush.bf16.msra.mxu2 %v4415_v54  ;;  %v12402_v4 = vpop.permute.xlu2 %7996  ;;  %v12404_v59 = vpop.f32.mrf.mxu3  ;;  %v4065_v29 = vsel %vm2796_vm14, %v4060_v38, 0  ;;  %v4229_v38 = vsel %vm215_vm2, %v12150_v3, %v4227_v5 }
 0x50c   :  { %3315 = vst [vmem:[%s14419_s8] sm:$0xff] %v3311_v57  ;;  %v9231_v57 = vpack.c.bf16 %v9228_v8, %v9228_v8  ;;  %v4369_v43 = vsel %vm2796_vm14, %v4366_v41, 0  ;;  %v4234_v41 = vsel %vm2796_vm14, %v4229_v38, 0 }
 0x50d   :  { %14478 = vst [vmem:[#allocation38_spill] sm:$0xff] %v12402_v4  ;;  %v12406_v15 = vpop.f32.mrf.mxu2  ;;  %v12408_v47 = vpop.f32.mrf.mxu1 }
 0x50e   :  { %v9237_v28 = vrot.slane %v9231_v57, 2  ;;  %v12429_v57 = vld [vmem:[#allocation12 + $0x28] sm:$0xff] }
 0x50f   :  { %v12410_v63 = vpop.f32.mrf.mxu0 }
 0x510   :  { %9297 = vrot.lane.b32.xlu0 %v9289_v51, %s10910_s0  ;;  %10182 = vmatmul.msk.bf16.vlgmr.msra.gmra.mxu1 %vm2792_vm15, %v12413_v20  ;;  %v4507_v51 = vld [vmem:[#allocation3 + $0x28] sm:$0xf] }
 0x511   :  { %9505 = vrot.lane.b32.xlu2 %v9498_v61, %s10908_s9  ;;  %4088 = vmatpush.bf16.msra.mxu1 %v4065_v29  ;;  %v9341_v61 = vld [vmem:[#allocation3 + $0xb0] sm:$0xf0]  ;;  %v4509_v4 = vpack.c.bf16 %v4507_v51, %v4507_v51  ;;  %v4148_v51 = vrot.slane %v4144_v58, 2  ;;  %v9496_v58 = vld [vmem:[#allocation3 + $0x40] sm:$0xf] }
 0x512   :  { %10193 = vmatmul.msk.bf16.vlgmr.msrb.gmra.mxu0 %vm2792_vm15, %v12123_v19  ;;  %v9696_v19 = vpack.c.bf16 %v9693_v12, %v9693_v12  ;;  %v9344_v3 = vpack.c.bf16 %v9341_v61, %v9341_v61  ;;  %v2883_v12 = vadd.f32 %v12324_v21, %v12331_v23  ;;  %v4467_v21 = vsel %vm566_vm5, %v11920_v62, %v12189_v17 }
 0x513   :  { %4381 = vmatpush.bf16.msrb.mxu0 %v4369_v43  ;;  %v12422_v54 = vpop.permute.xlu2 %8109  ;;  %v3116_v13 = vpop.f32.mrf.mxu3  ;;  %v4470_v62 = vsel %vm2796_vm14, %v4467_v21, 0 }
 0x514   :  { %14479 = vst [vmem:[#allocation39_spill] sm:$0xff] %v12422_v54  ;;  %v9350_v5 = vrot.slane %v9344_v3, 2  ;;  %v9499_v3 = vpack.c.bf16 %v9496_v58, %v9496_v58 }
 0x515   :  { %v3458_v40 = vpop.f32.mrf.mxu2  ;;  %v3062_v8 = vpop.f32.mrf.mxu1 }
 0x516   :  { %v3068_v29 = vadd.f32 %v3062_v8, %v3018_v39  ;;  %v2950_v39 = vadd.f32 %v12363_v25, %v2883_v12  ;;  %v4153_v25 = vsel %vm2796_vm14, %v4148_v51, 0  ;;  %v9806_v12 = vld [vmem:[#allocation3 + $0xc0] sm:$0xf] }
 0x517   :  { %v3407_v50 = vpop.f32.mrf.mxu0 }
 0x518   :  { %v3408_v43 = vadd.f32 %v3407_v50, %v12383_v24  ;;  %v3122_v54 = vadd.f32 %v3116_v13, %v3068_v29  ;;  %9242 = vrot.lane.b32.xlu0 %v9237_v28, %s10910_s0  ;;  %10188 = vmatmul.msk.bf16.vlgmr.msra.gmra.mxu3 %vm2792_vm15, %v12429_v57  ;;  %v4512_v50 = vsel %vm2796_vm14, %v4509_v4, 0  ;;  %v9638_v13 = vld [vmem:[#allocation3 + $0x8] sm:$0xf]  ;;  %v4323_v4 = vpop.permute.xlu0 %4322  ;;  %v3016_v61 = vadd.f32 %v12359_v49, %v2950_v39 }
 0x519   :  { %9703 = vrot.lane.b32.xlu2 %v9696_v19, %s10910_s0  ;;  %4257 = vmatpush.bf16.msra.mxu3 %v4234_v41  ;;  %v12451_v29 = vld [vmem:[#allocation12 + $0x20] sm:$0xff] }
 0x51a   :  { %v3477_v31 = vadd.f32 %v3458_v40, %v3408_v43  ;;  %10203 = vmatmul.msk.bf16.vlgmr.msrb.gmra.mxu2 %vm2792_vm15, %v12413_v20  ;;  %v9641_v40 = vpack.c.bf16 %v9638_v13, %v9638_v13  ;;  %v3066_v19 = vadd.f32 %v12408_v47, %v3016_v61  ;;  %v12459_v41 = vld [vmem:[#allocation12] sm:$0xff]  ;;  %v4610_v47 = vsel %vm566_vm5, %v11928_v16, %v12204_v10 }
 0x51b   :  { %4524 = vmatpush.bf16.msrb.mxu2 %v4512_v50  ;;  %v12439_v28 = vpop.permute.xlu2 %8209  ;;  %v3230_v24 = vpop.f32.mrf.mxu3  ;;  %v4325_v50 = vsel %vm346_vm3, %v12163_v53, %v4323_v4  ;;  %v4549_v61 = vld [vmem:[#allocation3 + $0x28] sm:$0xf0]  ;;  %v12473_v53 = vld [vmem:[#allocation12 + $0x38] sm:$0xff]  ;;  %v9694_v16 = vld [vmem:[#allocation3 + $0xb0] sm:$0xf] }
 0x51c   :  { %v3120_v13 = vadd.f32 %v12404_v59, %v3066_v19  ;;  %v9748_v59 = vld [vmem:[#allocation3 + $0x10] sm:$0xf0]  ;;  %v4551_v19 = vpack.c.bf16 %v4549_v61, %v4549_v61 }
 0x51d   :  { %v3180_v38 = vpop.f32.mrf.mxu1  ;;  %v12442_v8 = vpop.f32.mrf.mxu2 }
 0x51f   :  { %v12447_v23 = vpop.f32.mrf.mxu0 }
 0x520   :  { %9355 = vrot.lane.b32.xlu0 %v9350_v5, %s10910_s0  ;;  %10186 = vmatmul.msk.bf16.vlgmr.msrb.gmra.mxu1 %vm2792_vm15, %v12451_v29  ;;  %v4272_v4 = vpop.permute.xlu0 %4271 }
 0x521   :  { %9648 = vrot.lane.b32.xlu2 %v9641_v40, %s10908_s9  ;;  %4176 = vmatpush.bf16.msrb.mxu1 %v4153_v25  ;;  %v9809_v40 = vpack.c.bf16 %v9806_v12, %v9806_v12  ;;  %v4330_v25 = vsel %vm2796_vm14, %v4325_v50, 0  ;;  %v9751_v12 = vpack.c.bf16 %v9748_v59, %v9748_v59 }
 0x522   :  { %10201 = vmatmul.msk.bf16.vlgmr.msra.gmra.mxu0 %vm2792_vm15, %v12459_v41 }
 0x523   :  { %4482 = vmatpush.bf16.msra.mxu0 %v4470_v62  ;;  %v12463_v49 = vpop.permute.xlu2 %8410  ;;  %v3232_v43 = vpop.f32.mrf.mxu3  ;;  %v3186_v62 = vadd.f32 %v3180_v38, %v3120_v13  ;;  %v3406_v38 = vadd.f32 %v12410_v63, %v12361_v33  ;;  %v4274_v13 = vsel %vm215_vm2, %v12175_v55, %v4272_v4  ;;  %v9757_v61 = vrot.slane %v9751_v12, 2 }
 0x524   :  { %14480 = vst [vmem:[#allocation40_spill] sm:$0xff] %v12463_v49 }
 0x525   :  { %v3182_v39 = vpop.f32.mrf.mxu1  ;;  %v3546_v5 = vpop.f32.mrf.mxu2  ;;  %v3236_v50 = vadd.f32 %v3230_v24, %v3186_v62  ;;  %v3475_v33 = vadd.f32 %v12406_v15, %v3406_v38  ;;  %v12493_v24 = vld [vmem:[#allocation12 + $0x30] sm:$0xff] }
 0x526   :  { %v3188_v51 = vadd.f32 %v3182_v39, %v3122_v54  ;;  %v4613_v54 = vsel %vm2796_vm14, %v4610_v47, 0  ;;  %v9697_v39 = vpack.c.bf16 %v9694_v16, %v9694_v16  ;;  %v9639_v15 = vld [vmem:[#allocation3 + $0x98] sm:$0xf] }
 0x527   :  { %v3500_v21 = vpop.f32.mrf.mxu0  ;;  %v3517_v62 = vadd.f32 %v12447_v23, %v3475_v33  ;;  %v9642_v4 = vpack.c.bf16 %v9639_v15, %v9639_v15  ;;  %v4723_v23 = vsel %vm419_vm4, %v11935_v34, %v12219_v37 }
 0x528   :  { %v3519_v58 = vadd.f32 %v3500_v21, %v3477_v31  ;;  %v3238_v49 = vadd.f32 %v3232_v43, %v3188_v51  ;;  %9507 = vrot.lane.b32.xlu0 %v9499_v3, %s10908_s9  ;;  %10192 = vmatmul.msk.bf16.vlgmr.msrb.gmra.mxu3 %vm2792_vm15, %v12473_v53  ;;  %v4407_v21 = vld [vmem:[#allocation3 + $0x10] sm:$0xf0] }
 0x529   :  { %9816 = vrot.lane.b32.xlu2 %v9809_v40, %s10911_s11  ;;  %4353 = vmatpush.bf16.msrb.mxu3 %v4330_v25  ;;  %v4279_v25 = vsel %vm2796_vm14, %v4274_v13, 0  ;;  %v4409_v55 = vpack.c.bf16 %v4407_v21, %v4407_v21  ;;  %v2763_v13 = vld [vmem:[#allocation14 + $0x8] sm:$0xff] }
 0x52a   :  { %v3565_v31 = vadd.f32 %v3546_v5, %v3519_v58  ;;  %10207 = vmatmul.msk.bf16.vlgmr.msra.gmra.mxu2 %vm2792_vm15, %v12451_v29  ;;  %v4555_v5 = vrot.slane %v4551_v19, 2 }
 0x52b   :  { %4625 = vmatpush.bf16.msra.mxu2 %v4613_v54  ;;  %v12483_v43 = vpop.permute.xlu2 %8355  ;;  %v12485_v3 = vpop.f32.mrf.mxu3  ;;  %v4413_v38 = vrot.slane %v4409_v55, 2  ;;  %v4673_v55 = vld [vmem:[#allocation3 + $0x60] sm:$0xf] }
 0x52c   :  { %v4558_v59 = vsel %vm2796_vm14, %v4555_v5, 0  ;;  %v4365_v5 = vld [vmem:[#allocation3 + $0x10] sm:$0xf] }
 0x52d   :  { %v3284_v51 = vpop.f32.mrf.mxu1  ;;  %v3628_v47 = vpop.f32.mrf.mxu2 }
 0x52e   :  { %v3290_v63 = vadd.f32 %v3284_v51, %v3236_v50  ;;  %v3563_v50 = vadd.f32 %v12442_v8, %v3517_v62  ;;  %v4367_v62 = vpack.c.bf16 %v4365_v5, %v4365_v5 }
 0x52f   :  { %v3586_v40 = vpop.f32.mrf.mxu0 }
 0x530   :  { %v3304_v58 = vadd.f32 %v12368_v14, %v3290_v63  ;;  %9705 = vrot.lane.b32.xlu0 %v9697_v39, %s10910_s0  ;;  %10190 = vmatmul.msk.bf16.vlgmr.msra.gmra.mxu1 %vm2792_vm15, %v12493_v24  ;;  %v4418_v63 = vsel %vm2796_vm14, %v4413_v38, 0  ;;  %v3605_v34 = vadd.f32 %v3586_v40, %v3563_v50  ;;  %v9749_v38 = vld [vmem:[#allocation3 + $0xb0] sm:$0xf0]  ;;  %v4372_v50 = vsel %vm2796_vm14, %v4367_v62, 0 }
 0x531   :  { %9761 = vrot.lane.b32.xlu2 %v9757_v61, %s10910_s0  ;;  %4302 = vmatpush.bf16.msra.mxu1 %v4279_v25  ;;  %v4726_v61 = vsel %vm2796_vm14, %v4723_v23, 0  ;;  %v4823_v62 = vsel %vm419_vm4, %v11941_v2, %v12231_v32 }
 0x532   :  { %10546 = vtanh.f32 %v3304_v58  ;;  %10205 = vmatmul.msk.bf16.vlgmr.msrb.gmra.mxu0 %vm2792_vm15, %v12388_v35 }
 0x533   :  { %4570 = vmatpush.bf16.msrb.mxu0 %v4558_v59  ;;  %v12502_v16 = vpop.permute.xlu2 %8468  ;;  %v3376_v54 = vpop.f32.mrf.mxu3 }
 0x534   :  { %14481 = vst [vmem:[#allocation41_spill] sm:$0xff] %v12502_v16 }
 0x535   :  { %v3286_v19 = vpop.f32.mrf.mxu1  ;;  %v3630_v12 = vpop.f32.mrf.mxu2 }
 0x536   :  { %v12505_v39 = vadd.f32 %v3286_v19, %v3238_v49  ;;  %v9807_v49 = vld [vmem:[#allocation3 + $0x38] sm:$0xf]  ;;  %v3647_v19 = vadd.f32 %v3628_v47, %v3605_v34 }
 0x537   :  { %v3588_v51 = vpop.f32.mrf.mxu0  ;;  %v9810_v15 = vpack.c.bf16 %v9807_v49, %v9807_v49 }
 0x538   :  { %v10547_v21 = vpop.eup %10546  ;;  %v3607_v33 = vadd.f32 %v3588_v51, %v3565_v31  ;;  %9650 = vrot.lane.b32.xlu0 %v9642_v4, %s10908_s9  ;;  %10200 = vmatmul.msk.bf16.vlgmr.msra.gmra.mxu3 %vm2792_vm15, %v12371_v0  ;;  %v9752_v51 = vpack.c.bf16 %v9749_v38, %v9749_v38  ;;  %v4759_v38 = vld [vmem:[#allocation3 + $0x60] sm:$0xf0] }
 0x539   :  { %v3312_v8 = vsel %vm11193_vm11, %v10547_v21, 0.0  ;;  %3300 = vperm.xlu2 %10543, %v2763_v13   ;;  %4441 = vmatpush.bf16.msra.mxu3 %v4418_v63  ;;  %v4675_v13 = vpack.c.bf16 %v4673_v55, %v4673_v55  ;;  %v4508_v21 = vld [vmem:[#allocation3 + $0x70] sm:$0xf]  ;;  %v4761_v2 = vpack.c.bf16 %v4759_v38, %v4759_v38 }
 0x53a   :  { %3316 = vst [vmem:[%s14419_s8 + $0x8] sm:$0xff] %v3312_v8  ;;  %v3649_v31 = vadd.f32 %v3630_v12, %v3607_v33  ;;  %10211 = vmatmul.msk.bf16.vlgmr.msrb.gmra.mxu2 %vm2792_vm15, %v12493_v24  ;;  %v12529_v12 = vld [vmem:[#allocation12 + $0x40] sm:$0xff]  ;;  %v9758_v5 = vrot.slane %v9752_v51, 2 }
 0x53b   :  { %4738 = vmatpush.bf16.msrb.mxu2 %v4726_v61  ;;  %v12522_v25 = vpop.permute.xlu2 %8792  ;;  %v12524_v58 = vpop.f32.mrf.mxu3  ;;  %v4678_v47 = vsel %vm2796_vm14, %v4675_v13, 0  ;;  %v4510_v61 = vpack.c.bf16 %v4508_v21, %v4508_v21 }
 0x53c   :  { %14482 = vst [vmem:[#allocation42_spill] sm:$0xff] %v12522_v25 }
 0x53d   :  { %v12526_v59 = vpop.f32.mrf.mxu1  ;;  %v3716_v4 = vpop.f32.mrf.mxu2 }
 0x53f   :  { %v3674_v23 = vpop.f32.mrf.mxu0 }
 0x540   :  { %v3693_v40 = vadd.f32 %v3674_v23, %v3647_v19  ;;  %9818 = vrot.lane.b32.xlu0 %v9810_v15, %s10911_s11  ;;  %10194 = vmatmul.msk.bf16.vlgmr.msrb.gmra.mxu1 %vm2792_vm15, %v12529_v12  ;;  %v4466_v19 = vpop.permute.xlu0 %4465 }
 0x541   :  { %4395 = vmatpush.bf16.msrb.mxu1 %v4372_v50 }
 0x542   :  { %v3735_v33 = vadd.f32 %v3716_v4, %v3693_v40  ;;  %10209 = vmatmul.msk.bf16.vlgmr.msra.gmra.mxu0 %vm2792_vm15, %v12429_v57  ;;  %v4515_v40 = vsel %vm2796_vm14, %v4510_v61, 0 }
 0x543   :  { %4690 = vmatpush.bf16.msra.mxu0 %v4678_v47  ;;  %v12537_v63 = vpop.permute.xlu2 %8905  ;;  %v3472_v8 = vpop.f32.mrf.mxu3 }
 0x544   :  { %14483 = vst [vmem:[#allocation43_spill] sm:$0xff] %v12537_v63  ;;  %v3739_v49 = vadd.f32 %v3735_v33, %v12368_v14  ;;  %v4468_v33 = vsel %vm566_vm5, %v12189_v17, %v4466_v19 }
 0x545   :  { %v3421_v34 = vpop.f32.mrf.mxu1  ;;  %v3718_v55 = vpop.f32.mrf.mxu2 }
 0x546   :  { %10548 = vtanh.f32 %v3739_v49  ;;  %v3422_v15 = vadd.f32 %v3421_v34, %v3376_v54  ;;  %v4826_v54 = vsel %vm2796_vm14, %v4823_v62, 0  ;;  %v4905_v34 = vld [vmem:[#allocation3 + $0xe8] sm:$0xf0] }
 0x547   :  { %v3676_v4 = vpop.f32.mrf.mxu0  ;;  %v4907_v62 = vpack.c.bf16 %v4905_v34, %v4905_v34 }
 0x548   :  { %v3695_v13 = vadd.f32 %v3676_v4, %v3649_v31  ;;  %v12543_v23 = vadd.f32 %v3472_v8, %v3422_v15  ;;  %9763 = vrot.lane.b32.xlu0 %v9758_v5, %s10910_s0  ;;  %10204 = vmatmul.msk.bf16.vlgmr.msrb.gmra.mxu3 %vm2792_vm15, %v12413_v20  ;;  %v4765_v5 = vrot.slane %v4761_v2, 2  ;;  %v4609_v17 = vpop.permute.xlu0 %4608 }
 0x549   :  { %4538 = vmatpush.bf16.msrb.mxu3 %v4515_v40  ;;  %v4611_v19 = vsel %vm566_vm5, %v12204_v10, %v4609_v17  ;;  %v4911_v2 = vrot.slane %v4907_v62, 2  ;;  %v3420_v17 = vadd.f32 %v12526_v59, %v12485_v3 }
 0x54a   :  { %v12550_v50 = vadd.f32 %v3718_v55, %v3695_v13  ;;  %10215 = vmatmul.msk.bf16.vlgmr.msra.gmra.mxu2 %vm2792_vm15, %v12529_v12  ;;  %v4473_v55 = vsel %vm2796_vm14, %v4468_v33, 0  ;;  %v4768_v15 = vsel %vm2796_vm14, %v4765_v5, 0  ;;  %v4616_v33 = vsel %vm2796_vm14, %v4611_v19, 0 }
 0x54b   :  { %4838 = vmatpush.bf16.msra.mxu2 %v4826_v54  ;;  %v12554_v31 = vpop.permute.xlu2 %8850  ;;  %v3558_v51 = vpop.f32.mrf.mxu3  ;;  %v4550_v54 = vld [vmem:[#allocation3 + $0x70] sm:$0xf0]  ;;  %v4914_v10 = vsel %vm2796_vm14, %v4911_v2, 0 }
 0x54c   :  { %14484 = vst [vmem:[#allocation44_spill] sm:$0xff] %v12554_v31  ;;  %v10549_v21 = vpop.eup %10548 }
 0x54d   :  { %v3747_v47 = vsel %vm11189_vm10, %v10549_v21, 0.0  ;;  %v3512_v8 = vpop.f32.mrf.mxu1  ;;  %v12560_v49 = vpop.f32.mrf.mxu2 }
 0x54e   :  { %10173 = vst [vmem:[%s14419_s8 + $0x20] sm:$0xff] %v3747_v47  ;;  %v4552_v47 = vpack.c.bf16 %v4550_v54, %v4550_v54 }
 0x54f   :  { %v12565_v61 = vpop.f32.mrf.mxu0 }
 0x550   :  { %10202 = vmatmul.msk.bf16.vlgmr.msra.gmra.mxu1 %vm2792_vm15, %v12459_v41 }
 0x551   :  { %4496 = vmatpush.bf16.msra.mxu1 %v4473_v55  ;;  %v4863_v55 = vld [vmem:[#allocation3 + $0xe8] sm:$0xf] }
 0x552   :  { %10213 = vmatmul.msk.bf16.vlgmr.msrb.gmra.mxu0 %vm2792_vm15, %v12473_v53 }
 0x553   :  { %4780 = vmatpush.bf16.msrb.mxu0 %v4768_v15  ;;  %v12573_v4 = vpop.permute.xlu2 %9295  ;;  %v12575_v38 = vpop.f32.mrf.mxu3  ;;  %v4556_v15 = vrot.slane %v4552_v47, 2 }
 0x554   :  { %14485 = vst [vmem:[#allocation45_spill] sm:$0xff] %v12573_v4  ;;  %v4865_v4 = vpack.c.bf16 %v4863_v55, %v4863_v55  ;;  %v5009_v55 = vld [vmem:[#allocation3 + $0x90] sm:$0xf] }
 0x555   :  { %v12579_v13 = vpop.f32.mrf.mxu1  ;;  %v12581_v40 = vpop.f32.mrf.mxu2  ;;  %v4561_v2 = vsel %vm2796_vm14, %v4556_v15, 0 }
 0x556   :  { %v4868_v3 = vsel %vm2796_vm14, %v4865_v4, 0 }
 0x557   :  { %v12583_v21 = vpop.f32.mrf.mxu0 }
 0x558   :  { %10208 = vmatmul.msk.bf16.vlgmr.msra.gmra.mxu3 %vm2792_vm15, %v12451_v29 }
 0x559   :  { %4639 = vmatpush.bf16.msra.mxu3 %v4616_v33  ;;  %v3476_v33 = vadd.f32 %v12524_v58, %v3420_v17 }
 0x55a   :  { %10223 = vmatmul.msk.bf16.vlgmr.msrb.gmra.mxu2 %vm2792_vm15, %v12459_v41 }
 0x55b   :  { %4926 = vmatpush.bf16.msrb.mxu2 %v4914_v10  ;;  %v12591_v5 = vpop.permute.xlu2 %9240  ;;  %v3642_v34 = vpop.f32.mrf.mxu3 }
 0x55c   :  { %14486 = vst [vmem:[#allocation46_spill] sm:$0xff] %v12591_v5  ;;  %v4722_v10 = vpop.permute.xlu0 %4721  ;;  %v3518_v5 = vadd.f32 %v3512_v8, %v3476_v33  ;;  %v5011_v8 = vpack.c.bf16 %v5009_v55, %v5009_v55 }
 0x55d   :  { %v3600_v62 = vpop.f32.mrf.mxu1  ;;  %v12595_v19 = vpop.f32.mrf.mxu2  ;;  %v4724_v58 = vsel %vm419_vm4, %v12219_v37, %v4722_v10 }
 0x55e   :  { %v4729_v31 = vsel %vm2796_vm14, %v4724_v58, 0  ;;  %v5014_v37 = vsel %vm2796_vm14, %v5011_v8, 0 }
 0x55f   :  { %v12597_v54 = vpop.f32.mrf.mxu0 }
 0x560   :  { %10206 = vmatmul.msk.bf16.vlgmr.msrb.gmra.mxu1 %vm2792_vm15, %v12388_v35 }
 0x561   :  { %4584 = vmatpush.bf16.msrb.mxu1 %v4561_v2  ;;  %v3564_v2 = vadd.f32 %v3558_v51, %v3518_v5 }
 0x562   :  { %10221 = vmatmul.msk.bf16.vlgmr.msra.gmra.mxu0 %vm2792_vm15, %v12371_v0 }
 0x563   :  { %4880 = vmatpush.bf16.msra.mxu0 %v4868_v3  ;;  %v12606_v59 = vpop.permute.xlu2 %9353  ;;  %v12608_v47 = vpop.f32.mrf.mxu3  ;;  %v3606_v4 = vadd.f32 %v3600_v62, %v3564_v2  ;;  %v4674_v3 = vld [vmem:[#allocation3 + $0xc0] sm:$0xf]  ;;  %v5118_v2 = vld [vmem:[#allocation3 + $0x60] sm:$0xf0] }
 0x564   :  { %14487 = vst [vmem:[#allocation47_spill] sm:$0xff] %v12606_v59  ;;  %v4676_v55 = vpack.c.bf16 %v4674_v3, %v4674_v3 }
 0x565   :  { %v12612_v17 = vpop.f32.mrf.mxu1  ;;  %v12614_v15 = vpop.f32.mrf.mxu2  ;;  %v3648_v5 = vadd.f32 %v3642_v34, %v3606_v4 }
 0x566   :  { %v4681_v8 = vsel %vm2796_vm14, %v4676_v55, 0  ;;  %v4822_v4 = vpop.permute.xlu0 %4821 }
 0x567   :  { %v12616_v33 = vpop.f32.mrf.mxu0 }
 0x568   :  { %10212 = vmatmul.msk.bf16.vlgmr.msrb.gmra.mxu3 %vm2792_vm15, %v12493_v24 }
 0x569   :  { %4752 = vmatpush.bf16.msrb.mxu3 %v4729_v31  ;;  %v4969_v31 = vsel %vm419_vm4, %v11946_v9, %v12248_v1 }
 0x56a   :  { %10227 = vmatmul.msk.bf16.vlgmr.msra.gmra.mxu2 %vm2792_vm15, %v12388_v35  ;;  %v4972_v34 = vsel %vm2796_vm14, %v4969_v31, 0 }
 0x56b   :  { %5026 = vmatpush.bf16.msra.mxu2 %v5014_v37  ;;  %v12624_v10 = vpop.permute.xlu2 %9505  ;;  %v3730_v51 = vpop.f32.mrf.mxu3 }
 0x56c   :  { %14488 = vst [vmem:[#allocation48_spill] sm:$0xff] %v12624_v10 }
 0x56d   :  { %v3688_v59 = vpop.f32.mrf.mxu1  ;;  %v12626_v63 = vpop.f32.mrf.mxu2 }
 0x56e   :  { %v3694_v62 = vadd.f32 %v3688_v59, %v3648_v5  ;;  %v5120_v59 = vpack.c.bf16 %v5118_v2, %v5118_v2  ;;  %v5051_v2 = vld [vmem:[#allocation3 + $0x90] sm:$0xf0] }
 0x56f   :  { %v3984_v58 = vpop.f32.mrf.mxu0  ;;  %v5053_v10 = vpack.c.bf16 %v5051_v2, %v5051_v2 }
 0x570   :  { %v3736_v25 = vadd.f32 %v3730_v51, %v3694_v62  ;;  %10210 = vmatmul.msk.bf16.vlgmr.msra.gmra.mxu1 %vm2792_vm15, %v12429_v57  ;;  %v4824_v51 = vsel %vm419_vm4, %v12231_v32, %v4822_v4  ;;  %v4760_v62 = vld [vmem:[#allocation3 + $0xc0] sm:$0xf0]  ;;  %v5124_v31 = vrot.slane %v5120_v59, 2 }
 0x571   :  { %4704 = vmatpush.bf16.msra.mxu1 %v4681_v8 }
 0x572   :  { %v3740_v3 = vadd.f32 %v3736_v25, %v12368_v14  ;;  %10225 = vmatmul.msk.bf16.vlgmr.msrb.gmra.mxu0 %vm2792_vm15, %v12413_v20  ;;  %v3843_v25 = vadd.f32 %v12560_v49, %v12565_v61  ;;  %v5127_v4 = vsel %vm2796_vm14, %v5124_v31, 0  ;;  %v3845_v31 = vadd.f32 %v12581_v40, %v12583_v21 }
 0x573   :  { %4984 = vmatpush.bf16.msrb.mxu0 %v4972_v34  ;;  %v12638_v9 = vpop.permute.xlu2 %9703  ;;  %v12640_v37 = vpop.f32.mrf.mxu3  ;;  %v4829_v34 = vsel %vm2796_vm14, %v4824_v51, 0  ;;  %v3520_v40 = vadd.f32 %v12579_v13, %v12543_v23  ;;  %v4864_v13 = vld [vmem:[#allocation3 + $0x30] sm:$0xf] }
 0x574   :  { %14489 = vst [vmem:[#allocation49_spill] sm:$0xff] %v12638_v9  ;;  %10550 = vtanh.f32 %v3740_v3  ;;  %v4762_v3 = vpack.c.bf16 %v4760_v62, %v4760_v62  ;;  %v3915_v32 = vadd.f32 %v12597_v54, %v3843_v25  ;;  %v4906_v25 = vld [vmem:[#allocation3 + $0x30] sm:$0xf0] }
 0x575   :  { %v12644_v5 = vpop.f32.mrf.mxu1  ;;  %v12646_v55 = vpop.f32.mrf.mxu2 }
 0x576   :  { %v4766_v51 = vrot.slane %v4762_v3, 2  ;;  %v3961_v2 = vadd.f32 %v12595_v19, %v3915_v32  ;;  %v3917_v3 = vadd.f32 %v12616_v33, %v3845_v31 }
 0x577   :  { %v3986_v8 = vpop.f32.mrf.mxu0 }
 0x578   :  { %10216 = vmatmul.msk.bf16.vlgmr.msra.gmra.mxu3 %vm2792_vm15, %v12529_v12  ;;  %v3963_v33 = vadd.f32 %v12614_v15, %v3917_v3  ;;  %v5114_v3 = vld [vmem:[#allocation3 + $0x60] sm:$0xf] }
 0x579   :  { %4852 = vmatpush.bf16.msra.mxu3 %v4829_v34 }
 0x57a   :  { %v10551_v9 = vpop.eup %10550  ;;  %10231 = vmatmul.msk.bf16.vlgmr.msrb.gmra.mxu2 %vm2792_vm15, %v12429_v57 }
 0x57b   :  { %v3748_v49 = vsel %vm11193_vm11, %v10551_v9, 0.0  ;;  %5139 = vmatpush.bf16.msrb.mxu2 %v5127_v4  ;;  %v12659_v61 = vpop.permute.xlu2 %9648  ;;  %v12661_v59 = vpop.f32.mrf.mxu3  ;;  %v5057_v9 = vrot.slane %v5053_v10, 2  ;;  %v4771_v4 = vsel %vm2796_vm14, %v4766_v51, 0  ;;  %v5194_v10 = vld [vmem:[#allocation3 + $0x58] sm:$0xf] }
 0x57c   :  { %14490 = vst [vmem:[#allocation50_spill] sm:$0xff] %v12659_v61  ;;  %v4908_v61 = vpack.c.bf16 %v4906_v25, %v4906_v25  ;;  %v5196_v31 = vpack.c.bf16 %v5194_v10, %v5194_v10 }
 0x57d   :  { %10174 = vst [vmem:[%s14419_s8 + $0x28] sm:$0xff] %v3748_v49  ;;  %v12666_v54 = vpop.f32.mrf.mxu1  ;;  %v4118_v62 = vpop.f32.mrf.mxu2  ;;  %v4003_v49 = vadd.f32 %v3984_v58, %v3961_v2  ;;  %v5060_v16 = vsel %vm2796_vm14, %v5057_v9, 0  ;;  %v3566_v2 = vadd.f32 %v12575_v38, %v3520_v40 }
 0x57e   :  { %v4912_v32 = vrot.slane %v4908_v61, 2  ;;  %v4005_v61 = vadd.f32 %v3986_v8, %v3963_v33 }
 0x57f   :  { %v4076_v34 = vpop.f32.mrf.mxu0  ;;  %v4049_v58 = vadd.f32 %v12626_v63, %v4003_v49  ;;  %v3608_v23 = vadd.f32 %v12612_v17, %v3566_v2  ;;  %v5199_v63 = vsel %vm2796_vm14, %v5196_v31, 0  ;;  %v4866_v49 = vpack.c.bf16 %v4864_v13, %v4864_v13  ;;  %v5278_v31 = vld [vmem:[#allocation3 + $0xe8] sm:$0xf0] }
 0x580   :  { %10214 = vmatmul.msk.bf16.vlgmr.msrb.gmra.mxu1 %vm2792_vm15, %v12473_v53  ;;  %v4051_v8 = vadd.f32 %v12646_v55, %v4005_v61 }
 0x581   :  { %4794 = vmatpush.bf16.msrb.mxu1 %v4771_v4  ;;  %v4095_v4 = vadd.f32 %v4076_v34, %v4049_v58  ;;  %v3650_v40 = vadd.f32 %v12608_v47, %v3608_v23  ;;  %v5010_v47 = vld [vmem:[#allocation3 + $0x68] sm:$0xf] }
 0x582   :  { %10229 = vmatmul.msk.bf16.vlgmr.msra.gmra.mxu0 %vm2792_vm15, %v12451_v29 }
 0x583   :  { %5072 = vmatpush.bf16.msra.mxu0 %v5060_v16  ;;  %v12680_v21 = vpop.permute.xlu2 %9816  ;;  %v12682_v19 = vpop.f32.mrf.mxu3  ;;  %v4917_v16 = vsel %vm2796_vm14, %v4912_v32, 0  ;;  %v4137_v34 = vadd.f32 %v4118_v62, %v4095_v4  ;;  %v5116_v32 = vpack.c.bf16 %v5114_v3, %v5114_v3  ;;  %v3696_v33 = vadd.f32 %v12644_v5, %v3650_v40 }
 0x584   :  { %v5280_v62 = vpack.c.bf16 %v5278_v31, %v5278_v31  ;;  %v5012_v3 = vpack.c.bf16 %v5010_v47, %v5010_v47 }
 0x585   :  { %v12684_v51 = vpop.f32.mrf.mxu1  ;;  %v4120_v25 = vpop.f32.mrf.mxu2  ;;  %v5161_v55 = vsel %vm2796_vm14, %v5116_v32, 0  ;;  %v3738_v5 = vadd.f32 %v12640_v37, %v3696_v33 }
 0x586   :  { %v5284_v32 = vrot.slane %v5280_v62, 2 }
 0x587   :  { %v4078_v9 = vpop.f32.mrf.mxu0 }
 0x588   :  { %10224 = vmatmul.msk.bf16.vlgmr.msrb.gmra.mxu3 %vm2792_vm15, %v12459_v41  ;;  %v4097_v23 = vadd.f32 %v4078_v9, %v4051_v8 }
 0x589   :  { %4940 = vmatpush.bf16.msrb.mxu3 %v4917_v16  ;;  %v4871_v16 = vsel %vm2796_vm14, %v4866_v49, 0 }
 0x58a   :  { %10235 = vmatmul.msk.bf16.vlgmr.msra.gmra.mxu2 %vm2792_vm15, %v12473_v53 }
 0x58b   :  { %5211 = vmatpush.bf16.msra.mxu2 %v5199_v63  ;;  %v12696_v15 = vpop.permute.xlu2 %9761  ;;  %v12698_v38 = vpop.f32.mrf.mxu3 }
 0x58d   :  { %v12701_v10 = vpop.f32.mrf.mxu1  ;;  %v12703_v17 = vpop.f32.mrf.mxu2 }
 0x58f   :  { %v4164_v58 = vpop.f32.mrf.mxu0 }
 0x590   :  { %v4183_v2 = vadd.f32 %v4164_v58, %v4137_v34  ;;  %10222 = vmatmul.msk.bf16.vlgmr.msra.gmra.mxu1 %vm2792_vm15, %v12371_v0  ;;  %v4139_v34 = vadd.f32 %v4120_v25, %v4097_v23  ;;  %v4968_v58 = vpop.permute.xlu0 %4967  ;;  %v5287_v25 = vsel %vm2796_vm14, %v5284_v32, 0 }
 0x591   :  { %4894 = vmatpush.bf16.msra.mxu1 %v4871_v16 }
 0x592   :  { %v4187_v13 = vadd.f32 %v4183_v2, %v12368_v14  ;;  %10233 = vmatmul.msk.bf16.vlgmr.msrb.gmra.mxu0 %vm2792_vm15, %v12493_v24 }
 0x593   :  { %5173 = vmatpush.bf16.msrb.mxu0 %v5161_v55  ;;  %v12715_v61 = vpop.permute.xlu2 %3300  ;;  %v12717_v4 = vpop.f32.mrf.mxu3 }
 0x594   :  { %10552 = vtanh.f32 %v4187_v13  ;;  %v3305_v63 = vadd.f32 %v12715_v61, %v12385_v22  ;;  %v3306_v9 = vadd.f32 %v12715_v61, %v12505_v39  ;;  %v3741_v49 = vadd.f32 %v12550_v50, %v12715_v61 }
 0x595   :  { %v3742_v40 = vadd.f32 %v3738_v5, %v12715_v61  ;;  %v12726_v8 = vpop.f32.mrf.mxu1  ;;  %v12728_v37 = vpop.f32.mrf.mxu2  ;;  %v5017_v39 = vsel %vm2796_vm14, %v5012_v3, 0  ;;  %v4970_v13 = vsel %vm419_vm4, %v12248_v1, %v4968_v58  ;;  %v5119_v5 = vld [vmem:[#allocation3 + $0xc0] sm:$0xf0] }
 0x596   :  { %10554 = vtanh.f32 %v3305_v63 }
 0x597   :  { %10556 = vtanh.f32 %v3306_v9  ;;  %v4166_v33 = vpop.f32.mrf.mxu0 }
 0x598   :  { %10558 = vtanh.f32 %v3741_v49  ;;  %v4185_v22 = vadd.f32 %v4166_v33, %v4139_v34  ;;  %10228 = vmatmul.msk.bf16.vlgmr.msra.gmra.mxu3 %vm2792_vm15, %v12388_v35  ;;  %v5236_v35 = vld [vmem:[#allocation3 + $0xe8] sm:$0xf]  ;;  %v4975_v34 = vsel %vm2796_vm14, %v4970_v13, 0  ;;  %v5121_v33 = vpack.c.bf16 %v5119_v5, %v5119_v5 }
 0x599   :  { %10560 = vtanh.f32 %v3742_v40  ;;  %5040 = vmatpush.bf16.msra.mxu3 %v5017_v39  ;;  %v5238_v3 = vpack.c.bf16 %v5236_v35, %v5236_v35 }
 0x59a   :  { %v10553_v50 = vpop.eup %10552  ;;  %v4189_v31 = vadd.f32 %v4185_v22, %v12715_v61  ;;  %10243 = vmatmul.msk.bf16.vlgmr.msrb.gmra.mxu2 %vm2792_vm15, %v12371_v0 }
 0x59b   :  { %v4195_v2 = vsel %vm11189_vm10, %v10553_v50, 0.0  ;;  %5299 = vmatpush.bf16.msrb.mxu2 %v5287_v25  ;;  %v12739_v16 = vpop.f32.mrf.mxu3  ;;  %v5241_v39 = vsel %vm2796_vm14, %v5238_v3, 0  ;;  %v5125_v25 = vrot.slane %v5121_v33, 2 }
 0x59c   :  { %v10555_v47 = vpop.eup %10554  ;;  %10195 = vst [vmem:[%s14419_s8 + $0x40] sm:$0xff] %v4195_v2  ;;  %10562 = vtanh.f32 %v4189_v31  ;;  %v5366_v31 = vld [vmem:[#allocation3 + $0x90] sm:$0xf] }
 0x59d   :  { %v10557_v23 = vpop.eup %10556  ;;  %v3313_v0 = vsel %vm11189_vm10, %v10555_v47, 0.0  ;;  %v3998_v55 = vpop.f32.mrf.mxu1  ;;  %v5052_v47 = vld [vmem:[#allocation3 + $0x68] sm:$0xf0] }
 0x59e   :  { %v12748_v62 = vpop.f32.mrf.mxu2  ;;  %v10559_v63 = vpop.eup %10558  ;;  %v3314_v9 = vsel %vm11193_vm11, %v10557_v23, 0.0  ;;  %3317 = vst [vmem:[%s14419_s8 + $0x10] sm:$0xff] %v3313_v0  ;;  %v5368_v23 = vpack.c.bf16 %v5366_v31, %v5366_v31  ;;  %v5130_v0 = vsel %vm2796_vm14, %v5125_v25, 0  ;;  %v5054_v5 = vpack.c.bf16 %v5052_v47, %v5052_v47  ;;  %v5454_v25 = vld [vmem:[#allocation3 + $0x88] sm:$0xf] }
 0x59f   :  { %v10561_v49 = vpop.eup %10560  ;;  %3318 = vst [vmem:[%s14419_s8 + $0x18] sm:$0xff] %v3314_v9  ;;  %v3749_v1 = vsel %vm11189_vm10, %v10559_v63, 0.0  ;;  %v12760_v40 = vpop.f32.mrf.mxu0  ;;  %v3857_v63 = vadd.f32 %v12661_v59, %v12666_v54  ;;  %v5195_v59 = vld [vmem:[#allocation3 + $0x10] sm:$0xf]  ;;  %v3859_v54 = vadd.f32 %v12682_v19, %v12684_v51  ;;  %v5408_v19 = vld [vmem:[#allocation3 + $0x90] sm:$0xf0] }
 0x5a0   :  { %v3750_v32 = vsel %vm11193_vm11, %v10561_v49, 0.0  ;;  %10175 = vst [vmem:[%s14419_s8 + $0x30] sm:$0xff] %v3749_v1  ;;  %10226 = vmatmul.msk.bf16.vlgmr.msrb.gmra.mxu1 %vm2792_vm15, %v12413_v20  ;;  %v5371_v9 = vsel %vm2796_vm14, %v5368_v23, 0  ;;  %v5324_v49 = vld [vmem:[#allocation3 + $0x28] sm:$0xf]  ;;  %v5197_v47 = vpack.c.bf16 %v5195_v59, %v5195_v59 }
 0x5a1   :  { %10176 = vst [vmem:[%s14419_s8 + $0x38] sm:$0xff] %v3750_v32  ;;  %4998 = vmatpush.bf16.msrb.mxu1 %v4975_v34  ;;  %v3916_v1 = vadd.f32 %v12701_v10, %v3857_v63  ;;  %v5058_v34 = vrot.slane %v5054_v5, 2  ;;  %v5326_v33 = vpack.c.bf16 %v5324_v49, %v5324_v49  ;;  %v5456_v63 = vpack.c.bf16 %v5454_v25, %v5454_v25  ;;  %v5115_v49 = vld [vmem:[#allocation3 + $0xc0] sm:$0xf] }
 0x5a2   :  { %v10563_v22 = vpop.eup %10562  ;;  %10237 = vmatmul.msk.bf16.vlgmr.msra.gmra.mxu0 %vm2792_vm15, %v12529_v12 }
 0x5a3   :  { %v4197_v50 = vsel %vm11189_vm10, %v10563_v22, 0.0  ;;  %5253 = vmatpush.bf16.msra.mxu0 %v5241_v39  ;;  %v12778_v58 = vpop.f32.mrf.mxu3  ;;  %v3962_v39 = vadd.f32 %v12698_v38, %v3916_v1  ;;  %v5329_v10 = vsel %vm2796_vm14, %v5326_v33, 0  ;;  %v3918_v38 = vadd.f32 %v12726_v8, %v3859_v54 }
 0x5a4   :  { %10197 = vst [vmem:[%s14419_s8 + $0x50] sm:$0xff] %v4197_v50  ;;  %v4291_v8 = vadd.f32 %v12760_v40, %v12703_v17  ;;  %v5117_v33 = vpack.c.bf16 %v5115_v49, %v5115_v49 }
 0x5a5   :  { %v4000_v2 = vpop.f32.mrf.mxu1  ;;  %v4004_v50 = vadd.f32 %v3998_v55, %v3962_v39  ;;  %v3964_v51 = vadd.f32 %v12717_v4, %v3918_v38 }
 0x5a6   :  { %v12783_v35 = vpop.f32.mrf.mxu2  ;;  %v4360_v59 = vadd.f32 %v12748_v62, %v4291_v8 }
 0x5a7   :  { %v12785_v13 = vpop.f32.mrf.mxu0  ;;  %v4050_v5 = vadd.f32 %v12739_v16, %v4004_v50  ;;  %v4006_v1 = vadd.f32 %v4000_v2, %v3964_v51  ;;  %v5459_v16 = vsel %vm2796_vm14, %v5456_v63, 0  ;;  %v5513_v2 = vld [vmem:[#allocation3 + $0x60] sm:$0xf0] }
 0x5a8   :  { %10232 = vmatmul.msk.bf16.vlgmr.msrb.gmra.mxu3 %vm2792_vm15, %v12429_v57  ;;  %v5515_v38 = vpack.c.bf16 %v5513_v2, %v5513_v2  ;;  %v4293_v62 = vadd.f32 %v12785_v13, %v12728_v37 }
 0x5a9   :  { %5153 = vmatpush.bf16.msrb.mxu3 %v5130_v0  ;;  %v4052_v54 = vadd.f32 %v12778_v58, %v4006_v1  ;;  %v12830_v58 = vld [vmem:[#allocation12 + $0x18] sm:$0xff] }
 0x5aa   :  { %10247 = vmatmul.msk.bf16.vlgmr.msra.gmra.mxu2 %vm2792_vm15, %v12413_v20  ;;  %v5063_v20 = vsel %vm2796_vm14, %v5058_v34, 0  ;;  %v5410_v34 = vpack.c.bf16 %v5408_v19, %v5408_v19 }
 0x5ab   :  { %5383 = vmatpush.bf16.msra.mxu2 %v5371_v9  ;;  %v4132_v3 = vpop.f32.mrf.mxu3 }
 0x5ac   :  { %v5414_v40 = vrot.slane %v5410_v34, 2 }
 0x5ad   :  { %v4090_v32 = vpop.f32.mrf.mxu1 }
 0x5ae   :  { %v12796_v57 = vpop.f32.mrf.mxu2  ;;  %v4096_v55 = vadd.f32 %v4090_v32, %v4050_v5 }
 0x5af   :  { %v4383_v22 = vpop.f32.mrf.mxu0 }
 0x5b0   :  { %10230 = vmatmul.msk.bf16.vlgmr.msra.gmra.mxu1 %vm2792_vm15, %v12451_v29  ;;  %v4138_v32 = vadd.f32 %v4132_v3, %v4096_v55  ;;  %v5164_v3 = vsel %vm2796_vm14, %v5117_v33, 0 }
 0x5b1   :  { %5086 = vmatpush.bf16.msra.mxu1 %v5063_v20  ;;  %v5279_v20 = vld [vmem:[#allocation3 + $0x30] sm:$0xf0] }
 0x5b2   :  { %10245 = vmatmul.msk.bf16.vlgmr.msrb.gmra.mxu0 %vm2792_vm15, %v12459_v41  ;;  %v5202_v41 = vsel %vm2796_vm14, %v5197_v47, 0  ;;  %v5281_v25 = vpack.c.bf16 %v5279_v20, %v5279_v20  ;;  %v4402_v47 = vadd.f32 %v4383_v22, %v4360_v59  ;;  %v5557_v22 = vrot.slane %v5515_v38, 2  ;;  %v5517_v20 = vld [vmem:[#allocation3 + $0x58] sm:$0xf]  ;;  %v5367_v38 = vld [vmem:[#allocation3 + $0x68] sm:$0xf] }
 0x5b3   :  { %5341 = vmatpush.bf16.msrb.mxu0 %v5329_v10  ;;  %v4134_v31 = vpop.f32.mrf.mxu3  ;;  %v5519_v2 = vpack.c.bf16 %v5517_v20, %v5517_v20 }
 0x5b4   :  { %v5285_v19 = vrot.slane %v5281_v25, 2  ;;  %v4448_v37 = vadd.f32 %v12796_v57, %v4402_v47  ;;  %v5560_v33 = vsel %vm2796_vm14, %v5557_v22, 0 }
 0x5b5   :  { %v4092_v23 = vpop.f32.mrf.mxu1  ;;  %v5522_v47 = vsel %vm2796_vm14, %v5519_v2, 0 }
 0x5b6   :  { %v12808_v0 = vpop.f32.mrf.mxu2 }
 0x5b7   :  { %v4385_v9 = vpop.f32.mrf.mxu0 }
 0x5b8   :  { %10236 = vmatmul.msk.bf16.vlgmr.msra.gmra.mxu3 %vm2792_vm15, %v12473_v53 }
 0x5b9   :  { %5225 = vmatpush.bf16.msra.mxu3 %v5202_v41  ;;  %v4362_v41 = vadd.f32 %v12783_v35, %v4293_v62  ;;  %v5237_v35 = vld [vmem:[#allocation3 + $0x30] sm:$0xf] }
 0x5ba   :  { %10251 = vmatmul.msk.bf16.vlgmr.msrb.gmra.mxu2 %vm2792_vm15, %v12451_v29  ;;  %v4098_v29 = vadd.f32 %v4092_v23, %v4052_v54  ;;  %v5417_v23 = vsel %vm2796_vm14, %v5414_v40, 0  ;;  %v5239_v59 = vpack.c.bf16 %v5237_v35, %v5237_v35  ;;  %v12866_v62 = vld [vmem:[#allocation12 + $0x28] sm:$0xff] }
 0x5bb   :  { %5471 = vmatpush.bf16.msrb.mxu2 %v5459_v16  ;;  %v12820_v4 = vpop.f32.mrf.mxu3  ;;  %v12840_v16 = vld [vmem:[#allocation12 + $0x8] sm:$0xff] }
 0x5bc   :  { %v4140_v63 = vadd.f32 %v4134_v31, %v4098_v29  ;;  %v5290_v31 = vsel %vm2796_vm14, %v5285_v19, 0  ;;  %v5325_v35 = vld [vmem:[#allocation3 + $0x70] sm:$0xf] }
 0x5bd   :  { %v4178_v53 = vpop.f32.mrf.mxu1 }
 0x5be   :  { %v4526_v39 = vpop.f32.mrf.mxu2  ;;  %v4184_v17 = vadd.f32 %v4178_v53, %v4138_v32  ;;  %v4404_v32 = vadd.f32 %v4385_v9, %v4362_v41 }
 0x5bf   :  { %v4484_v50 = vpop.f32.mrf.mxu0 }
 0x5c0   :  { %v4188_v10 = vadd.f32 %v4184_v17, %v12368_v14  ;;  %10234 = vmatmul.msk.bf16.vlgmr.msrb.gmra.mxu1 %vm2792_vm15, %v12493_v24  ;;  %v4503_v57 = vadd.f32 %v4484_v50, %v4448_v37  ;;  %v4450_v9 = vadd.f32 %v12808_v0, %v4404_v32  ;;  %v5639_v50 = vld [vmem:[#allocation3 + $0xe8] sm:$0xf0] }
 0x5c1   :  { %5187 = vmatpush.bf16.msrb.mxu1 %v5164_v3 }
 0x5c2   :  { %10564 = vtanh.f32 %v4188_v10  ;;  %10249 = vmatmul.msk.bf16.vlgmr.msra.gmra.mxu0 %vm2792_vm15, %v12830_v58  ;;  %v4545_v40 = vadd.f32 %v4526_v39, %v4503_v57 }
 0x5c3   :  { %5429 = vmatpush.bf16.msra.mxu0 %v5417_v23  ;;  %v12835_v5 = vpop.f32.mrf.mxu3  ;;  %v5641_v23 = vpack.c.bf16 %v5639_v50, %v5639_v50  ;;  %v5727_v50 = vld [vmem:[#allocation3 + $0x28] sm:$0xf0] }
 0x5c5   :  { %v4180_v51 = vpop.f32.mrf.mxu1  ;;  %v5645_v22 = vrot.slane %v5641_v23, 2 }
 0x5c6   :  { %v4528_v55 = vpop.f32.mrf.mxu2  ;;  %v4186_v13 = vadd.f32 %v4180_v51, %v4140_v63  ;;  %v5369_v51 = vpack.c.bf16 %v5367_v38, %v5367_v38 }
 0x5c7   :  { %v4486_v49 = vpop.f32.mrf.mxu0 }
 0x5c8   :  { %v10565_v8 = vpop.eup %10564  ;;  %v4190_v1 = vadd.f32 %v4186_v13, %v12715_v61  ;;  %10244 = vmatmul.msk.bf16.vlgmr.msrb.gmra.mxu3 %vm2792_vm15, %v12840_v16  ;;  %v4505_v0 = vadd.f32 %v4486_v49, %v4450_v9 }
 0x5c9   :  { %v4196_v34 = vsel %vm11193_vm11, %v10565_v8, 0.0  ;;  %5313 = vmatpush.bf16.msrb.mxu3 %v5290_v31  ;;  %v5593_v8 = vld [vmem:[#allocation3 + $0x58] sm:$0xf0] }
 0x5ca   :  { %10196 = vst [vmem:[%s14419_s8 + $0x48] sm:$0xff] %v4196_v34  ;;  %10566 = vtanh.f32 %v4190_v1  ;;  %10255 = vmatmul.msk.bf16.vlgmr.msra.gmra.mxu2 %vm2792_vm15, %v12493_v24  ;;  %v5244_v24 = vsel %vm2796_vm14, %v5239_v59, 0  ;;  %v4547_v13 = vadd.f32 %v4528_v55, %v4505_v0  ;;  %v12876_v31 = vld [vmem:[#allocation12 + $0x10] sm:$0xff]  ;;  %v5374_v34 = vsel %vm2796_vm14, %v5369_v51, 0 }
 0x5cb   :  { %5572 = vmatpush.bf16.msra.mxu2 %v5560_v33  ;;  %v12853_v53 = vpop.f32.mrf.mxu3  ;;  %v5648_v55 = vsel %vm2796_vm14, %v5645_v22, 0  ;;  %v5595_v57 = vpack.c.bf16 %v5593_v8, %v5593_v8  ;;  %v5729_v0 = vpack.c.bf16 %v5727_v50, %v5727_v50  ;;  %v12917_v8 = vld [vmem:[#allocation12 + $0x20] sm:$0xff] }
 0x5cd   :  { %v12855_v54 = vpop.f32.mrf.mxu1  ;;  %v5733_v22 = vrot.slane %v5729_v0, 2 }
 0x5ce   :  { %v4627_v17 = vpop.f32.mrf.mxu2 }
 0x5cf   :  { %v4572_v29 = vpop.f32.mrf.mxu0 }
 0x5d0   :  { %v10567_v10 = vpop.eup %10566  ;;  %v4591_v3 = vadd.f32 %v4572_v29, %v4545_v40  ;;  %10238 = vmatmul.msk.bf16.vlgmr.msra.gmra.mxu1 %vm2792_vm15, %v12529_v12 }
 0x5d1   :  { %v4198_v25 = vsel %vm11193_vm11, %v10567_v10, 0.0  ;;  %5267 = vmatpush.bf16.msra.mxu1 %v5244_v24  ;;  %v12896_v10 = vld [vmem:[#allocation12] sm:$0xff]  ;;  %v5455_v24 = vld [vmem:[#allocation3 + $0xb8] sm:$0xf] }
 0x5d2   :  { %10198 = vst [vmem:[%s14419_s8 + $0x58] sm:$0xff] %v4198_v25  ;;  %v4646_v39 = vadd.f32 %v4627_v17, %v4591_v3  ;;  %10253 = vmatmul.msk.bf16.vlgmr.msrb.gmra.mxu0 %vm2792_vm15, %v12866_v62  ;;  %v5327_v17 = vpack.c.bf16 %v5325_v35, %v5325_v35  ;;  %v12901_v25 = vld [vmem:[#allocation12 + $0x38] sm:$0xff]  ;;  %v5457_v23 = vpack.c.bf16 %v5455_v24, %v5455_v24  ;;  %v5736_v35 = vsel %vm2796_vm14, %v5733_v22, 0 }
 0x5d3   :  { %5534 = vmatpush.bf16.msrb.mxu0 %v5522_v47  ;;  %v12871_v63 = vpop.f32.mrf.mxu3 }
 0x5d4   :  { %v4650_v19 = vadd.f32 %v4646_v39, %v12368_v14  ;;  %v5332_v3 = vsel %vm2796_vm14, %v5327_v17, 0 }
 0x5d5   :  { %v12874_v41 = vpop.f32.mrf.mxu1 }
 0x5d6   :  { %v4629_v37 = vpop.f32.mrf.mxu2  ;;  %10568 = vtanh.f32 %v4650_v19 }
 0x5d7   :  { %v4574_v49 = vpop.f32.mrf.mxu0 }
 0x5d8   :  { %v4593_v1 = vadd.f32 %v4574_v49, %v4547_v13  ;;  %10248 = vmatmul.msk.bf16.vlgmr.msra.gmra.mxu3 %vm2792_vm15, %v12876_v31  ;;  %v5409_v13 = vld [vmem:[#allocation3 + $0x68] sm:$0xf0] }
 0x5d9   :  { %5397 = vmatpush.bf16.msra.mxu3 %v5374_v34  ;;  %v5411_v34 = vpack.c.bf16 %v5409_v13, %v5409_v13 }
 0x5da   :  { %v4648_v32 = vadd.f32 %v4629_v37, %v4593_v1  ;;  %10259 = vmatmul.msk.bf16.vlgmr.msrb.gmra.mxu2 %vm2792_vm15, %v12529_v12  ;;  %v5599_v12 = vrot.slane %v5595_v57, 2  ;;  %v5462_v1 = vsel %vm2796_vm14, %v5457_v23, 0  ;;  %v4305_v57 = vadd.f32 %v12855_v54, %v12820_v4 }
 0x5db   :  { %5660 = vmatpush.bf16.msrb.mxu2 %v5648_v55  ;;  %v12884_v33 = vpop.f32.mrf.mxu3  ;;  %v5685_v55 = vld [vmem:[#allocation3 + $0x28] sm:$0xf]  ;;  %v4307_v23 = vadd.f32 %v12874_v41, %v12835_v5  ;;  %v5518_v41 = vld [vmem:[#allocation3 + $0x10] sm:$0xf] }
 0x5dc   :  { %v10569_v20 = vpop.eup %10568  ;;  %v4652_v59 = vadd.f32 %v4648_v32, %v12715_v61  ;;  %v5602_v38 = vsel %vm2796_vm14, %v5599_v12, 0  ;;  %v5687_v12 = vpack.c.bf16 %v5685_v55, %v5685_v55 }
 0x5dd   :  { %v4658_v9 = vsel %vm11189_vm10, %v10569_v20, 0.0  ;;  %v4397_v40 = vpop.f32.mrf.mxu1  ;;  %v5415_v20 = vrot.slane %v5411_v34, 2 }
 0x5de   :  { %v12889_v2 = vpop.f32.mrf.mxu2  ;;  %10217 = vst [vmem:[%s14419_s8 + $0x60] sm:$0xff] %v4658_v9  ;;  %10570 = vtanh.f32 %v4652_v59  ;;  %v5514_v9 = vld [vmem:[#allocation3 + $0xc0] sm:$0xf0]  ;;  %v5690_v4 = vsel %vm2796_vm14, %v5687_v12, 0 }
 0x5df   :  { %v12894_v29 = vpop.f32.mrf.mxu0  ;;  %v5420_v24 = vsel %vm2796_vm14, %v5415_v20, 0 }
 0x5e0   :  { %10246 = vmatmul.msk.bf16.vlgmr.msrb.gmra.mxu1 %vm2792_vm15, %v12896_v10 }
 0x5e1   :  { %5355 = vmatpush.bf16.msrb.mxu1 %v5332_v3  ;;  %v4361_v3 = vadd.f32 %v12853_v53, %v4305_v57  ;;  %v12946_v57 = vld [vmem:[#allocation12 + $0x30] sm:$0xff] }
 0x5e2   :  { %10257 = vmatmul.msk.bf16.vlgmr.msra.gmra.mxu0 %vm2792_vm15, %v12901_v25 }
 0x5e3   :  { %5614 = vmatpush.bf16.msra.mxu0 %v5602_v38  ;;  %v12906_v39 = vpop.f32.mrf.mxu3  ;;  %v5516_v38 = vpack.c.bf16 %v5514_v9, %v5514_v9  ;;  %v4403_v0 = vadd.f32 %v4397_v40, %v4361_v3  ;;  %v5773_v40 = vld [vmem:[#allocation3 + $0x90] sm:$0xf0] }
 0x5e4   :  { %v10571_v47 = vpop.eup %10570  ;;  %v5775_v9 = vpack.c.bf16 %v5773_v40, %v5773_v40 }
 0x5e5   :  { %v4660_v19 = vsel %vm11189_vm10, %v10571_v47, 0.0  ;;  %v4399_v51 = vpop.f32.mrf.mxu1  ;;  %v5819_v47 = vld [vmem:[#allocation3 + $0x88] sm:$0xf]  ;;  %v5558_v53 = vrot.slane %v5516_v38, 2  ;;  %v4449_v22 = vadd.f32 %v12884_v33, %v4403_v0  ;;  %v5640_v38 = vld [vmem:[#allocation3 + $0x30] sm:$0xf0] }
 0x5e6   :  { %v12910_v37 = vpop.f32.mrf.mxu2  ;;  %10219 = vst [vmem:[%s14419_s8 + $0x70] sm:$0xff] %v4660_v19  ;;  %v5642_v40 = vpack.c.bf16 %v5640_v38, %v5640_v38 }
 0x5e7   :  { %v12915_v49 = vpop.f32.mrf.mxu0  ;;  %v5563_v5 = vsel %vm2796_vm14, %v5558_v53, 0 }
 0x5e8   :  { %10252 = vmatmul.msk.bf16.vlgmr.msrb.gmra.mxu3 %vm2792_vm15, %v12917_v8 }
 0x5e9   :  { %5485 = vmatpush.bf16.msrb.mxu3 %v5462_v1  ;;  %v5821_v1 = vpack.c.bf16 %v5819_v47, %v5819_v47  ;;  %v5779_v47 = vrot.slane %v5775_v9, 2  ;;  %v4741_v9 = vadd.f32 %v12889_v2, %v12894_v29 }
 0x5ea   :  { %10267 = vmatmul.msk.bf16.vlgmr.msra.gmra.mxu2 %vm2792_vm15, %v12896_v10 }
 0x5eb   :  { %5748 = vmatpush.bf16.msra.mxu2 %v5736_v35  ;;  %v4540_v32 = vpop.f32.mrf.mxu3  ;;  %v4363_v35 = vadd.f32 %v12871_v63, %v4307_v23  ;;  %v5824_v33 = vsel %vm2796_vm14, %v5821_v1, 0 }
 0x5ed   :  { %v4498_v59 = vpop.f32.mrf.mxu1  ;;  %v4405_v20 = vadd.f32 %v4399_v51, %v4363_v35  ;;  %v5928_v51 = vld [vmem:[#allocation3 + $0x58] sm:$0xf0] }
 0x5ee   :  { %v12927_v17 = vpop.f32.mrf.mxu2  ;;  %v4504_v55 = vadd.f32 %v4498_v59, %v4449_v22  ;;  %v5520_v59 = vpack.c.bf16 %v5518_v41, %v5518_v41  ;;  %v5930_v35 = vpack.c.bf16 %v5928_v51, %v5928_v51 }
 0x5ef   :  { %v12929_v50 = vpop.f32.mrf.mxu0  ;;  %v4451_v0 = vadd.f32 %v12906_v39, %v4405_v20  ;;  %v5782_v39 = vsel %vm2796_vm14, %v5779_v47, 0 }
 0x5f0   :  { %10250 = vmatmul.msk.bf16.vlgmr.msra.gmra.mxu1 %vm2792_vm15, %v12830_v58  ;;  %v4546_v63 = vadd.f32 %v4540_v32, %v4504_v55  ;;  %v5525_v1 = vsel %vm2796_vm14, %v5520_v59, 0  ;;  %v4801_v51 = vadd.f32 %v12929_v50, %v4741_v9 }
 0x5f1   :  { %5443 = vmatpush.bf16.msra.mxu1 %v5420_v24 }
 0x5f2   :  { %10265 = vmatmul.msk.bf16.vlgmr.msrb.gmra.mxu0 %vm2792_vm15, %v12840_v16 }
 0x5f3   :  { %5702 = vmatpush.bf16.msrb.mxu0 %v5690_v4  ;;  %v4542_v54 = vpop.f32.mrf.mxu3 }
 0x5f5   :  { %v4500_v19 = vpop.f32.mrf.mxu1 }
 0x5f6   :  { %v12940_v13 = vpop.f32.mrf.mxu2  ;;  %v4506_v53 = vadd.f32 %v4500_v19, %v4451_v0  ;;  %v5646_v19 = vrot.slane %v5642_v40, 2  ;;  %v12968_v0 = vld [vmem:[#allocation12 + $0x40] sm:$0xff] }
 0x5f7   :  { %v12943_v34 = vpop.f32.mrf.mxu0 }
 0x5f8   :  { %10256 = vmatmul.msk.bf16.vlgmr.msra.gmra.mxu3 %vm2792_vm15, %v12946_v57 }
 0x5f9   :  { %5586 = vmatpush.bf16.msra.mxu3 %v5563_v5  ;;  %v4548_v5 = vadd.f32 %v4542_v54, %v4506_v53  ;;  %v5651_v54 = vsel %vm2796_vm14, %v5646_v19, 0 }
 0x5fa   :  { %10271 = vmatmul.msk.bf16.vlgmr.msrb.gmra.mxu2 %vm2792_vm15, %v12830_v58 }
 0x5fb   :  { %5836 = vmatpush.bf16.msrb.mxu2 %v5824_v33  ;;  %v4641_v12 = vpop.f32.mrf.mxu3  ;;  %v5594_v33 = vld [vmem:[#allocation3 + $0x10] sm:$0xf0] }
 0x5fd   :  { %v4586_v3 = vpop.f32.mrf.mxu1 }
 0x5fe   :  { %v12954_v24 = vpop.f32.mrf.mxu2  ;;  %v4592_v4 = vadd.f32 %v4586_v3, %v4546_v63  ;;  %v5934_v63 = vrot.slane %v5930_v35, 2  ;;  %v5861_v3 = vld [vmem:[#allocation3 + $0x88] sm:$0xf0]  ;;  %v4743_v35 = vadd.f32 %v12910_v37, %v12915_v49 }
 0x5ff   :  { %v4882_v23 = vpop.f32.mrf.mxu0  ;;  %v5863_v29 = vpack.c.bf16 %v5861_v3, %v5861_v3 }
 0x600   :  { %v4647_v22 = vadd.f32 %v4641_v12, %v4592_v4  ;;  %10254 = vmatmul.msk.bf16.vlgmr.msrb.gmra.mxu1 %vm2792_vm15, %v12866_v62  ;;  %v5596_v4 = vpack.c.bf16 %v5594_v33, %v5594_v33  ;;  %v5937_v2 = vsel %vm2796_vm14, %v5934_v63, 0 }
 0x601   :  { %5548 = vmatpush.bf16.msrb.mxu1 %v5525_v1 }
 0x602   :  { %v4651_v32 = vadd.f32 %v4647_v22, %v12368_v14  ;;  %10269 = vmatmul.msk.bf16.vlgmr.msra.gmra.mxu0 %vm2792_vm15, %v12876_v31  ;;  %v5600_v50 = vrot.slane %v5596_v4, 2  ;;  %v6019_v4 = vsel %vm566_vm5, %v11951_v52, %v12260_v11 }
 0x603   :  { %5794 = vmatpush.bf16.msra.mxu0 %v5782_v39  ;;  %v4643_v55 = vpop.f32.mrf.mxu3  ;;  %v5728_v39 = vld [vmem:[#allocation3 + $0x70] sm:$0xf0] }
 0x604   :  { %10572 = vtanh.f32 %v4651_v32  ;;  %v5730_v33 = vpack.c.bf16 %v5728_v39, %v5728_v39 }
 0x605   :  { %v4588_v41 = vpop.f32.mrf.mxu1 }
 0x606   :  { %v12964_v20 = vpop.f32.mrf.mxu2  ;;  %v4594_v12 = vadd.f32 %v4588_v41, %v4548_v5  ;;  %v5867_v5 = vrot.slane %v5863_v29, 2  ;;  %v5605_v41 = vsel %vm2796_vm14, %v5600_v50, 0  ;;  %v5734_v3 = vrot.slane %v5730_v33, 2  ;;  %v6101_v33 = vld [vmem:[#allocation3 + $0x28] sm:$0xf0] }
 0x607   :  { %v4884_v59 = vpop.f32.mrf.mxu0 }
 0x608   :  { %v4649_v38 = vadd.f32 %v4643_v55, %v4594_v12  ;;  %10260 = vmatmul.msk.bf16.vlgmr.msrb.gmra.mxu3 %vm2792_vm15, %v12968_v0  ;;  %v4859_v55 = vadd.f32 %v12927_v17, %v4801_v51  ;;  %v4803_v12 = vadd.f32 %v12943_v34, %v4743_v35  ;;  %v5870_v37 = vsel %vm2796_vm14, %v5867_v5, 0 }
 0x609   :  { %5674 = vmatpush.bf16.msrb.mxu3 %v5651_v54  ;;  %v5739_v51 = vsel %vm2796_vm14, %v5734_v3, 0 }
 0x60a   :  { %v10573_v47 = vpop.eup %10572  ;;  %v4653_v53 = vadd.f32 %v4649_v38, %v12715_v61  ;;  %10275 = vmatmul.msk.bf16.vlgmr.msra.gmra.mxu2 %vm2792_vm15, %v12866_v62  ;;  %v4901_v63 = vadd.f32 %v4882_v23, %v4859_v55  ;;  %v4861_v23 = vadd.f32 %v12940_v13, %v4803_v12 }
 0x60b   :  { %v4659_v22 = vsel %vm11193_vm11, %v10573_v47, 0.0  ;;  %5949 = vmatpush.bf16.msra.mxu2 %v5937_v2  ;;  %v12980_v1 = vpop.f32.mrf.mxu3  ;;  %v6022_v2 = vsel %vm2796_vm14, %v6019_v4, 0 }
 0x60c   :  { %10218 = vst [vmem:[%s14419_s8 + $0x68] sm:$0xff] %v4659_v22  ;;  %10574 = vtanh.f32 %v4653_v53  ;;  %v4947_v54 = vadd.f32 %v12954_v24, %v4901_v63  ;;  %v5686_v53 = vld [vmem:[#allocation3 + $0x70] sm:$0xf]  ;;  %v4903_v29 = vadd.f32 %v4884_v59, %v4861_v23  ;;  %v5924_v24 = vld [vmem:[#allocation3 + $0x58] sm:$0xf] }
 0x60d   :  { %v12985_v40 = vpop.f32.mrf.mxu1  ;;  %v5688_v52 = vpack.c.bf16 %v5686_v53, %v5686_v53  ;;  %v5926_v5 = vpack.c.bf16 %v5924_v24, %v5924_v24 }
 0x60e   :  { %v5028_v32 = vpop.f32.mrf.mxu2  ;;  %v4949_v35 = vadd.f32 %v12964_v20, %v4903_v29 }
 0x60f   :  { %v4986_v19 = vpop.f32.mrf.mxu0  ;;  %v5971_v20 = vsel %vm2796_vm14, %v5926_v5, 0 }
 0x610   :  { %10258 = vmatmul.msk.bf16.vlgmr.msra.gmra.mxu1 %vm2792_vm15, %v12901_v25  ;;  %v5005_v22 = vadd.f32 %v4986_v19, %v4947_v54  ;;  %v5693_v19 = vsel %vm2796_vm14, %v5688_v52, 0  ;;  %v5774_v54 = vld [vmem:[#allocation3 + $0x68] sm:$0xf0] }
 0x611   :  { %5628 = vmatpush.bf16.msra.mxu1 %v5605_v41  ;;  %v5776_v29 = vpack.c.bf16 %v5774_v54, %v5774_v54 }
 0x612   :  { %v10575_v9 = vpop.eup %10574  ;;  %10273 = vmatmul.msk.bf16.vlgmr.msrb.gmra.mxu0 %vm2792_vm15, %v12917_v8  ;;  %v5047_v55 = vadd.f32 %v5028_v32, %v5005_v22  ;;  %v6103_v32 = vpack.c.bf16 %v6101_v33, %v6101_v33 }
 0x613   :  { %v4661_v49 = vsel %vm11193_vm11, %v10575_v9, 0.0  ;;  %5882 = vmatpush.bf16.msrb.mxu0 %v5870_v37  ;;  %v12999_v17 = vpop.f32.mrf.mxu3  ;;  %v5820_v9 = vld [vmem:[#allocation3 + $0xb8] sm:$0xf]  ;;  %v5780_v5 = vrot.slane %v5776_v29, 2 }
 0x614   :  { %10220 = vst [vmem:[%s14419_s8 + $0x78] sm:$0xff] %v4661_v49  ;;  %v5822_v49 = vpack.c.bf16 %v5820_v9, %v5820_v9 }
 0x615   :  { %v13004_v38 = vpop.f32.mrf.mxu1 }
 0x616   :  { %v5030_v34 = vpop.f32.mrf.mxu2 }
 0x617   :  { %v4988_v47 = vpop.f32.mrf.mxu0 }
 0x618   :  { %10268 = vmatmul.msk.bf16.vlgmr.msra.gmra.mxu3 %vm2792_vm15, %v12896_v10  ;;  %v5007_v12 = vadd.f32 %v4988_v47, %v4949_v35  ;;  %v6107_v47 = vrot.slane %v6103_v32, 2 }
 0x619   :  { %5762 = vmatpush.bf16.msra.mxu3 %v5739_v51 }
 0x61a   :  { %10279 = vmatmul.msk.bf16.vlgmr.msrb.gmra.mxu2 %vm2792_vm15, %v12901_v25  ;;  %v5049_v4 = vadd.f32 %v5030_v34, %v5007_v12  ;;  %v6110_v52 = vsel %vm2796_vm14, %v6107_v47, 0  ;;  %v5785_v12 = vsel %vm2796_vm14, %v5780_v5, 0 }
 0x61b   :  { %6034 = vmatpush.bf16.msrb.mxu2 %v6022_v2  ;;  %v13017_v13 = vpop.f32.mrf.mxu3  ;;  %v5827_v2 = vsel %vm2796_vm14, %v5822_v49, 0 }
 0x61d   :  { %v13019_v50 = vpop.f32.mrf.mxu1 }
 0x61e   :  { %v13021_v39 = vpop.f32.mrf.mxu2 }
 0x61f   :  { %v5074_v41 = vpop.f32.mrf.mxu0 }
 0x620   :  { %v5093_v59 = vadd.f32 %v5074_v41, %v5047_v55  ;;  %10266 = vmatmul.msk.bf16.vlgmr.msrb.gmra.mxu1 %vm2792_vm15, %v12840_v16  ;;  %v6059_v55 = vld [vmem:[#allocation3 + $0x28] sm:$0xf] }
 0x621   :  { %5716 = vmatpush.bf16.msrb.mxu1 %v5693_v19  ;;  %v6061_v19 = vpack.c.bf16 %v6059_v55, %v6059_v55 }
 0x622   :  { %v5097_v63 = vadd.f32 %v5093_v59, %v12368_v14  ;;  %10277 = vmatmul.msk.bf16.vlgmr.msra.gmra.mxu0 %vm2792_vm15, %v12946_v57  ;;  %v5929_v59 = vld [vmem:[#allocation3 + $0x10] sm:$0xf0] }
 0x623   :  { %5983 = vmatpush.bf16.msra.mxu0 %v5971_v20  ;;  %v13031_v37 = vpop.f32.mrf.mxu3  ;;  %v6064_v32 = vsel %vm2796_vm14, %v6061_v19, 0 }
 0x624   :  { %10576 = vtanh.f32 %v5097_v63  ;;  %v5931_v63 = vpack.c.bf16 %v5929_v59, %v5929_v59 }
 0x625   :  { %v13033_v3 = vpop.f32.mrf.mxu1 }
 0x626   :  { %v13035_v23 = vpop.f32.mrf.mxu2  ;;  %v5935_v47 = vrot.slane %v5931_v63, 2 }
 0x627   :  { %v5076_v51 = vpop.f32.mrf.mxu0 }
 0x628   :  { %v5095_v53 = vadd.f32 %v5076_v51, %v5049_v4  ;;  %10272 = vmatmul.msk.bf16.vlgmr.msrb.gmra.mxu3 %vm2792_vm15, %v12830_v58  ;;  %v6202_v4 = vld [vmem:[#allocation3 + $0x88] sm:$0xf] }
 0x629   :  { %5850 = vmatpush.bf16.msrb.mxu3 %v5827_v2  ;;  %v5862_v2 = vld [vmem:[#allocation3 + $0xb8] sm:$0xf0]  ;;  %v6204_v29 = vpack.c.bf16 %v6202_v4, %v6202_v4  ;;  %v4757_v4 = vadd.f32 %v12999_v17, %v13004_v38  ;;  %v6244_v38 = vld [vmem:[#allocation3 + $0x88] sm:$0xf0] }
 0x62a   :  { %v10577_v22 = vpop.eup %10576  ;;  %v5099_v24 = vadd.f32 %v5095_v53, %v12715_v61  ;;  %10287 = vmatmul.msk.bf16.vlgmr.msra.gmra.mxu2 %vm2792_vm15, %v12840_v16 }
 0x62b   :  { %v5105_v34 = vsel %vm11189_vm10, %v10577_v22, 0.0  ;;  %6122 = vmatpush.bf16.msra.mxu2 %v6110_v52  ;;  %v4942_v35 = vpop.f32.mrf.mxu3  ;;  %v5864_v52 = vpack.c.bf16 %v5862_v2, %v5862_v2  ;;  %v6207_v55 = vsel %vm2796_vm14, %v6204_v29, 0 }
 0x62c   :  { %10239 = vst [vmem:[%s14419_s8 + $0x80] sm:$0xff] %v5105_v34  ;;  %10578 = vtanh.f32 %v5099_v24  ;;  %v5940_v24 = vsel %vm2796_vm14, %v5935_v47, 0  ;;  %v4755_v34 = vadd.f32 %v12980_v1, %v12985_v40 }
 0x62d   :  { %v4896_v41 = vpop.f32.mrf.mxu1  ;;  %v5868_v19 = vrot.slane %v5864_v52, 2 }
 0x62e   :  { %v13049_v33 = vpop.f32.mrf.mxu2  ;;  %v4802_v59 = vadd.f32 %v13019_v50, %v4755_v34  ;;  %v6018_v50 = vpop.permute.xlu0 %6017  ;;  %v6305_v34 = vsel %vm566_vm5, %v11963_v18, %v12290_v48  ;;  %v6246_v18 = vpack.c.bf16 %v6244_v38, %v6244_v38 }
 0x62f   :  { %v5175_v9 = vpop.f32.mrf.mxu0  ;;  %v5873_v40 = vsel %vm2796_vm14, %v5868_v19, 0  ;;  %v6020_v2 = vsel %vm566_vm5, %v12260_v11, %v6018_v50  ;;  %v5925_v11 = vld [vmem:[#allocation3 + $0x10] sm:$0xf] }
 0x630   :  { %10270 = vmatmul.msk.bf16.vlgmr.msra.gmra.mxu1 %vm2792_vm15, %v12876_v31  ;;  %v4860_v1 = vadd.f32 %v13017_v13, %v4802_v59  ;;  %v4804_v13 = vadd.f32 %v13033_v3, %v4757_v4  ;;  %v6308_v3 = vsel %vm2796_vm14, %v6305_v34, 0 }
 0x631   :  { %5808 = vmatpush.bf16.msra.mxu1 %v5785_v12 }
 0x632   :  { %v10579_v20 = vpop.eup %10578  ;;  %10281 = vmatmul.msk.bf16.vlgmr.msrb.gmra.mxu0 %vm2792_vm15, %v12968_v0  ;;  %v4902_v47 = vadd.f32 %v4896_v41, %v4860_v1  ;;  %v6025_v41 = vsel %vm2796_vm14, %v6020_v2, 0 }
 0x633   :  { %v5107_v49 = vsel %vm11189_vm10, %v10579_v20, 0.0  ;;  %6076 = vmatpush.bf16.msrb.mxu0 %v6064_v32  ;;  %v4944_v54 = vpop.f32.mrf.mxu3  ;;  %v6162_v20 = vsel %vm566_vm5, %v11958_v44, %v12276_v26 }
 0x634   :  { %10241 = vst [vmem:[%s14419_s8 + $0x90] sm:$0xff] %v5107_v49  ;;  %v6165_v49 = vsel %vm2796_vm14, %v6162_v20, 0  ;;  %v4948_v52 = vadd.f32 %v4942_v35, %v4902_v47  ;;  %v5176_v35 = vadd.f32 %v5175_v9, %v13021_v39 }
 0x635   :  { %v4898_v51 = vpop.f32.mrf.mxu1 }
 0x636   :  { %v13062_v53 = vpop.f32.mrf.mxu2  ;;  %v5232_v50 = vadd.f32 %v13049_v33, %v5176_v35 }
 0x637   :  { %v13064_v22 = vpop.f32.mrf.mxu0 }
 0x638   :  { %10276 = vmatmul.msk.bf16.vlgmr.msra.gmra.mxu3 %vm2792_vm15, %v12866_v62 }
 0x639   :  { %5963 = vmatpush.bf16.msra.mxu3 %v5940_v24 }
 0x63a   :  { %10291 = vmatmul.msk.bf16.vlgmr.msrb.gmra.mxu2 %vm2792_vm15, %v12876_v31 }
 0x63b   :  { %6219 = vmatpush.bf16.msrb.mxu2 %v6207_v55  ;;  %v5042_v5 = vpop.f32.mrf.mxu3  ;;  %v4862_v55 = vadd.f32 %v13031_v37, %v4804_v13  ;;  %v5927_v37 = vpack.c.bf16 %v5925_v11, %v5925_v11  ;;  %v6250_v13 = vrot.slane %v6246_v18, 2 }
 0x63d   :  { %v5000_v12 = vpop.f32.mrf.mxu1  ;;  %v4904_v19 = vadd.f32 %v4898_v51, %v4862_v55  ;;  %v5974_v51 = vsel %vm2796_vm14, %v5927_v37, 0  ;;  %v6253_v33 = vsel %vm2796_vm14, %v6250_v13, 0  ;;  %v6368_v37 = vld [vmem:[#allocation3 + $0xe8] sm:$0xf] }
 0x63e   :  { %v13075_v63 = vpop.f32.mrf.mxu2  ;;  %v5006_v59 = vadd.f32 %v5000_v12, %v4948_v52 }
 0x63f   :  { %v5255_v32 = vpop.f32.mrf.mxu0  ;;  %v4950_v4 = vadd.f32 %v4944_v54, %v4904_v19 }
 0x640   :  { %10274 = vmatmul.msk.bf16.vlgmr.msrb.gmra.mxu1 %vm2792_vm15, %v12917_v8  ;;  %v5048_v1 = vadd.f32 %v5042_v5, %v5006_v59  ;;  %v5178_v5 = vadd.f32 %v13064_v22, %v13035_v23  ;;  %v5274_v34 = vadd.f32 %v5255_v32, %v5232_v50  ;;  %v6418_v23 = vsel %vm419_vm4, %v11969_v60, %v12306_v30 }
 0x641   :  { %5896 = vmatpush.bf16.msrb.mxu1 %v5873_v40 }
 0x642   :  { %10289 = vmatmul.msk.bf16.vlgmr.msra.gmra.mxu0 %vm2792_vm15, %v12896_v10  ;;  %v5234_v59 = vadd.f32 %v13062_v53, %v5178_v5  ;;  %v5320_v11 = vadd.f32 %v13075_v63, %v5274_v34  ;;  %v6060_v53 = vld [vmem:[#allocation3 + $0x70] sm:$0xf]  ;;  %v6421_v63 = vsel %vm2796_vm14, %v6418_v23, 0  ;;  %v6454_v23 = vld [vmem:[#allocation3 + $0xe8] sm:$0xf0] }
 0x643   :  { %6177 = vmatpush.bf16.msra.mxu0 %v6165_v49  ;;  %v5044_v44 = vpop.f32.mrf.mxu3  ;;  %v6102_v49 = vld [vmem:[#allocation3 + $0x70] sm:$0xf0] }
 0x644   :  { %v6104_v52 = vpack.c.bf16 %v6102_v49, %v6102_v49 }
 0x645   :  { %v5002_v29 = vpop.f32.mrf.mxu1 }
 0x646   :  { %v13092_v24 = vpop.f32.mrf.mxu2  ;;  %v5008_v39 = vadd.f32 %v5002_v29, %v4950_v4  ;;  %v6108_v38 = vrot.slane %v6104_v52, 2  ;;  %v6203_v52 = vld [vmem:[#allocation3 + $0xb8] sm:$0xf] }
 0x647   :  { %v5257_v17 = vpop.f32.mrf.mxu0 }
 0x648   :  { %10280 = vmatmul.msk.bf16.vlgmr.msrb.gmra.mxu3 %vm2792_vm15, %v12901_v25  ;;  %v5050_v29 = vadd.f32 %v5044_v44, %v5008_v39  ;;  %v6113_v44 = vsel %vm2796_vm14, %v6108_v38, 0  ;;  %v5276_v18 = vadd.f32 %v5257_v17, %v5234_v59 }
 0x649   :  { %6048 = vmatpush.bf16.msrb.mxu3 %v6025_v41 }
 0x64a   :  { %10295 = vmatmul.msk.bf16.vlgmr.msra.gmra.mxu2 %vm2792_vm15, %v12917_v8  ;;  %v5322_v4 = vadd.f32 %v13092_v24, %v5276_v18 }
 0x64b   :  { %6320 = vmatpush.bf16.msra.mxu2 %v6308_v3  ;;  %v13105_v20 = vpop.f32.mrf.mxu3 }
 0x64d   :  { %v5088_v12 = vpop.f32.mrf.mxu1 }
 0x64e   :  { %v5385_v40 = vpop.f32.mrf.mxu2  ;;  %v5094_v47 = vadd.f32 %v5088_v12, %v5048_v1  ;;  %v6062_v12 = vpack.c.bf16 %v6060_v53, %v6060_v53 }
 0x64f   :  { %v5343_v2 = vpop.f32.mrf.mxu0 }
 0x650   :  { %v5098_v9 = vadd.f32 %v5094_v47, %v12368_v14  ;;  %10278 = vmatmul.msk.bf16.vlgmr.msra.gmra.mxu1 %vm2792_vm15, %v12946_v57  ;;  %v5362_v60 = vadd.f32 %v5343_v2, %v5320_v11  ;;  %v6370_v47 = vpack.c.bf16 %v6368_v37, %v6368_v37  ;;  %v6067_v2 = vsel %vm2796_vm14, %v6062_v12, 0 }
 0x651   :  { %5997 = vmatpush.bf16.msra.mxu1 %v5974_v51  ;;  %v6518_v11 = vsel %vm419_vm4, %v11974_v42, %v12322_v27 }
 0x652   :  { %10580 = vtanh.f32 %v5098_v9  ;;  %10293 = vmatmul.msk.bf16.vlgmr.msrb.gmra.mxu0 %vm2792_vm15, %v12830_v58  ;;  %v5404_v17 = vadd.f32 %v5385_v40, %v5362_v60  ;;  %v6373_v5 = vsel %vm2796_vm14, %v6370_v47, 0 }
 0x653   :  { %6265 = vmatpush.bf16.msrb.mxu0 %v6253_v33  ;;  %v13117_v54 = vpop.f32.mrf.mxu3 }
 0x655   :  { %v5090_v41 = vpop.f32.mrf.mxu1 }
 0x656   :  { %v5387_v55 = vpop.f32.mrf.mxu2  ;;  %v5096_v3 = vadd.f32 %v5090_v41, %v5050_v29  ;;  %v6205_v29 = vpack.c.bf16 %v6203_v52, %v6203_v52 }
 0x657   :  { %v5345_v22 = vpop.f32.mrf.mxu0 }
 0x658   :  { %v10581_v32 = vpop.eup %10580  ;;  %v5100_v35 = vadd.f32 %v5096_v3, %v12715_v61  ;;  %10288 = vmatmul.msk.bf16.vlgmr.msra.gmra.mxu3 %vm2792_vm15, %v12840_v16  ;;  %v5364_v24 = vadd.f32 %v5345_v22, %v5322_v4  ;;  %v6161_v22 = vpop.permute.xlu0 %6160 }
 0x659   :  { %v5106_v19 = vsel %vm11193_vm11, %v10581_v32, 0.0  ;;  %6136 = vmatpush.bf16.msra.mxu3 %v6113_v44  ;;  %v6521_v44 = vsel %vm2796_vm14, %v6518_v11, 0  ;;  %v6163_v18 = vsel %vm566_vm5, %v12276_v26, %v6161_v22 }
 0x65a   :  { %10240 = vst [vmem:[%s14419_s8 + $0x88] sm:$0xff] %v5106_v19  ;;  %10582 = vtanh.f32 %v5100_v35  ;;  %10299 = vmatmul.msk.bf16.vlgmr.msrb.gmra.mxu2 %vm2792_vm15, %v12946_v57  ;;  %v5406_v59 = vadd.f32 %v5387_v55, %v5364_v24  ;;  %v6210_v35 = vsel %vm2796_vm14, %v6205_v29, 0  ;;  %v6456_v55 = vpack.c.bf16 %v6454_v23, %v6454_v23 }
 0x65b   :  { %6433 = vmatpush.bf16.msrb.mxu2 %v6421_v63  ;;  %v13136_v1 = vpop.f32.mrf.mxu3  ;;  %v6168_v47 = vsel %vm2796_vm14, %v6163_v18, 0 }
 0x65d   :  { %v13138_v49 = vpop.f32.mrf.mxu1 }
 0x65e   :  { %v5473_v50 = vpop.f32.mrf.mxu2  ;;  %v5190_v23 = vadd.f32 %v13138_v49, %v13105_v20 }
 0x65f   :  { %v5431_v13 = vpop.f32.mrf.mxu0 }
 0x660   :  { %v10583_v39 = vpop.eup %10582  ;;  %v5450_v9 = vadd.f32 %v5431_v13, %v5404_v17  ;;  %10282 = vmatmul.msk.bf16.vlgmr.msrb.gmra.mxu1 %vm2792_vm15, %v12968_v0  ;;  %v6600_v17 = vld [vmem:[#allocation3 + $0x90] sm:$0xf0]  ;;  %v6304_v26 = vpop.permute.xlu0 %6303 }
 0x661   :  { %v5108_v51 = vsel %vm11193_vm11, %v10583_v39, 0.0  ;;  %6090 = vmatpush.bf16.msrb.mxu1 %v6067_v2  ;;  %v6602_v39 = vpack.c.bf16 %v6600_v17, %v6600_v17 }
 0x662   :  { %10242 = vst [vmem:[%s14419_s8 + $0x98] sm:$0xff] %v5108_v51  ;;  %v5492_v40 = vadd.f32 %v5473_v50, %v5450_v9  ;;  %10297 = vmatmul.msk.bf16.vlgmr.msra.gmra.mxu0 %vm2792_vm15, %v12866_v62  ;;  %v6460_v50 = vrot.slane %v6456_v55, 2  ;;  %v6306_v51 = vsel %vm566_vm5, %v12290_v48, %v6304_v26  ;;  %v5233_v55 = vadd.f32 %v13136_v1, %v5190_v23 }
 0x663   :  { %6385 = vmatpush.bf16.msra.mxu0 %v6373_v5  ;;  %v13152_v34 = vpop.f32.mrf.mxu3  ;;  %v6245_v5 = vld [vmem:[#allocation3 + $0xb8] sm:$0xf0] }
 0x664   :  { %v5496_v33 = vadd.f32 %v5492_v40, %v12368_v14  ;;  %v6463_v13 = vsel %vm2796_vm14, %v6460_v50, 0  ;;  %v6247_v48 = vpack.c.bf16 %v6245_v5, %v6245_v5 }
 0x665   :  { %v13155_v38 = vpop.f32.mrf.mxu1 }
 0x666   :  { %v5475_v41 = vpop.f32.mrf.mxu2  ;;  %10584 = vtanh.f32 %v5496_v33  ;;  %v6606_v33 = vrot.slane %v6602_v39, 2  ;;  %v6251_v22 = vrot.slane %v6247_v48, 2  ;;  %v5192_v50 = vadd.f32 %v13155_v38, %v13117_v54  ;;  %v6369_v54 = vld [vmem:[#allocation3 + $0x30] sm:$0xf] }
 0x667   :  { %v5433_v3 = vpop.f32.mrf.mxu0  ;;  %v6664_v48 = vsel %vm419_vm4, %v11987_v7, %v12341_v45 }
 0x668   :  { %v5452_v32 = vadd.f32 %v5433_v3, %v5406_v59  ;;  %10292 = vmatmul.msk.bf16.vlgmr.msrb.gmra.mxu3 %vm2792_vm15, %v12876_v31  ;;  %v6609_v59 = vsel %vm2796_vm14, %v6606_v33, 0  ;;  %v6558_v3 = vld [vmem:[#allocation3 + $0x90] sm:$0xf]  ;;  %v5235_v39 = vadd.f32 %v13152_v34, %v5192_v50 }
 0x669   :  { %6233 = vmatpush.bf16.msrb.mxu3 %v6210_v35 }
 0x66a   :  { %v5494_v19 = vadd.f32 %v5475_v41, %v5452_v32  ;;  %10303 = vmatmul.msk.bf16.vlgmr.msra.gmra.mxu2 %vm2792_vm15, %v12968_v0  ;;  %v6311_v41 = vsel %vm2796_vm14, %v6306_v51, 0 }
 0x66b   :  { %6533 = vmatpush.bf16.msra.mxu2 %v6521_v44  ;;  %v5315_v53 = vpop.f32.mrf.mxu3  ;;  %v6560_v44 = vpack.c.bf16 %v6558_v3, %v6558_v3 }
 0x66c   :  { %v10585_v42 = vpop.eup %10584  ;;  %v5498_v63 = vadd.f32 %v5494_v19, %v12715_v61 }
 0x66d   :  { %v5504_v60 = vsel %vm11189_vm10, %v10585_v42, 0.0  ;;  %v5269_v37 = vpop.f32.mrf.mxu1  ;;  %v6256_v42 = vsel %vm2796_vm14, %v6251_v22, 0  ;;  %v6563_v20 = vsel %vm2796_vm14, %v6560_v44, 0 }
 0x66e   :  { %v13171_v12 = vpop.f32.mrf.mxu2  ;;  %10261 = vst [vmem:[%s14419_s8 + $0xa0] sm:$0xff] %v5504_v60  ;;  %10586 = vtanh.f32 %v5498_v63  ;;  %v6417_v63 = vpop.permute.xlu0 %6416  ;;  %v5275_v18 = vadd.f32 %v5269_v37, %v5233_v55  ;;  %v6704_v60 = vld [vmem:[#allocation3 + $0xe0] sm:$0xf] }
 0x66f   :  { %v13176_v4 = vpop.f32.mrf.mxu0  ;;  %v6419_v1 = vsel %vm419_vm4, %v12306_v30, %v6417_v63 }
 0x670   :  { %10290 = vmatmul.msk.bf16.vlgmr.msra.gmra.mxu1 %vm2792_vm15, %v12896_v10  ;;  %v5321_v26 = vadd.f32 %v5315_v53, %v5275_v18  ;;  %v6455_v18 = vld [vmem:[#allocation3 + $0x30] sm:$0xf0] }
 0x671   :  { %6191 = vmatpush.bf16.msra.mxu1 %v6168_v47 }
 0x672   :  { %10301 = vmatmul.msk.bf16.vlgmr.msrb.gmra.mxu0 %vm2792_vm15, %v12901_v25 }
 0x673   :  { %6475 = vmatpush.bf16.msrb.mxu0 %v6463_v13  ;;  %v5317_v9 = vpop.f32.mrf.mxu3  ;;  %v6706_v13 = vpack.c.bf16 %v6704_v60, %v6704_v60 }
 0x674   :  { %v10587_v2 = vpop.eup %10586 }
 0x675   :  { %v5506_v52 = vsel %vm11189_vm10, %v10587_v2, 0.0  ;;  %v5271_v24 = vpop.f32.mrf.mxu1  ;;  %v6709_v30 = vsel %vm2796_vm14, %v6706_v13, 0 }
 0x676   :  { %v13188_v40 = vpop.f32.mrf.mxu2  ;;  %10263 = vst [vmem:[%s14419_s8 + $0xb0] sm:$0xff] %v5506_v52  ;;  %v5277_v38 = vadd.f32 %v5271_v24, %v5235_v39  ;;  %v6371_v52 = vpack.c.bf16 %v6369_v54, %v6369_v54  ;;  %v6813_v24 = vld [vmem:[#allocation3 + $0xe8] sm:$0xf0]  ;;  %v6517_v22 = vpop.permute.xlu0 %6516 }
 0x677   :  { %v13193_v29 = vpop.f32.mrf.mxu0  ;;  %v6519_v55 = vsel %vm419_vm4, %v12322_v27, %v6517_v22 }
 0x678   :  { %10296 = vmatmul.msk.bf16.vlgmr.msra.gmra.mxu3 %vm2792_vm15, %v12917_v8  ;;  %v5323_v34 = vadd.f32 %v5317_v9, %v5277_v38 }
 0x679   :  { %6334 = vmatpush.bf16.msra.mxu3 %v6311_v41 }
 0x67a   :  { %10311 = vmatmul.msk.bf16.vlgmr.msrb.gmra.mxu2 %vm2792_vm15, %v12896_v10 }
 0x67b   :  { %6621 = vmatpush.bf16.msrb.mxu2 %v6609_v59  ;;  %v5399_v11 = vpop.f32.mrf.mxu3 }
 0x67d   :  { %v5357_v32 = vpop.f32.mrf.mxu1 }
 0x67e   :  { %v13203_v35 = vpop.f32.mrf.mxu2  ;;  %v5363_v2 = vadd.f32 %v5357_v32, %v5321_v26  ;;  %v6815_v32 = vpack.c.bf16 %v6813_v24, %v6813_v24 }
 0x67f   :  { %v13205_v19 = vpop.f32.mrf.mxu0 }
 0x680   :  { %10294 = vmatmul.msk.bf16.vlgmr.msrb.gmra.mxu1 %vm2792_vm15, %v12830_v58  ;;  %v5405_v51 = vadd.f32 %v5399_v11, %v5363_v2  ;;  %v6667_v11 = vsel %vm2796_vm14, %v6664_v48, 0  ;;  %v6819_v50 = vrot.slane %v6815_v32, 2  ;;  %v6559_v32 = vld [vmem:[#allocation3 + $0x68] sm:$0xf] }
 0x681   :  { %6279 = vmatpush.bf16.msrb.mxu1 %v6256_v42 }
 0x682   :  { %10309 = vmatmul.msk.bf16.vlgmr.msra.gmra.mxu0 %vm2792_vm15, %v12840_v16  ;;  %v6424_v16 = vsel %vm2796_vm14, %v6419_v1, 0 }
 0x683   :  { %6575 = vmatpush.bf16.msra.mxu0 %v6563_v20  ;;  %v5401_v49 = vpop.f32.mrf.mxu3  ;;  %v5575_v20 = vadd.f32 %v13171_v12, %v13176_v4  ;;  %v6822_v12 = vsel %vm2796_vm14, %v6819_v50, 0 }
 0x685   :  { %v5359_v17 = vpop.f32.mrf.mxu1  ;;  %v5635_v13 = vadd.f32 %v13205_v19, %v5575_v20 }
 0x686   :  { %v13218_v47 = vpop.f32.mrf.mxu2  ;;  %v5365_v3 = vadd.f32 %v5359_v17, %v5323_v34  ;;  %v6746_v17 = vld [vmem:[#allocation3 + $0xe0] sm:$0xf0] }
 0x687   :  { %v13220_v37 = vpop.f32.mrf.mxu0  ;;  %v6748_v4 = vpack.c.bf16 %v6746_v17, %v6746_v17  ;;  %v6973_v17 = vld [vmem:[#allocation3 + $0x90] sm:$0xf0] }
 0x688   :  { %10300 = vmatmul.msk.bf16.vlgmr.msrb.gmra.mxu3 %vm2792_vm15, %v12946_v57  ;;  %v5407_v44 = vadd.f32 %v5401_v49, %v5365_v3  ;;  %v6457_v49 = vpack.c.bf16 %v6455_v18, %v6455_v18  ;;  %v6889_v3 = vld [vmem:[#allocation3 + $0x28] sm:$0xf] }
 0x689   :  { %6447 = vmatpush.bf16.msrb.mxu3 %v6424_v16 }
 0x68a   :  { %10315 = vmatmul.msk.bf16.vlgmr.msra.gmra.mxu2 %vm2792_vm15, %v12830_v58  ;;  %v6376_v58 = vsel %vm2796_vm14, %v6371_v52, 0  ;;  %v6461_v19 = vrot.slane %v6457_v49, 2  ;;  %v6705_v49 = vld [vmem:[#allocation3 + $0x8] sm:$0xf] }
 0x68b   :  { %6721 = vmatpush.bf16.msra.mxu2 %v6709_v30  ;;  %v5487_v53 = vpop.f32.mrf.mxu3  ;;  %v6601_v30 = vld [vmem:[#allocation3 + $0x68] sm:$0xf0] }
 0x68c   :  { %v6603_v34 = vpack.c.bf16 %v6601_v30, %v6601_v30 }
 0x68d   :  { %v5445_v5 = vpop.f32.mrf.mxu1 }
 0x68e   :  { %v13229_v33 = vpop.f32.mrf.mxu2  ;;  %v5451_v41 = vadd.f32 %v5445_v5, %v5405_v51  ;;  %v6752_v51 = vrot.slane %v6748_v4, 2  ;;  %v6466_v5 = vsel %vm2796_vm14, %v6461_v19, 0  ;;  %v6707_v4 = vpack.c.bf16 %v6705_v49, %v6705_v49 }
 0x68f   :  { %v5704_v59 = vpop.f32.mrf.mxu0 }
 0x690   :  { %v5493_v23 = vadd.f32 %v5487_v53, %v5451_v41  ;;  %10298 = vmatmul.msk.bf16.vlgmr.msra.gmra.mxu1 %vm2792_vm15, %v12866_v62  ;;  %v5681_v53 = vadd.f32 %v13203_v35, %v5635_v13 }
 0x691   :  { %6399 = vmatpush.bf16.msra.mxu1 %v6376_v58 }
 0x692   :  { %v5497_v9 = vadd.f32 %v5493_v23, %v12368_v14  ;;  %10313 = vmatmul.msk.bf16.vlgmr.msrb.gmra.mxu0 %vm2792_vm15, %v12876_v31  ;;  %v6524_v31 = vsel %vm2796_vm14, %v6519_v55, 0  ;;  %v5723_v24 = vadd.f32 %v5704_v59, %v5681_v53  ;;  %v6607_v23 = vrot.slane %v6603_v34, 2 }
 0x693   :  { %6679 = vmatpush.bf16.msrb.mxu0 %v6667_v11  ;;  %v5489_v7 = vpop.f32.mrf.mxu3  ;;  %v6891_v11 = vpack.c.bf16 %v6889_v3, %v6889_v3 }
 0x694   :  { %10588 = vtanh.f32 %v5497_v9  ;;  %v6612_v9 = vsel %vm2796_vm14, %v6607_v23, 0 }
 0x695   :  { %v5447_v42 = vpop.f32.mrf.mxu1  ;;  %v6894_v55 = vsel %vm2796_vm14, %v6891_v11, 0 }
 0x696   :  { %v13243_v63 = vpop.f32.mrf.mxu2  ;;  %v5453_v60 = vadd.f32 %v5447_v42, %v5407_v44  ;;  %v6561_v42 = vpack.c.bf16 %v6559_v32, %v6559_v32 }
 0x697   :  { %v5706_v1 = vpop.f32.mrf.mxu0 }
 0x698   :  { %v5495_v26 = vadd.f32 %v5489_v7, %v5453_v60  ;;  %10304 = vmatmul.msk.bf16.vlgmr.msra.gmra.mxu3 %vm2792_vm15, %v12968_v0 }
 0x699   :  { %6547 = vmatpush.bf16.msra.mxu3 %v6524_v31 }
 0x69a   :  { %v10589_v27 = vpop.eup %10588  ;;  %v5499_v16 = vadd.f32 %v5495_v26, %v12715_v61  ;;  %10319 = vmatmul.msk.bf16.vlgmr.msrb.gmra.mxu2 %vm2792_vm15, %v12866_v62  ;;  %v5577_v62 = vadd.f32 %v13188_v40, %v13193_v29  ;;  %v6755_v40 = vsel %vm2796_vm14, %v6752_v51, 0  ;;  %v13298_v26 = vld [vmem:[#allocation12 + $0x8] sm:$0xff]  ;;  %v13313_v51 = vld [vmem:[#allocation12 + $0x18] sm:$0xff] }
 0x69b   :  { %v5505_v39 = vsel %vm11193_vm11, %v10589_v27, 0.0  ;;  %6834 = vmatpush.bf16.msrb.mxu2 %v6822_v12  ;;  %v13257_v2 = vpop.f32.mrf.mxu3 }
 0x69c   :  { %10262 = vst [vmem:[%s14419_s8 + $0xa8] sm:$0xff] %v5505_v39  ;;  %10590 = vtanh.f32 %v5499_v16  ;;  %v5637_v48 = vadd.f32 %v13220_v37, %v5577_v62  ;;  %v6975_v16 = vpack.c.bf16 %v6973_v17, %v6973_v17 }
 0x69d   :  { %v13262_v54 = vpop.f32.mrf.mxu1 }
 0x69e   :  { %v5838_v38 = vpop.f32.mrf.mxu2  ;;  %v5683_v59 = vadd.f32 %v13218_v47, %v5637_v48  ;;  %v6979_v30 = vrot.slane %v6975_v16, 2 }
 0x69f   :  { %v5796_v52 = vpop.f32.mrf.mxu0 }
 0x6a0   :  { %10302 = vmatmul.msk.bf16.vlgmr.msrb.gmra.mxu1 %vm2792_vm15, %v12901_v25  ;;  %v5725_v7 = vadd.f32 %v5706_v1, %v5683_v59 }
 0x6a1   :  { %6489 = vmatpush.bf16.msrb.mxu1 %v6466_v5  ;;  %v6663_v5 = vpop.permute.xlu0 %6662 }
 0x6a2   :  { %v10591_v41 = vpop.eup %10590  ;;  %10317 = vmatmul.msk.bf16.vlgmr.msra.gmra.mxu0 %vm2792_vm15, %v12917_v8  ;;  %v5769_v8 = vadd.f32 %v13229_v33, %v5723_v24  ;;  %v6809_v33 = vld [vmem:[#allocation3 + $0xe8] sm:$0xf] }
 0x6a3   :  { %v5507_v29 = vsel %vm11193_vm11, %v10591_v41, 0.0  ;;  %6767 = vmatpush.bf16.msra.mxu0 %v6755_v40  ;;  %v13276_v35 = vpop.f32.mrf.mxu3  ;;  %v6811_v50 = vpack.c.bf16 %v6809_v33, %v6809_v33  ;;  %v6982_v41 = vsel %vm2796_vm14, %v6979_v30, 0  ;;  %v6931_v40 = vld [vmem:[#allocation3 + $0x90] sm:$0xf] }
 0x6a4   :  { %10264 = vst [vmem:[%s14419_s8 + $0xb8] sm:$0xff] %v5507_v29  ;;  %v5815_v44 = vadd.f32 %v5796_v52, %v5769_v8  ;;  %v6665_v29 = vsel %vm419_vm4, %v12341_v45, %v6663_v5  ;;  %v6933_v59 = vpack.c.bf16 %v6931_v40, %v6931_v40  ;;  %v13375_v5 = vld [vmem:[#allocation12] sm:$0xff] }
 0x6a5   :  { %v13281_v58 = vpop.f32.mrf.mxu1  ;;  %v6670_v11 = vsel %vm2796_vm14, %v6665_v29, 0 }
 0x6a6   :  { %v5840_v37 = vpop.f32.mrf.mxu2  ;;  %v5857_v60 = vadd.f32 %v5838_v38, %v5815_v44  ;;  %v6936_v45 = vsel %vm2796_vm14, %v6933_v59, 0 }
 0x6a7   :  { %v5798_v22 = vpop.f32.mrf.mxu0 }
 0x6a8   :  { %10312 = vmatmul.msk.bf16.vlgmr.msrb.gmra.mxu3 %vm2792_vm15, %v12896_v10  ;;  %v5771_v10 = vadd.f32 %v13243_v63, %v5725_v7  ;;  %v6856_v63 = vsel %vm2796_vm14, %v6811_v50, 0 }
 0x6a9   :  { %6635 = vmatpush.bf16.msrb.mxu3 %v6612_v9 }
 0x6aa   :  { %10323 = vmatmul.msk.bf16.vlgmr.msra.gmra.mxu2 %vm2792_vm15, %v12901_v25  ;;  %v6566_v25 = vsel %vm2796_vm14, %v6561_v42, 0  ;;  %v5817_v27 = vadd.f32 %v5798_v22, %v5771_v10  ;;  %v13336_v22 = vld [vmem:[#allocation12 + $0x10] sm:$0xff] }
 0x6ab   :  { %6906 = vmatpush.bf16.msra.mxu2 %v6894_v55  ;;  %v13291_v47 = vpop.f32.mrf.mxu3  ;;  %v7061_v55 = vld [vmem:[#allocation3 + $0xe0] sm:$0xf] }
 0x6ac   :  { %v5859_v38 = vadd.f32 %v5840_v37, %v5817_v27  ;;  %v6814_v37 = vld [vmem:[#allocation3 + $0x30] sm:$0xf0]  ;;  %v7063_v50 = vpack.c.bf16 %v7061_v55, %v7061_v55 }
 0x6ad   :  { %v13293_v18 = vpop.f32.mrf.mxu1  ;;  %v6816_v9 = vpack.c.bf16 %v6814_v37, %v6814_v37 }
 0x6ae   :  { %v13295_v20 = vpop.f32.mrf.mxu2  ;;  %v7066_v49 = vsel %vm2796_vm14, %v7063_v50, 0 }
 0x6af   :  { %v5884_v1 = vpop.f32.mrf.mxu0  ;;  %v6820_v33 = vrot.slane %v6816_v9, 2 }
 0x6b0   :  { %v5903_v31 = vadd.f32 %v5884_v1, %v5857_v60  ;;  %10310 = vmatmul.msk.bf16.vlgmr.msra.gmra.mxu1 %vm2792_vm15, %v13298_v26  ;;  %v6747_v60 = vld [vmem:[#allocation3 + $0x8] sm:$0xf0]  ;;  %v13354_v1 = vld [vmem:[#allocation12 + $0x28] sm:$0xff] }
 0x6b1   :  { %6589 = vmatpush.bf16.msra.mxu1 %v6566_v25  ;;  %v6825_v17 = vsel %vm2796_vm14, %v6820_v33, 0  ;;  %v5589_v25 = vadd.f32 %v13257_v2, %v13262_v54  ;;  %v6890_v54 = vld [vmem:[#allocation3 + $0x70] sm:$0xf] }
 0x6b2   :  { %v5907_v13 = vadd.f32 %v5903_v31, %v12368_v14  ;;  %10321 = vmatmul.msk.bf16.vlgmr.msrb.gmra.mxu0 %vm2792_vm15, %v12946_v57  ;;  %v6712_v57 = vsel %vm2796_vm14, %v6707_v4, 0  ;;  %v6749_v31 = vpack.c.bf16 %v6747_v60, %v6747_v60  ;;  %v6892_v40 = vpack.c.bf16 %v6890_v54, %v6890_v54 }
 0x6b3   :  { %6868 = vmatpush.bf16.msrb.mxu0 %v6856_v63  ;;  %v13307_v12 = vpop.f32.mrf.mxu3  ;;  %v5636_v63 = vadd.f32 %v13293_v18, %v5589_v25  ;;  %v5591_v18 = vadd.f32 %v13276_v35, %v13281_v58  ;;  %v6974_v25 = vld [vmem:[#allocation3 + $0x68] sm:$0xf0] }
 0x6b4   :  { %10592 = vtanh.f32 %v5907_v13  ;;  %v7019_v13 = vld [vmem:[#allocation3 + $0x88] sm:$0xf]  ;;  %v6753_v16 = vrot.slane %v6749_v31, 2 }
 0x6b5   :  { %v13309_v39 = vpop.f32.mrf.mxu1  ;;  %v7021_v30 = vpack.c.bf16 %v7019_v13, %v7019_v13 }
 0x6b6   :  { %v13311_v19 = vpop.f32.mrf.mxu2  ;;  %v6758_v2 = vsel %vm2796_vm14, %v6753_v16, 0 }
 0x6b7   :  { %v5886_v62 = vpop.f32.mrf.mxu0 }
 0x6b8   :  { %v5905_v53 = vadd.f32 %v5886_v62, %v5859_v38  ;;  %10316 = vmatmul.msk.bf16.vlgmr.msra.gmra.mxu3 %vm2792_vm15, %v13313_v51 }
 0x6b9   :  { %6735 = vmatpush.bf16.msra.mxu3 %v6712_v57  ;;  %v13368_v57 = vld [vmem:[#allocation12 + $0x20] sm:$0xff] }
 0x6ba   :  { %v10593_v52 = vpop.eup %10592  ;;  %v5909_v34 = vadd.f32 %v5905_v53, %v12715_v61  ;;  %10331 = vmatmul.msk.bf16.vlgmr.msrb.gmra.mxu2 %vm2792_vm15, %v13298_v26  ;;  %v5682_v53 = vadd.f32 %v13291_v47, %v5636_v63  ;;  %v7024_v47 = vsel %vm2796_vm14, %v7021_v30, 0  ;;  %v13400_v30 = vld [vmem:[#allocation12 + $0x30] sm:$0xff] }
 0x6bb   :  { %v5915_v48 = vsel %vm11189_vm10, %v10593_v52, 0.0  ;;  %6994 = vmatpush.bf16.msrb.mxu2 %v6982_v41  ;;  %v13324_v24 = vpop.f32.mrf.mxu3  ;;  %v7149_v41 = vld [vmem:[#allocation3 + $0xc8] sm:$0xf] }
 0x6bc   :  { %10283 = vst [vmem:[%s14419_s8 + $0xc0] sm:$0xff] %v5915_v48  ;;  %10594 = vtanh.f32 %v5909_v34  ;;  %v5638_v48 = vadd.f32 %v13309_v39, %v5591_v18  ;;  %v7151_v35 = vpack.c.bf16 %v7149_v41, %v7149_v41  ;;  %v6810_v39 = vld [vmem:[#allocation3 + $0x30] sm:$0xf] }
 0x6bd   :  { %v5718_v3 = vpop.f32.mrf.mxu1  ;;  %v6812_v50 = vpack.c.bf16 %v6810_v39, %v6810_v39  ;;  %v7212_v39 = vld [vmem:[#allocation3 + $0x28] sm:$0xf] }
 0x6be   :  { %v13331_v23 = vpop.f32.mrf.mxu2  ;;  %v5724_v52 = vadd.f32 %v5718_v3, %v5682_v53  ;;  %v7103_v3 = vld [vmem:[#allocation3 + $0xe0] sm:$0xf0]  ;;  %v6976_v53 = vpack.c.bf16 %v6974_v25, %v6974_v25 }
 0x6bf   :  { %v13333_v8 = vpop.f32.mrf.mxu0 }
 0x6c0   :  { %10314 = vmatmul.msk.bf16.vlgmr.msrb.gmra.mxu1 %vm2792_vm15, %v13336_v22  ;;  %v5770_v59 = vadd.f32 %v13324_v24, %v5724_v52  ;;  %v7154_v24 = vsel %vm2796_vm14, %v7151_v35, 0 }
 0x6c1   :  { %6693 = vmatpush.bf16.msrb.mxu1 %v6670_v11  ;;  %v5684_v11 = vadd.f32 %v13307_v12, %v5638_v48  ;;  %v7105_v12 = vpack.c.bf16 %v7103_v3, %v7103_v3 }
 0x6c2   :  { %v10595_v32 = vpop.eup %10594  ;;  %10325 = vmatmul.msk.bf16.vlgmr.msra.gmra.mxu0 %vm2792_vm15, %v12968_v0 }
 0x6c3   :  { %v5917_v7 = vsel %vm11189_vm10, %v10595_v32, 0.0  ;;  %6948 = vmatpush.bf16.msra.mxu0 %v6936_v45  ;;  %v13345_v44 = vpop.f32.mrf.mxu3  ;;  %v13385_v32 = vld [vmem:[#allocation12 + $0x38] sm:$0xff]  ;;  %v6897_v45 = vsel %vm2796_vm14, %v6892_v40, 0 }
 0x6c4   :  { %10285 = vst [vmem:[%s14419_s8 + $0xd0] sm:$0xff] %v5917_v7  ;;  %v5986_v7 = vadd.f32 %v13333_v8, %v13295_v20  ;;  %v7109_v8 = vrot.slane %v7105_v12, 2 }
 0x6c5   :  { %v5720_v42 = vpop.f32.mrf.mxu1 }
 0x6c6   :  { %v13350_v10 = vpop.f32.mrf.mxu2  ;;  %v5726_v55 = vadd.f32 %v5720_v42, %v5684_v11  ;;  %v7208_v42 = vld [vmem:[#allocation3 + $0xe8] sm:$0xf0]  ;;  %v7112_v54 = vsel %vm2796_vm14, %v7109_v8, 0  ;;  %v6932_v11 = vld [vmem:[#allocation3 + $0x68] sm:$0xf] }
 0x6c7   :  { %v13352_v0 = vpop.f32.mrf.mxu0 }
 0x6c8   :  { %10320 = vmatmul.msk.bf16.vlgmr.msrb.gmra.mxu3 %vm2792_vm15, %v13354_v1  ;;  %v5772_v13 = vadd.f32 %v13345_v44, %v5726_v55 }
 0x6c9   :  { %6848 = vmatpush.bf16.msrb.mxu3 %v6825_v17 }
 0x6ca   :  { %10335 = vmatmul.msk.bf16.vlgmr.msra.gmra.mxu2 %vm2792_vm15, %v13336_v22 }
 0x6cb   :  { %7078 = vmatpush.bf16.msra.mxu2 %v7066_v49  ;;  %v5852_v27 = vpop.f32.mrf.mxu3  ;;  %v6055_v49 = vadd.f32 %v13331_v23, %v5986_v7  ;;  %v5988_v23 = vadd.f32 %v13352_v0, %v13311_v19  ;;  %v6934_v7 = vpack.c.bf16 %v6932_v11, %v6932_v11 }
 0x6cd   :  { %v5810_v4 = vpop.f32.mrf.mxu1  ;;  %v6057_v40 = vadd.f32 %v13350_v10, %v5988_v23 }
 0x6ce   :  { %v13365_v38 = vpop.f32.mrf.mxu2  ;;  %v5816_v9 = vadd.f32 %v5810_v4, %v5770_v59 }
 0x6cf   :  { %v6078_v62 = vpop.f32.mrf.mxu0 }
 0x6d0   :  { %10318 = vmatmul.msk.bf16.vlgmr.msra.gmra.mxu1 %vm2792_vm15, %v13368_v57  ;;  %v5858_v60 = vadd.f32 %v5852_v27, %v5816_v9  ;;  %v6859_v27 = vsel %vm2796_vm14, %v6812_v50, 0  ;;  %v6097_v44 = vadd.f32 %v6078_v62, %v6055_v49 }
 0x6d1   :  { %6781 = vmatpush.bf16.msra.mxu1 %v6758_v2  ;;  %v7210_v2 = vpack.c.bf16 %v7208_v42, %v7208_v42  ;;  %v7062_v42 = vld [vmem:[#allocation3 + $0x8] sm:$0xf] }
 0x6d2   :  { %10333 = vmatmul.msk.bf16.vlgmr.msrb.gmra.mxu0 %vm2792_vm15, %v13375_v5 }
 0x6d3   :  { %7036 = vmatpush.bf16.msrb.mxu0 %v7024_v47  ;;  %v5854_v34 = vpop.f32.mrf.mxu3  ;;  %v6980_v47 = vrot.slane %v6976_v53, 2  ;;  %v7252_v19 = vrot.slane %v7210_v2, 2  ;;  %v7064_v53 = vpack.c.bf16 %v7062_v42, %v7062_v42 }
 0x6d5   :  { %v5812_v29 = vpop.f32.mrf.mxu1  ;;  %v6985_v3 = vsel %vm2796_vm14, %v6980_v47, 0  ;;  %v7288_v47 = vld [vmem:[#allocation3 + $0x28] sm:$0xf0] }
 0x6d6   :  { %v13381_v37 = vpop.f32.mrf.mxu2  ;;  %v5818_v16 = vadd.f32 %v5812_v29, %v5772_v13  ;;  %v6143_v29 = vadd.f32 %v13365_v38, %v6097_v44  ;;  %v7255_v38 = vsel %vm2796_vm14, %v7252_v19, 0  ;;  %v13431_v13 = vld [vmem:[#allocation12 + $0x40] sm:$0xff] }
 0x6d7   :  { %v6080_v58 = vpop.f32.mrf.mxu0 }
 0x6d8   :  { %10324 = vmatmul.msk.bf16.vlgmr.msra.gmra.mxu3 %vm2792_vm15, %v13385_v32  ;;  %v5860_v52 = vadd.f32 %v5854_v34, %v5818_v16  ;;  %v6099_v9 = vadd.f32 %v6080_v58, %v6057_v40  ;;  %v7069_v40 = vsel %vm2796_vm14, %v7064_v53, 0  ;;  %v7380_v53 = vld [vmem:[#allocation3 + $0x88] sm:$0xf] }
 0x6d9   :  { %6920 = vmatpush.bf16.msra.mxu3 %v6897_v45 }
 0x6da   :  { %10339 = vmatmul.msk.bf16.vlgmr.msrb.gmra.mxu2 %vm2792_vm15, %v13368_v57  ;;  %v6145_v58 = vadd.f32 %v13381_v37, %v6099_v9 }
 0x6db   :  { %7166 = vmatpush.bf16.msrb.mxu2 %v7154_v24  ;;  %v13395_v33 = vpop.f32.mrf.mxu3 }
 0x6dd   :  { %v5898_v17 = vpop.f32.mrf.mxu1 }
 0x6de   :  { %v6221_v31 = vpop.f32.mrf.mxu2  ;;  %v5904_v20 = vadd.f32 %v5898_v17, %v5858_v60  ;;  %v7214_v60 = vpack.c.bf16 %v7212_v39, %v7212_v39  ;;  %v7334_v17 = vld [vmem:[#allocation3 + $0x90] sm:$0xf0]  ;;  %v7422_v39 = vld [vmem:[#allocation3 + $0x88] sm:$0xf0] }
 0x6df   :  { %v6179_v63 = vpop.f32.mrf.mxu0  ;;  %v7336_v16 = vpack.c.bf16 %v7334_v17, %v7334_v17 }
 0x6e0   :  { %v5908_v4 = vadd.f32 %v5904_v20, %v12368_v14  ;;  %10322 = vmatmul.msk.bf16.vlgmr.msrb.gmra.mxu1 %vm2792_vm15, %v13400_v30  ;;  %v6198_v10 = vadd.f32 %v6179_v63, %v6143_v29  ;;  %v6939_v20 = vsel %vm2796_vm14, %v6934_v7, 0  ;;  %v7217_v63 = vsel %vm2796_vm14, %v7214_v60, 0  ;;  %v7020_v29 = vld [vmem:[#allocation3 + $0xb8] sm:$0xf] }
 0x6e1   :  { %6882 = vmatpush.bf16.msrb.mxu1 %v6859_v27 }
 0x6e2   :  { %10596 = vtanh.f32 %v5908_v4  ;;  %10337 = vmatmul.msk.bf16.vlgmr.msra.gmra.mxu0 %vm2792_vm15, %v13313_v51  ;;  %v6240_v12 = vadd.f32 %v6221_v31, %v6198_v10 }
 0x6e3   :  { %7124 = vmatpush.bf16.msra.mxu0 %v7112_v54  ;;  %v13410_v18 = vpop.f32.mrf.mxu3  ;;  %v7340_v54 = vrot.slane %v7336_v16, 2 }
 0x6e5   :  { %v5900_v41 = vpop.f32.mrf.mxu1  ;;  %v7343_v19 = vsel %vm2796_vm14, %v7340_v54, 0 }
 0x6e6   :  { %v6223_v48 = vpop.f32.mrf.mxu2  ;;  %v5906_v59 = vadd.f32 %v5900_v41, %v5860_v52 }
 0x6e7   :  { %v6181_v0 = vpop.f32.mrf.mxu0 }
 0x6e8   :  { %v10597_v62 = vpop.eup %10596  ;;  %v5910_v35 = vadd.f32 %v5906_v59, %v12715_v61  ;;  %10332 = vmatmul.msk.bf16.vlgmr.msrb.gmra.mxu3 %vm2792_vm15, %v13298_v26  ;;  %v6200_v37 = vadd.f32 %v6181_v0, %v6145_v58  ;;  %v7290_v0 = vpack.c.bf16 %v7288_v47, %v7288_v47  ;;  %v7209_v47 = vld [vmem:[#allocation3 + $0x30] sm:$0xf0] }
 0x6e9   :  { %v5916_v34 = vsel %vm11193_vm11, %v10597_v62, 0.0  ;;  %7008 = vmatpush.bf16.msrb.mxu3 %v6985_v3  ;;  %v7022_v3 = vpack.c.bf16 %v7020_v29, %v7020_v29 }
 0x6ea   :  { %10284 = vst [vmem:[%s14419_s8 + $0xc8] sm:$0xff] %v5916_v34  ;;  %10598 = vtanh.f32 %v5910_v35  ;;  %10343 = vmatmul.msk.bf16.vlgmr.msra.gmra.mxu2 %vm2792_vm15, %v13400_v30  ;;  %v6242_v44 = vadd.f32 %v6223_v48, %v6200_v37  ;;  %v7294_v10 = vrot.slane %v7290_v0, 2 }
 0x6eb   :  { %7267 = vmatpush.bf16.msra.mxu2 %v7255_v38  ;;  %v13426_v45 = vpop.f32.mrf.mxu3  ;;  %v7027_v7 = vsel %vm2796_vm14, %v7022_v3, 0 }
 0x6ec   :  { %v7297_v58 = vsel %vm2796_vm14, %v7294_v10, 0 }
 0x6ed   :  { %v13428_v55 = vpop.f32.mrf.mxu1 }
 0x6ee   :  { %v6322_v24 = vpop.f32.mrf.mxu2 }
 0x6ef   :  { %v6267_v50 = vpop.f32.mrf.mxu0 }
 0x6f0   :  { %v10599_v25 = vpop.eup %10598  ;;  %v6286_v49 = vadd.f32 %v6267_v50, %v6240_v12  ;;  %10326 = vmatmul.msk.bf16.vlgmr.msra.gmra.mxu1 %vm2792_vm15, %v13431_v13  ;;  %v7424_v12 = vpack.c.bf16 %v7422_v39, %v7422_v39 }
 0x6f1   :  { %v5918_v8 = vsel %vm11193_vm11, %v10599_v25, 0.0  ;;  %6962 = vmatpush.bf16.msra.mxu1 %v6939_v20 }
 0x6f2   :  { %10286 = vst [vmem:[%s14419_s8 + $0xd8] sm:$0xff] %v5918_v8  ;;  %v6341_v31 = vadd.f32 %v6322_v24, %v6286_v49  ;;  %10341 = vmatmul.msk.bf16.vlgmr.msrb.gmra.mxu0 %vm2792_vm15, %v13354_v1  ;;  %v7150_v24 = vld [vmem:[#allocation3 + $0x48] sm:$0xf]  ;;  %v7104_v8 = vld [vmem:[#allocation3 + $0x8] sm:$0xf0]  ;;  %v7428_v42 = vrot.slane %v7424_v12, 2 }
 0x6f3   :  { %7229 = vmatpush.bf16.msrb.mxu0 %v7217_v63  ;;  %v13444_v4 = vpop.f32.mrf.mxu3  ;;  %v7152_v17 = vpack.c.bf16 %v7150_v24, %v7150_v24  ;;  %v7106_v63 = vpack.c.bf16 %v7104_v8, %v7104_v8 }
 0x6f4   :  { %v6345_v27 = vadd.f32 %v6341_v31, %v12368_v14  ;;  %v7431_v16 = vsel %vm2796_vm14, %v7428_v42, 0 }
 0x6f5   :  { %v13447_v2 = vpop.f32.mrf.mxu1  ;;  %v7157_v31 = vsel %vm2796_vm14, %v7152_v17, 0 }
 0x6f6   :  { %v6324_v23 = vpop.f32.mrf.mxu2  ;;  %10600 = vtanh.f32 %v6345_v27 }
 0x6f7   :  { %v6269_v52 = vpop.f32.mrf.mxu0 }
 0x6f8   :  { %v6288_v41 = vadd.f32 %v6269_v52, %v6242_v44  ;;  %10336 = vmatmul.msk.bf16.vlgmr.msra.gmra.mxu3 %vm2792_vm15, %v13336_v22  ;;  %v7110_v44 = vrot.slane %v7106_v63, 2 }
 0x6f9   :  { %7092 = vmatpush.bf16.msra.mxu3 %v7069_v40 }
 0x6fa   :  { %v6343_v59 = vadd.f32 %v6324_v23, %v6288_v41  ;;  %10347 = vmatmul.msk.bf16.vlgmr.msrb.gmra.mxu2 %vm2792_vm15, %v13431_v13  ;;  %v6000_v23 = vadd.f32 %v13428_v55, %v13395_v33  ;;  %v7382_v41 = vpack.c.bf16 %v7380_v53, %v7380_v53 }
 0x6fb   :  { %7355 = vmatpush.bf16.msrb.mxu2 %v7343_v19  ;;  %v6138_v48 = vpop.f32.mrf.mxu3  ;;  %v7211_v19 = vpack.c.bf16 %v7209_v47, %v7209_v47 }
 0x6fc   :  { %v10601_v62 = vpop.eup %10600  ;;  %v6347_v35 = vadd.f32 %v6343_v59, %v12715_v61  ;;  %v6056_v29 = vadd.f32 %v13426_v45, %v6000_v23  ;;  %v7115_v59 = vsel %vm2796_vm14, %v7110_v44, 0  ;;  %v7385_v33 = vsel %vm2796_vm14, %v7382_v41, 0  ;;  %v7623_v44 = vld [vmem:[#allocation3 + $0x28] sm:$0xf0] }
 0x6fd   :  { %v6353_v34 = vsel %vm11189_vm10, %v10601_v62, 0.0  ;;  %v6092_v11 = vpop.f32.mrf.mxu1  ;;  %v7514_v62 = vld [vmem:[#allocation3 + $0xc8] sm:$0xf]  ;;  %v7253_v45 = vrot.slane %v7211_v19, 2 }
 0x6fe   :  { %v13458_v9 = vpop.f32.mrf.mxu2  ;;  %10305 = vst [vmem:[%s14419_s8 + $0xe0] sm:$0xff] %v6353_v34  ;;  %10602 = vtanh.f32 %v6347_v35  ;;  %v6098_v0 = vadd.f32 %v6092_v11, %v6056_v29  ;;  %v6002_v35 = vadd.f32 %v13447_v2, %v13410_v18  ;;  %v7516_v39 = vpack.c.bf16 %v7514_v62, %v7514_v62  ;;  %v7468_v11 = vld [vmem:[#allocation3 + $0xe0] sm:$0xf0] }
 0x6ff   :  { %v13463_v38 = vpop.f32.mrf.mxu0  ;;  %v7258_v12 = vsel %vm2796_vm14, %v7253_v45, 0  ;;  %v7625_v29 = vpack.c.bf16 %v7623_v44, %v7623_v44 }
 0x700   :  { %10334 = vmatmul.msk.bf16.vlgmr.msrb.gmra.mxu1 %vm2792_vm15, %v13375_v5  ;;  %v6144_v10 = vadd.f32 %v6138_v48, %v6098_v0  ;;  %v6058_v24 = vadd.f32 %v13444_v4, %v6002_v35  ;;  %v7519_v2 = vsel %vm2796_vm14, %v7516_v39, 0  ;;  %v7470_v48 = vpack.c.bf16 %v7468_v11, %v7468_v11  ;;  %v7289_v35 = vld [vmem:[#allocation3 + $0x70] sm:$0xf0]  ;;  %v7556_v11 = vld [vmem:[#allocation3 + $0xc8] sm:$0xf0] }
 0x701   :  { %7050 = vmatpush.bf16.msrb.mxu1 %v7027_v7  ;;  %v6436_v45 = vadd.f32 %v13458_v9, %v13463_v38  ;;  %v7558_v38 = vpack.c.bf16 %v7556_v11, %v7556_v11 }
 0x702   :  { %10345 = vmatmul.msk.bf16.vlgmr.msra.gmra.mxu0 %vm2792_vm15, %v13385_v32  ;;  %v7474_v53 = vrot.slane %v7470_v48, 2 }
 0x703   :  { %7309 = vmatpush.bf16.msra.mxu0 %v7297_v58  ;;  %v6140_v60 = vpop.f32.mrf.mxu3 }
 0x704   :  { %v10603_v50 = vpop.eup %10602 }
 0x705   :  { %v6355_v25 = vsel %vm11189_vm10, %v10603_v50, 0.0  ;;  %v6094_v49 = vpop.f32.mrf.mxu1  ;;  %v7213_v50 = vld [vmem:[#allocation3 + $0x70] sm:$0xf] }
 0x706   :  { %v13473_v20 = vpop.f32.mrf.mxu2  ;;  %10307 = vst [vmem:[%s14419_s8 + $0xf0] sm:$0xff] %v6355_v25  ;;  %v6100_v18 = vadd.f32 %v6094_v49, %v6058_v24  ;;  %v7215_v8 = vpack.c.bf16 %v7213_v50, %v7213_v50 }
 0x707   :  { %v13478_v37 = vpop.f32.mrf.mxu0 }
 0x708   :  { %10340 = vmatmul.msk.bf16.vlgmr.msrb.gmra.mxu3 %vm2792_vm15, %v13368_v57  ;;  %v6146_v63 = vadd.f32 %v6140_v60, %v6100_v18  ;;  %v7220_v47 = vsel %vm2796_vm14, %v7215_v8, 0  ;;  %v7477_v60 = vsel %vm2796_vm14, %v7474_v53, 0  ;;  %v7423_v8 = vld [vmem:[#allocation3 + $0xb8] sm:$0xf0] }
 0x709   :  { %7180 = vmatpush.bf16.msrb.mxu3 %v7157_v31  ;;  %v7335_v31 = vld [vmem:[#allocation3 + $0x68] sm:$0xf0]  ;;  %v7425_v44 = vpack.c.bf16 %v7423_v8, %v7423_v8 }
 0x70a   :  { %10355 = vmatmul.msk.bf16.vlgmr.msra.gmra.mxu2 %vm2792_vm15, %v13375_v5  ;;  %v7337_v41 = vpack.c.bf16 %v7335_v31, %v7335_v31 }
 0x70b   :  { %7443 = vmatpush.bf16.msra.mxu2 %v7431_v16  ;;  %v6235_v27 = vpop.f32.mrf.mxu3 }
 0x70c   :  { %v7341_v0 = vrot.slane %v7337_v41, 2  ;;  %v7429_v41 = vrot.slane %v7425_v44, 2 }
 0x70d   :  { %v6193_v54 = vpop.f32.mrf.mxu1 }
 0x70e   :  { %v13488_v52 = vpop.f32.mrf.mxu2  ;;  %v6199_v58 = vadd.f32 %v6193_v54, %v6144_v10  ;;  %v7629_v10 = vrot.slane %v7625_v29, 2  ;;  %v7714_v29 = vsel %vm566_vm5, %v12005_v56, %v12357_v36 }
 0x70f   :  { %v13490_v40 = vpop.f32.mrf.mxu0 }
 0x710   :  { %10338 = vmatmul.msk.bf16.vlgmr.msra.gmra.mxu1 %vm2792_vm15, %v13313_v51  ;;  %v6241_v25 = vadd.f32 %v6235_v27, %v6199_v58  ;;  %v7346_v58 = vsel %vm2796_vm14, %v7341_v0, 0  ;;  %v6496_v50 = vadd.f32 %v13490_v40, %v6436_v45  ;;  %v7632_v9 = vsel %vm2796_vm14, %v7629_v10, 0  ;;  %v7381_v0 = vld [vmem:[#allocation3 + $0xb8] sm:$0xf] }
 0x711   :  { %7138 = vmatpush.bf16.msra.mxu1 %v7115_v59  ;;  %v7383_v56 = vpack.c.bf16 %v7381_v0, %v7381_v0 }
 0x712   :  { %10353 = vmatmul.msk.bf16.vlgmr.msrb.gmra.mxu0 %vm2792_vm15, %v13298_v26  ;;  %v6554_v31 = vadd.f32 %v13488_v52, %v6496_v50 }
 0x713   :  { %7397 = vmatpush.bf16.msrb.mxu0 %v7385_v33  ;;  %v6237_v55 = vpop.f32.mrf.mxu3  ;;  %v7388_v50 = vsel %vm2796_vm14, %v7383_v56, 0 }
 0x715   :  { %v6195_v3 = vpop.f32.mrf.mxu1 }
 0x716   :  { %v13501_v34 = vpop.f32.mrf.mxu2  ;;  %v6201_v49 = vadd.f32 %v6195_v3, %v6146_v63  ;;  %v7562_v63 = vrot.slane %v7558_v38, 2 }
 0x717   :  { %v13503_v7 = vpop.f32.mrf.mxu0 }
 0x718   :  { %10344 = vmatmul.msk.bf16.vlgmr.msra.gmra.mxu3 %vm2792_vm15, %v13400_v30  ;;  %v6243_v19 = vadd.f32 %v6237_v55, %v6201_v49  ;;  %v7291_v55 = vpack.c.bf16 %v7289_v35, %v7289_v35 }
 0x719   :  { %7281 = vmatpush.bf16.msra.mxu3 %v7258_v12 }
 0x71a   :  { %10359 = vmatmul.msk.bf16.vlgmr.msrb.gmra.mxu2 %vm2792_vm15, %v13313_v51  ;;  %v7295_v40 = vrot.slane %v7291_v55, 2 }
 0x71b   :  { %7531 = vmatpush.bf16.msrb.mxu2 %v7519_v2  ;;  %v6336_v17 = vpop.f32.mrf.mxu3 }
 0x71c   :  { %v7300_v53 = vsel %vm2796_vm14, %v7295_v40, 0 }
 0x71d   :  { %v6281_v4 = vpop.f32.mrf.mxu1 }
 0x71e   :  { %v13512_v42 = vpop.f32.mrf.mxu2  ;;  %v6287_v16 = vadd.f32 %v6281_v4, %v6241_v25  ;;  %v6438_v4 = vadd.f32 %v13473_v20, %v13478_v37  ;;  %v7565_v20 = vsel %vm2796_vm14, %v7562_v63, 0 }
 0x71f   :  { %v6577_v23 = vpop.f32.mrf.mxu0 }
 0x720   :  { %v6342_v54 = vadd.f32 %v6336_v17, %v6287_v16  ;;  %10342 = vmatmul.msk.bf16.vlgmr.msrb.gmra.mxu1 %vm2792_vm15, %v13354_v1 }
 0x721   :  { %7243 = vmatpush.bf16.msrb.mxu1 %v7220_v47  ;;  %v6596_v47 = vadd.f32 %v6577_v23, %v6554_v31  ;;  %v7469_v31 = vld [vmem:[#allocation3 + $0x8] sm:$0xf0] }
 0x722   :  { %v6346_v27 = vadd.f32 %v6342_v54, %v12368_v14  ;;  %10357 = vmatmul.msk.bf16.vlgmr.msra.gmra.mxu0 %vm2792_vm15, %v13336_v22  ;;  %v6498_v54 = vadd.f32 %v13503_v7, %v6438_v4 }
 0x723   :  { %7489 = vmatpush.bf16.msra.mxu0 %v7477_v60  ;;  %v6338_v59 = vpop.f32.mrf.mxu3  ;;  %v6642_v60 = vadd.f32 %v13512_v42, %v6596_v47  ;;  %v7619_v42 = vld [vmem:[#allocation3 + $0x28] sm:$0xf] }
 0x724   :  { %10604 = vtanh.f32 %v6346_v27  ;;  %v6556_v23 = vadd.f32 %v13501_v34, %v6498_v54  ;;  %v7471_v54 = vpack.c.bf16 %v7469_v31, %v7469_v31 }
 0x725   :  { %v6283_v33 = vpop.f32.mrf.mxu1 }
 0x726   :  { %v13521_v62 = vpop.f32.mrf.mxu2  ;;  %v6289_v3 = vadd.f32 %v6283_v33, %v6243_v19  ;;  %v7434_v19 = vsel %vm2796_vm14, %v7429_v41, 0  ;;  %v7717_v33 = vsel %vm2796_vm14, %v7714_v29, 0 }
 0x727   :  { %v6579_v39 = vpop.f32.mrf.mxu0 }
 0x728   :  { %v6344_v24 = vadd.f32 %v6338_v59, %v6289_v3  ;;  %10348 = vmatmul.msk.bf16.vlgmr.msrb.gmra.mxu3 %vm2792_vm15, %v13431_v13  ;;  %v6598_v35 = vadd.f32 %v6579_v39, %v6556_v23  ;;  %v7754_v23 = vld [vmem:[#allocation3 + $0x88] sm:$0xf] }
 0x729   :  { %7369 = vmatpush.bf16.msrb.mxu3 %v7346_v58  ;;  %v7621_v58 = vpack.c.bf16 %v7619_v42, %v7619_v42  ;;  %v7756_v0 = vpack.c.bf16 %v7754_v23, %v7754_v23 }
 0x72a   :  { %v10605_v12 = vpop.eup %10604  ;;  %v6348_v18 = vadd.f32 %v6344_v24, %v12715_v61  ;;  %10363 = vmatmul.msk.bf16.vlgmr.msra.gmra.mxu2 %vm2792_vm15, %v13354_v1  ;;  %v6644_v11 = vadd.f32 %v13521_v62, %v6598_v35 }
 0x72b   :  { %v6354_v2 = vsel %vm11193_vm11, %v10605_v12, 0.0  ;;  %7644 = vmatpush.bf16.msra.mxu2 %v7632_v9  ;;  %v13535_v48 = vpop.f32.mrf.mxu3  ;;  %v7796_v12 = vld [vmem:[#allocation3 + $0x88] sm:$0xf0]  ;;  %v7666_v62 = vsel %vm2796_vm14, %v7621_v58, 0  ;;  %v7759_v56 = vsel %vm2796_vm14, %v7756_v0, 0 }
 0x72c   :  { %10306 = vst [vmem:[%s14419_s8 + $0xe8] sm:$0xff] %v6354_v2  ;;  %10606 = vtanh.f32 %v6348_v18  ;;  %v7515_v18 = vld [vmem:[#allocation3 + $0x48] sm:$0xf]  ;;  %v7798_v2 = vpack.c.bf16 %v7796_v12, %v7796_v12 }
 0x72d   :  { %v13540_v17 = vpop.f32.mrf.mxu1  ;;  %v7897_v58 = vld [vmem:[#allocation3 + $0xc8] sm:$0xf] }
 0x72e   :  { %v6723_v25 = vpop.f32.mrf.mxu2 }
 0x72f   :  { %v6681_v16 = vpop.f32.mrf.mxu0 }
 0x730   :  { %10346 = vmatmul.msk.bf16.vlgmr.msra.gmra.mxu1 %vm2792_vm15, %v13385_v32  ;;  %v6700_v45 = vadd.f32 %v6681_v16, %v6642_v60  ;;  %v7802_v16 = vrot.slane %v7798_v2, 2  ;;  %v7475_v60 = vrot.slane %v7471_v54, 2  ;;  %v6450_v2 = vadd.f32 %v13535_v48, %v13540_v17  ;;  %v14492_v54 = vld [vmem:[#allocation20_spill] sm:$0xff] }
 0x731   :  { %7323 = vmatpush.bf16.msra.mxu1 %v7300_v53 }
 0x732   :  { %v10607_v49 = vpop.eup %10606  ;;  %10361 = vmatmul.msk.bf16.vlgmr.msrb.gmra.mxu0 %vm2792_vm15, %v13368_v57  ;;  %v6742_v24 = vadd.f32 %v6723_v25, %v6700_v45  ;;  %v7517_v25 = vpack.c.bf16 %v7515_v18, %v7515_v18  ;;  %v7480_v35 = vsel %vm2796_vm14, %v7475_v60, 0  ;;  %v7899_v18 = vpack.c.bf16 %v7897_v58, %v7897_v58 }
 0x733   :  { %v6356_v37 = vsel %vm11193_vm11, %v10607_v49, 0.0  ;;  %7577 = vmatpush.bf16.msrb.mxu0 %v7565_v20  ;;  %v13554_v52 = vpop.f32.mrf.mxu3 }
 0x734   :  { %10308 = vst [vmem:[%s14419_s8 + $0xf8] sm:$0xff] %v6356_v37  ;;  %v7522_v49 = vsel %vm2796_vm14, %v7517_v25, 0  ;;  %v7805_v37 = vsel %vm2796_vm14, %v7802_v16, 0  ;;  %v7902_v25 = vsel %vm2796_vm14, %v7899_v18, 0 }
 0x735   :  { %v13559_v27 = vpop.f32.mrf.mxu1 }
 0x736   :  { %v6725_v7 = vpop.f32.mrf.mxu2 }
 0x737   :  { %v6683_v59 = vpop.f32.mrf.mxu0 }
 0x738   :  { %10356 = vmatmul.msk.bf16.vlgmr.msra.gmra.mxu3 %vm2792_vm15, %v13375_v5  ;;  %v6702_v9 = vadd.f32 %v6683_v59, %v6644_v11 }
 0x739   :  { %7457 = vmatpush.bf16.msra.mxu3 %v7434_v19  ;;  %v7624_v19 = vld [vmem:[#allocation3 + $0x70] sm:$0xf0] }
 0x73a   :  { %10367 = vmatmul.msk.bf16.vlgmr.msrb.gmra.mxu2 %vm2792_vm15, %v13385_v32  ;;  %v6744_v63 = vadd.f32 %v6725_v7, %v6702_v9  ;;  %v7626_v45 = vpack.c.bf16 %v7624_v19, %v7624_v19 }
 0x73b   :  { %7729 = vmatpush.bf16.msrb.mxu2 %v7717_v33  ;;  %v13572_v34 = vpop.f32.mrf.mxu3 }
 0x73d   :  { %v13574_v3 = vpop.f32.mrf.mxu1 }
 0x73e   :  { %v13576_v10 = vpop.f32.mrf.mxu2 }
 0x73f   :  { %v6769_v55 = vpop.f32.mrf.mxu0 }
 0x740   :  { %v6788_v39 = vadd.f32 %v6769_v55, %v6742_v24  ;;  %10354 = vmatmul.msk.bf16.vlgmr.msrb.gmra.mxu1 %vm2792_vm15, %v13298_v26  ;;  %v7630_v55 = vrot.slane %v7626_v45, 2  ;;  %v14493_v45 = vld [vmem:[#allocation38_spill] sm:$0xff] }
 0x741   :  { %7411 = vmatpush.bf16.msrb.mxu1 %v7388_v50  ;;  %v7557_v50 = vld [vmem:[#allocation3 + $0x48] sm:$0xf0] }
 0x742   :  { %v6792_v38 = vadd.f32 %v6788_v39, %v12368_v14  ;;  %10365 = vmatmul.msk.bf16.vlgmr.msra.gmra.mxu0 %vm2792_vm15, %v13400_v30 }
 0x743   :  { %7678 = vmatpush.bf16.msra.mxu0 %v7666_v62  ;;  %v13586_v40 = vpop.f32.mrf.mxu3  ;;  %v7559_v62 = vpack.c.bf16 %v7557_v50, %v7557_v50 }
 0x744   :  { %10608 = vtanh.f32 %v6792_v38  ;;  %v7635_v38 = vsel %vm2796_vm14, %v7630_v55, 0 }
 0x745   :  { %v13588_v8 = vpop.f32.mrf.mxu1  ;;  %v7563_v16 = vrot.slane %v7559_v62, 2 }
 0x746   :  { %v13590_v4 = vpop.f32.mrf.mxu2 }
 0x747   :  { %v6771_v53 = vpop.f32.mrf.mxu0 }
 0x748   :  { %v6790_v44 = vadd.f32 %v6771_v53, %v6744_v63  ;;  %10360 = vmatmul.msk.bf16.vlgmr.msrb.gmra.mxu3 %vm2792_vm15, %v13313_v51  ;;  %v6497_v63 = vadd.f32 %v13574_v3, %v6450_v2  ;;  %v7713_v3 = vpop.permute.xlu0 %7712 }
 0x749   :  { %7545 = vmatpush.bf16.msrb.mxu3 %v7522_v49  ;;  %v14491_v49 = vld [vmem:[#allocation37_spill] sm:$0xff]  ;;  %v7715_v60 = vsel %vm566_vm5, %v12357_v36, %v7713_v3 }
 0x74a   :  { %v10609_v47 = vpop.eup %10608  ;;  %v6794_v20 = vadd.f32 %v6790_v44, %v12715_v61  ;;  %10375 = vmatmul.msk.bf16.vlgmr.msra.gmra.mxu2 %vm2792_vm15, %v13298_v26  ;;  %v6555_v48 = vadd.f32 %v13572_v34, %v6497_v63  ;;  %v7620_v36 = vld [vmem:[#allocation3 + $0x70] sm:$0xf] }
 0x74b   :  { %v6800_v41 = vsel %vm11189_vm10, %v10609_v47, 0.0  ;;  %7817 = vmatpush.bf16.msra.mxu2 %v7805_v37  ;;  %v6637_v7 = vpop.f32.mrf.mxu3  ;;  %v7857_v47 = vsel %vm566_vm5, %v14492_v54, %v14491_v49  ;;  %v6452_v37 = vadd.f32 %v13554_v52, %v13559_v27  ;;  %v7939_v27 = vld [vmem:[#allocation3 + $0xc8] sm:$0xf0] }
 0x74c   :  { %10327 = vst [vmem:[%s14419_s8 + $0x100] sm:$0xff] %v6800_v41  ;;  %10610 = vtanh.f32 %v6794_v20  ;;  %v7860_v17 = vsel %vm2796_vm14, %v7857_v47, 0  ;;  %v7941_v50 = vpack.c.bf16 %v7939_v27, %v7939_v27 }
 0x74d   :  { %v6591_v29 = vpop.f32.mrf.mxu1  ;;  %v6499_v34 = vadd.f32 %v13588_v8, %v6452_v37 }
 0x74e   :  { %v13604_v59 = vpop.f32.mrf.mxu2  ;;  %v6597_v41 = vadd.f32 %v6591_v29, %v6555_v48  ;;  %v7720_v29 = vsel %vm2796_vm14, %v7715_v60, 0  ;;  %v7945_v54 = vrot.slane %v7941_v50, 2 }
 0x74f   :  { %v6870_v33 = vpop.f32.mrf.mxu0 }
 0x750   :  { %10358 = vmatmul.msk.bf16.vlgmr.msra.gmra.mxu1 %vm2792_vm15, %v13336_v22 }
 0x751   :  { %7503 = vmatpush.bf16.msra.mxu1 %v7480_v35  ;;  %v6643_v35 = vadd.f32 %v6637_v7, %v6597_v41  ;;  %v6871_v7 = vadd.f32 %v6870_v33, %v13576_v10 }
 0x752   :  { %v10611_v42 = vpop.eup %10610  ;;  %10369 = vmatmul.msk.bf16.vlgmr.msrb.gmra.mxu0 %vm2792_vm15, %v13431_v13 }
 0x753   :  { %v6802_v11 = vsel %vm11189_vm10, %v10611_v42, 0.0  ;;  %7771 = vmatpush.bf16.msrb.mxu0 %v7759_v56  ;;  %v6639_v24 = vpop.f32.mrf.mxu3  ;;  %v14494_v42 = vld [vmem:[#allocation19_spill] sm:$0xff]  ;;  %v6927_v63 = vadd.f32 %v13604_v59, %v6871_v7  ;;  %v7948_v59 = vsel %vm2796_vm14, %v7945_v54, 0 }
 0x754   :  { %10329 = vst [vmem:[%s14419_s8 + $0x110] sm:$0xff] %v6802_v11  ;;  %v8000_v56 = vsel %vm566_vm5, %v14494_v42, %v14493_v45  ;;  %v6557_v11 = vadd.f32 %v13586_v40, %v6499_v34  ;;  %v7622_v40 = vpack.c.bf16 %v7620_v36, %v7620_v36 }
 0x755   :  { %v6593_v12 = vpop.f32.mrf.mxu1  ;;  %v8003_v8 = vsel %vm2796_vm14, %v8000_v56, 0 }
 0x756   :  { %v13617_v39 = vpop.f32.mrf.mxu2  ;;  %v6599_v55 = vadd.f32 %v6593_v12, %v6557_v11 }
 0x757   :  { %v13619_v9 = vpop.f32.mrf.mxu0 }
 0x758   :  { %10364 = vmatmul.msk.bf16.vlgmr.msra.gmra.mxu3 %vm2792_vm15, %v13354_v1 }
 0x759   :  { %7658 = vmatpush.bf16.msra.mxu3 %v7635_v38 }
 0x75a   :  { %10379 = vmatmul.msk.bf16.vlgmr.msrb.gmra.mxu2 %vm2792_vm15, %v13336_v22  ;;  %v7568_v22 = vsel %vm2796_vm14, %v7563_v16, 0  ;;  %v6645_v16 = vadd.f32 %v6639_v24, %v6599_v55 }
 0x75b   :  { %7914 = vmatpush.bf16.msrb.mxu2 %v7902_v25  ;;  %v6737_v31 = vpop.f32.mrf.mxu3  ;;  %v7797_v25 = vld [vmem:[#allocation3 + $0xb8] sm:$0xf0] }
 0x75c   :  { %v7799_v12 = vpack.c.bf16 %v7797_v25, %v7797_v25  ;;  %v7898_v25 = vld [vmem:[#allocation3 + $0x48] sm:$0xf] }
 0x75d   :  { %v6695_v53 = vpop.f32.mrf.mxu1  ;;  %v7900_v54 = vpack.c.bf16 %v7898_v25, %v7898_v25 }
 0x75e   :  { %v13630_v44 = vpop.f32.mrf.mxu2  ;;  %v6701_v58 = vadd.f32 %v6695_v53, %v6643_v35 }
 0x75f   :  { %v6950_v20 = vpop.f32.mrf.mxu0 }
 0x760   :  { %10362 = vmatmul.msk.bf16.vlgmr.msrb.gmra.mxu1 %vm2792_vm15, %v13368_v57  ;;  %v6743_v38 = vadd.f32 %v6737_v31, %v6701_v58  ;;  %v6873_v31 = vadd.f32 %v13619_v9, %v13590_v4  ;;  %v6969_v48 = vadd.f32 %v6950_v20, %v6927_v63  ;;  %v14495_v4 = vld [vmem:[#allocation39_spill] sm:$0xff]  ;;  %v14496_v9 = vld [vmem:[#allocation21_spill] sm:$0xff] }
 0x761   :  { %7591 = vmatpush.bf16.msrb.mxu1 %v7568_v22  ;;  %v8113_v20 = vsel %vm419_vm4, %v14496_v9, %v14495_v4 }
 0x762   :  { %10377 = vmatmul.msk.bf16.vlgmr.msra.gmra.mxu0 %vm2792_vm15, %v13375_v5  ;;  %v6929_v41 = vadd.f32 %v13617_v39, %v6873_v31  ;;  %v7015_v34 = vadd.f32 %v13630_v44, %v6969_v48  ;;  %v7755_v39 = vld [vmem:[#allocation3 + $0xb8] sm:$0xf]  ;;  %v8116_v44 = vsel %vm2796_vm14, %v8113_v20, 0  ;;  %v8149_v48 = vld [vmem:[#allocation3 + $0x90] sm:$0xf0] }
 0x763   :  { %7872 = vmatpush.bf16.msra.mxu0 %v7860_v17  ;;  %v6739_v23 = vpop.f32.mrf.mxu3  ;;  %v7803_v17 = vrot.slane %v7799_v12, 2  ;;  %v7757_v11 = vpack.c.bf16 %v7755_v39, %v7755_v39  ;;  %v8295_v39 = vld [vmem:[#allocation3 + $0xe0] sm:$0xf0] }
 0x765   :  { %v6697_v19 = vpop.f32.mrf.mxu1 }
 0x766   :  { %v13647_v0 = vpop.f32.mrf.mxu2  ;;  %v6703_v10 = vadd.f32 %v6697_v19, %v6645_v16 }
 0x767   :  { %v6952_v52 = vpop.f32.mrf.mxu0 }
 0x768   :  { %10368 = vmatmul.msk.bf16.vlgmr.msrb.gmra.mxu3 %vm2792_vm15, %v13385_v32  ;;  %v6745_v22 = vadd.f32 %v6739_v23, %v6703_v10  ;;  %v7808_v23 = vsel %vm2796_vm14, %v7803_v17, 0  ;;  %v6971_v56 = vadd.f32 %v6952_v52, %v6929_v41  ;;  %v7905_v17 = vsel %vm2796_vm14, %v7900_v54, 0 }
 0x769   :  { %7743 = vmatpush.bf16.msrb.mxu3 %v7720_v29  ;;  %v8063_v29 = vld [vmem:[#allocation3 + $0x90] sm:$0xf]  ;;  %v8151_v41 = vpack.c.bf16 %v8149_v48, %v8149_v48 }
 0x76a   :  { %10383 = vmatmul.msk.bf16.vlgmr.msra.gmra.mxu2 %vm2792_vm15, %v13368_v57  ;;  %v7669_v57 = vsel %vm2796_vm14, %v7622_v40, 0  ;;  %v8065_v7 = vpack.c.bf16 %v8063_v29, %v8063_v29  ;;  %v7762_v40 = vsel %vm2796_vm14, %v7757_v11, 0 }
 0x76b   :  { %8015 = vmatpush.bf16.msra.mxu2 %v8003_v8  ;;  %v13660_v18 = vpop.f32.mrf.mxu3  ;;  %v7017_v8 = vadd.f32 %v13647_v0, %v6971_v56 }
 0x76c   :  { %v8068_v63 = vsel %vm2796_vm14, %v8065_v7, 0 }
 0x76d   :  { %v6783_v62 = vpop.f32.mrf.mxu1 }
 0x76e   :  { %v7080_v2 = vpop.f32.mrf.mxu2  ;;  %v6789_v53 = vadd.f32 %v6783_v62, %v6743_v38 }
 0x76f   :  { %v7038_v47 = vpop.f32.mrf.mxu0 }
 0x770   :  { %v6793_v33 = vadd.f32 %v6789_v53, %v12368_v14  ;;  %10366 = vmatmul.msk.bf16.vlgmr.msra.gmra.mxu1 %vm2792_vm15, %v13400_v30  ;;  %v7057_v27 = vadd.f32 %v7038_v47, %v7015_v34 }
 0x771   :  { %7692 = vmatpush.bf16.msra.mxu1 %v7669_v57  ;;  %v14497_v57 = vld [vmem:[#allocation22_spill] sm:$0xff] }
 0x772   :  { %10612 = vtanh.f32 %v6793_v33  ;;  %10381 = vmatmul.msk.bf16.vlgmr.msrb.gmra.mxu0 %vm2792_vm15, %v13313_v51  ;;  %v7099_v52 = vadd.f32 %v7080_v2, %v7057_v27  ;;  %v8213_v12 = vsel %vm419_vm4, %v14497_v57, %v12439_v28  ;;  %v8297_v27 = vpack.c.bf16 %v8295_v39, %v8295_v39 }
 0x773   :  { %7960 = vmatpush.bf16.msrb.mxu0 %v7948_v59  ;;  %v13672_v24 = vpop.f32.mrf.mxu3 }
 0x775   :  { %v6785_v3 = vpop.f32.mrf.mxu1 }
 0x776   :  { %v7082_v37 = vpop.f32.mrf.mxu2  ;;  %v6791_v60 = vadd.f32 %v6785_v3, %v6745_v22  ;;  %v13715_v22 = vld [vmem:[#allocation12 + $0x10] sm:$0xff]  ;;  %v8216_v3 = vsel %vm2796_vm14, %v8213_v12, 0  ;;  %v13771_v12 = vld [vmem:[#allocation12 + $0x18] sm:$0xff] }
 0x777   :  { %v7040_v19 = vpop.f32.mrf.mxu0 }
 0x778   :  { %v10613_v51 = vpop.eup %10612  ;;  %v6795_v35 = vadd.f32 %v6791_v60, %v12715_v61  ;;  %10376 = vmatmul.msk.bf16.vlgmr.msra.gmra.mxu3 %vm2792_vm15, %v13298_v26  ;;  %v7059_v0 = vadd.f32 %v7040_v19, %v7017_v8 }
 0x779   :  { %v6801_v42 = vsel %vm11193_vm11, %v10613_v51, 0.0  ;;  %7831 = vmatpush.bf16.msra.mxu3 %v7808_v23  ;;  %v8155_v23 = vrot.slane %v8151_v41, 2 }
 0x77a   :  { %10328 = vst [vmem:[%s14419_s8 + $0x108] sm:$0xff] %v6801_v42  ;;  %10614 = vtanh.f32 %v6795_v35  ;;  %10387 = vmatmul.msk.bf16.vlgmr.msrb.gmra.mxu2 %vm2792_vm15, %v13400_v30  ;;  %v7101_v33 = vadd.f32 %v7082_v37, %v7059_v0  ;;  %v8253_v0 = vld [vmem:[#allocation3 + $0xe0] sm:$0xf] }
 0x77b   :  { %8128 = vmatpush.bf16.msrb.mxu2 %v8116_v44  ;;  %v13691_v26 = vpop.f32.mrf.mxu3  ;;  %v8158_v56 = vsel %vm2796_vm14, %v8155_v23, 0 }
 0x77d   :  { %v13693_v58 = vpop.f32.mrf.mxu1 }
 0x77e   :  { %v7168_v36 = vpop.f32.mrf.mxu2 }
 0x77f   :  { %v7126_v55 = vpop.f32.mrf.mxu0 }
 0x780   :  { %v10615_v50 = vpop.eup %10614  ;;  %v7145_v38 = vadd.f32 %v7126_v55, %v7099_v52  ;;  %10370 = vmatmul.msk.bf16.vlgmr.msrb.gmra.mxu1 %vm2792_vm15, %v13431_v13 }
 0x781   :  { %v6803_v62 = vsel %vm11193_vm11, %v10615_v50, 0.0  ;;  %7785 = vmatpush.bf16.msrb.mxu1 %v7762_v40  ;;  %v13759_v40 = vld [vmem:[#allocation12] sm:$0xff] }
 0x782   :  { %10330 = vst [vmem:[%s14419_s8 + $0x118] sm:$0xff] %v6803_v62  ;;  %v7187_v2 = vadd.f32 %v7168_v36, %v7145_v38  ;;  %10385 = vmatmul.msk.bf16.vlgmr.msra.gmra.mxu0 %vm2792_vm15, %v13354_v1  ;;  %v7856_v1 = vpop.permute.xlu0 %7855  ;;  %v13755_v38 = vld [vmem:[#allocation12 + $0x20] sm:$0xff] }
 0x783   :  { %8080 = vmatpush.bf16.msra.mxu0 %v8068_v63  ;;  %v13707_v16 = vpop.f32.mrf.mxu3  ;;  %v7858_v20 = vsel %vm566_vm5, %v14491_v49, %v7856_v1 }
 0x784   :  { %v7191_v53 = vadd.f32 %v7187_v2, %v12368_v14  ;;  %v7863_v44 = vsel %vm2796_vm14, %v7858_v20, 0  ;;  %v6885_v2 = vadd.f32 %v13693_v58, %v13660_v18  ;;  %v13776_v18 = vld [vmem:[#allocation12 + $0x8] sm:$0xff] }
 0x785   :  { %v13710_v47 = vpop.f32.mrf.mxu1 }
 0x786   :  { %v7170_v10 = vpop.f32.mrf.mxu2  ;;  %10616 = vtanh.f32 %v7191_v53  ;;  %v6928_v57 = vadd.f32 %v13691_v26, %v6885_v2  ;;  %v6887_v26 = vadd.f32 %v13710_v47, %v13672_v24  ;;  %v8064_v24 = vld [vmem:[#allocation3 + $0x68] sm:$0xf] }
 0x787   :  { %v7128_v31 = vpop.f32.mrf.mxu0 }
 0x788   :  { %v7147_v59 = vadd.f32 %v7128_v31, %v7101_v33  ;;  %10380 = vmatmul.msk.bf16.vlgmr.msrb.gmra.mxu3 %vm2792_vm15, %v13715_v22  ;;  %v6930_v23 = vadd.f32 %v13707_v16, %v6887_v26 }
 0x789   :  { %7928 = vmatpush.bf16.msrb.mxu3 %v7905_v17 }
 0x78a   :  { %v7189_v37 = vadd.f32 %v7170_v10, %v7147_v59  ;;  %10391 = vmatmul.msk.bf16.vlgmr.msra.gmra.mxu2 %vm2792_vm15, %v13431_v13  ;;  %v7999_v49 = vpop.permute.xlu0 %7998  ;;  %v8255_v10 = vpack.c.bf16 %v8253_v0, %v8253_v0 }
 0x78b   :  { %8228 = vmatpush.bf16.msra.mxu2 %v8216_v3  ;;  %v13723_v34 = vpop.f32.mrf.mxu3  ;;  %v8001_v36 = vsel %vm566_vm5, %v14493_v45, %v7999_v49  ;;  %v8066_v49 = vpack.c.bf16 %v8064_v24, %v8064_v24 }
 0x78c   :  { %v10617_v60 = vpop.eup %10616  ;;  %v7193_v9 = vadd.f32 %v7189_v37, %v12715_v61  ;;  %v8006_v50 = vsel %vm2796_vm14, %v8001_v36, 0  ;;  %v8258_v58 = vsel %vm2796_vm14, %v8255_v10, 0  ;;  %v14500_v36 = vld [vmem:[#allocation24_spill] sm:$0xff] }
 0x78d   :  { %v7199_v19 = vsel %vm11189_vm10, %v10617_v60, 0.0  ;;  %v6964_v51 = vpop.f32.mrf.mxu1  ;;  %v14498_v60 = vld [vmem:[#allocation40_spill] sm:$0xff] }
 0x78e   :  { %v13730_v35 = vpop.f32.mrf.mxu2  ;;  %10349 = vst [vmem:[%s14419_s8 + $0x120] sm:$0xff] %v7199_v19  ;;  %10618 = vtanh.f32 %v7193_v9  ;;  %v6970_v1 = vadd.f32 %v6964_v51, %v6928_v57  ;;  %v14499_v9 = vld [vmem:[#allocation23_spill] sm:$0xff] }
 0x78f   :  { %v13735_v42 = vpop.f32.mrf.mxu0  ;;  %v8414_v20 = vsel %vm712_vm7, %v14499_v9, %v14498_v60 }
 0x790   :  { %10378 = vmatmul.msk.bf16.vlgmr.msra.gmra.mxu1 %vm2792_vm15, %v13375_v5  ;;  %v7940_v5 = vld [vmem:[#allocation3 + $0x48] sm:$0xf0]  ;;  %v7016_v41 = vadd.f32 %v13723_v34, %v6970_v1 }
 0x791   :  { %7886 = vmatpush.bf16.msra.mxu1 %v7863_v44  ;;  %v7942_v45 = vpack.c.bf16 %v7940_v5, %v7940_v5  ;;  %v8533_v5 = vld [vmem:[#allocation3 + $0x90] sm:$0xf0] }
 0x792   :  { %10389 = vmatmul.msk.bf16.vlgmr.msrb.gmra.mxu0 %vm2792_vm15, %v13385_v32  ;;  %v8301_v32 = vrot.slane %v8297_v27, 2  ;;  %v8112_v48 = vpop.permute.xlu0 %8111  ;;  %v8535_v0 = vpack.c.bf16 %v8533_v5, %v8533_v5  ;;  %v8609_v5 = vld [vmem:[#allocation3 + $0x88] sm:$0xf] }
 0x793   :  { %8170 = vmatpush.bf16.msrb.mxu0 %v8158_v56  ;;  %v7012_v29 = vpop.f32.mrf.mxu3  ;;  %v7946_v63 = vrot.slane %v7942_v45, 2  ;;  %v8114_v17 = vsel %vm419_vm4, %v14495_v4, %v8112_v48  ;;  %v8417_v4 = vsel %vm2796_vm14, %v8414_v20, 0  ;;  %v8071_v45 = vsel %vm2796_vm14, %v8066_v49, 0  ;;  %v13843_v49 = vld [vmem:[#allocation12 + $0x38] sm:$0xff] }
 0x794   :  { %v10619_v11 = vpop.eup %10618  ;;  %v8304_v62 = vsel %vm2796_vm14, %v8301_v32, 0  ;;  %v8119_v51 = vsel %vm2796_vm14, %v8114_v17, 0  ;;  %v7270_v48 = vadd.f32 %v13730_v35, %v13735_v42 }
 0x795   :  { %v7201_v8 = vsel %vm11189_vm10, %v10619_v11, 0.0  ;;  %v6966_v52 = vpop.f32.mrf.mxu1  ;;  %v7951_v31 = vsel %vm2796_vm14, %v7946_v63, 0 }
 0x796   :  { %v13747_v7 = vpop.f32.mrf.mxu2  ;;  %10351 = vst [vmem:[%s14419_s8 + $0x130] sm:$0xff] %v7201_v8  ;;  %v6972_v47 = vadd.f32 %v6966_v52, %v6930_v23  ;;  %v8296_v23 = vld [vmem:[#allocation3 + $0x8] sm:$0xf0] }
 0x797   :  { %v13752_v55 = vpop.f32.mrf.mxu0 }
 0x798   :  { %10384 = vmatmul.msk.bf16.vlgmr.msra.gmra.mxu3 %vm2792_vm15, %v13755_v38  ;;  %v7018_v16 = vadd.f32 %v7012_v29, %v6972_v47  ;;  %v14502_v47 = vld [vmem:[#allocation25_spill] sm:$0xff] }
 0x799   :  { %8029 = vmatpush.bf16.msra.mxu3 %v8006_v50  ;;  %v13805_v50 = vld [vmem:[#allocation12 + $0x28] sm:$0xff] }
 0x79a   :  { %10399 = vmatmul.msk.bf16.vlgmr.msrb.gmra.mxu2 %vm2792_vm15, %v13759_v40  ;;  %v8212_v29 = vpop.permute.xlu0 %8211 }
 0x79b   :  { %8316 = vmatpush.bf16.msrb.mxu2 %v8304_v62  ;;  %v7094_v25 = vpop.f32.mrf.mxu3 }
 0x79d   :  { %v7052_v53 = vpop.f32.mrf.mxu1 }
 0x79e   :  { %v13766_v54 = vpop.f32.mrf.mxu2  ;;  %v7058_v39 = vadd.f32 %v7052_v53, %v7016_v41  ;;  %v8214_v53 = vsel %vm419_vm4, %v12439_v28, %v8212_v29 }
 0x79f   :  { %v13768_v33 = vpop.f32.mrf.mxu0  ;;  %v8219_v17 = vsel %vm2796_vm14, %v8214_v53, 0 }
 0x7a0   :  { %10382 = vmatmul.msk.bf16.vlgmr.msrb.gmra.mxu1 %vm2792_vm15, %v13771_v12  ;;  %v7100_v44 = vadd.f32 %v7094_v25, %v7058_v39  ;;  %v7330_v28 = vadd.f32 %v13768_v33, %v7270_v48  ;;  %v7272_v39 = vadd.f32 %v13747_v7, %v13752_v55 }
 0x7a1   :  { %7974 = vmatpush.bf16.msrb.mxu1 %v7951_v31  ;;  %v8150_v31 = vld [vmem:[#allocation3 + $0x68] sm:$0xf0] }
 0x7a2   :  { %10397 = vmatmul.msk.bf16.vlgmr.msra.gmra.mxu0 %vm2792_vm15, %v13776_v18  ;;  %v7376_v24 = vadd.f32 %v13766_v54, %v7330_v28 }
 0x7a3   :  { %8270 = vmatpush.bf16.msra.mxu0 %v8258_v58  ;;  %v7096_v59 = vpop.f32.mrf.mxu3  ;;  %v8539_v58 = vrot.slane %v8535_v0, 2  ;;  %v8254_v0 = vld [vmem:[#allocation3 + $0x8] sm:$0xf] }
 0x7a5   :  { %v7054_v3 = vpop.f32.mrf.mxu1  ;;  %v8542_v35 = vsel %vm2796_vm14, %v8539_v58, 0 }
 0x7a6   :  { %v13785_v37 = vpop.f32.mrf.mxu2  ;;  %v7060_v32 = vadd.f32 %v7054_v3, %v7018_v16  ;;  %v8298_v16 = vpack.c.bf16 %v8296_v23, %v8296_v23 }
 0x7a7   :  { %v13791_v19 = vpop.f32.mrf.mxu0 }
 0x7a8   :  { %10388 = vmatmul.msk.bf16.vlgmr.msrb.gmra.mxu3 %vm2792_vm15, %v13400_v30  ;;  %v8359_v30 = vsel %vm639_vm6, %v14500_v36, %v12483_v43  ;;  %v7102_v63 = vadd.f32 %v7096_v59, %v7060_v32  ;;  %v8152_v59 = vpack.c.bf16 %v8150_v31, %v8150_v31  ;;  %v7332_v7 = vadd.f32 %v13791_v19, %v7272_v39 }
 0x7a9   :  { %8142 = vmatpush.bf16.msrb.mxu3 %v8119_v51  ;;  %v8362_v62 = vsel %vm2796_vm14, %v8359_v30, 0  ;;  %v8302_v32 = vrot.slane %v8298_v16, 2 }
 0x7aa   :  { %10403 = vmatmul.msk.bf16.vlgmr.msra.gmra.mxu2 %vm2792_vm15, %v13771_v12  ;;  %v7378_v19 = vadd.f32 %v13785_v37, %v7332_v7 }
 0x7ab   :  { %8429 = vmatpush.bf16.msra.mxu2 %v8417_v4  ;;  %v7182_v34 = vpop.f32.mrf.mxu3  ;;  %v14501_v4 = vld [vmem:[#allocation41_spill] sm:$0xff] }
 0x7ad   :  { %v7140_v56 = vpop.f32.mrf.mxu1 }
 0x7ae   :  { %v13800_v27 = vpop.f32.mrf.mxu2  ;;  %v7146_v11 = vadd.f32 %v7140_v56, %v7100_v44 }
 0x7af   :  { %v7399_v8 = vpop.f32.mrf.mxu0 }
 0x7b0   :  { %v7188_v52 = vadd.f32 %v7182_v34, %v7146_v11  ;;  %10386 = vmatmul.msk.bf16.vlgmr.msra.gmra.mxu1 %vm2792_vm15, %v13805_v50  ;;  %v8472_v34 = vsel %vm712_vm7, %v14502_v47, %v14501_v4  ;;  %v7418_v55 = vadd.f32 %v7399_v8, %v7376_v24 }
 0x7b1   :  { %8094 = vmatpush.bf16.msra.mxu1 %v8071_v45  ;;  %v8475_v36 = vsel %vm2796_vm14, %v8472_v34, 0 }
 0x7b2   :  { %v7192_v25 = vadd.f32 %v7188_v52, %v12368_v14  ;;  %10401 = vmatmul.msk.bf16.vlgmr.msrb.gmra.mxu0 %vm2792_vm15, %v13715_v22  ;;  %v7464_v8 = vadd.f32 %v13800_v27, %v7418_v55  ;;  %v8529_v27 = vld [vmem:[#allocation3 + $0x90] sm:$0xf] }
 0x7b3   :  { %8374 = vmatpush.bf16.msrb.mxu0 %v8362_v62  ;;  %v7184_v2 = vpop.f32.mrf.mxu3  ;;  %v8611_v62 = vpack.c.bf16 %v8609_v5, %v8609_v5  ;;  %v8651_v5 = vld [vmem:[#allocation3 + $0xe0] sm:$0xf] }
 0x7b4   :  { %10620 = vtanh.f32 %v7192_v25  ;;  %v8307_v25 = vsel %vm2796_vm14, %v8302_v32, 0 }
 0x7b5   :  { %v7142_v10 = vpop.f32.mrf.mxu1  ;;  %v8614_v53 = vsel %vm2796_vm14, %v8611_v62, 0  ;;  %v8653_v62 = vpack.c.bf16 %v8651_v5, %v8651_v5 }
 0x7b6   :  { %v13816_v57 = vpop.f32.mrf.mxu2  ;;  %v7148_v1 = vadd.f32 %v7142_v10, %v7102_v63  ;;  %v8256_v10 = vpack.c.bf16 %v8254_v0, %v8254_v0 }
 0x7b7   :  { %v7401_v26 = vpop.f32.mrf.mxu0 }
 0x7b8   :  { %v7190_v3 = vadd.f32 %v7184_v2, %v7148_v1  ;;  %10392 = vmatmul.msk.bf16.vlgmr.msra.gmra.mxu3 %vm2792_vm15, %v13431_v13  ;;  %v8156_v13 = vrot.slane %v8152_v59, 2  ;;  %v7420_v2 = vadd.f32 %v7401_v26, %v7378_v19  ;;  %v8413_v59 = vpop.permute.xlu0 %8412  ;;  %v8261_v28 = vsel %vm2796_vm14, %v8256_v10, 0 }
 0x7b9   :  { %8242 = vmatpush.bf16.msra.mxu3 %v8219_v17  ;;  %v8531_v17 = vpack.c.bf16 %v8529_v27, %v8529_v27  ;;  %v8415_v23 = vsel %vm712_vm7, %v14498_v60, %v8413_v59 }
 0x7ba   :  { %v10621_v41 = vpop.eup %10620  ;;  %v7194_v9 = vadd.f32 %v7190_v3, %v12715_v61  ;;  %10407 = vmatmul.msk.bf16.vlgmr.msrb.gmra.mxu2 %vm2792_vm15, %v13805_v50  ;;  %v8161_v56 = vsel %vm2796_vm14, %v8156_v13, 0  ;;  %v7466_v1 = vadd.f32 %v13816_v57, %v7420_v2  ;;  %v8693_v3 = vld [vmem:[#allocation3 + $0xe0] sm:$0xf0] }
 0x7bb   :  { %v7200_v42 = vsel %vm11193_vm11, %v10621_v41, 0.0  ;;  %8554 = vmatpush.bf16.msrb.mxu2 %v8542_v35  ;;  %v13830_v20 = vpop.f32.mrf.mxu3  ;;  %v8576_v57 = vsel %vm2796_vm14, %v8531_v17, 0  ;;  %v8695_v13 = vpack.c.bf16 %v8693_v3, %v8693_v3  ;;  %v14503_v17 = vld [vmem:[#allocation42_spill] sm:$0xff] }
 0x7bc   :  { %10350 = vst [vmem:[%s14419_s8 + $0x128] sm:$0xff] %v7200_v42  ;;  %10622 = vtanh.f32 %v7194_v9  ;;  %v13880_v42 = vld [vmem:[#allocation12 + $0x30] sm:$0xff] }
 0x7bd   :  { %v13835_v33 = vpop.f32.mrf.mxu1  ;;  %v8699_v34 = vrot.slane %v8695_v13, 2  ;;  %v8739_v13 = vld [vmem:[#allocation3 + $0xc8] sm:$0xf] }
 0x7be   :  { %v7533_v51 = vpop.f32.mrf.mxu2 }
 0x7bf   :  { %v7491_v44 = vpop.f32.mrf.mxu0  ;;  %v8702_v60 = vsel %vm2796_vm14, %v8699_v34, 0 }
 0x7c0   :  { %10390 = vmatmul.msk.bf16.vlgmr.msrb.gmra.mxu1 %vm2792_vm15, %v13843_v49  ;;  %v7510_v63 = vadd.f32 %v7491_v44, %v7464_v8  ;;  %v8534_v8 = vld [vmem:[#allocation3 + $0x68] sm:$0xf0] }
 0x7c1   :  { %8184 = vmatpush.bf16.msrb.mxu1 %v8161_v56  ;;  %v8420_v56 = vsel %vm2796_vm14, %v8415_v23, 0  ;;  %v8536_v0 = vpack.c.bf16 %v8534_v8, %v8534_v8  ;;  %v14505_v8 = vld [vmem:[#allocation43_spill] sm:$0xff] }
 0x7c2   :  { %v10623_v11 = vpop.eup %10622  ;;  %10405 = vmatmul.msk.bf16.vlgmr.msra.gmra.mxu0 %vm2792_vm15, %v13755_v38  ;;  %v7552_v58 = vadd.f32 %v7533_v51, %v7510_v63  ;;  %v13912_v63 = vld [vmem:[#allocation12 + $0x40] sm:$0xff] }
 0x7c3   :  { %v7202_v54 = vsel %vm11193_vm11, %v10623_v11, 0.0  ;;  %8487 = vmatpush.bf16.msra.mxu0 %v8475_v36  ;;  %v13854_v30 = vpop.f32.mrf.mxu3  ;;  %v8358_v36 = vpop.permute.xlu0 %8357  ;;  %v8540_v10 = vrot.slane %v8536_v0, 2 }
 0x7c4   :  { %10352 = vst [vmem:[%s14419_s8 + $0x138] sm:$0xff] %v7202_v54  ;;  %v8360_v32 = vsel %vm639_vm6, %v12483_v43, %v8358_v36  ;;  %v8656_v43 = vsel %vm2796_vm14, %v8653_v62, 0  ;;  %v14506_v62 = vld [vmem:[#allocation27_spill] sm:$0xff] }
 0x7c5   :  { %v13859_v52 = vpop.f32.mrf.mxu1 }
 0x7c6   :  { %v7535_v45 = vpop.f32.mrf.mxu2 }
 0x7c7   :  { %v7493_v29 = vpop.f32.mrf.mxu0 }
 0x7c8   :  { %10400 = vmatmul.msk.bf16.vlgmr.msrb.gmra.mxu3 %vm2792_vm15, %v13759_v40  ;;  %v7512_v9 = vadd.f32 %v7493_v29, %v7466_v1 }
 0x7c9   :  { %8330 = vmatpush.bf16.msrb.mxu3 %v8307_v25  ;;  %v8365_v25 = vsel %vm2796_vm14, %v8360_v32, 0 }
 0x7ca   :  { %10411 = vmatmul.msk.bf16.vlgmr.msra.gmra.mxu2 %vm2792_vm15, %v13843_v49  ;;  %v7554_v47 = vadd.f32 %v7535_v45, %v7512_v9 }
 0x7cb   :  { %8626 = vmatpush.bf16.msra.mxu2 %v8614_v53  ;;  %v13869_v37 = vpop.f32.mrf.mxu3  ;;  %v8471_v9 = vpop.permute.xlu0 %8470 }
 0x7cd   :  { %v13871_v31 = vpop.f32.mrf.mxu1 }
 0x7ce   :  { %v13873_v48 = vpop.f32.mrf.mxu2 }
 0x7cf   :  { %v7579_v26 = vpop.f32.mrf.mxu0 }
 0x7d0   :  { %v7598_v41 = vadd.f32 %v7579_v26, %v7552_v58  ;;  %10398 = vmatmul.msk.bf16.vlgmr.msra.gmra.mxu1 %vm2792_vm15, %v13776_v18  ;;  %v14504_v26 = vld [vmem:[#allocation26_spill] sm:$0xff] }
 0x7d1   :  { %8284 = vmatpush.bf16.msra.mxu1 %v8261_v28  ;;  %v8796_v3 = vsel %vm712_vm7, %v14504_v26, %v14503_v17 }
 0x7d2   :  { %v7602_v35 = vadd.f32 %v7598_v41, %v12368_v14  ;;  %10409 = vmatmul.msk.bf16.vlgmr.msrb.gmra.mxu0 %vm2792_vm15, %v13880_v42  ;;  %v8545_v41 = vsel %vm2796_vm14, %v8540_v10, 0  ;;  %v8799_v28 = vsel %vm2796_vm14, %v8796_v3, 0 }
 0x7d3   :  { %8588 = vmatpush.bf16.msrb.mxu0 %v8576_v57  ;;  %v13885_v51 = vpop.f32.mrf.mxu3 }
 0x7d4   :  { %10624 = vtanh.f32 %v7602_v35  ;;  %v7284_v35 = vadd.f32 %v13830_v20, %v13835_v33  ;;  %v8610_v33 = vld [vmem:[#allocation3 + $0xb8] sm:$0xf] }
 0x7d5   :  { %v13889_v39 = vpop.f32.mrf.mxu1 }
 0x7d6   :  { %v13891_v24 = vpop.f32.mrf.mxu2  ;;  %v7331_v23 = vadd.f32 %v13871_v31, %v7284_v35  ;;  %v7286_v31 = vadd.f32 %v13854_v30, %v13859_v52 }
 0x7d7   :  { %v7581_v44 = vpop.f32.mrf.mxu0 }
 0x7d8   :  { %v7600_v16 = vadd.f32 %v7581_v44, %v7554_v47  ;;  %10404 = vmatmul.msk.bf16.vlgmr.msra.gmra.mxu3 %vm2792_vm15, %v13771_v12  ;;  %v8473_v47 = vsel %vm712_vm7, %v14501_v4, %v8471_v9  ;;  %v7377_v20 = vadd.f32 %v13869_v37, %v7331_v23  ;;  %v14507_v23 = vld [vmem:[#allocation44_spill] sm:$0xff] }
 0x7d9   :  { %8443 = vmatpush.bf16.msra.mxu3 %v8420_v56  ;;  %v8741_v56 = vpack.c.bf16 %v8739_v13, %v8739_v13  ;;  %v8966_v13 = vld [vmem:[#allocation3 + $0x90] sm:$0xf0] }
 0x7da   :  { %v10625_v11 = vpop.eup %10624  ;;  %v7604_v7 = vadd.f32 %v7600_v16, %v12715_v61  ;;  %10419 = vmatmul.msk.bf16.vlgmr.msrb.gmra.mxu2 %vm2792_vm15, %v13776_v18 }
 0x7db   :  { %v7610_v55 = vsel %vm11189_vm10, %v10625_v11, 0.0  ;;  %8714 = vmatpush.bf16.msrb.mxu2 %v8702_v60  ;;  %v7459_v54 = vpop.f32.mrf.mxu3  ;;  %v8478_v11 = vsel %vm2796_vm14, %v8473_v47, 0  ;;  %v8744_v4 = vsel %vm2796_vm14, %v8741_v56, 0  ;;  %v7333_v60 = vadd.f32 %v13889_v39, %v7286_v31  ;;  %v8530_v39 = vld [vmem:[#allocation3 + $0x68] sm:$0xf] }
 0x7dc   :  { %10371 = vst [vmem:[%s14419_s8 + $0x140] sm:$0xff] %v7610_v55  ;;  %10626 = vtanh.f32 %v7604_v7  ;;  %v8612_v55 = vpack.c.bf16 %v8610_v33, %v8610_v33  ;;  %v8532_v10 = vpack.c.bf16 %v8530_v39, %v8530_v39  ;;  %v14508_v47 = vld [vmem:[#allocation28_spill] sm:$0xff] }
 0x7dd   :  { %v7413_v45 = vpop.f32.mrf.mxu1  ;;  %v7379_v52 = vadd.f32 %v13885_v51, %v7333_v60  ;;  %v8970_v39 = vld [vmem:[#allocation3 + $0x88] sm:$0xf] }
 0x7de   :  { %v13907_v19 = vpop.f32.mrf.mxu2  ;;  %v7419_v36 = vadd.f32 %v7413_v45, %v7377_v20  ;;  %v8617_v0 = vsel %vm2796_vm14, %v8612_v55, 0 }
 0x7df   :  { %v7680_v29 = vpop.f32.mrf.mxu0 }
 0x7e0   :  { %10402 = vmatmul.msk.bf16.vlgmr.msrb.gmra.mxu1 %vm2792_vm15, %v13715_v22  ;;  %v7465_v32 = vadd.f32 %v7459_v54, %v7419_v36 }
 0x7e1   :  { %8388 = vmatpush.bf16.msrb.mxu1 %v8365_v25  ;;  %v8909_v25 = vsel %vm712_vm7, %v14506_v62, %v14505_v8 }
 0x7e2   :  { %v10627_v2 = vpop.eup %10626  ;;  %10413 = vmatmul.msk.bf16.vlgmr.msra.gmra.mxu0 %vm2792_vm15, %v13912_v63 }
 0x7e3   :  { %v7612_v53 = vsel %vm11189_vm10, %v10627_v2, 0.0  ;;  %8668 = vmatpush.bf16.msra.mxu0 %v8656_v43  ;;  %v7461_v27 = vpop.f32.mrf.mxu3  ;;  %v8912_v2 = vsel %vm2796_vm14, %v8909_v25, 0  ;;  %v7681_v43 = vadd.f32 %v7680_v29, %v13873_v48  ;;  %v8854_v48 = vsel %vm712_vm7, %v14508_v47, %v14507_v23  ;;  %v8795_v47 = vpop.permute.xlu0 %8794 }
 0x7e4   :  { %10373 = vst [vmem:[%s14419_s8 + $0x150] sm:$0xff] %v7612_v53 }
 0x7e5   :  { %v7415_v1 = vpop.f32.mrf.mxu1 }
 0x7e6   :  { %v13922_v58 = vpop.f32.mrf.mxu2  ;;  %v7421_v54 = vadd.f32 %v7415_v1, %v7379_v52  ;;  %v8652_v52 = vld [vmem:[#allocation3 + $0x8] sm:$0xf] }
 0x7e7   :  { %v13927_v59 = vpop.f32.mrf.mxu0 }
 0x7e8   :  { %10408 = vmatmul.msk.bf16.vlgmr.msrb.gmra.mxu3 %vm2792_vm15, %v13805_v50  ;;  %v7467_v9 = vadd.f32 %v7461_v27, %v7421_v54  ;;  %v7683_v27 = vadd.f32 %v13927_v59, %v13891_v24 }
 0x7e9   :  { %8568 = vmatpush.bf16.msrb.mxu3 %v8545_v41  ;;  %v8694_v41 = vld [vmem:[#allocation3 + $0x8] sm:$0xf0] }
 0x7ea   :  { %10423 = vmatmul.msk.bf16.vlgmr.msra.gmra.mxu2 %vm2792_vm15, %v13715_v22  ;;  %v8696_v56 = vpack.c.bf16 %v8694_v41, %v8694_v41  ;;  %v7752_v55 = vadd.f32 %v13922_v58, %v7683_v27  ;;  %v9092_v41 = vld [vmem:[#allocation3 + $0xe0] sm:$0xf0] }
 0x7eb   :  { %8811 = vmatpush.bf16.msra.mxu2 %v8799_v28  ;;  %v7547_v57 = vpop.f32.mrf.mxu3  ;;  %v7750_v28 = vadd.f32 %v13907_v19, %v7681_v43  ;;  %v8857_v19 = vsel %vm2796_vm14, %v8854_v48, 0 }
 0x7ec   :  { %v8700_v36 = vrot.slane %v8696_v56, 2 }
 0x7ed   :  { %v7505_v34 = vpop.f32.mrf.mxu1 }
 0x7ee   :  { %v13940_v44 = vpop.f32.mrf.mxu2  ;;  %v7511_v45 = vadd.f32 %v7505_v34, %v7465_v32 }
 0x7ef   :  { %v7773_v16 = vpop.f32.mrf.mxu0 }
 0x7f0   :  { %10406 = vmatmul.msk.bf16.vlgmr.msra.gmra.mxu1 %vm2792_vm15, %v13755_v38  ;;  %v7553_v51 = vadd.f32 %v7547_v57, %v7511_v45  ;;  %v8579_v57 = vsel %vm2796_vm14, %v8532_v10, 0  ;;  %v7792_v20 = vadd.f32 %v7773_v16, %v7750_v28  ;;  %v8705_v16 = vsel %vm2796_vm14, %v8700_v36, 0 }
 0x7f1   :  { %8501 = vmatpush.bf16.msra.mxu1 %v8478_v11  ;;  %v8968_v11 = vpack.c.bf16 %v8966_v13, %v8966_v13  ;;  %v8972_v10 = vpack.c.bf16 %v8970_v39, %v8970_v39 }
 0x7f2   :  { %10421 = vmatmul.msk.bf16.vlgmr.msrb.gmra.mxu0 %vm2792_vm15, %v13759_v40 }
 0x7f3   :  { %8756 = vmatpush.bf16.msrb.mxu0 %v8744_v4  ;;  %v7549_v7 = vpop.f32.mrf.mxu3  ;;  %v9010_v62 = vrot.slane %v8968_v11, 2  ;;  %v8975_v48 = vsel %vm2796_vm14, %v8972_v10, 0 }
 0x7f5   :  { %v7507_v37 = vpop.f32.mrf.mxu1 }
 0x7f6   :  { %v13952_v5 = vpop.f32.mrf.mxu2  ;;  %v7513_v1 = vadd.f32 %v7507_v37, %v7467_v9  ;;  %v7838_v37 = vadd.f32 %v13940_v44, %v7792_v20  ;;  %v9013_v44 = vsel %vm2796_vm14, %v9010_v62, 0 }
 0x7f7   :  { %v7775_v30 = vpop.f32.mrf.mxu0 }
 0x7f8   :  { %10412 = vmatmul.msk.bf16.vlgmr.msra.gmra.mxu3 %vm2792_vm15, %v13843_v49  ;;  %v7555_v31 = vadd.f32 %v7549_v7, %v7513_v1  ;;  %v7794_v45 = vadd.f32 %v7775_v30, %v7752_v55  ;;  %v8740_v55 = vld [vmem:[#allocation3 + $0x48] sm:$0xf] }
 0x7f9   :  { %8640 = vmatpush.bf16.msra.mxu3 %v8617_v0 }
 0x7fa   :  { %10427 = vmatmul.msk.bf16.vlgmr.msrb.gmra.mxu2 %vm2792_vm15, %v13755_v38  ;;  %v7840_v30 = vadd.f32 %v13952_v5, %v7794_v45 }
 0x7fb   :  { %8924 = vmatpush.bf16.msrb.mxu2 %v8912_v2  ;;  %v13965_v53 = vpop.f32.mrf.mxu3  ;;  %v8654_v2 = vpack.c.bf16 %v8652_v52, %v8652_v52 }
 0x7fd   :  { %v7593_v26 = vpop.f32.mrf.mxu1 }
 0x7fe   :  { %v7916_v3 = vpop.f32.mrf.mxu2  ;;  %v7599_v35 = vadd.f32 %v7593_v26, %v7553_v51 }
 0x7ff   :  { %v7874_v29 = vpop.f32.mrf.mxu0 }
 0x800   :  { %v7603_v34 = vadd.f32 %v7599_v35, %v12368_v14  ;;  %10410 = vmatmul.msk.bf16.vlgmr.msrb.gmra.mxu1 %vm2792_vm15, %v13880_v42  ;;  %v7893_v58 = vadd.f32 %v7874_v29, %v7838_v37  ;;  %v8659_v35 = vsel %vm2796_vm14, %v8654_v2, 0  ;;  %v9094_v29 = vpack.c.bf16 %v9092_v41, %v9092_v41 }
 0x801   :  { %8602 = vmatpush.bf16.msrb.mxu1 %v8579_v57  ;;  %v8797_v57 = vsel %vm712_vm7, %v14503_v17, %v8795_v47 }
 0x802   :  { %10628 = vtanh.f32 %v7603_v34  ;;  %10425 = vmatmul.msk.bf16.vlgmr.msra.gmra.mxu0 %vm2792_vm15, %v13771_v12  ;;  %v7935_v51 = vadd.f32 %v7916_v3, %v7893_v58  ;;  %v9098_v27 = vrot.slane %v9094_v29, 2  ;;  %v8802_v36 = vsel %vm2796_vm14, %v8797_v57, 0  ;;  %v9180_v58 = vld [vmem:[#allocation3 + $0xc8] sm:$0xf0] }
 0x803   :  { %8869 = vmatpush.bf16.msra.mxu0 %v8857_v19  ;;  %v13980_v33 = vpop.f32.mrf.mxu3 }
 0x804   :  { %v9101_v17 = vsel %vm2796_vm14, %v9098_v27, 0 }
 0x805   :  { %v7595_v4 = vpop.f32.mrf.mxu1 }
 0x806   :  { %v7918_v60 = vpop.f32.mrf.mxu2  ;;  %v7601_v32 = vadd.f32 %v7595_v4, %v7555_v31  ;;  %v9046_v31 = vld [vmem:[#allocation3 + $0x88] sm:$0xf0] }
 0x807   :  { %v7876_v25 = vpop.f32.mrf.mxu0 }
 0x808   :  { %v10629_v24 = vpop.eup %10628  ;;  %v7605_v59 = vadd.f32 %v7601_v32, %v12715_v61  ;;  %10420 = vmatmul.msk.bf16.vlgmr.msrb.gmra.mxu3 %vm2792_vm15, %v13776_v18  ;;  %v7895_v5 = vadd.f32 %v7876_v25, %v7840_v30  ;;  %v9048_v32 = vpack.c.bf16 %v9046_v31, %v9046_v31 }
 0x809   :  { %v7611_v7 = vsel %vm11193_vm11, %v10629_v24, 0.0  ;;  %8728 = vmatpush.bf16.msrb.mxu3 %v8705_v16  ;;  %v8742_v24 = vpack.c.bf16 %v8740_v55, %v8740_v55 }
 0x80a   :  { %10372 = vst [vmem:[%s14419_s8 + $0x148] sm:$0xff] %v7611_v7  ;;  %10630 = vtanh.f32 %v7605_v59  ;;  %10431 = vmatmul.msk.bf16.vlgmr.msra.gmra.mxu2 %vm2792_vm15, %v13880_v42  ;;  %v7937_v19 = vadd.f32 %v7918_v60, %v7895_v5  ;;  %v9052_v52 = vrot.slane %v9048_v32, 2  ;;  %v14509_v32 = vld [vmem:[#allocation45_spill] sm:$0xff] }
 0x80b   :  { %9025 = vmatpush.bf16.msra.mxu2 %v9013_v44  ;;  %v13996_v0 = vpop.f32.mrf.mxu3  ;;  %v8908_v44 = vpop.permute.xlu0 %8907  ;;  %v8747_v39 = vsel %vm2796_vm14, %v8742_v24, 0 }
 0x80c   :  { %v9055_v2 = vsel %vm2796_vm14, %v9052_v52, 0  ;;  %v8910_v10 = vsel %vm712_vm7, %v14505_v8, %v8908_v44 }
 0x80d   :  { %v13998_v43 = vpop.f32.mrf.mxu1 }
 0x80e   :  { %v8017_v54 = vpop.f32.mrf.mxu2 }
 0x80f   :  { %v7962_v26 = vpop.f32.mrf.mxu0 }
 0x810   :  { %v10631_v28 = vpop.eup %10630  ;;  %v7981_v9 = vadd.f32 %v7962_v26, %v7935_v51  ;;  %10414 = vmatmul.msk.bf16.vlgmr.msra.gmra.mxu1 %vm2792_vm15, %v13912_v63 }
 0x811   :  { %v7613_v13 = vsel %vm11193_vm11, %v10631_v28, 0.0  ;;  %8682 = vmatpush.bf16.msra.mxu1 %v8659_v35 }
 0x812   :  { %10374 = vst [vmem:[%s14419_s8 + $0x158] sm:$0xff] %v7613_v13  ;;  %v8036_v3 = vadd.f32 %v8017_v54, %v7981_v9  ;;  %10429 = vmatmul.msk.bf16.vlgmr.msrb.gmra.mxu0 %vm2792_vm15, %v13805_v50  ;;  %v9182_v54 = vpack.c.bf16 %v9180_v58, %v9180_v58  ;;  %v8915_v13 = vsel %vm2796_vm14, %v8910_v10, 0 }
 0x813   :  { %8987 = vmatpush.bf16.msrb.mxu0 %v8975_v48  ;;  %v14012_v1 = vpop.f32.mrf.mxu3  ;;  %v8853_v8 = vpop.permute.xlu0 %8852  ;;  %v7695_v48 = vadd.f32 %v13998_v43, %v13965_v53 }
 0x814   :  { %v8040_v34 = vadd.f32 %v8036_v3, %v12368_v14  ;;  %v9186_v9 = vrot.slane %v9182_v54, 2  ;;  %v9138_v3 = vld [vmem:[#allocation3 + $0xc8] sm:$0xf]  ;;  %v8855_v29 = vsel %vm712_vm7, %v14507_v23, %v8853_v8  ;;  %v9093_v54 = vld [vmem:[#allocation3 + $0x8] sm:$0xf0] }
 0x815   :  { %v14017_v56 = vpop.f32.mrf.mxu1  ;;  %v7751_v31 = vadd.f32 %v13996_v0, %v7695_v48  ;;  %v9095_v48 = vpack.c.bf16 %v9093_v54, %v9093_v54 }
 0x816   :  { %v8019_v11 = vpop.f32.mrf.mxu2  ;;  %10632 = vtanh.f32 %v8040_v34  ;;  %v9189_v47 = vsel %vm2796_vm14, %v9186_v9, 0  ;;  %v14512_v9 = vld [vmem:[#allocation30_spill] sm:$0xff] }
 0x817   :  { %v7964_v20 = vpop.f32.mrf.mxu0 }
 0x818   :  { %v7983_v4 = vadd.f32 %v7964_v20, %v7937_v19  ;;  %10424 = vmatmul.msk.bf16.vlgmr.msra.gmra.mxu3 %vm2792_vm15, %v13715_v22  ;;  %v9140_v19 = vpack.c.bf16 %v9138_v3, %v9138_v3  ;;  %v8860_v20 = vsel %vm2796_vm14, %v8855_v29, 0 }
 0x819   :  { %8825 = vmatpush.bf16.msra.mxu3 %v8802_v36 }
 0x81a   :  { %v8038_v37 = vadd.f32 %v8019_v11, %v7983_v4  ;;  %10435 = vmatmul.msk.bf16.vlgmr.msrb.gmra.mxu2 %vm2792_vm15, %v13912_v63  ;;  %v8967_v11 = vld [vmem:[#allocation3 + $0x68] sm:$0xf0]  ;;  %v9143_v23 = vsel %vm2796_vm14, %v9140_v19, 0  ;;  %v7697_v4 = vadd.f32 %v14017_v56, %v13980_v33  ;;  %v8971_v33 = vld [vmem:[#allocation3 + $0xb8] sm:$0xf] }
 0x81b   :  { %9113 = vmatpush.bf16.msrb.mxu2 %v9101_v17  ;;  %v7833_v60 = vpop.f32.mrf.mxu3  ;;  %v8969_v36 = vpack.c.bf16 %v8967_v11, %v8967_v11 }
 0x81c   :  { %v10633_v62 = vpop.eup %10632  ;;  %v8042_v25 = vadd.f32 %v8038_v37, %v12715_v61 }
 0x81d   :  { %v8048_v59 = vsel %vm11189_vm10, %v10633_v62, 0.0  ;;  %v7787_v16 = vpop.f32.mrf.mxu1  ;;  %v9011_v55 = vrot.slane %v8969_v36, 2  ;;  %v14510_v62 = vld [vmem:[#allocation29_spill] sm:$0xff] }
 0x81e   :  { %v14028_v7 = vpop.f32.mrf.mxu2  ;;  %10393 = vst [vmem:[%s14419_s8 + $0x160] sm:$0xff] %v8048_v59  ;;  %10634 = vtanh.f32 %v8042_v25  ;;  %v7793_v53 = vadd.f32 %v7787_v16, %v7751_v31  ;;  %v9299_v25 = vsel %vm712_vm7, %v14510_v62, %v14509_v32  ;;  %v7753_v59 = vadd.f32 %v14012_v1, %v7697_v4 }
 0x81f   :  { %v14033_v45 = vpop.f32.mrf.mxu0  ;;  %v9016_v52 = vsel %vm2796_vm14, %v9011_v55, 0  ;;  %v9302_v56 = vsel %vm2796_vm14, %v9299_v25, 0 }
 0x820   :  { %10422 = vmatmul.msk.bf16.vlgmr.msrb.gmra.mxu1 %vm2792_vm15, %v13759_v40  ;;  %v7839_v0 = vadd.f32 %v7833_v60, %v7793_v53  ;;  %v9047_v53 = vld [vmem:[#allocation3 + $0xb8] sm:$0xf0] }
 0x821   :  { %8770 = vmatpush.bf16.msrb.mxu1 %v8747_v39  ;;  %v8973_v39 = vpack.c.bf16 %v8971_v33, %v8971_v33  ;;  %v9049_v62 = vpack.c.bf16 %v9047_v53, %v9047_v53 }
 0x822   :  { %10433 = vmatmul.msk.bf16.vlgmr.msra.gmra.mxu0 %vm2792_vm15, %v13843_v49 }
 0x823   :  { %9067 = vmatpush.bf16.msra.mxu0 %v9055_v2  ;;  %v7835_v30 = vpop.f32.mrf.mxu3 }
 0x824   :  { %v10635_v51 = vpop.eup %10634 }
 0x825   :  { %v8050_v26 = vsel %vm11189_vm10, %v10635_v51, 0.0  ;;  %v7789_v41 = vpop.f32.mrf.mxu1 }
 0x826   :  { %v14045_v28 = vpop.f32.mrf.mxu2  ;;  %10395 = vst [vmem:[%s14419_s8 + $0x170] sm:$0xff] %v8050_v26  ;;  %v7795_v58 = vadd.f32 %v7789_v41, %v7753_v59  ;;  %v14511_v26 = vld [vmem:[#allocation46_spill] sm:$0xff] }
 0x827   :  { %v14050_v35 = vpop.f32.mrf.mxu0 }
 0x828   :  { %10428 = vmatmul.msk.bf16.vlgmr.msrb.gmra.mxu3 %vm2792_vm15, %v13755_v38  ;;  %v7841_v51 = vadd.f32 %v7835_v30, %v7795_v58  ;;  %v8133_v58 = vadd.f32 %v14045_v28, %v14050_v35 }
 0x829   :  { %8938 = vmatpush.bf16.msrb.mxu3 %v8915_v13  ;;  %v9244_v13 = vsel %vm712_vm7, %v14512_v9, %v14511_v26 }
 0x82a   :  { %10443 = vmatmul.msk.bf16.vlgmr.msra.gmra.mxu2 %vm2792_vm15, %v13759_v40  ;;  %v9247_v29 = vsel %vm2796_vm14, %v9244_v13, 0 }
 0x82b   :  { %9201 = vmatpush.bf16.msra.mxu2 %v9189_v47  ;;  %v7930_v5 = vpop.f32.mrf.mxu3  ;;  %v9418_v47 = vld [vmem:[#allocation3 + $0x88] sm:$0xf0] }
 0x82d   :  { %v7888_v34 = vpop.f32.mrf.mxu1 }
 0x82e   :  { %v14062_v57 = vpop.f32.mrf.mxu2  ;;  %v7894_v16 = vadd.f32 %v7888_v34, %v7839_v0  ;;  %v9420_v34 = vpack.c.bf16 %v9418_v47, %v9418_v47 }
 0x82f   :  { %v14064_v27 = vpop.f32.mrf.mxu0 }
 0x830   :  { %10426 = vmatmul.msk.bf16.vlgmr.msra.gmra.mxu1 %vm2792_vm15, %v13771_v12  ;;  %v7936_v44 = vadd.f32 %v7930_v5, %v7894_v16  ;;  %v8978_v5 = vsel %vm2796_vm14, %v8973_v39, 0  ;;  %v9424_v55 = vrot.slane %v9420_v34, 2  ;;  %v14514_v39 = vld [vmem:[#allocation31_spill] sm:$0xff] }
 0x831   :  { %8883 = vmatpush.bf16.msra.mxu1 %v8860_v20  ;;  %v9099_v20 = vrot.slane %v9095_v48, 2  ;;  %v14515_v48 = vld [vmem:[#allocation48_spill] sm:$0xff] }
 0x832   :  { %10441 = vmatmul.msk.bf16.vlgmr.msrb.gmra.mxu0 %vm2792_vm15, %v13776_v18 }
 0x833   :  { %9155 = vmatpush.bf16.msrb.mxu0 %v9143_v23  ;;  %v7932_v43 = vpop.f32.mrf.mxu3  ;;  %v8131_v23 = vadd.f32 %v14028_v7, %v14033_v45  ;;  %v9427_v7 = vsel %vm2796_vm14, %v9424_v55, 0 }
 0x835   :  { %v7890_v37 = vpop.f32.mrf.mxu1  ;;  %v8191_v25 = vadd.f32 %v14064_v27, %v8131_v23 }
 0x836   :  { %v14075_v17 = vpop.f32.mrf.mxu2  ;;  %v7896_v41 = vadd.f32 %v7890_v37, %v7841_v51 }
 0x837   :  { %v14080_v24 = vpop.f32.mrf.mxu0 }
 0x838   :  { %10432 = vmatmul.msk.bf16.vlgmr.msra.gmra.mxu3 %vm2792_vm15, %v13880_v42  ;;  %v7938_v19 = vadd.f32 %v7932_v43, %v7896_v41  ;;  %v8193_v47 = vadd.f32 %v14080_v24, %v8133_v58 }
 0x839   :  { %9039 = vmatpush.bf16.msra.mxu3 %v9016_v52  ;;  %v9053_v52 = vrot.slane %v9049_v62, 2  ;;  %v9591_v62 = vld [vmem:[#allocation3 + $0xc8] sm:$0xf0] }
 0x83a   :  { %10447 = vmatmul.msk.bf16.vlgmr.msrb.gmra.mxu2 %vm2792_vm15, %v13771_v12  ;;  %v8251_v24 = vadd.f32 %v14075_v17, %v8193_v47 }
 0x83b   :  { %9314 = vmatpush.bf16.msrb.mxu2 %v9302_v56  ;;  %v8031_v60 = vpop.f32.mrf.mxu3  ;;  %v9181_v56 = vld [vmem:[#allocation3 + $0x48] sm:$0xf0]  ;;  %v9058_v51 = vsel %vm2796_vm14, %v9053_v52, 0 }
 0x83d   :  { %v7976_v2 = vpop.f32.mrf.mxu1 }
 0x83e   :  { %v14089_v1 = vpop.f32.mrf.mxu2  ;;  %v7982_v10 = vadd.f32 %v7976_v2, %v7936_v44  ;;  %v14513_v44 = vld [vmem:[#allocation47_spill] sm:$0xff] }
 0x83f   :  { %v8272_v8 = vpop.f32.mrf.mxu0  ;;  %v9357_v2 = vsel %vm712_vm7, %v14514_v39, %v14513_v44 }
 0x840   :  { %v8037_v3 = vadd.f32 %v8031_v60, %v7982_v10  ;;  %10430 = vmatmul.msk.bf16.vlgmr.msrb.gmra.mxu1 %vm2792_vm15, %v13805_v50  ;;  %v8249_v60 = vadd.f32 %v14062_v57, %v8191_v25  ;;  %v9183_v10 = vpack.c.bf16 %v9181_v56, %v9181_v56  ;;  %v9360_v13 = vsel %vm2796_vm14, %v9357_v2, 0 }
 0x841   :  { %9001 = vmatpush.bf16.msrb.mxu1 %v8978_v5 }
 0x842   :  { %v8041_v30 = vadd.f32 %v8037_v3, %v12368_v14  ;;  %10445 = vmatmul.msk.bf16.vlgmr.msra.gmra.mxu0 %vm2792_vm15, %v13715_v22  ;;  %v9104_v22 = vsel %vm2796_vm14, %v9099_v20, 0  ;;  %v8291_v28 = vadd.f32 %v8272_v8, %v8249_v60  ;;  %v9187_v41 = vrot.slane %v9183_v10, 2 }
 0x843   :  { %9259 = vmatpush.bf16.msra.mxu0 %v9247_v29  ;;  %v8033_v11 = vpop.f32.mrf.mxu3 }
 0x844   :  { %10636 = vtanh.f32 %v8041_v30  ;;  %v8337_v8 = vadd.f32 %v14089_v1, %v8291_v28  ;;  %v9192_v34 = vsel %vm2796_vm14, %v9187_v41, 0  ;;  %v9414_v1 = vld [vmem:[#allocation3 + $0x88] sm:$0xf] }
 0x845   :  { %v7978_v31 = vpop.f32.mrf.mxu1 }
 0x846   :  { %v14101_v36 = vpop.f32.mrf.mxu2  ;;  %v7984_v4 = vadd.f32 %v7978_v31, %v7938_v19 }
 0x847   :  { %v8274_v37 = vpop.f32.mrf.mxu0 }
 0x848   :  { %v8039_v0 = vadd.f32 %v8033_v11, %v7984_v4  ;;  %10436 = vmatmul.msk.bf16.vlgmr.msrb.gmra.mxu3 %vm2792_vm15, %v13912_v63  ;;  %v9139_v11 = vld [vmem:[#allocation3 + $0x48] sm:$0xf]  ;;  %v8293_v20 = vadd.f32 %v8274_v37, %v8251_v24  ;;  %v9298_v37 = vpop.permute.xlu0 %9297 }
 0x849   :  { %9127 = vmatpush.bf16.msrb.mxu3 %v9104_v22  ;;  %v9141_v53 = vpack.c.bf16 %v9139_v11, %v9139_v11 }
 0x84a   :  { %v10637_v43 = vpop.eup %10636  ;;  %v8043_v59 = vadd.f32 %v8039_v0, %v12715_v61  ;;  %10451 = vmatmul.msk.bf16.vlgmr.msra.gmra.mxu2 %vm2792_vm15, %v13805_v50  ;;  %v9416_v0 = vpack.c.bf16 %v9414_v1, %v9414_v1 }
 0x84b   :  { %v8049_v45 = vsel %vm11193_vm11, %v10637_v43, 0.0  ;;  %9439 = vmatpush.bf16.msra.mxu2 %v9427_v7  ;;  %v14115_v16 = vpop.f32.mrf.mxu3  ;;  %v9146_v25 = vsel %vm2796_vm14, %v9141_v53, 0  ;;  %v14517_v53 = vld [vmem:[#allocation49_spill] sm:$0xff] }
 0x84c   :  { %10394 = vst [vmem:[%s14419_s8 + $0x168] sm:$0xff] %v8049_v45  ;;  %10638 = vtanh.f32 %v8043_v59  ;;  %v9593_v45 = vpack.c.bf16 %v9591_v62, %v9591_v62 }
 0x84d   :  { %v14120_v27 = vpop.f32.mrf.mxu1 }
 0x84e   :  { %v8431_v33 = vpop.f32.mrf.mxu2  ;;  %v9597_v39 = vrot.slane %v9593_v45, 2  ;;  %v14519_v45 = vld [vmem:[#allocation50_spill] sm:$0xff] }
 0x84f   :  { %v8376_v54 = vpop.f32.mrf.mxu0 }
 0x850   :  { %10434 = vmatmul.msk.bf16.vlgmr.msra.gmra.mxu1 %vm2792_vm15, %v13843_v49  ;;  %v8395_v31 = vadd.f32 %v8376_v54, %v8337_v8 }
 0x851   :  { %9081 = vmatpush.bf16.msra.mxu1 %v9058_v51 }
 0x852   :  { %v10639_v9 = vpop.eup %10638  ;;  %10449 = vmatmul.msk.bf16.vlgmr.msrb.gmra.mxu0 %vm2792_vm15, %v13755_v38  ;;  %v14516_v38 = vld [vmem:[#allocation32_spill] sm:$0xff]  ;;  %v8450_v55 = vadd.f32 %v8431_v33, %v8395_v31  ;;  %v9300_v33 = vsel %vm712_vm7, %v14509_v32, %v9298_v37  ;;  %v9600_v32 = vsel %vm2796_vm14, %v9597_v39, 0 }
 0x853   :  { %v8051_v35 = vsel %vm11193_vm11, %v10639_v9, 0.0  ;;  %9372 = vmatpush.bf16.msrb.mxu0 %v9360_v13  ;;  %v14137_v57 = vpop.f32.mrf.mxu3  ;;  %v9509_v29 = vsel %vm566_vm5, %v14516_v38, %v14515_v48  ;;  %v9305_v54 = vsel %vm2796_vm14, %v9300_v33, 0  ;;  %v9243_v9 = vpop.permute.xlu0 %9242  ;;  %v14520_v33 = vld [vmem:[#allocation34_spill] sm:$0xff] }
 0x854   :  { %10396 = vst [vmem:[%s14419_s8 + $0x178] sm:$0xff] %v8051_v35  ;;  %v9512_v19 = vsel %vm2796_vm14, %v9509_v29, 0  ;;  %v9549_v35 = vld [vmem:[#allocation3 + $0xc8] sm:$0xf]  ;;  %v14194_v29 = vld [vmem:[#allocation12 + $0x10] sm:$0xff] }
 0x855   :  { %v14142_v3 = vpop.f32.mrf.mxu1  ;;  %v9551_v24 = vpack.c.bf16 %v9549_v35, %v9549_v35 }
 0x856   :  { %v8433_v5 = vpop.f32.mrf.mxu2 }
 0x857   :  { %v8378_v30 = vpop.f32.mrf.mxu0 }
 0x858   :  { %10444 = vmatmul.msk.bf16.vlgmr.msra.gmra.mxu3 %vm2792_vm15, %v13759_v40  ;;  %v8339_v40 = vadd.f32 %v14101_v36, %v8293_v20  ;;  %v9461_v36 = vsel %vm2796_vm14, %v9416_v0, 0 }
 0x859   :  { %9215 = vmatpush.bf16.msra.mxu3 %v9192_v34 }
 0x85a   :  { %10455 = vmatmul.msk.bf16.vlgmr.msrb.gmra.mxu2 %vm2792_vm15, %v13843_v49  ;;  %v8397_v59 = vadd.f32 %v8378_v30, %v8339_v40  ;;  %v14518_v40 = vld [vmem:[#allocation33_spill] sm:$0xff] }
 0x85b   :  { %9524 = vmatpush.bf16.msrb.mxu2 %v9512_v19  ;;  %v14155_v17 = vpop.f32.mrf.mxu3 }
 0x85c   :  { %v8452_v60 = vadd.f32 %v8433_v5, %v8397_v59 }
 0x85d   :  { %v14157_v23 = vpop.f32.mrf.mxu1 }
 0x85e   :  { %v14159_v4 = vpop.f32.mrf.mxu2 }
 0x85f   :  { %v8489_v22 = vpop.f32.mrf.mxu0 }
 0x860   :  { %v8508_v43 = vadd.f32 %v8489_v22, %v8450_v55  ;;  %10442 = vmatmul.msk.bf16.vlgmr.msrb.gmra.mxu1 %vm2792_vm15, %v13776_v18  ;;  %v9707_v55 = vsel %vm712_vm7, %v14518_v40, %v14517_v53  ;;  %v9356_v22 = vpop.permute.xlu0 %9355 }
 0x861   :  { %9169 = vmatpush.bf16.msrb.mxu1 %v9146_v25  ;;  %v9710_v37 = vsel %vm2796_vm14, %v9707_v55, 0 }
 0x862   :  { %v8512_v7 = vadd.f32 %v8508_v43, %v12368_v14  ;;  %10453 = vmatmul.msk.bf16.vlgmr.msra.gmra.mxu0 %vm2792_vm15, %v13880_v42  ;;  %v8145_v43 = vadd.f32 %v14115_v16, %v14120_v27 }
 0x863   :  { %9473 = vmatpush.bf16.msra.mxu0 %v9461_v36  ;;  %v14169_v52 = vpop.f32.mrf.mxu3 }
 0x864   :  { %10640 = vtanh.f32 %v8512_v7  ;;  %v8192_v59 = vadd.f32 %v14157_v23, %v8145_v43  ;;  %v9358_v7 = vsel %vm712_vm7, %v14513_v44, %v9356_v22  ;;  %v14522_v22 = vld [vmem:[#allocation36_spill] sm:$0xff] }
 0x865   :  { %v14173_v56 = vpop.f32.mrf.mxu1  ;;  %v9363_v16 = vsel %vm2796_vm14, %v9358_v7, 0 }
 0x866   :  { %v14175_v58 = vpop.f32.mrf.mxu2  ;;  %v8250_v27 = vadd.f32 %v14155_v17, %v8192_v59  ;;  %v14271_v59 = vld [vmem:[#allocation12 + $0x18] sm:$0xff] }
 0x867   :  { %v8491_v2 = vpop.f32.mrf.mxu0 }
 0x868   :  { %v8510_v51 = vadd.f32 %v8491_v2, %v8452_v60  ;;  %10448 = vmatmul.msk.bf16.vlgmr.msrb.gmra.mxu3 %vm2792_vm15, %v13771_v12  ;;  %v9245_v12 = vsel %vm712_vm7, %v14511_v26, %v9243_v9  ;;  %v9554_v26 = vsel %vm2796_vm14, %v9551_v24, 0  ;;  %v9652_v60 = vsel %vm566_vm5, %v14520_v33, %v14519_v45  ;;  %v14231_v2 = vld [vmem:[#allocation12 + $0x20] sm:$0xff]  ;;  %v9508_v23 = vpop.permute.xlu0 %9507 }
 0x869   :  { %9328 = vmatpush.bf16.msrb.mxu3 %v9305_v54  ;;  %v9250_v38 = vsel %vm2796_vm14, %v9245_v12, 0  ;;  %v9655_v44 = vsel %vm2796_vm14, %v9652_v60, 0  ;;  %v8147_v54 = vadd.f32 %v14137_v57, %v14142_v3  ;;  %v14521_v12 = vld [vmem:[#allocation35_spill] sm:$0xff] }
 0x86a   :  { %v10641_v10 = vpop.eup %10640  ;;  %v8514_v13 = vadd.f32 %v8510_v51, %v12715_v61  ;;  %10463 = vmatmul.msk.bf16.vlgmr.msra.gmra.mxu2 %vm2792_vm15, %v13776_v18  ;;  %v9419_v18 = vld [vmem:[#allocation3 + $0xb8] sm:$0xf0]  ;;  %v9820_v57 = vsel %vm785_vm8, %v14521_v12, %v12680_v21 }
 0x86b   :  { %v8520_v47 = vsel %vm11189_vm10, %v10641_v10, 0.0  ;;  %9612 = vmatpush.bf16.msra.mxu2 %v9600_v32  ;;  %v8332_v28 = vpop.f32.mrf.mxu3  ;;  %v9421_v30 = vpack.c.bf16 %v9419_v18, %v9419_v18  ;;  %v14238_v10 = vld [vmem:[#allocation12] sm:$0xff]  ;;  %v8194_v9 = vadd.f32 %v14173_v56, %v8147_v54  ;;  %v9415_v56 = vld [vmem:[#allocation3 + $0xb8] sm:$0xf] }
 0x86c   :  { %10415 = vst [vmem:[%s14419_s8 + $0x180] sm:$0xff] %v8520_v47  ;;  %10642 = vtanh.f32 %v8514_v13  ;;  %v9510_v13 = vsel %vm566_vm5, %v14515_v48, %v9508_v23  ;;  %v9823_v48 = vsel %vm2796_vm14, %v9820_v57, 0  ;;  %v10712_v54 = vld [vmem:[#allocation12 + $0x8] sm:$0xff] }
 0x86d   :  { %v8286_v41 = vpop.f32.mrf.mxu1  ;;  %v9425_v20 = vrot.slane %v9421_v30, 2  ;;  %v8252_v18 = vadd.f32 %v14169_v52, %v8194_v9  ;;  %v9550_v9 = vld [vmem:[#allocation3 + $0x48] sm:$0xf] }
 0x86e   :  { %v14191_v5 = vpop.f32.mrf.mxu2  ;;  %v8292_v51 = vadd.f32 %v8286_v41, %v8250_v27  ;;  %v9515_v41 = vsel %vm2796_vm14, %v9510_v13, 0 }
 0x86f   :  { %v8590_v8 = vpop.f32.mrf.mxu0  ;;  %v9430_v62 = vsel %vm2796_vm14, %v9425_v20, 0  ;;  %v9592_v20 = vld [vmem:[#allocation3 + $0x48] sm:$0xf0] }
 0x870   :  { %10446 = vmatmul.msk.bf16.vlgmr.msra.gmra.mxu1 %vm2792_vm15, %v14194_v29  ;;  %v8338_v35 = vadd.f32 %v8332_v28, %v8292_v51  ;;  %v9594_v43 = vpack.c.bf16 %v9592_v20, %v9592_v20 }
 0x871   :  { %9273 = vmatpush.bf16.msra.mxu1 %v9250_v38  ;;  %v8591_v38 = vadd.f32 %v8590_v8, %v14159_v4  ;;  %v9765_v4 = vsel %vm712_vm7, %v14522_v22, %v12696_v15 }
 0x872   :  { %v10643_v34 = vpop.eup %10642  ;;  %10457 = vmatmul.msk.bf16.vlgmr.msrb.gmra.mxu0 %vm2792_vm15, %v13912_v63  ;;  %v9598_v33 = vrot.slane %v9594_v43, 2 }
 0x873   :  { %v8522_v11 = vsel %vm11189_vm10, %v10643_v34, 0.0  ;;  %9566 = vmatpush.bf16.msrb.mxu0 %v9554_v26  ;;  %v8334_v19 = vpop.f32.mrf.mxu3  ;;  %v9417_v26 = vpack.c.bf16 %v9415_v56, %v9415_v56 }
 0x874   :  { %10417 = vst [vmem:[%s14419_s8 + $0x190] sm:$0xff] %v8522_v11  ;;  %v9603_v51 = vsel %vm2796_vm14, %v9598_v33, 0 }
 0x875   :  { %v8288_v31 = vpop.f32.mrf.mxu1 }
 0x876   :  { %v14206_v1 = vpop.f32.mrf.mxu2  ;;  %v8294_v28 = vadd.f32 %v8288_v31, %v8252_v18 }
 0x877   :  { %v14211_v0 = vpop.f32.mrf.mxu0 }
 0x878   :  { %10452 = vmatmul.msk.bf16.vlgmr.msra.gmra.mxu3 %vm2792_vm15, %v13805_v50  ;;  %v8340_v40 = vadd.f32 %v8334_v19, %v8294_v28 }
 0x879   :  { %9453 = vmatpush.bf16.msra.mxu3 %v9430_v62 }
 0x87a   :  { %10467 = vmatmul.msk.bf16.vlgmr.msrb.gmra.mxu2 %vm2792_vm15, %v14194_v29 }
 0x87b   :  { %9722 = vmatpush.bf16.msrb.mxu2 %v9710_v37  ;;  %v8445_v25 = vpop.f32.mrf.mxu3  ;;  %v9464_v37 = vsel %vm2796_vm14, %v9417_v26, 0 }
 0x87d   :  { %v8390_v36 = vpop.f32.mrf.mxu1 }
 0x87e   :  { %v14224_v50 = vpop.f32.mrf.mxu2  ;;  %v8396_v24 = vadd.f32 %v8390_v36, %v8338_v35  ;;  %v9552_v35 = vpack.c.bf16 %v9550_v9, %v9550_v9 }
 0x87f   :  { %v8670_v39 = vpop.f32.mrf.mxu0 }
 0x880   :  { %10450 = vmatmul.msk.bf16.vlgmr.msrb.gmra.mxu1 %vm2792_vm15, %v14231_v2  ;;  %v8451_v34 = vadd.f32 %v8445_v25, %v8396_v24  ;;  %v9768_v25 = vsel %vm2796_vm14, %v9765_v4, 0 }
 0x881   :  { %9386 = vmatpush.bf16.msrb.mxu1 %v9363_v16 }
 0x882   :  { %10465 = vmatmul.msk.bf16.vlgmr.msra.gmra.mxu0 %vm2792_vm15, %v14238_v10 }
 0x883   :  { %9667 = vmatpush.bf16.msra.mxu0 %v9655_v44  ;;  %v8447_v17 = vpop.f32.mrf.mxu3 }
 0x885   :  { %v8392_v32 = vpop.f32.mrf.mxu1 }
 0x886   :  { %v14245_v47 = vpop.f32.mrf.mxu2  ;;  %v8398_v31 = vadd.f32 %v8392_v32, %v8340_v40  ;;  %v9706_v32 = vpop.permute.xlu0 %9705 }
 0x887   :  { %v8672_v3 = vpop.f32.mrf.mxu0 }
 0x888   :  { %10456 = vmatmul.msk.bf16.vlgmr.msrb.gmra.mxu3 %vm2792_vm15, %v13843_v49  ;;  %v8647_v49 = vadd.f32 %v14191_v5, %v8591_v38  ;;  %v8593_v5 = vadd.f32 %v14211_v0, %v14175_v58  ;;  %v8453_v36 = vadd.f32 %v8447_v17, %v8398_v31 }
 0x889   :  { %9538 = vmatpush.bf16.msrb.mxu3 %v9515_v41 }
 0x88a   :  { %10471 = vmatmul.msk.bf16.vlgmr.msra.gmra.mxu2 %vm2792_vm15, %v14231_v2  ;;  %v8689_v19 = vadd.f32 %v8670_v39, %v8647_v49  ;;  %v8649_v27 = vadd.f32 %v14206_v1, %v8593_v5 }
 0x88b   :  { %9835 = vmatpush.bf16.msra.mxu2 %v9823_v48  ;;  %v14258_v30 = vpop.f32.mrf.mxu3  ;;  %v9557_v48 = vsel %vm2796_vm14, %v9552_v35, 0 }
 0x88c   :  { %v8735_v44 = vadd.f32 %v14224_v50, %v8689_v19  ;;  %v8691_v13 = vadd.f32 %v8672_v3, %v8649_v27 }
 0x88d   :  { %v8503_v52 = vpop.f32.mrf.mxu1 }
 0x88e   :  { %v8813_v11 = vpop.f32.mrf.mxu2  ;;  %v8509_v55 = vadd.f32 %v8503_v52, %v8451_v34  ;;  %v8737_v41 = vadd.f32 %v14245_v47, %v8691_v13  ;;  %v14300_v47 = vld [vmem:[#allocation12 + $0x28] sm:$0xff]  ;;  %v9708_v52 = vsel %vm712_vm7, %v14517_v53, %v9706_v32  ;;  %v9651_v49 = vpop.permute.xlu0 %9650 }
 0x88f   :  { %v8758_v8 = vpop.f32.mrf.mxu0  ;;  %v9713_v22 = vsel %vm2796_vm14, %v9708_v52, 0 }
 0x890   :  { %v8513_v62 = vadd.f32 %v8509_v55, %v12368_v14  ;;  %10454 = vmatmul.msk.bf16.vlgmr.msra.gmra.mxu1 %vm2792_vm15, %v13880_v42  ;;  %v8777_v1 = vadd.f32 %v8758_v8, %v8735_v44 }
 0x891   :  { %9487 = vmatpush.bf16.msra.mxu1 %v9464_v37  ;;  %v9653_v37 = vsel %vm566_vm5, %v14519_v45, %v9651_v49 }
 0x892   :  { %10644 = vtanh.f32 %v8513_v62  ;;  %10469 = vmatmul.msk.bf16.vlgmr.msrb.gmra.mxu0 %vm2792_vm15, %v14271_v59  ;;  %v8832_v18 = vadd.f32 %v8813_v11, %v8777_v1 }
 0x893   :  { %9780 = vmatpush.bf16.msrb.mxu0 %v9768_v25  ;;  %v14275_v7 = vpop.f32.mrf.mxu3 }
 0x895   :  { %v8505_v60 = vpop.f32.mrf.mxu1 }
 0x896   :  { %v8815_v16 = vpop.f32.mrf.mxu2  ;;  %v8511_v23 = vadd.f32 %v8505_v60, %v8453_v36  ;;  %v9819_v19 = vpop.permute.xlu0 %9818  ;;  %v14323_v36 = vld [vmem:[#allocation12 + $0x38] sm:$0xff] }
 0x897   :  { %v8760_v58 = vpop.f32.mrf.mxu0  ;;  %v9821_v60 = vsel %vm785_vm8, %v12680_v21, %v9819_v19 }
 0x898   :  { %v10645_v0 = vpop.eup %10644  ;;  %v8515_v39 = vadd.f32 %v8511_v23, %v12715_v61  ;;  %10464 = vmatmul.msk.bf16.vlgmr.msra.gmra.mxu3 %vm2792_vm15, %v10712_v54  ;;  %v8779_v38 = vadd.f32 %v8760_v58, %v8737_v41  ;;  %v9826_v23 = vsel %vm2796_vm14, %v9821_v60, 0 }
 0x899   :  { %v8521_v17 = vsel %vm11193_vm11, %v10645_v0, 0.0  ;;  %9626 = vmatpush.bf16.msra.mxu3 %v9603_v51 }
 0x89a   :  { %10416 = vst [vmem:[%s14419_s8 + $0x188] sm:$0xff] %v8521_v17  ;;  %10646 = vtanh.f32 %v8515_v39  ;;  %10475 = vmatmul.msk.bf16.vlgmr.msrb.gmra.mxu2 %vm2792_vm15, %v13880_v42  ;;  %v8834_v40 = vadd.f32 %v8815_v16, %v8779_v38 }
 0x89b   :  { %v14289_v50 = vpop.f32.mrf.mxu3 }
 0x89d   :  { %v8604_v12 = vpop.f32.mrf.mxu1 }
 0x89e   :  { %v8926_v57 = vpop.f32.mrf.mxu2  ;;  %v9764_v58 = vpop.permute.xlu0 %9763  ;;  %v8605_v21 = vadd.f32 %v8604_v12, %v14258_v30 }
 0x89f   :  { %v8871_v24 = vpop.f32.mrf.mxu0  ;;  %v9766_v39 = vsel %vm712_vm7, %v12696_v15, %v9764_v58 }
 0x8a0   :  { %v10647_v3 = vpop.eup %10646  ;;  %v8890_v56 = vadd.f32 %v8871_v24, %v8832_v18  ;;  %10458 = vmatmul.msk.bf16.vlgmr.msrb.gmra.mxu1 %vm2792_vm15, %v13912_v63  ;;  %v9771_v9 = vsel %vm2796_vm14, %v9766_v39, 0  ;;  %v8648_v13 = vadd.f32 %v14289_v50, %v8605_v21  ;;  %v10715_v18 = vld [vmem:[#allocation12 + $0x30] sm:$0xff] }
 0x8a1   :  { %v8523_v42 = vsel %vm11193_vm11, %v10647_v3, 0.0  ;;  %9580 = vmatpush.bf16.msrb.mxu1 %v9557_v48 }
 0x8a2   :  { %10418 = vst [vmem:[%s14419_s8 + $0x198] sm:$0xff] %v8523_v42  ;;  %v8945_v28 = vadd.f32 %v8926_v57, %v8890_v56  ;;  %10473 = vmatmul.msk.bf16.vlgmr.msra.gmra.mxu0 %vm2792_vm15, %v14300_v47 }
 0x8a3   :  { %v8644_v34 = vpop.f32.mrf.mxu3 }
 0x8a4   :  { %v8949_v26 = vadd.f32 %v8945_v28, %v12368_v14 }
 0x8a5   :  { %v8606_v11 = vpop.f32.mrf.mxu1 }
 0x8a6   :  { %v8928_v20 = vpop.f32.mrf.mxu2  ;;  %10648 = vtanh.f32 %v8949_v26  ;;  %v8607_v32 = vadd.f32 %v8606_v11, %v14275_v7 }
 0x8a7   :  { %v8873_v55 = vpop.f32.mrf.mxu0 }
 0x8a8   :  { %v8892_v4 = vadd.f32 %v8873_v55, %v8834_v40  ;;  %10468 = vmatmul.msk.bf16.vlgmr.msrb.gmra.mxu3 %vm2792_vm15, %v14194_v29  ;;  %v8650_v15 = vadd.f32 %v8644_v34, %v8607_v32 }
 0x8a9   :  { %9736 = vmatpush.bf16.msrb.mxu3 %v9713_v22 }
 0x8aa   :  { %v8947_v8 = vadd.f32 %v8928_v20, %v8892_v4  ;;  %10479 = vmatmul.msk.bf16.vlgmr.msra.gmra.mxu2 %vm2792_vm15, %v13912_v63  ;;  %v9658_v63 = vsel %vm2796_vm14, %v9653_v37, 0  ;;  %v10716_v4 = vld [vmem:[#allocation12 + $0x40] sm:$0xff] }
 0x8ab   :  { %v8730_v31 = vpop.f32.mrf.mxu3 }
 0x8ac   :  { %v10649_v62 = vpop.eup %10648  ;;  %v8951_v53 = vadd.f32 %v8947_v8, %v12715_v61 }
 0x8ad   :  { %v8957_v43 = vsel %vm11189_vm10, %v10649_v62, 0.0  ;;  %v8684_v25 = vpop.f32.mrf.mxu1 }
 0x8ae   :  { %v9027_v5 = vpop.f32.mrf.mxu2  ;;  %10437 = vst [vmem:[%s14419_s8 + $0x1a0] sm:$0xff] %v8957_v43  ;;  %10650 = vtanh.f32 %v8951_v53 }
 0x8af   :  { %v8989_v29 = vpop.f32.mrf.mxu0 }
 0x8b0   :  { %10466 = vmatmul.msk.bf16.vlgmr.msra.gmra.mxu1 %vm2792_vm15, %v14238_v10  ;;  %v9028_v49 = vadd.f32 %v9027_v5, %v8989_v29 }
 0x8b1   :  { %9681 = vmatpush.bf16.msra.mxu1 %v9658_v63 }
 0x8b2   :  { %10477 = vmatmul.msk.bf16.vlgmr.msrb.gmra.mxu0 %vm2792_vm15, %v14323_v36 }
 0x8b3   :  { %v8732_v45 = vpop.f32.mrf.mxu3 }
 0x8b4   :  { %v10651_v33 = vpop.eup %10650 }
 0x8b5   :  { %v8959_v16 = vsel %vm11189_vm10, %v10651_v33, 0.0  ;;  %v8686_v27 = vpop.f32.mrf.mxu1 }
 0x8b6   :  { %v9029_v44 = vpop.f32.mrf.mxu2  ;;  %10439 = vst [vmem:[%s14419_s8 + $0x1b0] sm:$0xff] %v8959_v16  ;;  %v8692_v24 = vadd.f32 %v8686_v27, %v8650_v15 }
 0x8b7   :  { %v8991_v10 = vpop.f32.mrf.mxu0 }
 0x8b8   :  { %10472 = vmatmul.msk.bf16.vlgmr.msra.gmra.mxu3 %vm2792_vm15, %v14231_v2  ;;  %v8690_v2 = vadd.f32 %v8684_v25, %v8648_v13  ;;  %v9030_v25 = vadd.f32 %v9029_v44, %v8991_v10 }
 0x8b9   :  { %9849 = vmatpush.bf16.msra.mxu3 %v9826_v23 }
 0x8ba   :  { %v8736_v12 = vadd.f32 %v8730_v31, %v8690_v2 }
 0x8bb   :  { %v8827_v0 = vpop.f32.mrf.mxu3 }
 0x8bd   :  { %v8772_v54 = vpop.f32.mrf.mxu1 }
 0x8be   :  { %v9115_v51 = vpop.f32.mrf.mxu2  ;;  %v8778_v41 = vadd.f32 %v8772_v54, %v8736_v12 }
 0x8bf   :  { %v9069_v17 = vpop.f32.mrf.mxu0 }
 0x8c0   :  { %10470 = vmatmul.msk.bf16.vlgmr.msrb.gmra.mxu1 %vm2792_vm15, %v14271_v59  ;;  %v8833_v50 = vadd.f32 %v8827_v0, %v8778_v41  ;;  %v8738_v59 = vadd.f32 %v8732_v45, %v8692_v24  ;;  %v9088_v31 = vadd.f32 %v9069_v17, %v9028_v49 }
 0x8c1   :  { %9794 = vmatpush.bf16.msrb.mxu1 %v9771_v9 }
 0x8c2   :  { %v9134_v5 = vadd.f32 %v9115_v51, %v9088_v31 }
 0x8c3   :  { %v8829_v1 = vpop.f32.mrf.mxu3 }
 0x8c5   :  { %v8774_v35 = vpop.f32.mrf.mxu1 }
 0x8c6   :  { %v9117_v30 = vpop.f32.mrf.mxu2  ;;  %v8780_v28 = vadd.f32 %v8774_v35, %v8738_v59 }
 0x8c7   :  { %v9071_v57 = vpop.f32.mrf.mxu0 }
 0x8c8   :  { %10476 = vmatmul.msk.bf16.vlgmr.msrb.gmra.mxu3 %vm2792_vm15, %v10715_v18  ;;  %v8835_v52 = vadd.f32 %v8829_v1, %v8780_v28  ;;  %v9090_v19 = vadd.f32 %v9071_v57, %v9030_v25 }
 0x8ca   :  { %v9136_v23 = vadd.f32 %v9117_v30, %v9090_v19 }
 0x8cb   :  { %v8940_v3 = vpop.f32.mrf.mxu3 }
 0x8cd   :  { %v8885_v56 = vpop.f32.mrf.mxu1 }
 0x8ce   :  { %v9203_v48 = vpop.f32.mrf.mxu2  ;;  %v8891_v42 = vadd.f32 %v8885_v56, %v8833_v50 }
 0x8cf   :  { %v9157_v38 = vpop.f32.mrf.mxu0 }
 0x8d0   :  { %v8946_v26 = vadd.f32 %v8940_v3, %v8891_v42  ;;  %10474 = vmatmul.msk.bf16.vlgmr.msra.gmra.mxu1 %vm2792_vm15, %v14300_v47  ;;  %v9176_v45 = vadd.f32 %v9157_v38, %v9134_v5 }
 0x8d2   :  { %v8950_v7 = vadd.f32 %v8946_v26, %v12368_v14  ;;  %v9222_v44 = vadd.f32 %v9203_v48, %v9176_v45 }
 0x8d3   :  { %v8942_v34 = vpop.f32.mrf.mxu3 }
 0x8d4   :  { %10652 = vtanh.f32 %v8950_v7 }
 0x8d5   :  { %v8887_v11 = vpop.f32.mrf.mxu1 }
 0x8d6   :  { %v9205_v20 = vpop.f32.mrf.mxu2  ;;  %v8893_v40 = vadd.f32 %v8887_v11, %v8835_v52 }
 0x8d7   :  { %v9159_v55 = vpop.f32.mrf.mxu0 }
 0x8d8   :  { %v8948_v22 = vadd.f32 %v8942_v34, %v8893_v40  ;;  %10480 = vmatmul.msk.bf16.vlgmr.msra.gmra.mxu3 %vm2792_vm15, %v10716_v4  ;;  %v9178_v58 = vadd.f32 %v9159_v55, %v9136_v23 }
 0x8da   :  { %v10653_v8 = vpop.eup %10652  ;;  %v8952_v62 = vadd.f32 %v8948_v22, %v12715_v61  ;;  %v9224_v54 = vadd.f32 %v9205_v20, %v9178_v58 }
 0x8db   :  { %v8958_v47 = vsel %vm11193_vm11, %v10653_v8, 0.0  ;;  %v9041_v53 = vpop.f32.mrf.mxu3 }
 0x8dc   :  { %10438 = vst [vmem:[%s14419_s8 + $0x1a8] sm:$0xff] %v8958_v47  ;;  %10654 = vtanh.f32 %v8952_v62 }
 0x8dd   :  { %v9003_v37 = vpop.f32.mrf.mxu1 }
 0x8de   :  { %v9316_v43 = vpop.f32.mrf.mxu2  ;;  %v9042_v7 = vadd.f32 %v9041_v53, %v9003_v37 }
 0x8df   :  { %v9261_v29 = vpop.f32.mrf.mxu0 }
 0x8e0   :  { %10478 = vmatmul.msk.bf16.vlgmr.msrb.gmra.mxu1 %vm2792_vm15, %v14323_v36  ;;  %v9280_v0 = vadd.f32 %v9261_v29, %v9222_v44 }
 0x8e2   :  { %v10655_v63 = vpop.eup %10654  ;;  %v9335_v51 = vadd.f32 %v9316_v43, %v9280_v0 }
 0x8e3   :  { %v8960_v33 = vsel %vm11193_vm11, %v10655_v63, 0.0  ;;  %v9043_v60 = vpop.f32.mrf.mxu3 }
 0x8e4   :  { %10440 = vst [vmem:[%s14419_s8 + $0x1b8] sm:$0xff] %v8960_v33 }
 0x8e5   :  { %v9005_v16 = vpop.f32.mrf.mxu1 }
 0x8e6   :  { %v9318_v27 = vpop.f32.mrf.mxu2  ;;  %v9044_v55 = vadd.f32 %v9043_v60, %v9005_v16 }
 0x8e7   :  { %v9263_v10 = vpop.f32.mrf.mxu0 }
 0x8e8   :  { %v9282_v13 = vadd.f32 %v9263_v10, %v9224_v54 }
 0x8ea   :  { %v9337_v12 = vadd.f32 %v9318_v27, %v9282_v13 }
 0x8eb   :  { %v9129_v21 = vpop.f32.mrf.mxu3 }
 0x8ed   :  { %v9083_v36 = vpop.f32.mrf.mxu1 }
 0x8ee   :  { %v9441_v39 = vpop.f32.mrf.mxu2  ;;  %v9089_v52 = vadd.f32 %v9083_v36, %v9042_v7 }
 0x8ef   :  { %v9374_v17 = vpop.f32.mrf.mxu0 }
 0x8f0   :  { %v9393_v9 = vadd.f32 %v9374_v17, %v9335_v51  ;;  %v9135_v40 = vadd.f32 %v9129_v21, %v9089_v52 }
 0x8f2   :  { %v9397_v2 = vadd.f32 %v9393_v9, %v12368_v14 }
 0x8f3   :  { %v9131_v1 = vpop.f32.mrf.mxu3 }
 0x8f4   :  { %10656 = vtanh.f32 %v9397_v2 }
 0x8f5   :  { %v9085_v32 = vpop.f32.mrf.mxu1 }
 0x8f6   :  { %v9443_v35 = vpop.f32.mrf.mxu2  ;;  %v9091_v8 = vadd.f32 %v9085_v32, %v9044_v55 }
 0x8f7   :  { %v9376_v30 = vpop.f32.mrf.mxu0 }
 0x8f8   :  { %v9395_v57 = vadd.f32 %v9376_v30, %v9337_v12  ;;  %v9137_v25 = vadd.f32 %v9131_v1, %v9091_v8 }
 0x8fa   :  { %v10657_v15 = vpop.eup %10656  ;;  %v9399_v41 = vadd.f32 %v9395_v57, %v12715_v61 }
 0x8fb   :  { %v9405_v18 = vsel %vm11189_vm10, %v10657_v15, 0.0  ;;  %v9217_v24 = vpop.f32.mrf.mxu3 }
 0x8fc   :  { %10459 = vst [vmem:[%s14419_s8 + $0x1c0] sm:$0xff] %v9405_v18  ;;  %10658 = vtanh.f32 %v9399_v41 }
 0x8fd   :  { %v9171_v3 = vpop.f32.mrf.mxu1 }
 0x8fe   :  { %v9526_v50 = vpop.f32.mrf.mxu2  ;;  %v9177_v22 = vadd.f32 %v9171_v3, %v9135_v40 }
 0x8ff   :  { %v9475_v56 = vpop.f32.mrf.mxu0 }
 0x900   :  { %v9223_v47 = vadd.f32 %v9217_v24, %v9177_v22  ;;  %v9476_v29 = vadd.f32 %v9475_v56, %v9441_v39 }
 0x902   :  { %v10659_v48 = vpop.eup %10658  ;;  %v9545_v33 = vadd.f32 %v9526_v50, %v9476_v29 }
 0x903   :  { %v9407_v59 = vsel %vm11189_vm10, %v10659_v48, 0.0  ;;  %v9219_v42 = vpop.f32.mrf.mxu3 }
 0x904   :  { %10461 = vst [vmem:[%s14419_s8 + $0x1d0] sm:$0xff] %v9407_v59 }
 0x905   :  { %v9173_v38 = vpop.f32.mrf.mxu1 }
 0x906   :  { %v9528_v28 = vpop.f32.mrf.mxu2  ;;  %v9179_v63 = vadd.f32 %v9173_v38, %v9137_v25 }
 0x907   :  { %v9477_v26 = vpop.f32.mrf.mxu0 }
 0x908   :  { %v9225_v27 = vadd.f32 %v9219_v42, %v9179_v63  ;;  %v9478_v10 = vadd.f32 %v9477_v26, %v9443_v35 }
 0x90a   :  { %v9547_v39 = vadd.f32 %v9528_v28, %v9478_v10 }
 0x90b   :  { %v9330_v34 = vpop.f32.mrf.mxu3 }
 0x90d   :  { %v9275_v11 = vpop.f32.mrf.mxu1 }
 0x90e   :  { %v9614_v20 = vpop.f32.mrf.mxu2  ;;  %v9281_v5 = vadd.f32 %v9275_v11, %v9223_v47 }
 0x90f   :  { %v9568_v49 = vpop.f32.mrf.mxu0 }
 0x910   :  { %v9336_v53 = vadd.f32 %v9330_v34, %v9281_v5  ;;  %v9587_v58 = vadd.f32 %v9568_v49, %v9545_v33 }
 0x912   :  { %v9633_v51 = vadd.f32 %v9614_v20, %v9587_v58 }
 0x913   :  { %v9332_v4 = vpop.f32.mrf.mxu3 }
 0x915   :  { %v9277_v31 = vpop.f32.mrf.mxu1 }
 0x916   :  { %v9616_v62 = vpop.f32.mrf.mxu2  ;;  %v9283_v60 = vadd.f32 %v9277_v31, %v9225_v27 }
 0x917   :  { %v9570_v43 = vpop.f32.mrf.mxu0 }
 0x918   :  { %v9338_v21 = vadd.f32 %v9332_v4, %v9283_v60  ;;  %v9589_v32 = vadd.f32 %v9570_v43, %v9547_v39 }
 0x91a   :  { %v9635_v15 = vadd.f32 %v9616_v62, %v9589_v32 }
 0x91b   :  { %v9455_v19 = vpop.f32.mrf.mxu3 }
 0x91d   :  { %v9388_v37 = vpop.f32.mrf.mxu1 }
 0x91e   :  { %v9724_v45 = vpop.f32.mrf.mxu2  ;;  %v9394_v23 = vadd.f32 %v9388_v37, %v9336_v53 }
 0x91f   :  { %v9669_v44 = vpop.f32.mrf.mxu0 }
 0x920   :  { %v9398_v16 = vadd.f32 %v9394_v23, %v12368_v14  ;;  %v9688_v35 = vadd.f32 %v9669_v44, %v9633_v51 }
 0x922   :  { %10660 = vtanh.f32 %v9398_v16  ;;  %v9743_v41 = vadd.f32 %v9724_v45, %v9688_v35 }
 0x923   :  { %v9457_v0 = vpop.f32.mrf.mxu3 }
 0x925   :  { %v9390_v36 = vpop.f32.mrf.mxu1 }
 0x926   :  { %v9726_v54 = vpop.f32.mrf.mxu2  ;;  %v9396_v17 = vadd.f32 %v9390_v36, %v9338_v21 }
 0x927   :  { %v9671_v9 = vpop.f32.mrf.mxu0 }
 0x928   :  { %v10661_v13 = vpop.eup %10660  ;;  %v9400_v2 = vadd.f32 %v9396_v17, %v12715_v61  ;;  %v9690_v56 = vadd.f32 %v9671_v9, %v9635_v15 }
 0x929   :  { %v9406_v1 = vsel %vm11193_vm11, %v10661_v13, 0.0 }
 0x92a   :  { %10460 = vst [vmem:[%s14419_s8 + $0x1c8] sm:$0xff] %v9406_v1  ;;  %10662 = vtanh.f32 %v9400_v2  ;;  %v9745_v28 = vadd.f32 %v9726_v54, %v9690_v56 }
 0x92b   :  { %v9540_v12 = vpop.f32.mrf.mxu3 }
 0x92d   :  { %v9489_v30 = vpop.f32.mrf.mxu1 }
 0x92e   :  { %v9837_v57 = vpop.f32.mrf.mxu2  ;;  %v9490_v47 = vadd.f32 %v9489_v30, %v9455_v19 }
 0x92f   :  { %v9782_v18 = vpop.f32.mrf.mxu0 }
 0x930   :  { %v10663_v24 = vpop.eup %10662  ;;  %v9801_v3 = vadd.f32 %v9782_v18, %v9743_v41  ;;  %v9546_v25 = vadd.f32 %v9540_v12, %v9490_v47 }
 0x931   :  { %v9408_v50 = vsel %vm11193_vm11, %v10663_v24, 0.0 }
 0x932   :  { %10462 = vst [vmem:[%s14419_s8 + $0x1d8] sm:$0xff] %v9408_v50  ;;  %v9856_v48 = vadd.f32 %v9837_v57, %v9801_v3 }
 0x933   :  { %v9542_v59 = vpop.f32.mrf.mxu3 }
 0x934   :  { %v9860_v42 = vadd.f32 %v9856_v48, %v12368_v14 }
 0x935   :  { %v9491_v38 = vpop.f32.mrf.mxu1 }
 0x936   :  { %10664 = vtanh.f32 %v9860_v42  ;;  %v9839_v7 = vpop.f32.mrf.mxu2  ;;  %v9492_v63 = vadd.f32 %v9491_v38, %v9457_v0 }
 0x937   :  { %v9784_v26 = vpop.f32.mrf.mxu0 }
 0x938   :  { %v9803_v34 = vadd.f32 %v9784_v26, %v9745_v28  ;;  %v9548_v45 = vadd.f32 %v9542_v59, %v9492_v63 }
 0x93a   :  { %v9858_v52 = vadd.f32 %v9839_v7, %v9803_v34 }
 0x93b   :  { %v9628_v11 = vpop.f32.mrf.mxu3 }
 0x93c   :  { %v10665_v20 = vpop.eup %10664  ;;  %v9862_v49 = vadd.f32 %v9858_v52, %v12715_v61 }
 0x93d   :  { %v9868_v40 = vsel %vm11189_vm10, %v10665_v20, 0.0  ;;  %v9582_v55 = vpop.f32.mrf.mxu1 }
 0x93e   :  { %10481 = vst [vmem:[%s14419_s8 + $0x1e0] sm:$0xff] %v9868_v40  ;;  %10666 = vtanh.f32 %v9862_v49  ;;  %v9588_v5 = vadd.f32 %v9582_v55, %v9546_v25 }
 0x940   :  { %v9634_v37 = vadd.f32 %v9628_v11, %v9588_v5 }
 0x943   :  { %v9630_v22 = vpop.f32.mrf.mxu3 }
 0x944   :  { %v10667_v4 = vpop.eup %10666 }
 0x945   :  { %v9870_v8 = vsel %vm11189_vm10, %v10667_v4, 0.0  ;;  %v9584_v31 = vpop.f32.mrf.mxu1 }
 0x946   :  { %10483 = vst [vmem:[%s14419_s8 + $0x1f0] sm:$0xff] %v9870_v8  ;;  %v9590_v27 = vadd.f32 %v9584_v31, %v9548_v45 }
 0x948   :  { %v9636_v60 = vadd.f32 %v9630_v22, %v9590_v27 }
 0x94b   :  { %v9738_v62 = vpop.f32.mrf.mxu3 }
 0x94d   :  { %v9683_v43 = vpop.f32.mrf.mxu1 }
 0x94e   :  { %v9689_v33 = vadd.f32 %v9683_v43, %v9634_v37 }
 0x950   :  { %v9744_v23 = vadd.f32 %v9738_v62, %v9689_v33 }
 0x953   :  { %v9740_v29 = vpop.f32.mrf.mxu3 }
 0x955   :  { %v9685_v53 = vpop.f32.mrf.mxu1 }
 0x956   :  { %v9691_v10 = vadd.f32 %v9685_v53, %v9636_v60 }
 0x958   :  { %v9746_v19 = vadd.f32 %v9740_v29, %v9691_v10 }
 0x95b   :  { %v9851_v44 = vpop.f32.mrf.mxu3 }
 0x95d   :  { %v9796_v46 = vpop.f32.mrf.mxu1 }
 0x95e   :  { %v9802_v16 = vadd.f32 %v9796_v46, %v9744_v23 }
 0x960   :  { %v9857_v58 = vadd.f32 %v9851_v44, %v9802_v16 }
 0x962   :  { %v9861_v21 = vadd.f32 %v9857_v58, %v12368_v14 }
 0x963   :  { %v9853_v39 = vpop.f32.mrf.mxu3 }
 0x964   :  { %10668 = vtanh.f32 %v9861_v21 }
 0x965   :  { %v9798_v36 = vpop.f32.mrf.mxu1 }
 0x966   :  { %v9804_v54 = vadd.f32 %v9798_v36, %v9746_v19 }
 0x968   :  { %v9859_v0 = vadd.f32 %v9853_v39, %v9804_v54 }
 0x96a   :  { %v10669_v51 = vpop.eup %10668  ;;  %v9863_v17 = vadd.f32 %v9859_v0, %v12715_v61 }
 0x96b   :  { %v9869_v9 = vsel %vm11193_vm11, %v10669_v51, 0.0 }
 0x96c   :  { %10482 = vst [vmem:[%s14419_s8 + $0x1e8] sm:$0xff] %v9869_v9  ;;  %10670 = vtanh.f32 %v9863_v17 }
 0x972   :  { %v10671_v13 = vpop.eup %10670 }
 0x973   :  { %v9871_v14 = vsel %vm11193_vm11, %v10671_v13, 0.0 }
 0x974   :  { %10484 = vst [vmem:[%s14419_s8 + $0x1f8] sm:$0xff] %v9871_v14 }
 0x975   :  { %9881 = vsyncpa [#allocation5], 1 }
 0x976   :  { %9882 = vsyncpa [#allocation7], 1 }
 0x977   :  { %9883 = vsyncpa [#allocation10], 1 }
 0x978   :  { %9884 = vsyncpa [#allocation13], 1 }

</bundles_post_ra>
